<compile_context>
chip_gen: v7x
topology: tpu7x:2x2x1
jax: 0.10.0
libtpu: 0.0.40
codegen_flags: <defaults>
</compile_context>

<pallas_src>
import functools

import jax
import jax.numpy as jnp
from jax import lax
from jax.experimental import pallas as pl
from jax.experimental.pallas import tpu as pltpu

EPS = 1e-5              # nn.BatchNorm2d default eps
NEG_SLOPE = 0.1         # nn.LeakyReLU(negative_slope=0.1)
LANE = 128
ACT_DTYPE = jnp.bfloat16              # inter-kernel activation storage dtype
_VMEM_LIMIT = 32 * 1024 * 1024        # explicit scoped-VMEM budget (safe v5e/v6e/v7x)
_BLOCK_BYTE_BUDGET = 6 * 1024 * 1024  # per-grid-step working-set target


def _round_up(x, m):
    return ((x + m - 1) // m) * m


def _compiler_params(dims):
    return pltpu.CompilerParams(dimension_semantics=dims,
                                vmem_limit_bytes=_VMEM_LIMIT)


# --------------------------------------------------------------------------
# BatchNorm finalize: (sum, sumsq, gamma, beta) -> (scale, bias) with
# bn(x) == x * scale + bias.
# NOTE: single-pass E[x^2]-E[x]^2 in f32 (clamped at 0).  Intentional precision
# choice: it avoids a second full read of the activation; it can deviate
# slightly from PyTorch BN for pathological |mean|/std ratios.
# --------------------------------------------------------------------------

def _bn_finalize_kernel(sum_ref, sq_ref, g_ref, b_ref, scale_ref, bias_ref, *,
                        inv_m):
    mean = sum_ref[...] * inv_m
    var = jnp.maximum(sq_ref[...] * inv_m - mean * mean, 0.0)
    scl = g_ref[...] * lax.rsqrt(var + EPS)
    scale_ref[...] = scl
    bias_ref[...] = b_ref[...] - mean * scl


def bn_finalize(csum, csq, gamma, beta, count):
    cp = csum.shape[-1]
    spec = pl.BlockSpec((1, cp), lambda i: (0, 0))
    return pl.pallas_call(
        functools.partial(_bn_finalize_kernel, inv_m=1.0 / float(count)),
        grid=(1,),
        in_specs=[spec, spec, spec, spec],
        out_specs=(spec, spec),
        out_shape=(jax.ShapeDtypeStruct((1, cp), jnp.float32),
                   jax.ShapeDtypeStruct((1, cp), jnp.float32)),
        compiler_params=_compiler_params(("arbitrary",)),
    )(csum, csq, gamma, beta)


# --------------------------------------------------------------------------
# Standalone BN batch-statistics kernel — used ONLY for the very first bn1
# (its input is the NetworkBlock input, not one of our conv outputs).
# --------------------------------------------------------------------------

def _bn_stats_kernel(x_ref, g_ref, b_ref, scale_ref, bias_ref,
                     sum_scr, sq_scr, *, inv_m):
    i = pl.program_id(0)

    @pl.when(i == 0)
    def _init():
        sum_scr[...] = jnp.zeros_like(sum_scr)
        sq_scr[...] = jnp.zeros_like(sq_scr)

    x = x_ref[...].astype(jnp.float32)                  # (tm, Cpad)
    sum_scr[...] += jnp.sum(x, axis=0, keepdims=True)
    sq_scr[...] += jnp.sum(x * x, axis=0, keepdims=True)

    @pl.when(i == pl.num_programs(0) - 1)
    def _finalize():
        mean = sum_scr[...] * inv_m
        var = jnp.maximum(sq_scr[...] * inv_m - mean * mean, 0.0)
        scl = g_ref[...] * lax.rsqrt(var + EPS)
        scale_ref[...] = scl
        bias_ref[...] = b_ref[...] - mean * scl


def bn_scale_bias(x2, gamma, beta):
    """x2: [M, Cpad] (bf16), gamma/beta: [1, Cpad] f32 -> two [1, Cpad] f32.

    Rows are zero-padded to a tile multiple (zero rows add nothing to sum or
    sumsq; the mean divides by the TRUE row count), and the row tile is capped
    by a byte budget, so awkward M never produces an oversized VMEM block."""
    m, cp = x2.shape
    inv_m = 1.0 / float(m)
    bytes_per_row = cp * x2.dtype.itemsize
    max_rows = max(8, (_BLOCK_BYTE_BUDGET // 4 // bytes_per_row) // 8 * 8)
    tm = min(1024, _round_up(m, 8), max_rows)
    mp = _round_up(m, tm)
    if mp != m:
        x2 = jnp.pad(x2, ((0, mp - m), (0, 0)))
    return pl.pallas_call(
        functools.partial(_bn_stats_kernel, inv_m=inv_m),
        grid=(mp // tm,),
        in_specs=[pl.BlockSpec((tm, cp), lambda i: (i, 0)),
                  pl.BlockSpec((1, cp), lambda i: (0, 0)),
                  pl.BlockSpec((1, cp), lambda i: (0, 0))],
        out_specs=(pl.BlockSpec((1, cp), lambda i: (0, 0)),
                   pl.BlockSpec((1, cp), lambda i: (0, 0))),
        out_shape=(jax.ShapeDtypeStruct((1, cp), jnp.float32),
                   jax.ShapeDtypeStruct((1, cp), jnp.float32)),
        scratch_shapes=[pltpu.VMEM((1, cp), jnp.float32),
                        pltpu.VMEM((1, cp), jnp.float32)],
        compiler_params=_compiler_params(("arbitrary",)),
    )(x2, gamma, beta)


# --------------------------------------------------------------------------
# Fused (BN-affine + LeakyReLU) -> conv(k, stride) [-> + residual] [-> BN stats]
# --------------------------------------------------------------------------

def _make_conv_kernel(*, ksize, stride, pad, h_in, w_in, h_out, w_out,
                      b_tile, apply_act, has_res, emit_stats):
    s = stride
    s2 = s * s
    k2 = ksize * ksize
    m = b_tile * h_out * w_out

    def kernel(*refs):
        idx = 0
        x_ref = refs[idx]; idx += 1
        if apply_act:
            scale_ref, bias_ref = refs[idx], refs[idx + 1]; idx += 2
        w_ref = refs[idx]; idx += 1
        if has_res:
            res_ref = refs[idx]; idx += 1
        o_ref = refs[idx]; idx += 1
        if emit_stats:
            sum_ref, sq_ref = refs[idx], refs[idx + 1]; idx += 2

        cin_p = x_ref.shape[-1]
        tn = o_ref.shape[-1]
        xall = x_ref[...]                                  # (bt, s2, Hq, Wq, Cin_pad) bf16

        if apply_act:
            scale = scale_ref[...].reshape(1, 1, 1, cin_p)  # f32
            bias = bias_ref[...].reshape(1, 1, 1, cin_p)

        # Prologue: BN affine + LeakyReLU(0.1); re-zero the spatial zero-padding
        # border (the affine bias perturbs it); cast to bf16 ONCE so the
        # shifted-window copies below move half the bytes.
        acts = []
        for t in range(s2):
            p_off, q_off = t // s, t % s
            xt = xall[:, t]                                # (bt, Hq, Wq, Cin_pad)
            if apply_act:
                a = xt.astype(jnp.float32) * scale + bias
                a = jnp.where(a >= 0, a, NEG_SLOPE * a)
                if pad > 0:
                    r = lax.broadcasted_iota(jnp.int32, a.shape, 1) * s + p_off
                    c = lax.broadcasted_iota(jnp.int32, a.shape, 2) * s + q_off
                    inside = ((r >= pad) & (r < h_in + pad) &
                              (c >= pad) & (c < w_in + pad))
                    a = jnp.where(inside, a, 0.0)
                a = a.astype(jnp.bfloat16)
            else:
                a = xt
            acts.append(a)

        # One MXU matmul: the k*k taps concatenated along K (K = k2*Cin_pad);
        # accumulation happens inside the MXU instead of via k2 VALU adds.
        cols = []
        for kh in range(ksize):
            for kw in range(ksize):
                t = (kh % s) * s + (kw % s)
                ro, co = kh // s, kw // s
                win = acts[t][:, ro:ro + h_out, co:co + w_out, :]
                cols.append(win.reshape(m, cin_p))
        patch = cols[0] if k2 == 1 else jnp.concatenate(cols, axis=-1)
        acc = jnp.dot(patch, w_ref[...], preferred_element_type=jnp.float32)

        if has_res:
            acc = acc + res_ref[...].reshape(m, tn).astype(jnp.float32)
        o_ref[...] = acc.reshape(b_tile, h_out * w_out, tn).astype(o_ref.dtype)

        if emit_stats:
            # Per-channel sum / sumsq of this conv's OUTPUT, accumulated across
            # the inner ("arbitrary") batch-tile axis -> feeds the next
            # BatchNorm without re-reading the activation from HBM.
            b = pl.program_id(1)

            @pl.when(b == 0)
            def _init():
                sum_ref[...] = jnp.zeros_like(sum_ref)
                sq_ref[...] = jnp.zeros_like(sq_ref)

            sum_ref[...] += jnp.sum(acc, axis=0, keepdims=True)
            sq_ref[...] += jnp.sum(acc * acc, axis=0, keepdims=True)

    return kernel


def _pick_batch_tile(n, per_sample_bytes):
    bt = int(max(1, min(n, _BLOCK_BYTE_BUDGET // max(per_sample_bytes, 1))))
    while n % bt:
        bt -= 1
    return bt


def conv2d_fused(x, w_packed, *, ksize, stride, pad, cout_p,
                 scale=None, bias=None, residual=None, emit_stats=False):
    """NHWC conv (bias=False) with an optional fused BN-affine + LeakyReLU(0.1)
    prologue, optional fused residual add, and an optional BN batch-stats
    epilogue (per-channel sum / sumsq of the OUTPUT).

    x:         [N, H, W, Cin_pad]       bf16
    w_packed:  [k*k*Cin_pad, Cout_pad]  bf16
    scale/bias:[1, Cin_pad] f32 or None (None -> no activation prologue)
    residual:  [N, Ho, Wo, Cout_pad] bf16 or None
    returns    out [N, Ho, Wo, Cout_pad] bf16
               (plus (sum, sumsq) [1, Cout_pad] f32 if emit_stats)
    """
    if ksize == 1 and stride > 1:
        # A strided 1x1 conv only reads one stride phase; subsample in glue so
        # the kernel never DMAs the unused 3/4 of the input.
        x = x[:, ::stride, ::stride, :]
        stride = 1
    n, h, w, cin_p = x.shape
    s = stride
    ho = (h + 2 * pad - ksize) // s + 1
    wo = (w + 2 * pad - ksize) // s + 1
    amax = (ksize - 1) // s
    hq, wq = amax + ho, amax + wo
    s2 = s * s
    k2 = ksize * ksize
    m2 = ho * wo

    # Spatial zero-pad once; split into the s*s stride phases only when s>1 so
    # every conv tap becomes an UNSTRIDED shifted window (no HBM im2col).
    xp = jnp.pad(x, ((0, 0),
                     (pad, s * hq - h - pad),
                     (pad, s * wq - w - pad),
                     (0, 0)))
    if s == 1:
        xp = xp[:, None]                                   # (N, 1, Hq, Wq, Cin_pad)
    else:
        xp = xp.reshape(n, hq, s, wq, s, cin_p).transpose(0, 2, 4, 1, 3, 5)
        xp = xp.reshape(n, s2, hq, wq, cin_p)

    # Cout tile: 256 when possible (full v6e/v7x MXU N width), else 128 (v5e).
    tn = 256 if cout_p % 256 == 0 else LANE
    tn = min(tn, cout_p)
    n_jt = cout_p // tn

    apply_act = scale is not None
    has_res = residual is not None

    # Fold as many samples as fit the per-step VMEM byte budget into M.
    per_sample = (s2 * hq * wq * cin_p * 2        # bf16 input phases (+act copy)
                  + m2 * k2 * cin_p * 2           # bf16 K-concat patch
                  + m2 * tn * 6                   # f32 acc + bf16 out
                  + (m2 * tn * 2 if has_res else 0))
    b_tile = _pick_batch_tile(n, per_sample)
    n_bt = n // b_tile

    kernel = _make_conv_kernel(ksize=ksize, stride=s, pad=pad, h_in=h, w_in=w,
                               h_out=ho, w_out=wo, b_tile=b_tile,
                               apply_act=apply_act, has_res=has_res,
                               emit_stats=emit_stats)

    # grid = (Cout tiles, batch tiles): weight tile stays VMEM-resident across
    # the whole batch sweep; the batch axis is the stats-reduction axis when
    # emit_stats (then "arbitrary"), otherwise "parallel".
    in_specs = [pl.BlockSpec((b_tile, s2, hq, wq, cin_p),
                             lambda j, b: (b, 0, 0, 0, 0))]
    args = [xp]
    if apply_act:
        in_specs += [pl.BlockSpec((1, cin_p), lambda j, b: (0, 0)),
                     pl.BlockSpec((1, cin_p), lambda j, b: (0, 0))]
        args += [scale, bias]
    in_specs.append(pl.BlockSpec((k2 * cin_p, tn), lambda j, b: (0, j)))
    args.append(w_packed)
    if has_res:
        in_specs.append(pl.BlockSpec((b_tile, m2, tn), lambda j, b: (b, 0, j)))
        args.append(residual.reshape(n, m2, cout_p))

    out_specs = [pl.BlockSpec((b_tile, m2, tn), lambda j, b: (b, 0, j))]
    out_shapes = [jax.ShapeDtypeStruct((n, m2, cout_p), ACT_DTYPE)]
    if emit_stats:
        out_specs += [pl.BlockSpec((1, tn), lambda j, b: (0, j)),
                      pl.BlockSpec((1, tn), lambda j, b: (0, j))]
        out_shapes += [jax.ShapeDtypeStruct((1, cout_p), jnp.float32),
                       jax.ShapeDtypeStruct((1, cout_p), jnp.float32)]

    dims = ("parallel", "arbitrary" if emit_stats else "parallel")
    res = pl.pallas_call(
        kernel,
        grid=(n_jt, n_bt),
        in_specs=in_specs,
        out_specs=tuple(out_specs) if emit_stats else out_specs[0],
        out_shape=tuple(out_shapes) if emit_stats else out_shapes[0],
        compiler_params=_compiler_params(dims),
    )(*args)

    if emit_stats:
        out, csum, csq = res
        return out.reshape(n, ho, wo, cout_p), csum, csq
    return res.reshape(n, ho, wo, cout_p)


# --------------------------------------------------------------------------
# BasicBlock / NetworkBlock forward (pre-activation WRN, LeakyReLU 0.1)
# --------------------------------------------------------------------------

def basic_block_forward(x, x_stats, p, stride, activate_before_residual,
                        emit_out_stats, drop_rate=0.0):
    """Matches the PyTorch BasicBlock control flow, including the 'bn1 output
    discarded' quirk when equalInOut=False and activate_before_residual=False
    (that dead BN/LeakyReLU is skipped entirely).

    x_stats: optional (sum, sumsq) of x per channel produced by the conv that
    created x — avoids re-reading the full activation for bn1."""
    equal = p["in_planes"] == p["out_planes"]
    cout_p = p["cout_p"]
    n, h, w, cin_p = x.shape

    need_bn1 = equal or activate_before_residual
    if need_bn1:
        if x_stats is not None:
            scale1, bias1 = bn_finalize(x_stats[0], x_stats[1],
                                        p["bn1_gamma"], p["bn1_beta"],
                                        n * h * w)
        else:
            scale1, bias1 = bn_scale_bias(x.reshape(n * h * w, cin_p),
                                          p["bn1_gamma"], p["bn1_beta"])
    else:
        scale1 = bias1 = None

    # conv1( LeakyReLU(bn1(x)) )   (or conv1(raw x) in the quirk branch);
    # its epilogue also emits the batch stats bn2 needs.
    h1, s1, q1 = conv2d_fused(x, p["conv1_w"], ksize=3, stride=stride, pad=1,
                              cout_p=cout_p, scale=scale1, bias=bias1,
                              emit_stats=True)
    nh, hh, wh, _ = h1.shape
    scale2, bias2 = bn_finalize(s1, q1, p["bn2_gamma"], p["bn2_beta"],
                                nh * hh * wh)
    # TODO(synk): training-mode F.dropout for drop_rate>0 (PyTorch RNG
    # semantics) not implemented; the module default drop_rate=0.0 is a no-op.

    if equal:
        shortcut = x
    else:
        shortcut = conv2d_fused(
            x, p["shortcut_w"], ksize=1, stride=stride, pad=0, cout_p=cout_p,
            scale=scale1 if activate_before_residual else None,
            bias=bias1 if activate_before_residual else None)

    # conv2( LeakyReLU(bn2(h1)) ) + shortcut in one fused kernel; if another
    # block follows, also emit the stats its bn1 will need.
    if emit_out_stats:
        out, so, qo = conv2d_fused(h1, p["conv2_w"], ksize=3, stride=1, pad=1,
                                   cout_p=cout_p, scale=scale2, bias=bias2,
                                   residual=shortcut, emit_stats=True)
        return out, (so, qo)
    out = conv2d_fused(h1, p["conv2_w"], ksize=3, stride=1, pad=1,
                       cout_p=cout_p, scale=scale2, bias=bias2,
                       residual=shortcut)
    return out, None


def network_block_forward(x_nchw, params, nb_layers, stride,
                          activate_before_residual, drop_rate=0.0):
    # NCHW -> NHWC once; lane-dense channel padding; bf16 activation storage.
    # TODO(synk): early stages with Cin << 128 still pad channels to 128 in HBM;
    # K-packing the taps with natural C would cut that padding traffic further.
    x = jnp.transpose(x_nchw, (0, 2, 3, 1))
    cin = x.shape[-1]
    cin_p = _round_up(cin, LANE)
    x = jnp.pad(x, ((0, 0), (0, 0), (0, 0), (0, cin_p - cin))).astype(ACT_DTYPE)
    stats = None
    nb = int(nb_layers)
    for i in range(nb):
        s = stride if i == 0 else 1
        x, stats = basic_block_forward(x, stats, params[i], s,
                                       activate_before_residual,
                                       emit_out_stats=(i + 1 < nb),
                                       drop_rate=drop_rate)
    out_planes = params[-1]["out_planes"]
    x = x[..., :out_planes].astype(jnp.float32)
    return jnp.transpose(x, (0, 3, 1, 2))


# --------------------------------------------------------------------------
# Parameter init (PyTorch-layout random weights, pre-packed/padded once here)
# --------------------------------------------------------------------------

def _pack_conv_w(w_oihw, cin_p, cout_p):
    cout, cin, kh, kw = w_oihw.shape
    w = jnp.transpose(w_oihw, (2, 3, 1, 0))                # (kh, kw, cin, cout)
    w = jnp.pad(w, ((0, 0), (0, 0), (0, cin_p - cin), (0, cout_p - cout)))
    return w.reshape(kh * kw * cin_p, cout_p).astype(jnp.bfloat16)


def _pack_bn(v, c_p):
    c = v.shape[0]
    return jnp.pad(v.reshape(1, c), ((0, 0), (0, c_p - c))).astype(jnp.float32)


def init_network_block_params(key, nb_layers, in_planes, out_planes):
    params = []
    for i in range(int(nb_layers)):
        ip = in_planes if i == 0 else out_planes
        op = out_planes
        cin_p, cout_p = _round_up(ip, LANE), _round_up(op, LANE)
        key, k1, k2, k3, k4, k5, k6, k7 = jax.random.split(key, 8)
        conv1_w = jax.random.normal(k3, (op, ip, 3, 3), jnp.float32) * jnp.sqrt(2.0 / (9 * ip))
        conv2_w = jax.random.normal(k6, (op, op, 3, 3), jnp.float32) * jnp.sqrt(2.0 / (9 * op))
        p = {
            "in_planes": ip, "out_planes": op,
            "cin_p": cin_p, "cout_p": cout_p,
            "bn1_gamma": _pack_bn(1.0 + 0.1 * jax.random.normal(k1, (ip,), jnp.float32), cin_p),
            "bn1_beta": _pack_bn(0.1 * jax.random.normal(k2, (ip,), jnp.float32), cin_p),
            "bn2_gamma": _pack_bn(1.0 + 0.1 * jax.random.normal(k4, (op,), jnp.float32), cout_p),
            "bn2_beta": _pack_bn(0.1 * jax.random.normal(k5, (op,), jnp.float32), cout_p),
            "conv1_w": _pack_conv_w(conv1_w, cin_p, cout_p),
            "conv2_w": _pack_conv_w(conv2_w, cout_p, cout_p),
        }
        if ip != op:   # convShortcut exists only when not equalInOut
            sw = jax.random.normal(k7, (op, ip, 1, 1), jnp.float32) * jnp.sqrt(2.0 / ip)
            p["shortcut_w"] = _pack_conv_w(sw, cin_p, cout_p)
        params.append(p)
    return params


# ----------------------------------- main -----------------------------------

if __name__ == "__main__":
    # NetworkBlock(nb_layers=2, in_planes=4, out_planes=8, block=BasicBlock,
    #              stride=2, drop_rate=0.0, activate_before_residual=True)
    NB_LAYERS, IN_PLANES, OUT_PLANES, STRIDE, ABR = 2, 4, 8, 2, True

    key = jax.random.PRNGKey(0)
    kx, kp = jax.random.split(key)
    x = jax.random.normal(kx, (2, IN_PLANES, 16, 16), jnp.float32)   # NCHW like PyTorch
    params = init_network_block_params(kp, NB_LAYERS, IN_PLANES, OUT_PLANES)

    fwd = jax.jit(
        lambda xx: network_block_forward(xx, params, NB_LAYERS, STRIDE, ABR)
    )
    y = fwd(x)
    jax.block_until_ready(y)
    assert y.shape == (2, OUT_PLANES, 8, 8), y.shape
    assert bool(jnp.all(jnp.isfinite(y)))
    print("KERNEL_OK")
</pallas_src>

<mosaic_0001>
module attributes {stable_mosaic.version = 11 : i64} {
  func.func @_bn_stats_kernel(%arg0: i32, %arg1: memref<512x128xbf16, #tpu.memory_space<vmem>>, %arg2: memref<1x128xf32, #tpu.memory_space<vmem>>, %arg3: memref<1x128xf32, #tpu.memory_space<vmem>>, %arg4: memref<1x128xf32, #tpu.memory_space<vmem>>, %arg5: memref<1x128xf32, #tpu.memory_space<vmem>>, %arg6: memref<1x128xf32, #tpu.memory_space<vmem>>, %arg7: memref<1x128xf32, #tpu.memory_space<vmem>>) attributes {dimension_semantics = [#tpu.dimension_semantics<arbitrary>], iteration_bounds = array<i64: 1>, scalar_prefetch = 0 : i64, scratch_operands = 2 : i64, tpu.core_type = #tpu.core_type<tc>, window_params = [{transform_indices = @transform_0, window_bounds = array<i64: 512, 128>}, {pipeline_mode = #tpu.pipeline_mode<synchronous>, transform_indices = @transform_1, window_bounds = array<i64: 1, 128>}, {pipeline_mode = #tpu.pipeline_mode<synchronous>, transform_indices = @transform_2, window_bounds = array<i64: 1, 128>}, {pipeline_mode = #tpu.pipeline_mode<synchronous>, transform_indices = @transform_3, window_bounds = array<i64: 1, 128>}, {pipeline_mode = #tpu.pipeline_mode<synchronous>, transform_indices = @transform_4, window_bounds = array<i64: 1, 128>}]} {
    %c0_i32 = arith.constant 0 : i32
    %0 = arith.cmpi eq, %arg0, %c0_i32 : i32
    %1 = arith.extui %0 : i1 to i32
    %c0_i32_0 = arith.constant 0 : i32
    %2 = arith.cmpi ne, %1, %c0_i32_0 : i32
    scf.if %2 {
      %cst_13 = arith.constant 0.000000e+00 : f32
      %19 = vector.broadcast %cst_13 : f32 to vector<1x128xf32>
      %c0_14 = arith.constant 0 : index
      %c0_15 = arith.constant 0 : index
      %20 = vector.load %arg6[%c0_14, %c0_15] : memref<1x128xf32, #tpu.memory_space<vmem>>, vector<1x128xf32>
      tpu.vector_store %arg6[%c0_14, %c0_15], %19 {strides = array<i32>} : memref<1x128xf32, #tpu.memory_space<vmem>>, vector<1x128xf32>,
      %cst_16 = arith.constant 0.000000e+00 : f32
      %21 = vector.broadcast %cst_16 : f32 to vector<1x128xf32>
      %c0_17 = arith.constant 0 : index
      %c0_18 = arith.constant 0 : index
      %22 = vector.load %arg7[%c0_17, %c0_18] : memref<1x128xf32, #tpu.memory_space<vmem>>, vector<1x128xf32>
      tpu.vector_store %arg7[%c0_17, %c0_18], %21 {strides = array<i32>} : memref<1x128xf32, #tpu.memory_space<vmem>>, vector<1x128xf32>,
    } else {
    }
    %c0 = arith.constant 0 : index
    %c0_1 = arith.constant 0 : index
    %3 = vector.load %arg1[%c0, %c0_1] : memref<512x128xbf16, #tpu.memory_space<vmem>>, vector<512x128xbf16>
    %4 = arith.extf %3 : vector<512x128xbf16> to vector<512x128xf32>
    %c0_2 = arith.constant 0 : index
    %c0_3 = arith.constant 0 : index
    %5 = vector.load %arg6[%c0_2, %c0_3] : memref<1x128xf32, #tpu.memory_space<vmem>>, vector<1x128xf32>
    %cst = arith.constant dense<0.000000e+00> : vector<128xf32>
    %6 = vector.multi_reduction <add>, %4, %cst [0] : vector<512x128xf32> to vector<128xf32>
    %7 = vector.shape_cast %6 : vector<128xf32> to vector<1x128xf32>
    %8 = arith.addf %5, %7 : vector<1x128xf32>
    %c0_4 = arith.constant 0 : index
    %c0_5 = arith.constant 0 : index
    %9 = vector.load %arg6[%c0_4, %c0_5] : memref<1x128xf32, #tpu.memory_space<vmem>>, vector<1x128xf32>
    tpu.vector_store %arg6[%c0_4, %c0_5], %8 {strides = array<i32>} : memref<1x128xf32, #tpu.memory_space<vmem>>, vector<1x128xf32>,
    %c0_6 = arith.constant 0 : index
    %c0_7 = arith.constant 0 : index
    %10 = vector.load %arg7[%c0_6, %c0_7] : memref<1x128xf32, #tpu.memory_space<vmem>>, vector<1x128xf32>
    %11 = arith.mulf %4, %4 : vector<512x128xf32>
    %cst_8 = arith.constant dense<0.000000e+00> : vector<128xf32>
    %12 = vector.multi_reduction <add>, %11, %cst_8 [0] : vector<512x128xf32> to vector<128xf32>
    %13 = vector.shape_cast %12 : vector<128xf32> to vector<1x128xf32>
    %14 = arith.addf %10, %13 : vector<1x128xf32>
    %c0_9 = arith.constant 0 : index
    %c0_10 = arith.constant 0 : index
    %15 = vector.load %arg7[%c0_9, %c0_10] : memref<1x128xf32, #tpu.memory_space<vmem>>, vector<1x128xf32>
    tpu.vector_store %arg7[%c0_9, %c0_10], %14 {strides = array<i32>} : memref<1x128xf32, #tpu.memory_space<vmem>>, vector<1x128xf32>,
    %c0_i32_11 = arith.constant 0 : i32
    %16 = arith.cmpi eq, %arg0, %c0_i32_11 : i32
    %17 = arith.extui %16 : i1 to i32
    %c0_i32_12 = arith.constant 0 : i32
    %18 = arith.cmpi ne, %17, %c0_i32_12 : i32
    scf.if %18 {
      %c0_13 = arith.constant 0 : index
      %c0_14 = arith.constant 0 : index
      %19 = vector.load %arg6[%c0_13, %c0_14] : memref<1x128xf32, #tpu.memory_space<vmem>>, vector<1x128xf32>
      %cst_15 = arith.constant 0.001953125 : f32
      %20 = vector.broadcast %cst_15 : f32 to vector<1x128xf32>
      %21 = arith.mulf %19, %20 : vector<1x128xf32>
      %c0_16 = arith.constant 0 : index
      %c0_17 = arith.constant 0 : index
      %22 = vector.load %arg7[%c0_16, %c0_17] : memref<1x128xf32, #tpu.memory_space<vmem>>, vector<1x128xf32>
      %cst_18 = arith.constant 0.001953125 : f32
      %23 = vector.broadcast %cst_18 : f32 to vector<1x128xf32>
      %24 = arith.mulf %22, %23 : vector<1x128xf32>
      %25 = arith.mulf %21, %21 : vector<1x128xf32>
      %26 = arith.subf %24, %25 : vector<1x128xf32>
      %cst_19 = arith.constant 0.000000e+00 : f32
      %27 = vector.broadcast %cst_19 : f32 to vector<1x128xf32>
      %28 = arith.maximumf %26, %27 : vector<1x128xf32>
      %c0_20 = arith.constant 0 : index
      %c0_21 = arith.constant 0 : index
      %29 = vector.load %arg2[%c0_20, %c0_21] : memref<1x128xf32, #tpu.memory_space<vmem>>, vector<1x128xf32>
      %cst_22 = arith.constant 9.99999974E-6 : f32
      %30 = vector.broadcast %cst_22 : f32 to vector<1x128xf32>
      %31 = arith.addf %28, %30 : vector<1x128xf32>
      %32 = math.rsqrt %31 : vector<1x128xf32>
      %33 = arith.mulf %29, %32 : vector<1x128xf32>
      %c0_23 = arith.constant 0 : index
      %c0_24 = arith.constant 0 : index
      %34 = vector.load %arg4[%c0_23, %c0_24] : memref<1x128xf32, #tpu.memory_space<vmem>>, vector<1x128xf32>
      tpu.vector_store %arg4[%c0_23, %c0_24], %33 {strides = array<i32>} : memref<1x128xf32, #tpu.memory_space<vmem>>, vector<1x128xf32>,
      %c0_25 = arith.constant 0 : index
      %c0_26 = arith.constant 0 : index
      %35 = vector.load %arg3[%c0_25, %c0_26] : memref<1x128xf32, #tpu.memory_space<vmem>>, vector<1x128xf32>
      %36 = arith.mulf %21, %33 : vector<1x128xf32>
      %37 = arith.subf %35, %36 : vector<1x128xf32>
      %c0_27 = arith.constant 0 : index
      %c0_28 = arith.constant 0 : index
      %38 = vector.load %arg5[%c0_27, %c0_28] : memref<1x128xf32, #tpu.memory_space<vmem>>, vector<1x128xf32>
      tpu.vector_store %arg5[%c0_27, %c0_28], %37 {strides = array<i32>} : memref<1x128xf32, #tpu.memory_space<vmem>>, vector<1x128xf32>,
    } else {
    }
    return
  }
  func.func @transform_0(%arg0: i32) -> (i32, i32) {
    %c0_i32 = arith.constant 0 : i32
    %c0_i32_0 = arith.constant 0 : i32
    return %arg0, %c0_i32 : i32, i32
  }
  func.func @transform_1(%arg0: i32) -> (i32, i32) {
    %c0_i32 = arith.constant 0 : i32
    %c0_i32_0 = arith.constant 0 : i32
    %c0_i32_1 = arith.constant 0 : i32
    return %c0_i32, %c0_i32_0 : i32, i32
  }
  func.func @transform_2(%arg0: i32) -> (i32, i32) {
    %c0_i32 = arith.constant 0 : i32
    %c0_i32_0 = arith.constant 0 : i32
    %c0_i32_1 = arith.constant 0 : i32
    return %c0_i32, %c0_i32_0 : i32, i32
  }
  func.func @transform_3(%arg0: i32) -> (i32, i32) {
    %c0_i32 = arith.constant 0 : i32
    %c0_i32_0 = arith.constant 0 : i32
    %c0_i32_1 = arith.constant 0 : i32
    return %c0_i32, %c0_i32_0 : i32, i32
  }
  func.func @transform_4(%arg0: i32) -> (i32, i32) {
    %c0_i32 = arith.constant 0 : i32
    %c0_i32_0 = arith.constant 0 : i32
    %c0_i32_1 = arith.constant 0 : i32
    return %c0_i32, %c0_i32_0 : i32, i32
  }
}

module attributes {stable_mosaic.version = 11 : i64} {
  func.func @kernel(%arg0: i32, %arg1: i32, %arg2: memref<2x1x8x8x128xbf16, #tpu.memory_space<vmem>>, %arg3: memref<1x128xf32, #tpu.memory_space<vmem>>, %arg4: memref<1x128xf32, #tpu.memory_space<vmem>>, %arg5: memref<128x128xbf16, #tpu.memory_space<vmem>>, %arg6: memref<2x64x128xbf16, #tpu.memory_space<vmem>>) attributes {dimension_semantics = [#tpu.dimension_semantics<parallel>, #tpu.dimension_semantics<parallel>], iteration_bounds = array<i64: 1, 1>, scalar_prefetch = 0 : i64, scratch_operands = 0 : i64, tpu.core_type = #tpu.core_type<tc>, window_params = [{transform_indices = @transform_0, window_bounds = array<i64: 2, 1, 8, 8, 128>}, {pipeline_mode = #tpu.pipeline_mode<synchronous>, transform_indices = @transform_1, window_bounds = array<i64: 1, 128>}, {pipeline_mode = #tpu.pipeline_mode<synchronous>, transform_indices = @transform_2, window_bounds = array<i64: 1, 128>}, {transform_indices = @transform_3, window_bounds = array<i64: 128, 128>}, {transform_indices = @transform_4, window_bounds = array<i64: 2, 64, 128>}]} {
    %c0 = arith.constant 0 : index
    %c0_0 = arith.constant 0 : index
    %c0_1 = arith.constant 0 : index
    %c0_2 = arith.constant 0 : index
    %c0_3 = arith.constant 0 : index
    %0 = vector.load %arg2[%c0, %c0_0, %c0_1, %c0_2, %c0_3] : memref<2x1x8x8x128xbf16, #tpu.memory_space<vmem>>, vector<2x1x8x8x128xbf16>
    %c0_4 = arith.constant 0 : index
    %c0_5 = arith.constant 0 : index
    %1 = vector.load %arg3[%c0_4, %c0_5] : memref<1x128xf32, #tpu.memory_space<vmem>>, vector<1x128xf32>
    %2 = vector.shape_cast %1 : vector<1x128xf32> to vector<1x1x1x128xf32>
    %c0_6 = arith.constant 0 : index
    %c0_7 = arith.constant 0 : index
    %3 = vector.load %arg4[%c0_6, %c0_7] : memref<1x128xf32, #tpu.memory_space<vmem>>, vector<1x128xf32>
    %4 = vector.shape_cast %3 : vector<1x128xf32> to vector<1x1x1x128xf32>
    %5 = vector.shape_cast %0 : vector<2x1x8x8x128xbf16> to vector<2x8x8x128xbf16>
    %6 = arith.extf %5 : vector<2x8x8x128xbf16> to vector<2x8x8x128xf32>
    %7 = vector.broadcast %2 : vector<1x1x1x128xf32> to vector<2x8x8x128xf32>
    %8 = arith.mulf %6, %7 : vector<2x8x8x128xf32>
    %9 = vector.broadcast %4 : vector<1x1x1x128xf32> to vector<2x8x8x128xf32>
    %10 = arith.addf %8, %9 : vector<2x8x8x128xf32>
    %cst = arith.constant 0.000000e+00 : f32
    %11 = vector.broadcast %cst : f32 to vector<2x8x8x128xf32>
    %12 = arith.cmpf oge, %10, %11 : vector<2x8x8x128xf32>
    %cst_8 = arith.constant 1.000000e-01 : f32
    %13 = vector.broadcast %cst_8 : f32 to vector<2x8x8x128xf32>
    %14 = arith.mulf %13, %10 : vector<2x8x8x128xf32>
    %15 = arith.select %12, %10, %14 : vector<2x8x8x128xi1>, vector<2x8x8x128xf32>
    %16 = arith.truncf %15 : vector<2x8x8x128xf32> to vector<2x8x8x128xbf16>
    %17 = vector.shape_cast %16 : vector<2x8x8x128xbf16> to vector<128x128xbf16>
    %c0_9 = arith.constant 0 : index
    %c0_10 = arith.constant 0 : index
    %18 = vector.load %arg5[%c0_9, %c0_10] : memref<128x128xbf16, #tpu.memory_space<vmem>>, vector<128x128xbf16>
    %cst_11 = arith.constant dense<0.000000e+00> : vector<128x128xf32>
    %19 = tpu.matmul %17, %18, %cst_11 {dimension_numbers = #tpu.dot_dimension_numbers<[1], [0], [0], [1], [0, 0, 1, 1], [], []>} : vector<128x128xbf16>, vector<128x128xbf16>, vector<128x128xf32> -> vector<128x128xf32>
    %20 = vector.shape_cast %19 : vector<128x128xf32> to vector<2x64x128xf32>
    %21 = arith.truncf %20 : vector<2x64x128xf32> to vector<2x64x128xbf16>
    %c0_12 = arith.constant 0 : index
    %c0_13 = arith.constant 0 : index
    %c0_14 = arith.constant 0 : index
    %22 = vector.load %arg6[%c0_12, %c0_13, %c0_14] : memref<2x64x128xbf16, #tpu.memory_space<vmem>>, vector<2x64x128xbf16>
    tpu.vector_store %arg6[%c0_12, %c0_13, %c0_14], %21 {strides = array<i32>} : memref<2x64x128xbf16, #tpu.memory_space<vmem>>, vector<2x64x128xbf16>,
    return
  }
  func.func @transform_0(%arg0: i32, %arg1: i32) -> (i32, i32, i32, i32, i32) {
    %c0_i32 = arith.constant 0 : i32
    %c0_i32_0 = arith.constant 0 : i32
    %c0_i32_1 = arith.constant 0 : i32
    %c0_i32_2 = arith.constant 0 : i32
    %c0_i32_3 = arith.constant 0 : i32
    return %arg1, %c0_i32, %c0_i32_0, %c0_i32_1, %c0_i32_2 : i32, i32, i32, i32, i32
  }
  func.func @transform_1(%arg0: i32, %arg1: i32) -> (i32, i32) {
    %c0_i32 = arith.constant 0 : i32
    %c0_i32_0 = arith.constant 0 : i32
    %c0_i32_1 = arith.constant 0 : i32
    return %c0_i32, %c0_i32_0 : i32, i32
  }
  func.func @transform_2(%arg0: i32, %arg1: i32) -> (i32, i32) {
    %c0_i32 = arith.constant 0 : i32
    %c0_i32_0 = arith.constant 0 : i32
    %c0_i32_1 = arith.constant 0 : i32
    return %c0_i32, %c0_i32_0 : i32, i32
  }
  func.func @transform_3(%arg0: i32, %arg1: i32) -> (i32, i32) {
    %c0_i32 = arith.constant 0 : i32
    %c0_i32_0 = arith.constant 0 : i32
    return %c0_i32, %arg0 : i32, i32
  }
  func.func @transform_4(%arg0: i32, %arg1: i32) -> (i32, i32, i32) {
    %c0_i32 = arith.constant 0 : i32
    %c0_i32_0 = arith.constant 0 : i32
    return %arg1, %c0_i32, %arg0 : i32, i32, i32
  }
}

module attributes {stable_mosaic.version = 11 : i64} {
  func.func @kernel(%arg0: i32, %arg1: i32, %arg2: memref<2x4x9x9x128xbf16, #tpu.memory_space<vmem>>, %arg3: memref<1x128xf32, #tpu.memory_space<vmem>>, %arg4: memref<1x128xf32, #tpu.memory_space<vmem>>, %arg5: memref<1152x128xbf16, #tpu.memory_space<vmem>>, %arg6: memref<2x64x128xbf16, #tpu.memory_space<vmem>>, %arg7: memref<1x128xf32, #tpu.memory_space<vmem>>, %arg8: memref<1x128xf32, #tpu.memory_space<vmem>>) attributes {dimension_semantics = [#tpu.dimension_semantics<parallel>, #tpu.dimension_semantics<arbitrary>], iteration_bounds = array<i64: 1, 1>, scalar_prefetch = 0 : i64, scratch_operands = 0 : i64, tpu.core_type = #tpu.core_type<tc>, window_params = [{transform_indices = @transform_0, window_bounds = array<i64: 2, 4, 9, 9, 128>}, {pipeline_mode = #tpu.pipeline_mode<synchronous>, transform_indices = @transform_1, window_bounds = array<i64: 1, 128>}, {pipeline_mode = #tpu.pipeline_mode<synchronous>, transform_indices = @transform_2, window_bounds = array<i64: 1, 128>}, {transform_indices = @transform_3, window_bounds = array<i64: 1152, 128>}, {transform_indices = @transform_4, window_bounds = array<i64: 2, 64, 128>}, {transform_indices = @transform_5, window_bounds = array<i64: 1, 128>}, {transform_indices = @transform_6, window_bounds = array<i64: 1, 128>}]} {
    %c0 = arith.constant 0 : index
    %c0_0 = arith.constant 0 : index
    %c0_1 = arith.constant 0 : index
    %c0_2 = arith.constant 0 : index
    %c0_3 = arith.constant 0 : index
    %0 = vector.load %arg2[%c0, %c0_0, %c0_1, %c0_2, %c0_3] : memref<2x4x9x9x128xbf16, #tpu.memory_space<vmem>>, vector<2x4x9x9x128xbf16>
    %c0_4 = arith.constant 0 : index
    %c0_5 = arith.constant 0 : index
    %1 = vector.load %arg3[%c0_4, %c0_5] : memref<1x128xf32, #tpu.memory_space<vmem>>, vector<1x128xf32>
    %2 = vector.shape_cast %1 : vector<1x128xf32> to vector<1x1x1x128xf32>
    %c0_6 = arith.constant 0 : index
    %c0_7 = arith.constant 0 : index
    %3 = vector.load %arg4[%c0_6, %c0_7] : memref<1x128xf32, #tpu.memory_space<vmem>>, vector<1x128xf32>
    %4 = vector.shape_cast %3 : vector<1x128xf32> to vector<1x1x1x128xf32>
    %5 = vector.extract_strided_slice %0 {offsets = [0, 0, 0, 0, 0], sizes = [2, 1, 9, 9, 128], strides = [1, 1, 1, 1, 1]} : vector<2x4x9x9x128xbf16> to vector<2x1x9x9x128xbf16>
    %6 = vector.shape_cast %5 : vector<2x1x9x9x128xbf16> to vector<2x9x9x128xbf16>
    %7 = arith.extf %6 : vector<2x9x9x128xbf16> to vector<2x9x9x128xf32>
    %8 = vector.broadcast %2 : vector<1x1x1x128xf32> to vector<2x9x9x128xf32>
    %9 = arith.mulf %7, %8 : vector<2x9x9x128xf32>
    %10 = vector.broadcast %4 : vector<1x1x1x128xf32> to vector<2x9x9x128xf32>
    %11 = arith.addf %9, %10 : vector<2x9x9x128xf32>
    %cst = arith.constant 0.000000e+00 : f32
    %12 = vector.broadcast %cst : f32 to vector<2x9x9x128xf32>
    %13 = arith.cmpf oge, %11, %12 : vector<2x9x9x128xf32>
    %cst_8 = arith.constant 1.000000e-01 : f32
    %14 = vector.broadcast %cst_8 : f32 to vector<2x9x9x128xf32>
    %15 = arith.mulf %14, %11 : vector<2x9x9x128xf32>
    %16 = arith.select %13, %11, %15 : vector<2x9x9x128xi1>, vector<2x9x9x128xf32>
    %17 = tpu.iota {dimensions = array<i32: 1>} : vector<2x9x9x128xi32>
    %c2_i32 = arith.constant 2 : i32
    %18 = vector.broadcast %c2_i32 : i32 to vector<2x9x9x128xi32>
    %19 = arith.muli %17, %18 : vector<2x9x9x128xi32>
    %c0_i32 = arith.constant 0 : i32
    %20 = vector.broadcast %c0_i32 : i32 to vector<2x9x9x128xi32>
    %21 = arith.addi %19, %20 : vector<2x9x9x128xi32>
    %22 = tpu.iota {dimensions = array<i32: 2>} : vector<2x9x9x128xi32>
    %c2_i32_9 = arith.constant 2 : i32
    %23 = vector.broadcast %c2_i32_9 : i32 to vector<2x9x9x128xi32>
    %24 = arith.muli %22, %23 : vector<2x9x9x128xi32>
    %c0_i32_10 = arith.constant 0 : i32
    %25 = vector.broadcast %c0_i32_10 : i32 to vector<2x9x9x128xi32>
    %26 = arith.addi %24, %25 : vector<2x9x9x128xi32>
    %c1_i32 = arith.constant 1 : i32
    %27 = vector.broadcast %c1_i32 : i32 to vector<2x9x9x128xi32>
    %28 = arith.cmpi sge, %21, %27 : vector<2x9x9x128xi32>
    %c17_i32 = arith.constant 17 : i32
    %29 = vector.broadcast %c17_i32 : i32 to vector<2x9x9x128xi32>
    %30 = arith.cmpi slt, %21, %29 : vector<2x9x9x128xi32>
    %31 = arith.andi %28, %30 : vector<2x9x9x128xi1>
    %c1_i32_11 = arith.constant 1 : i32
    %32 = vector.broadcast %c1_i32_11 : i32 to vector<2x9x9x128xi32>
    %33 = arith.cmpi sge, %26, %32 : vector<2x9x9x128xi32>
    %34 = arith.andi %31, %33 : vector<2x9x9x128xi1>
    %c17_i32_12 = arith.constant 17 : i32
    %35 = vector.broadcast %c17_i32_12 : i32 to vector<2x9x9x128xi32>
    %36 = arith.cmpi slt, %26, %35 : vector<2x9x9x128xi32>
    %37 = arith.andi %34, %36 : vector<2x9x9x128xi1>
    %cst_13 = arith.constant 0.000000e+00 : f32
    %38 = vector.broadcast %cst_13 : f32 to vector<2x9x9x128xf32>
    %39 = arith.select %37, %16, %38 : vector<2x9x9x128xi1>, vector<2x9x9x128xf32>
    %40 = arith.truncf %39 : vector<2x9x9x128xf32> to vector<2x9x9x128xbf16>
    %41 = vector.extract_strided_slice %0 {offsets = [0, 1, 0, 0, 0], sizes = [2, 1, 9, 9, 128], strides = [1, 1, 1, 1, 1]} : vector<2x4x9x9x128xbf16> to vector<2x1x9x9x128xbf16>
    %42 = vector.shape_cast %41 : vector<2x1x9x9x128xbf16> to vector<2x9x9x128xbf16>
    %43 = arith.extf %42 : vector<2x9x9x128xbf16> to vector<2x9x9x128xf32>
    %44 = vector.broadcast %2 : vector<1x1x1x128xf32> to vector<2x9x9x128xf32>
    %45 = arith.mulf %43, %44 : vector<2x9x9x128xf32>
    %46 = vector.broadcast %4 : vector<1x1x1x128xf32> to vector<2x9x9x128xf32>
    %47 = arith.addf %45, %46 : vector<2x9x9x128xf32>
    %cst_14 = arith.constant 0.000000e+00 : f32
    %48 = vector.broadcast %cst_14 : f32 to vector<2x9x9x128xf32>
    %49 = arith.cmpf oge, %47, %48 : vector<2x9x9x128xf32>
    %cst_15 = arith.constant 1.000000e-01 : f32
    %50 = vector.broadcast %cst_15 : f32 to vector<2x9x9x128xf32>
    %51 = arith.mulf %50, %47 : vector<2x9x9x128xf32>
    %52 = arith.select %49, %47, %51 : vector<2x9x9x128xi1>, vector<2x9x9x128xf32>
    %53 = tpu.iota {dimensions = array<i32: 1>} : vector<2x9x9x128xi32>
    %c2_i32_16 = arith.constant 2 : i32
    %54 = vector.broadcast %c2_i32_16 : i32 to vector<2x9x9x128xi32>
    %55 = arith.muli %53, %54 : vector<2x9x9x128xi32>
    %c0_i32_17 = arith.constant 0 : i32
    %56 = vector.broadcast %c0_i32_17 : i32 to vector<2x9x9x128xi32>
    %57 = arith.addi %55, %56 : vector<2x9x9x128xi32>
    %58 = tpu.iota {dimensions = array<i32: 2>} : vector<2x9x9x128xi32>
    %c2_i32_18 = arith.constant 2 : i32
    %59 = vector.broadcast %c2_i32_18 : i32 to vector<2x9x9x128xi32>
    %60 = arith.muli %58, %59 : vector<2x9x9x128xi32>
    %c1_i32_19 = arith.constant 1 : i32
    %61 = vector.broadcast %c1_i32_19 : i32 to vector<2x9x9x128xi32>
    %62 = arith.addi %60, %61 : vector<2x9x9x128xi32>
    %c1_i32_20 = arith.constant 1 : i32
    %63 = vector.broadcast %c1_i32_20 : i32 to vector<2x9x9x128xi32>
    %64 = arith.cmpi sge, %57, %63 : vector<2x9x9x128xi32>
    %c17_i32_21 = arith.constant 17 : i32
    %65 = vector.broadcast %c17_i32_21 : i32 to vector<2x9x9x128xi32>
    %66 = arith.cmpi slt, %57, %65 : vector<2x9x9x128xi32>
    %67 = arith.andi %64, %66 : vector<2x9x9x128xi1>
    %c1_i32_22 = arith.constant 1 : i32
    %68 = vector.broadcast %c1_i32_22 : i32 to vector<2x9x9x128xi32>
    %69 = arith.cmpi sge, %62, %68 : vector<2x9x9x128xi32>
    %70 = arith.andi %67, %69 : vector<2x9x9x128xi1>
    %c17_i32_23 = arith.constant 17 : i32
    %71 = vector.broadcast %c17_i32_23 : i32 to vector<2x9x9x128xi32>
    %72 = arith.cmpi slt, %62, %71 : vector<2x9x9x128xi32>
    %73 = arith.andi %70, %72 : vector<2x9x9x128xi1>
    %cst_24 = arith.constant 0.000000e+00 : f32
    %74 = vector.broadcast %cst_24 : f32 to vector<2x9x9x128xf32>
    %75 = arith.select %73, %52, %74 : vector<2x9x9x128xi1>, vector<2x9x9x128xf32>
    %76 = arith.truncf %75 : vector<2x9x9x128xf32> to vector<2x9x9x128xbf16>
    %77 = vector.extract_strided_slice %0 {offsets = [0, 2, 0, 0, 0], sizes = [2, 1, 9, 9, 128], strides = [1, 1, 1, 1, 1]} : vector<2x4x9x9x128xbf16> to vector<2x1x9x9x128xbf16>
    %78 = vector.shape_cast %77 : vector<2x1x9x9x128xbf16> to vector<2x9x9x128xbf16>
    %79 = arith.extf %78 : vector<2x9x9x128xbf16> to vector<2x9x9x128xf32>
    %80 = vector.broadcast %2 : vector<1x1x1x128xf32> to vector<2x9x9x128xf32>
    %81 = arith.mulf %79, %80 : vector<2x9x9x128xf32>
    %82 = vector.broadcast %4 : vector<1x1x1x128xf32> to vector<2x9x9x128xf32>
    %83 = arith.addf %81, %82 : vector<2x9x9x128xf32>
    %cst_25 = arith.constant 0.000000e+00 : f32
    %84 = vector.broadcast %cst_25 : f32 to vector<2x9x9x128xf32>
    %85 = arith.cmpf oge, %83, %84 : vector<2x9x9x128xf32>
    %cst_26 = arith.constant 1.000000e-01 : f32
    %86 = vector.broadcast %cst_26 : f32 to vector<2x9x9x128xf32>
    %87 = arith.mulf %86, %83 : vector<2x9x9x128xf32>
    %88 = arith.select %85, %83, %87 : vector<2x9x9x128xi1>, vector<2x9x9x128xf32>
    %89 = tpu.iota {dimensions = array<i32: 1>} : vector<2x9x9x128xi32>
    %c2_i32_27 = arith.constant 2 : i32
    %90 = vector.broadcast %c2_i32_27 : i32 to vector<2x9x9x128xi32>
    %91 = arith.muli %89, %90 : vector<2x9x9x128xi32>
    %c1_i32_28 = arith.constant 1 : i32
    %92 = vector.broadcast %c1_i32_28 : i32 to vector<2x9x9x128xi32>
    %93 = arith.addi %91, %92 : vector<2x9x9x128xi32>
    %94 = tpu.iota {dimensions = array<i32: 2>} : vector<2x9x9x128xi32>
    %c2_i32_29 = arith.constant 2 : i32
    %95 = vector.broadcast %c2_i32_29 : i32 to vector<2x9x9x128xi32>
    %96 = arith.muli %94, %95 : vector<2x9x9x128xi32>
    %c0_i32_30 = arith.constant 0 : i32
    %97 = vector.broadcast %c0_i32_30 : i32 to vector<2x9x9x128xi32>
    %98 = arith.addi %96, %97 : vector<2x9x9x128xi32>
    %c1_i32_31 = arith.constant 1 : i32
    %99 = vector.broadcast %c1_i32_31 : i32 to vector<2x9x9x128xi32>
    %100 = arith.cmpi sge, %93, %99 : vector<2x9x9x128xi32>
    %c17_i32_32 = arith.constant 17 : i32
    %101 = vector.broadcast %c17_i32_32 : i32 to vector<2x9x9x128xi32>
    %102 = arith.cmpi slt, %93, %101 : vector<2x9x9x128xi32>
    %103 = arith.andi %100, %102 : vector<2x9x9x128xi1>
    %c1_i32_33 = arith.constant 1 : i32
    %104 = vector.broadcast %c1_i32_33 : i32 to vector<2x9x9x128xi32>
    %105 = arith.cmpi sge, %98, %104 : vector<2x9x9x128xi32>
    %106 = arith.andi %103, %105 : vector<2x9x9x128xi1>
    %c17_i32_34 = arith.constant 17 : i32
    %107 = vector.broadcast %c17_i32_34 : i32 to vector<2x9x9x128xi32>
    %108 = arith.cmpi slt, %98, %107 : vector<2x9x9x128xi32>
    %109 = arith.andi %106, %108 : vector<2x9x9x128xi1>
    %cst_35 = arith.constant 0.000000e+00 : f32
    %110 = vector.broadcast %cst_35 : f32 to vector<2x9x9x128xf32>
    %111 = arith.select %109, %88, %110 : vector<2x9x9x128xi1>, vector<2x9x9x128xf32>
    %112 = arith.truncf %111 : vector<2x9x9x128xf32> to vector<2x9x9x128xbf16>
    %113 = vector.extract_strided_slice %0 {offsets = [0, 3, 0, 0, 0], sizes = [2, 1, 9, 9, 128], strides = [1, 1, 1, 1, 1]} : vector<2x4x9x9x128xbf16> to vector<2x1x9x9x128xbf16>
    %114 = vector.shape_cast %113 : vector<2x1x9x9x128xbf16> to vector<2x9x9x128xbf16>
    %115 = arith.extf %114 : vector<2x9x9x128xbf16> to vector<2x9x9x128xf32>
    %116 = vector.broadcast %2 : vector<1x1x1x128xf32> to vector<2x9x9x128xf32>
    %117 = arith.mulf %115, %116 : vector<2x9x9x128xf32>
    %118 = vector.broadcast %4 : vector<1x1x1x128xf32> to vector<2x9x9x128xf32>
    %119 = arith.addf %117, %118 : vector<2x9x9x128xf32>
    %cst_36 = arith.constant 0.000000e+00 : f32
    %120 = vector.broadcast %cst_36 : f32 to vector<2x9x9x128xf32>
    %121 = arith.cmpf oge, %119, %120 : vector<2x9x9x128xf32>
    %cst_37 = arith.constant 1.000000e-01 : f32
    %122 = vector.broadcast %cst_37 : f32 to vector<2x9x9x128xf32>
    %123 = arith.mulf %122, %119 : vector<2x9x9x128xf32>
    %124 = arith.select %121, %119, %123 : vector<2x9x9x128xi1>, vector<2x9x9x128xf32>
    %125 = tpu.iota {dimensions = array<i32: 1>} : vector<2x9x9x128xi32>
    %c2_i32_38 = arith.constant 2 : i32
    %126 = vector.broadcast %c2_i32_38 : i32 to vector<2x9x9x128xi32>
    %127 = arith.muli %125, %126 : vector<2x9x9x128xi32>
    %c1_i32_39 = arith.constant 1 : i32
    %128 = vector.broadcast %c1_i32_39 : i32 to vector<2x9x9x128xi32>
    %129 = arith.addi %127, %128 : vector<2x9x9x128xi32>
    %130 = tpu.iota {dimensions = array<i32: 2>} : vector<2x9x9x128xi32>
    %c2_i32_40 = arith.constant 2 : i32
    %131 = vector.broadcast %c2_i32_40 : i32 to vector<2x9x9x128xi32>
    %132 = arith.muli %130, %131 : vector<2x9x9x128xi32>
    %c1_i32_41 = arith.constant 1 : i32
    %133 = vector.broadcast %c1_i32_41 : i32 to vector<2x9x9x128xi32>
    %134 = arith.addi %132, %133 : vector<2x9x9x128xi32>
    %c1_i32_42 = arith.constant 1 : i32
    %135 = vector.broadcast %c1_i32_42 : i32 to vector<2x9x9x128xi32>
    %136 = arith.cmpi sge, %129, %135 : vector<2x9x9x128xi32>
    %c17_i32_43 = arith.constant 17 : i32
    %137 = vector.broadcast %c17_i32_43 : i32 to vector<2x9x9x128xi32>
    %138 = arith.cmpi slt, %129, %137 : vector<2x9x9x128xi32>
    %139 = arith.andi %136, %138 : vector<2x9x9x128xi1>
    %c1_i32_44 = arith.constant 1 : i32
    %140 = vector.broadcast %c1_i32_44 : i32 to vector<2x9x9x128xi32>
    %141 = arith.cmpi sge, %134, %140 : vector<2x9x9x128xi32>
    %142 = arith.andi %139, %141 : vector<2x9x9x128xi1>
    %c17_i32_45 = arith.constant 17 : i32
    %143 = vector.broadcast %c17_i32_45 : i32 to vector<2x9x9x128xi32>
    %144 = arith.cmpi slt, %134, %143 : vector<2x9x9x128xi32>
    %145 = arith.andi %142, %144 : vector<2x9x9x128xi1>
    %cst_46 = arith.constant 0.000000e+00 : f32
    %146 = vector.broadcast %cst_46 : f32 to vector<2x9x9x128xf32>
    %147 = arith.select %145, %124, %146 : vector<2x9x9x128xi1>, vector<2x9x9x128xf32>
    %148 = arith.truncf %147 : vector<2x9x9x128xf32> to vector<2x9x9x128xbf16>
    %149 = vector.extract_strided_slice %40 {offsets = [0, 0, 0, 0], sizes = [2, 8, 8, 128], strides = [1, 1, 1, 1]} : vector<2x9x9x128xbf16> to vector<2x8x8x128xbf16>
    %150 = vector.shape_cast %149 : vector<2x8x8x128xbf16> to vector<128x128xbf16>
    %151 = vector.extract_strided_slice %76 {offsets = [0, 0, 0, 0], sizes = [2, 8, 8, 128], strides = [1, 1, 1, 1]} : vector<2x9x9x128xbf16> to vector<2x8x8x128xbf16>
    %152 = vector.shape_cast %151 : vector<2x8x8x128xbf16> to vector<128x128xbf16>
    %153 = vector.extract_strided_slice %40 {offsets = [0, 0, 1, 0], sizes = [2, 8, 8, 128], strides = [1, 1, 1, 1]} : vector<2x9x9x128xbf16> to vector<2x8x8x128xbf16>
    %154 = vector.shape_cast %153 : vector<2x8x8x128xbf16> to vector<128x128xbf16>
    %155 = vector.extract_strided_slice %112 {offsets = [0, 0, 0, 0], sizes = [2, 8, 8, 128], strides = [1, 1, 1, 1]} : vector<2x9x9x128xbf16> to vector<2x8x8x128xbf16>
    %156 = vector.shape_cast %155 : vector<2x8x8x128xbf16> to vector<128x128xbf16>
    %157 = vector.extract_strided_slice %148 {offsets = [0, 0, 0, 0], sizes = [2, 8, 8, 128], strides = [1, 1, 1, 1]} : vector<2x9x9x128xbf16> to vector<2x8x8x128xbf16>
    %158 = vector.shape_cast %157 : vector<2x8x8x128xbf16> to vector<128x128xbf16>
    %159 = vector.extract_strided_slice %112 {offsets = [0, 0, 1, 0], sizes = [2, 8, 8, 128], strides = [1, 1, 1, 1]} : vector<2x9x9x128xbf16> to vector<2x8x8x128xbf16>
    %160 = vector.shape_cast %159 : vector<2x8x8x128xbf16> to vector<128x128xbf16>
    %161 = vector.extract_strided_slice %40 {offsets = [0, 1, 0, 0], sizes = [2, 8, 8, 128], strides = [1, 1, 1, 1]} : vector<2x9x9x128xbf16> to vector<2x8x8x128xbf16>
    %162 = vector.shape_cast %161 : vector<2x8x8x128xbf16> to vector<128x128xbf16>
    %163 = vector.extract_strided_slice %76 {offsets = [0, 1, 0, 0], sizes = [2, 8, 8, 128], strides = [1, 1, 1, 1]} : vector<2x9x9x128xbf16> to vector<2x8x8x128xbf16>
    %164 = vector.shape_cast %163 : vector<2x8x8x128xbf16> to vector<128x128xbf16>
    %165 = vector.extract_strided_slice %40 {offsets = [0, 1, 1, 0], sizes = [2, 8, 8, 128], strides = [1, 1, 1, 1]} : vector<2x9x9x128xbf16> to vector<2x8x8x128xbf16>
    %166 = vector.shape_cast %165 : vector<2x8x8x128xbf16> to vector<128x128xbf16>
    %167 = tpu.concatenate %150, %152, %154, %156, %158, %160, %162, %164, %166 in 1 : vector<128x128xbf16>, vector<128x128xbf16>, vector<128x128xbf16>, vector<128x128xbf16>, vector<128x128xbf16>, vector<128x128xbf16>, vector<128x128xbf16>, vector<128x128xbf16>, vector<128x128xbf16> -> vector<128x1152xbf16>
    %c0_47 = arith.constant 0 : index
    %c0_48 = arith.constant 0 : index
    %168 = vector.load %arg5[%c0_47, %c0_48] : memref<1152x128xbf16, #tpu.memory_space<vmem>>, vector<1152x128xbf16>
    %cst_49 = arith.constant dense<0.000000e+00> : vector<128x128xf32>
    %169 = tpu.matmul %167, %168, %cst_49 {dimension_numbers = #tpu.dot_dimension_numbers<[1], [0], [0], [1], [0, 0, 1, 1], [], []>} : vector<128x1152xbf16>, vector<1152x128xbf16>, vector<128x128xf32> -> vector<128x128xf32>
    %170 = vector.shape_cast %169 : vector<128x128xf32> to vector<2x64x128xf32>
    %171 = arith.truncf %170 : vector<2x64x128xf32> to vector<2x64x128xbf16>
    %c0_50 = arith.constant 0 : index
    %c0_51 = arith.constant 0 : index
    %c0_52 = arith.constant 0 : index
    %172 = vector.load %arg6[%c0_50, %c0_51, %c0_52] : memref<2x64x128xbf16, #tpu.memory_space<vmem>>, vector<2x64x128xbf16>
    tpu.vector_store %arg6[%c0_50, %c0_51, %c0_52], %171 {strides = array<i32>} : memref<2x64x128xbf16, #tpu.memory_space<vmem>>, vector<2x64x128xbf16>,
    %c0_i32_53 = arith.constant 0 : i32
    %173 = arith.cmpi eq, %arg1, %c0_i32_53 : i32
    %174 = arith.extui %173 : i1 to i32
    %c0_i32_54 = arith.constant 0 : i32
    %175 = arith.cmpi ne, %174, %c0_i32_54 : i32
    scf.if %175 {
      %cst_65 = arith.constant 0.000000e+00 : f32
      %187 = vector.broadcast %cst_65 : f32 to vector<1x128xf32>
      %c0_66 = arith.constant 0 : index
      %c0_67 = arith.constant 0 : index
      %188 = vector.load %arg7[%c0_66, %c0_67] : memref<1x128xf32, #tpu.memory_space<vmem>>, vector<1x128xf32>
      tpu.vector_store %arg7[%c0_66, %c0_67], %187 {strides = array<i32>} : memref<1x128xf32, #tpu.memory_space<vmem>>, vector<1x128xf32>,
      %cst_68 = arith.constant 0.000000e+00 : f32
      %189 = vector.broadcast %cst_68 : f32 to vector<1x128xf32>
      %c0_69 = arith.constant 0 : index
      %c0_70 = arith.constant 0 : index
      %190 = vector.load %arg8[%c0_69, %c0_70] : memref<1x128xf32, #tpu.memory_space<vmem>>, vector<1x128xf32>
      tpu.vector_store %arg8[%c0_69, %c0_70], %189 {strides = array<i32>} : memref<1x128xf32, #tpu.memory_space<vmem>>, vector<1x128xf32>,
    } else {
    }
    %c0_55 = arith.constant 0 : index
    %c0_56 = arith.constant 0 : index
    %176 = vector.load %arg7[%c0_55, %c0_56] : memref<1x128xf32, #tpu.memory_space<vmem>>, vector<1x128xf32>
    %cst_57 = arith.constant dense<0.000000e+00> : vector<128xf32>
    %177 = vector.multi_reduction <add>, %169, %cst_57 [0] : vector<128x128xf32> to vector<128xf32>
    %178 = vector.shape_cast %177 : vector<128xf32> to vector<1x128xf32>
    %179 = arith.addf %176, %178 : vector<1x128xf32>
    %c0_58 = arith.constant 0 : index
    %c0_59 = arith.constant 0 : index
    %180 = vector.load %arg7[%c0_58, %c0_59] : memref<1x128xf32, #tpu.memory_space<vmem>>, vector<1x128xf32>
    tpu.vector_store %arg7[%c0_58, %c0_59], %179 {strides = array<i32>} : memref<1x128xf32, #tpu.memory_space<vmem>>, vector<1x128xf32>,
    %c0_60 = arith.constant 0 : index
    %c0_61 = arith.constant 0 : index
    %181 = vector.load %arg8[%c0_60, %c0_61] : memref<1x128xf32, #tpu.memory_space<vmem>>, vector<1x128xf32>
    %182 = arith.mulf %169, %169 : vector<128x128xf32>
    %cst_62 = arith.constant dense<0.000000e+00> : vector<128xf32>
    %183 = vector.multi_reduction <add>, %182, %cst_62 [0] : vector<128x128xf32> to vector<128xf32>
    %184 = vector.shape_cast %183 : vector<128xf32> to vector<1x128xf32>
    %185 = arith.addf %181, %184 : vector<1x128xf32>
    %c0_63 = arith.constant 0 : index
    %c0_64 = arith.constant 0 : index
    %186 = vector.load %arg8[%c0_63, %c0_64] : memref<1x128xf32, #tpu.memory_space<vmem>>, vector<1x128xf32>
    tpu.vector_store %arg8[%c0_63, %c0_64], %185 {strides = array<i32>} : memref<1x128xf32, #tpu.memory_space<vmem>>, vector<1x128xf32>,
    return
  }
  func.func @transform_0(%arg0: i32, %arg1: i32) -> (i32, i32, i32, i32, i32) {
    %c0_i32 = arith.constant 0 : i32
    %c0_i32_0 = arith.constant 0 : i32
    %c0_i32_1 = arith.constant 0 : i32
    %c0_i32_2 = arith.constant 0 : i32
    %c0_i32_3 = arith.constant 0 : i32
    return %arg1, %c0_i32, %c0_i32_0, %c0_i32_1, %c0_i32_2 : i32, i32, i32, i32, i32
  }
  func.func @transform_1(%arg0: i32, %arg1: i32) -> (i32, i32) {
    %c0_i32 = arith.constant 0 : i32
    %c0_i32_0 = arith.constant 0 : i32
    %c0_i32_1 = arith.constant 0 : i32
    return %c0_i32, %c0_i32_0 : i32, i32
  }
  func.func @transform_2(%arg0: i32, %arg1: i32) -> (i32, i32) {
    %c0_i32 = arith.constant 0 : i32
    %c0_i32_0 = arith.constant 0 : i32
    %c0_i32_1 = arith.constant 0 : i32
    return %c0_i32, %c0_i32_0 : i32, i32
  }
  func.func @transform_3(%arg0: i32, %arg1: i32) -> (i32, i32) {
    %c0_i32 = arith.constant 0 : i32
    %c0_i32_0 = arith.constant 0 : i32
    return %c0_i32, %arg0 : i32, i32
  }
  func.func @transform_4(%arg0: i32, %arg1: i32) -> (i32, i32, i32) {
    %c0_i32 = arith.constant 0 : i32
    %c0_i32_0 = arith.constant 0 : i32
    return %arg1, %c0_i32, %arg0 : i32, i32, i32
  }
  func.func @transform_5(%arg0: i32, %arg1: i32) -> (i32, i32) {
    %c0_i32 = arith.constant 0 : i32
    %c0_i32_0 = arith.constant 0 : i32
    return %c0_i32, %arg0 : i32, i32
  }
  func.func @transform_6(%arg0: i32, %arg1: i32) -> (i32, i32) {
    %c0_i32 = arith.constant 0 : i32
    %c0_i32_0 = arith.constant 0 : i32
    return %c0_i32, %arg0 : i32, i32
  }
}

module attributes {stable_mosaic.version = 11 : i64} {
  func.func @_bn_finalize_kernel(%arg0: i32, %arg1: memref<1x128xf32, #tpu.memory_space<vmem>>, %arg2: memref<1x128xf32, #tpu.memory_space<vmem>>, %arg3: memref<1x128xf32, #tpu.memory_space<vmem>>, %arg4: memref<1x128xf32, #tpu.memory_space<vmem>>, %arg5: memref<1x128xf32, #tpu.memory_space<vmem>>, %arg6: memref<1x128xf32, #tpu.memory_space<vmem>>) attributes {dimension_semantics = [#tpu.dimension_semantics<arbitrary>], iteration_bounds = array<i64: 1>, scalar_prefetch = 0 : i64, scratch_operands = 0 : i64, tpu.core_type = #tpu.core_type<tc>, window_params = [{pipeline_mode = #tpu.pipeline_mode<synchronous>, transform_indices = @transform_0, window_bounds = array<i64: 1, 128>}, {pipeline_mode = #tpu.pipeline_mode<synchronous>, transform_indices = @transform_1, window_bounds = array<i64: 1, 128>}, {pipeline_mode = #tpu.pipeline_mode<synchronous>, transform_indices = @transform_2, window_bounds = array<i64: 1, 128>}, {pipeline_mode = #tpu.pipeline_mode<synchronous>, transform_indices = @transform_3, window_bounds = array<i64: 1, 128>}, {pipeline_mode = #tpu.pipeline_mode<synchronous>, transform_indices = @transform_4, window_bounds = array<i64: 1, 128>}, {pipeline_mode = #tpu.pipeline_mode<synchronous>, transform_indices = @transform_5, window_bounds = array<i64: 1, 128>}]} {
    %c0 = arith.constant 0 : index
    %c0_0 = arith.constant 0 : index
    %0 = vector.load %arg1[%c0, %c0_0] : memref<1x128xf32, #tpu.memory_space<vmem>>, vector<1x128xf32>
    %cst = arith.constant 7.812500e-03 : f32
    %1 = vector.broadcast %cst : f32 to vector<1x128xf32>
    %2 = arith.mulf %0, %1 : vector<1x128xf32>
    %c0_1 = arith.constant 0 : index
    %c0_2 = arith.constant 0 : index
    %3 = vector.load %arg2[%c0_1, %c0_2] : memref<1x128xf32, #tpu.memory_space<vmem>>, vector<1x128xf32>
    %cst_3 = arith.constant 7.812500e-03 : f32
    %4 = vector.broadcast %cst_3 : f32 to vector<1x128xf32>
    %5 = arith.mulf %3, %4 : vector<1x128xf32>
    %6 = arith.mulf %2, %2 : vector<1x128xf32>
    %7 = arith.subf %5, %6 : vector<1x128xf32>
    %cst_4 = arith.constant 0.000000e+00 : f32
    %8 = vector.broadcast %cst_4 : f32 to vector<1x128xf32>
    %9 = arith.maximumf %7, %8 : vector<1x128xf32>
    %c0_5 = arith.constant 0 : index
    %c0_6 = arith.constant 0 : index
    %10 = vector.load %arg3[%c0_5, %c0_6] : memref<1x128xf32, #tpu.memory_space<vmem>>, vector<1x128xf32>
    %cst_7 = arith.constant 9.99999974E-6 : f32
    %11 = vector.broadcast %cst_7 : f32 to vector<1x128xf32>
    %12 = arith.addf %9, %11 : vector<1x128xf32>
    %13 = math.rsqrt %12 : vector<1x128xf32>
    %14 = arith.mulf %10, %13 : vector<1x128xf32>
    %c0_8 = arith.constant 0 : index
    %c0_9 = arith.constant 0 : index
    %15 = vector.load %arg5[%c0_8, %c0_9] : memref<1x128xf32, #tpu.memory_space<vmem>>, vector<1x128xf32>
    tpu.vector_store %arg5[%c0_8, %c0_9], %14 {strides = array<i32>} : memref<1x128xf32, #tpu.memory_space<vmem>>, vector<1x128xf32>,
    %c0_10 = arith.constant 0 : index
    %c0_11 = arith.constant 0 : index
    %16 = vector.load %arg4[%c0_10, %c0_11] : memref<1x128xf32, #tpu.memory_space<vmem>>, vector<1x128xf32>
    %17 = arith.mulf %2, %14 : vector<1x128xf32>
    %18 = arith.subf %16, %17 : vector<1x128xf32>
    %c0_12 = arith.constant 0 : index
    %c0_13 = arith.constant 0 : index
    %19 = vector.load %arg6[%c0_12, %c0_13] : memref<1x128xf32, #tpu.memory_space<vmem>>, vector<1x128xf32>
    tpu.vector_store %arg6[%c0_12, %c0_13], %18 {strides = array<i32>} : memref<1x128xf32, #tpu.memory_space<vmem>>, vector<1x128xf32>,
    return
  }
  func.func @transform_0(%arg0: i32) -> (i32, i32) {
    %c0_i32 = arith.constant 0 : i32
    %c0_i32_0 = arith.constant 0 : i32
    %c0_i32_1 = arith.constant 0 : i32
    return %c0_i32, %c0_i32_0 : i32, i32
  }
  func.func @transform_1(%arg0: i32) -> (i32, i32) {
    %c0_i32 = arith.constant 0 : i32
    %c0_i32_0 = arith.constant 0 : i32
    %c0_i32_1 = arith.constant 0 : i32
    return %c0_i32, %c0_i32_0 : i32, i32
  }
  func.func @transform_2(%arg0: i32) -> (i32, i32) {
    %c0_i32 = arith.constant 0 : i32
    %c0_i32_0 = arith.constant 0 : i32
    %c0_i32_1 = arith.constant 0 : i32
    return %c0_i32, %c0_i32_0 : i32, i32
  }
  func.func @transform_3(%arg0: i32) -> (i32, i32) {
    %c0_i32 = arith.constant 0 : i32
    %c0_i32_0 = arith.constant 0 : i32
    %c0_i32_1 = arith.constant 0 : i32
    return %c0_i32, %c0_i32_0 : i32, i32
  }
  func.func @transform_4(%arg0: i32) -> (i32, i32) {
    %c0_i32 = arith.constant 0 : i32
    %c0_i32_0 = arith.constant 0 : i32
    %c0_i32_1 = arith.constant 0 : i32
    return %c0_i32, %c0_i32_0 : i32, i32
  }
  func.func @transform_5(%arg0: i32) -> (i32, i32) {
    %c0_i32 = arith.constant 0 : i32
    %c0_i32_0 = arith.constant 0 : i32
    %c0_i32_1 = arith.constant 0 : i32
    return %c0_i32, %c0_i32_0 : i32, i32
  }
}

module attributes {stable_mosaic.version = 11 : i64} {
  func.func @kernel(%arg0: i32, %arg1: i32, %arg2: memref<2x1x10x10x128xbf16, #tpu.memory_space<vmem>>, %arg3: memref<1x128xf32, #tpu.memory_space<vmem>>, %arg4: memref<1x128xf32, #tpu.memory_space<vmem>>, %arg5: memref<1152x128xbf16, #tpu.memory_space<vmem>>, %arg6: memref<2x64x128xbf16, #tpu.memory_space<vmem>>, %arg7: memref<1x128xf32, #tpu.memory_space<vmem>>, %arg8: memref<1x128xf32, #tpu.memory_space<vmem>>) attributes {dimension_semantics = [#tpu.dimension_semantics<parallel>, #tpu.dimension_semantics<arbitrary>], iteration_bounds = array<i64: 1, 1>, scalar_prefetch = 0 : i64, scratch_operands = 0 : i64, tpu.core_type = #tpu.core_type<tc>, window_params = [{transform_indices = @transform_0, window_bounds = array<i64: 2, 1, 10, 10, 128>}, {pipeline_mode = #tpu.pipeline_mode<synchronous>, transform_indices = @transform_1, window_bounds = array<i64: 1, 128>}, {pipeline_mode = #tpu.pipeline_mode<synchronous>, transform_indices = @transform_2, window_bounds = array<i64: 1, 128>}, {transform_indices = @transform_3, window_bounds = array<i64: 1152, 128>}, {transform_indices = @transform_4, window_bounds = array<i64: 2, 64, 128>}, {transform_indices = @transform_5, window_bounds = array<i64: 1, 128>}, {transform_indices = @transform_6, window_bounds = array<i64: 1, 128>}]} {
    %c0 = arith.constant 0 : index
    %c0_0 = arith.constant 0 : index
    %c0_1 = arith.constant 0 : index
    %c0_2 = arith.constant 0 : index
    %c0_3 = arith.constant 0 : index
    %0 = vector.load %arg2[%c0, %c0_0, %c0_1, %c0_2, %c0_3] : memref<2x1x10x10x128xbf16, #tpu.memory_space<vmem>>, vector<2x1x10x10x128xbf16>
    %c0_4 = arith.constant 0 : index
    %c0_5 = arith.constant 0 : index
    %1 = vector.load %arg3[%c0_4, %c0_5] : memref<1x128xf32, #tpu.memory_space<vmem>>, vector<1x128xf32>
    %2 = vector.shape_cast %1 : vector<1x128xf32> to vector<1x1x1x128xf32>
    %c0_6 = arith.constant 0 : index
    %c0_7 = arith.constant 0 : index
    %3 = vector.load %arg4[%c0_6, %c0_7] : memref<1x128xf32, #tpu.memory_space<vmem>>, vector<1x128xf32>
    %4 = vector.shape_cast %3 : vector<1x128xf32> to vector<1x1x1x128xf32>
    %5 = vector.shape_cast %0 : vector<2x1x10x10x128xbf16> to vector<2x10x10x128xbf16>
    %6 = arith.extf %5 : vector<2x10x10x128xbf16> to vector<2x10x10x128xf32>
    %7 = vector.broadcast %2 : vector<1x1x1x128xf32> to vector<2x10x10x128xf32>
    %8 = arith.mulf %6, %7 : vector<2x10x10x128xf32>
    %9 = vector.broadcast %4 : vector<1x1x1x128xf32> to vector<2x10x10x128xf32>
    %10 = arith.addf %8, %9 : vector<2x10x10x128xf32>
    %cst = arith.constant 0.000000e+00 : f32
    %11 = vector.broadcast %cst : f32 to vector<2x10x10x128xf32>
    %12 = arith.cmpf oge, %10, %11 : vector<2x10x10x128xf32>
    %cst_8 = arith.constant 1.000000e-01 : f32
    %13 = vector.broadcast %cst_8 : f32 to vector<2x10x10x128xf32>
    %14 = arith.mulf %13, %10 : vector<2x10x10x128xf32>
    %15 = arith.select %12, %10, %14 : vector<2x10x10x128xi1>, vector<2x10x10x128xf32>
    %16 = tpu.iota {dimensions = array<i32: 1>} : vector<2x10x10x128xi32>
    %c1_i32 = arith.constant 1 : i32
    %17 = vector.broadcast %c1_i32 : i32 to vector<2x10x10x128xi32>
    %18 = arith.muli %16, %17 : vector<2x10x10x128xi32>
    %c0_i32 = arith.constant 0 : i32
    %19 = vector.broadcast %c0_i32 : i32 to vector<2x10x10x128xi32>
    %20 = arith.addi %18, %19 : vector<2x10x10x128xi32>
    %21 = tpu.iota {dimensions = array<i32: 2>} : vector<2x10x10x128xi32>
    %c1_i32_9 = arith.constant 1 : i32
    %22 = vector.broadcast %c1_i32_9 : i32 to vector<2x10x10x128xi32>
    %23 = arith.muli %21, %22 : vector<2x10x10x128xi32>
    %c0_i32_10 = arith.constant 0 : i32
    %24 = vector.broadcast %c0_i32_10 : i32 to vector<2x10x10x128xi32>
    %25 = arith.addi %23, %24 : vector<2x10x10x128xi32>
    %c1_i32_11 = arith.constant 1 : i32
    %26 = vector.broadcast %c1_i32_11 : i32 to vector<2x10x10x128xi32>
    %27 = arith.cmpi sge, %20, %26 : vector<2x10x10x128xi32>
    %c9_i32 = arith.constant 9 : i32
    %28 = vector.broadcast %c9_i32 : i32 to vector<2x10x10x128xi32>
    %29 = arith.cmpi slt, %20, %28 : vector<2x10x10x128xi32>
    %30 = arith.andi %27, %29 : vector<2x10x10x128xi1>
    %c1_i32_12 = arith.constant 1 : i32
    %31 = vector.broadcast %c1_i32_12 : i32 to vector<2x10x10x128xi32>
    %32 = arith.cmpi sge, %25, %31 : vector<2x10x10x128xi32>
    %33 = arith.andi %30, %32 : vector<2x10x10x128xi1>
    %c9_i32_13 = arith.constant 9 : i32
    %34 = vector.broadcast %c9_i32_13 : i32 to vector<2x10x10x128xi32>
    %35 = arith.cmpi slt, %25, %34 : vector<2x10x10x128xi32>
    %36 = arith.andi %33, %35 : vector<2x10x10x128xi1>
    %cst_14 = arith.constant 0.000000e+00 : f32
    %37 = vector.broadcast %cst_14 : f32 to vector<2x10x10x128xf32>
    %38 = arith.select %36, %15, %37 : vector<2x10x10x128xi1>, vector<2x10x10x128xf32>
    %39 = arith.truncf %38 : vector<2x10x10x128xf32> to vector<2x10x10x128xbf16>
    %40 = vector.extract_strided_slice %39 {offsets = [0, 0, 0, 0], sizes = [2, 8, 8, 128], strides = [1, 1, 1, 1]} : vector<2x10x10x128xbf16> to vector<2x8x8x128xbf16>
    %41 = vector.shape_cast %40 : vector<2x8x8x128xbf16> to vector<128x128xbf16>
    %42 = vector.extract_strided_slice %39 {offsets = [0, 0, 1, 0], sizes = [2, 8, 8, 128], strides = [1, 1, 1, 1]} : vector<2x10x10x128xbf16> to vector<2x8x8x128xbf16>
    %43 = vector.shape_cast %42 : vector<2x8x8x128xbf16> to vector<128x128xbf16>
    %44 = vector.extract_strided_slice %39 {offsets = [0, 0, 2, 0], sizes = [2, 8, 8, 128], strides = [1, 1, 1, 1]} : vector<2x10x10x128xbf16> to vector<2x8x8x128xbf16>
    %45 = vector.shape_cast %44 : vector<2x8x8x128xbf16> to vector<128x128xbf16>
    %46 = vector.extract_strided_slice %39 {offsets = [0, 1, 0, 0], sizes = [2, 8, 8, 128], strides = [1, 1, 1, 1]} : vector<2x10x10x128xbf16> to vector<2x8x8x128xbf16>
    %47 = vector.shape_cast %46 : vector<2x8x8x128xbf16> to vector<128x128xbf16>
    %48 = vector.extract_strided_slice %39 {offsets = [0, 1, 1, 0], sizes = [2, 8, 8, 128], strides = [1, 1, 1, 1]} : vector<2x10x10x128xbf16> to vector<2x8x8x128xbf16>
    %49 = vector.shape_cast %48 : vector<2x8x8x128xbf16> to vector<128x128xbf16>
    %50 = vector.extract_strided_slice %39 {offsets = [0, 1, 2, 0], sizes = [2, 8, 8, 128], strides = [1, 1, 1, 1]} : vector<2x10x10x128xbf16> to vector<2x8x8x128xbf16>
    %51 = vector.shape_cast %50 : vector<2x8x8x128xbf16> to vector<128x128xbf16>
    %52 = vector.extract_strided_slice %39 {offsets = [0, 2, 0, 0], sizes = [2, 8, 8, 128], strides = [1, 1, 1, 1]} : vector<2x10x10x128xbf16> to vector<2x8x8x128xbf16>
    %53 = vector.shape_cast %52 : vector<2x8x8x128xbf16> to vector<128x128xbf16>
    %54 = vector.extract_strided_slice %39 {offsets = [0, 2, 1, 0], sizes = [2, 8, 8, 128], strides = [1, 1, 1, 1]} : vector<2x10x10x128xbf16> to vector<2x8x8x128xbf16>
    %55 = vector.shape_cast %54 : vector<2x8x8x128xbf16> to vector<128x128xbf16>
    %56 = vector.extract_strided_slice %39 {offsets = [0, 2, 2, 0], sizes = [2, 8, 8, 128], strides = [1, 1, 1, 1]} : vector<2x10x10x128xbf16> to vector<2x8x8x128xbf16>
    %57 = vector.shape_cast %56 : vector<2x8x8x128xbf16> to vector<128x128xbf16>
    %58 = tpu.concatenate %41, %43, %45, %47, %49, %51, %53, %55, %57 in 1 : vector<128x128xbf16>, vector<128x128xbf16>, vector<128x128xbf16>, vector<128x128xbf16>, vector<128x128xbf16>, vector<128x128xbf16>, vector<128x128xbf16>, vector<128x128xbf16>, vector<128x128xbf16> -> vector<128x1152xbf16>
    %c0_15 = arith.constant 0 : index
    %c0_16 = arith.constant 0 : index
    %59 = vector.load %arg5[%c0_15, %c0_16] : memref<1152x128xbf16, #tpu.memory_space<vmem>>, vector<1152x128xbf16>
    %cst_17 = arith.constant dense<0.000000e+00> : vector<128x128xf32>
    %60 = tpu.matmul %58, %59, %cst_17 {dimension_numbers = #tpu.dot_dimension_numbers<[1], [0], [0], [1], [0, 0, 1, 1], [], []>} : vector<128x1152xbf16>, vector<1152x128xbf16>, vector<128x128xf32> -> vector<128x128xf32>
    %61 = vector.shape_cast %60 : vector<128x128xf32> to vector<2x64x128xf32>
    %62 = arith.truncf %61 : vector<2x64x128xf32> to vector<2x64x128xbf16>
    %c0_18 = arith.constant 0 : index
    %c0_19 = arith.constant 0 : index
    %c0_20 = arith.constant 0 : index
    %63 = vector.load %arg6[%c0_18, %c0_19, %c0_20] : memref<2x64x128xbf16, #tpu.memory_space<vmem>>, vector<2x64x128xbf16>
    tpu.vector_store %arg6[%c0_18, %c0_19, %c0_20], %62 {strides = array<i32>} : memref<2x64x128xbf16, #tpu.memory_space<vmem>>, vector<2x64x128xbf16>,
    %c0_i32_21 = arith.constant 0 : i32
    %64 = arith.cmpi eq, %arg1, %c0_i32_21 : i32
    %65 = arith.extui %64 : i1 to i32
    %c0_i32_22 = arith.constant 0 : i32
    %66 = arith.cmpi ne, %65, %c0_i32_22 : i32
    scf.if %66 {
      %cst_33 = arith.constant 0.000000e+00 : f32
      %78 = vector.broadcast %cst_33 : f32 to vector<1x128xf32>
      %c0_34 = arith.constant 0 : index
      %c0_35 = arith.constant 0 : index
      %79 = vector.load %arg7[%c0_34, %c0_35] : memref<1x128xf32, #tpu.memory_space<vmem>>, vector<1x128xf32>
      tpu.vector_store %arg7[%c0_34, %c0_35], %78 {strides = array<i32>} : memref<1x128xf32, #tpu.memory_space<vmem>>, vector<1x128xf32>,
      %cst_36 = arith.constant 0.000000e+00 : f32
      %80 = vector.broadcast %cst_36 : f32 to vector<1x128xf32>
      %c0_37 = arith.constant 0 : index
      %c0_38 = arith.constant 0 : index
      %81 = vector.load %arg8[%c0_37, %c0_38] : memref<1x128xf32, #tpu.memory_space<vmem>>, vector<1x128xf32>
      tpu.vector_store %arg8[%c0_37, %c0_38], %80 {strides = array<i32>} : memref<1x128xf32, #tpu.memory_space<vmem>>, vector<1x128xf32>,
    } else {
    }
    %c0_23 = arith.constant 0 : index
    %c0_24 = arith.constant 0 : index
    %67 = vector.load %arg7[%c0_23, %c0_24] : memref<1x128xf32, #tpu.memory_space<vmem>>, vector<1x128xf32>
    %cst_25 = arith.constant dense<0.000000e+00> : vector<128xf32>
    %68 = vector.multi_reduction <add>, %60, %cst_25 [0] : vector<128x128xf32> to vector<128xf32>
    %69 = vector.shape_cast %68 : vector<128xf32> to vector<1x128xf32>
    %70 = arith.addf %67, %69 : vector<1x128xf32>
    %c0_26 = arith.constant 0 : index
    %c0_27 = arith.constant 0 : index
    %71 = vector.load %arg7[%c0_26, %c0_27] : memref<1x128xf32, #tpu.memory_space<vmem>>, vector<1x128xf32>
    tpu.vector_store %arg7[%c0_26, %c0_27], %70 {strides = array<i32>} : memref<1x128xf32, #tpu.memory_space<vmem>>, vector<1x128xf32>,
    %c0_28 = arith.constant 0 : index
    %c0_29 = arith.constant 0 : index
    %72 = vector.load %arg8[%c0_28, %c0_29] : memref<1x128xf32, #tpu.memory_space<vmem>>, vector<1x128xf32>
    %73 = arith.mulf %60, %60 : vector<128x128xf32>
    %cst_30 = arith.constant dense<0.000000e+00> : vector<128xf32>
    %74 = vector.multi_reduction <add>, %73, %cst_30 [0] : vector<128x128xf32> to vector<128xf32>
    %75 = vector.shape_cast %74 : vector<128xf32> to vector<1x128xf32>
    %76 = arith.addf %72, %75 : vector<1x128xf32>
    %c0_31 = arith.constant 0 : index
    %c0_32 = arith.constant 0 : index
    %77 = vector.load %arg8[%c0_31, %c0_32] : memref<1x128xf32, #tpu.memory_space<vmem>>, vector<1x128xf32>
    tpu.vector_store %arg8[%c0_31, %c0_32], %76 {strides = array<i32>} : memref<1x128xf32, #tpu.memory_space<vmem>>, vector<1x128xf32>,
    return
  }
  func.func @transform_0(%arg0: i32, %arg1: i32) -> (i32, i32, i32, i32, i32) {
    %c0_i32 = arith.constant 0 : i32
    %c0_i32_0 = arith.constant 0 : i32
    %c0_i32_1 = arith.constant 0 : i32
    %c0_i32_2 = arith.constant 0 : i32
    %c0_i32_3 = arith.constant 0 : i32
    return %arg1, %c0_i32, %c0_i32_0, %c0_i32_1, %c0_i32_2 : i32, i32, i32, i32, i32
  }
  func.func @transform_1(%arg0: i32, %arg1: i32) -> (i32, i32) {
    %c0_i32 = arith.constant 0 : i32
    %c0_i32_0 = arith.constant 0 : i32
    %c0_i32_1 = arith.constant 0 : i32
    return %c0_i32, %c0_i32_0 : i32, i32
  }
  func.func @transform_2(%arg0: i32, %arg1: i32) -> (i32, i32) {
    %c0_i32 = arith.constant 0 : i32
    %c0_i32_0 = arith.constant 0 : i32
    %c0_i32_1 = arith.constant 0 : i32
    return %c0_i32, %c0_i32_0 : i32, i32
  }
  func.func @transform_3(%arg0: i32, %arg1: i32) -> (i32, i32) {
    %c0_i32 = arith.constant 0 : i32
    %c0_i32_0 = arith.constant 0 : i32
    return %c0_i32, %arg0 : i32, i32
  }
  func.func @transform_4(%arg0: i32, %arg1: i32) -> (i32, i32, i32) {
    %c0_i32 = arith.constant 0 : i32
    %c0_i32_0 = arith.constant 0 : i32
    return %arg1, %c0_i32, %arg0 : i32, i32, i32
  }
  func.func @transform_5(%arg0: i32, %arg1: i32) -> (i32, i32) {
    %c0_i32 = arith.constant 0 : i32
    %c0_i32_0 = arith.constant 0 : i32
    return %c0_i32, %arg0 : i32, i32
  }
  func.func @transform_6(%arg0: i32, %arg1: i32) -> (i32, i32) {
    %c0_i32 = arith.constant 0 : i32
    %c0_i32_0 = arith.constant 0 : i32
    return %c0_i32, %arg0 : i32, i32
  }
}

module attributes {stable_mosaic.version = 11 : i64} {
  func.func @kernel(%arg0: i32, %arg1: i32, %arg2: memref<2x1x10x10x128xbf16, #tpu.memory_space<vmem>>, %arg3: memref<1x128xf32, #tpu.memory_space<vmem>>, %arg4: memref<1x128xf32, #tpu.memory_space<vmem>>, %arg5: memref<1152x128xbf16, #tpu.memory_space<vmem>>, %arg6: memref<2x64x128xbf16, #tpu.memory_space<vmem>>, %arg7: memref<2x64x128xbf16, #tpu.memory_space<vmem>>) attributes {dimension_semantics = [#tpu.dimension_semantics<parallel>, #tpu.dimension_semantics<parallel>], iteration_bounds = array<i64: 1, 1>, scalar_prefetch = 0 : i64, scratch_operands = 0 : i64, tpu.core_type = #tpu.core_type<tc>, window_params = [{transform_indices = @transform_0, window_bounds = array<i64: 2, 1, 10, 10, 128>}, {pipeline_mode = #tpu.pipeline_mode<synchronous>, transform_indices = @transform_1, window_bounds = array<i64: 1, 128>}, {pipeline_mode = #tpu.pipeline_mode<synchronous>, transform_indices = @transform_2, window_bounds = array<i64: 1, 128>}, {transform_indices = @transform_3, window_bounds = array<i64: 1152, 128>}, {transform_indices = @transform_4, window_bounds = array<i64: 2, 64, 128>}, {transform_indices = @transform_5, window_bounds = array<i64: 2, 64, 128>}]} {
    %c0 = arith.constant 0 : index
    %c0_0 = arith.constant 0 : index
    %c0_1 = arith.constant 0 : index
    %c0_2 = arith.constant 0 : index
    %c0_3 = arith.constant 0 : index
    %0 = vector.load %arg2[%c0, %c0_0, %c0_1, %c0_2, %c0_3] : memref<2x1x10x10x128xbf16, #tpu.memory_space<vmem>>, vector<2x1x10x10x128xbf16>
    %c0_4 = arith.constant 0 : index
    %c0_5 = arith.constant 0 : index
    %1 = vector.load %arg3[%c0_4, %c0_5] : memref<1x128xf32, #tpu.memory_space<vmem>>, vector<1x128xf32>
    %2 = vector.shape_cast %1 : vector<1x128xf32> to vector<1x1x1x128xf32>
    %c0_6 = arith.constant 0 : index
    %c0_7 = arith.constant 0 : index
    %3 = vector.load %arg4[%c0_6, %c0_7] : memref<1x128xf32, #tpu.memory_space<vmem>>, vector<1x128xf32>
    %4 = vector.shape_cast %3 : vector<1x128xf32> to vector<1x1x1x128xf32>
    %5 = vector.shape_cast %0 : vector<2x1x10x10x128xbf16> to vector<2x10x10x128xbf16>
    %6 = arith.extf %5 : vector<2x10x10x128xbf16> to vector<2x10x10x128xf32>
    %7 = vector.broadcast %2 : vector<1x1x1x128xf32> to vector<2x10x10x128xf32>
    %8 = arith.mulf %6, %7 : vector<2x10x10x128xf32>
    %9 = vector.broadcast %4 : vector<1x1x1x128xf32> to vector<2x10x10x128xf32>
    %10 = arith.addf %8, %9 : vector<2x10x10x128xf32>
    %cst = arith.constant 0.000000e+00 : f32
    %11 = vector.broadcast %cst : f32 to vector<2x10x10x128xf32>
    %12 = arith.cmpf oge, %10, %11 : vector<2x10x10x128xf32>
    %cst_8 = arith.constant 1.000000e-01 : f32
    %13 = vector.broadcast %cst_8 : f32 to vector<2x10x10x128xf32>
    %14 = arith.mulf %13, %10 : vector<2x10x10x128xf32>
    %15 = arith.select %12, %10, %14 : vector<2x10x10x128xi1>, vector<2x10x10x128xf32>
    %16 = tpu.iota {dimensions = array<i32: 1>} : vector<2x10x10x128xi32>
    %c1_i32 = arith.constant 1 : i32
    %17 = vector.broadcast %c1_i32 : i32 to vector<2x10x10x128xi32>
    %18 = arith.muli %16, %17 : vector<2x10x10x128xi32>
    %c0_i32 = arith.constant 0 : i32
    %19 = vector.broadcast %c0_i32 : i32 to vector<2x10x10x128xi32>
    %20 = arith.addi %18, %19 : vector<2x10x10x128xi32>
    %21 = tpu.iota {dimensions = array<i32: 2>} : vector<2x10x10x128xi32>
    %c1_i32_9 = arith.constant 1 : i32
    %22 = vector.broadcast %c1_i32_9 : i32 to vector<2x10x10x128xi32>
    %23 = arith.muli %21, %22 : vector<2x10x10x128xi32>
    %c0_i32_10 = arith.constant 0 : i32
    %24 = vector.broadcast %c0_i32_10 : i32 to vector<2x10x10x128xi32>
    %25 = arith.addi %23, %24 : vector<2x10x10x128xi32>
    %c1_i32_11 = arith.constant 1 : i32
    %26 = vector.broadcast %c1_i32_11 : i32 to vector<2x10x10x128xi32>
    %27 = arith.cmpi sge, %20, %26 : vector<2x10x10x128xi32>
    %c9_i32 = arith.constant 9 : i32
    %28 = vector.broadcast %c9_i32 : i32 to vector<2x10x10x128xi32>
    %29 = arith.cmpi slt, %20, %28 : vector<2x10x10x128xi32>
    %30 = arith.andi %27, %29 : vector<2x10x10x128xi1>
    %c1_i32_12 = arith.constant 1 : i32
    %31 = vector.broadcast %c1_i32_12 : i32 to vector<2x10x10x128xi32>
    %32 = arith.cmpi sge, %25, %31 : vector<2x10x10x128xi32>
    %33 = arith.andi %30, %32 : vector<2x10x10x128xi1>
    %c9_i32_13 = arith.constant 9 : i32
    %34 = vector.broadcast %c9_i32_13 : i32 to vector<2x10x10x128xi32>
    %35 = arith.cmpi slt, %25, %34 : vector<2x10x10x128xi32>
    %36 = arith.andi %33, %35 : vector<2x10x10x128xi1>
    %cst_14 = arith.constant 0.000000e+00 : f32
    %37 = vector.broadcast %cst_14 : f32 to vector<2x10x10x128xf32>
    %38 = arith.select %36, %15, %37 : vector<2x10x10x128xi1>, vector<2x10x10x128xf32>
    %39 = arith.truncf %38 : vector<2x10x10x128xf32> to vector<2x10x10x128xbf16>
    %40 = vector.extract_strided_slice %39 {offsets = [0, 0, 0, 0], sizes = [2, 8, 8, 128], strides = [1, 1, 1, 1]} : vector<2x10x10x128xbf16> to vector<2x8x8x128xbf16>
    %41 = vector.shape_cast %40 : vector<2x8x8x128xbf16> to vector<128x128xbf16>
    %42 = vector.extract_strided_slice %39 {offsets = [0, 0, 1, 0], sizes = [2, 8, 8, 128], strides = [1, 1, 1, 1]} : vector<2x10x10x128xbf16> to vector<2x8x8x128xbf16>
    %43 = vector.shape_cast %42 : vector<2x8x8x128xbf16> to vector<128x128xbf16>
    %44 = vector.extract_strided_slice %39 {offsets = [0, 0, 2, 0], sizes = [2, 8, 8, 128], strides = [1, 1, 1, 1]} : vector<2x10x10x128xbf16> to vector<2x8x8x128xbf16>
    %45 = vector.shape_cast %44 : vector<2x8x8x128xbf16> to vector<128x128xbf16>
    %46 = vector.extract_strided_slice %39 {offsets = [0, 1, 0, 0], sizes = [2, 8, 8, 128], strides = [1, 1, 1, 1]} : vector<2x10x10x128xbf16> to vector<2x8x8x128xbf16>
    %47 = vector.shape_cast %46 : vector<2x8x8x128xbf16> to vector<128x128xbf16>
    %48 = vector.extract_strided_slice %39 {offsets = [0, 1, 1, 0], sizes = [2, 8, 8, 128], strides = [1, 1, 1, 1]} : vector<2x10x10x128xbf16> to vector<2x8x8x128xbf16>
    %49 = vector.shape_cast %48 : vector<2x8x8x128xbf16> to vector<128x128xbf16>
    %50 = vector.extract_strided_slice %39 {offsets = [0, 1, 2, 0], sizes = [2, 8, 8, 128], strides = [1, 1, 1, 1]} : vector<2x10x10x128xbf16> to vector<2x8x8x128xbf16>
    %51 = vector.shape_cast %50 : vector<2x8x8x128xbf16> to vector<128x128xbf16>
    %52 = vector.extract_strided_slice %39 {offsets = [0, 2, 0, 0], sizes = [2, 8, 8, 128], strides = [1, 1, 1, 1]} : vector<2x10x10x128xbf16> to vector<2x8x8x128xbf16>
    %53 = vector.shape_cast %52 : vector<2x8x8x128xbf16> to vector<128x128xbf16>
    %54 = vector.extract_strided_slice %39 {offsets = [0, 2, 1, 0], sizes = [2, 8, 8, 128], strides = [1, 1, 1, 1]} : vector<2x10x10x128xbf16> to vector<2x8x8x128xbf16>
    %55 = vector.shape_cast %54 : vector<2x8x8x128xbf16> to vector<128x128xbf16>
    %56 = vector.extract_strided_slice %39 {offsets = [0, 2, 2, 0], sizes = [2, 8, 8, 128], strides = [1, 1, 1, 1]} : vector<2x10x10x128xbf16> to vector<2x8x8x128xbf16>
    %57 = vector.shape_cast %56 : vector<2x8x8x128xbf16> to vector<128x128xbf16>
    %58 = tpu.concatenate %41, %43, %45, %47, %49, %51, %53, %55, %57 in 1 : vector<128x128xbf16>, vector<128x128xbf16>, vector<128x128xbf16>, vector<128x128xbf16>, vector<128x128xbf16>, vector<128x128xbf16>, vector<128x128xbf16>, vector<128x128xbf16>, vector<128x128xbf16> -> vector<128x1152xbf16>
    %c0_15 = arith.constant 0 : index
    %c0_16 = arith.constant 0 : index
    %59 = vector.load %arg5[%c0_15, %c0_16] : memref<1152x128xbf16, #tpu.memory_space<vmem>>, vector<1152x128xbf16>
    %cst_17 = arith.constant dense<0.000000e+00> : vector<128x128xf32>
    %60 = tpu.matmul %58, %59, %cst_17 {dimension_numbers = #tpu.dot_dimension_numbers<[1], [0], [0], [1], [0, 0, 1, 1], [], []>} : vector<128x1152xbf16>, vector<1152x128xbf16>, vector<128x128xf32> -> vector<128x128xf32>
    %c0_18 = arith.constant 0 : index
    %c0_19 = arith.constant 0 : index
    %c0_20 = arith.constant 0 : index
    %61 = vector.load %arg6[%c0_18, %c0_19, %c0_20] : memref<2x64x128xbf16, #tpu.memory_space<vmem>>, vector<2x64x128xbf16>
    %62 = vector.shape_cast %61 : vector<2x64x128xbf16> to vector<128x128xbf16>
    %63 = arith.extf %62 : vector<128x128xbf16> to vector<128x128xf32>
    %64 = arith.addf %60, %63 : vector<128x128xf32>
    %65 = vector.shape_cast %64 : vector<128x128xf32> to vector<2x64x128xf32>
    %66 = arith.truncf %65 : vector<2x64x128xf32> to vector<2x64x128xbf16>
    %c0_21 = arith.constant 0 : index
    %c0_22 = arith.constant 0 : index
    %c0_23 = arith.constant 0 : index
    %67 = vector.load %arg7[%c0_21, %c0_22, %c0_23] : memref<2x64x128xbf16, #tpu.memory_space<vmem>>, vector<2x64x128xbf16>
    tpu.vector_store %arg7[%c0_21, %c0_22, %c0_23], %66 {strides = array<i32>} : memref<2x64x128xbf16, #tpu.memory_space<vmem>>, vector<2x64x128xbf16>,
    return
  }
  func.func @transform_0(%arg0: i32, %arg1: i32) -> (i32, i32, i32, i32, i32) {
    %c0_i32 = arith.constant 0 : i32
    %c0_i32_0 = arith.constant 0 : i32
    %c0_i32_1 = arith.constant 0 : i32
    %c0_i32_2 = arith.constant 0 : i32
    %c0_i32_3 = arith.constant 0 : i32
    return %arg1, %c0_i32, %c0_i32_0, %c0_i32_1, %c0_i32_2 : i32, i32, i32, i32, i32
  }
  func.func @transform_1(%arg0: i32, %arg1: i32) -> (i32, i32) {
    %c0_i32 = arith.constant 0 : i32
    %c0_i32_0 = arith.constant 0 : i32
    %c0_i32_1 = arith.constant 0 : i32
    return %c0_i32, %c0_i32_0 : i32, i32
  }
  func.func @transform_2(%arg0: i32, %arg1: i32) -> (i32, i32) {
    %c0_i32 = arith.constant 0 : i32
    %c0_i32_0 = arith.constant 0 : i32
    %c0_i32_1 = arith.constant 0 : i32
    return %c0_i32, %c0_i32_0 : i32, i32
  }
  func.func @transform_3(%arg0: i32, %arg1: i32) -> (i32, i32) {
    %c0_i32 = arith.constant 0 : i32
    %c0_i32_0 = arith.constant 0 : i32
    return %c0_i32, %arg0 : i32, i32
  }
  func.func @transform_4(%arg0: i32, %arg1: i32) -> (i32, i32, i32) {
    %c0_i32 = arith.constant 0 : i32
    %c0_i32_0 = arith.constant 0 : i32
    return %arg1, %c0_i32, %arg0 : i32, i32, i32
  }
  func.func @transform_5(%arg0: i32, %arg1: i32) -> (i32, i32, i32) {
    %c0_i32 = arith.constant 0 : i32
    %c0_i32_0 = arith.constant 0 : i32
    return %arg1, %c0_i32, %arg0 : i32, i32, i32
  }
}

module attributes {stable_mosaic.version = 11 : i64} {
  func.func @kernel(%arg0: i32, %arg1: i32, %arg2: memref<2x1x10x10x128xbf16, #tpu.memory_space<vmem>>, %arg3: memref<1x128xf32, #tpu.memory_space<vmem>>, %arg4: memref<1x128xf32, #tpu.memory_space<vmem>>, %arg5: memref<1152x128xbf16, #tpu.memory_space<vmem>>, %arg6: memref<2x64x128xbf16, #tpu.memory_space<vmem>>, %arg7: memref<2x64x128xbf16, #tpu.memory_space<vmem>>, %arg8: memref<1x128xf32, #tpu.memory_space<vmem>>, %arg9: memref<1x128xf32, #tpu.memory_space<vmem>>) attributes {dimension_semantics = [#tpu.dimension_semantics<parallel>, #tpu.dimension_semantics<arbitrary>], iteration_bounds = array<i64: 1, 1>, scalar_prefetch = 0 : i64, scratch_operands = 0 : i64, tpu.core_type = #tpu.core_type<tc>, window_params = [{transform_indices = @transform_0, window_bounds = array<i64: 2, 1, 10, 10, 128>}, {pipeline_mode = #tpu.pipeline_mode<synchronous>, transform_indices = @transform_1, window_bounds = array<i64: 1, 128>}, {pipeline_mode = #tpu.pipeline_mode<synchronous>, transform_indices = @transform_2, window_bounds = array<i64: 1, 128>}, {transform_indices = @transform_3, window_bounds = array<i64: 1152, 128>}, {transform_indices = @transform_4, window_bounds = array<i64: 2, 64, 128>}, {transform_indices = @transform_5, window_bounds = array<i64: 2, 64, 128>}, {transform_indices = @transform_6, window_bounds = array<i64: 1, 128>}, {transform_indices = @transform_7, window_bounds = array<i64: 1, 128>}]} {
    %c0 = arith.constant 0 : index
    %c0_0 = arith.constant 0 : index
    %c0_1 = arith.constant 0 : index
    %c0_2 = arith.constant 0 : index
    %c0_3 = arith.constant 0 : index
    %0 = vector.load %arg2[%c0, %c0_0, %c0_1, %c0_2, %c0_3] : memref<2x1x10x10x128xbf16, #tpu.memory_space<vmem>>, vector<2x1x10x10x128xbf16>
    %c0_4 = arith.constant 0 : index
    %c0_5 = arith.constant 0 : index
    %1 = vector.load %arg3[%c0_4, %c0_5] : memref<1x128xf32, #tpu.memory_space<vmem>>, vector<1x128xf32>
    %2 = vector.shape_cast %1 : vector<1x128xf32> to vector<1x1x1x128xf32>
    %c0_6 = arith.constant 0 : index
    %c0_7 = arith.constant 0 : index
    %3 = vector.load %arg4[%c0_6, %c0_7] : memref<1x128xf32, #tpu.memory_space<vmem>>, vector<1x128xf32>
    %4 = vector.shape_cast %3 : vector<1x128xf32> to vector<1x1x1x128xf32>
    %5 = vector.shape_cast %0 : vector<2x1x10x10x128xbf16> to vector<2x10x10x128xbf16>
    %6 = arith.extf %5 : vector<2x10x10x128xbf16> to vector<2x10x10x128xf32>
    %7 = vector.broadcast %2 : vector<1x1x1x128xf32> to vector<2x10x10x128xf32>
    %8 = arith.mulf %6, %7 : vector<2x10x10x128xf32>
    %9 = vector.broadcast %4 : vector<1x1x1x128xf32> to vector<2x10x10x128xf32>
    %10 = arith.addf %8, %9 : vector<2x10x10x128xf32>
    %cst = arith.constant 0.000000e+00 : f32
    %11 = vector.broadcast %cst : f32 to vector<2x10x10x128xf32>
    %12 = arith.cmpf oge, %10, %11 : vector<2x10x10x128xf32>
    %cst_8 = arith.constant 1.000000e-01 : f32
    %13 = vector.broadcast %cst_8 : f32 to vector<2x10x10x128xf32>
    %14 = arith.mulf %13, %10 : vector<2x10x10x128xf32>
    %15 = arith.select %12, %10, %14 : vector<2x10x10x128xi1>, vector<2x10x10x128xf32>
    %16 = tpu.iota {dimensions = array<i32: 1>} : vector<2x10x10x128xi32>
    %c1_i32 = arith.constant 1 : i32
    %17 = vector.broadcast %c1_i32 : i32 to vector<2x10x10x128xi32>
    %18 = arith.muli %16, %17 : vector<2x10x10x128xi32>
    %c0_i32 = arith.constant 0 : i32
    %19 = vector.broadcast %c0_i32 : i32 to vector<2x10x10x128xi32>
    %20 = arith.addi %18, %19 : vector<2x10x10x128xi32>
    %21 = tpu.iota {dimensions = array<i32: 2>} : vector<2x10x10x128xi32>
    %c1_i32_9 = arith.constant 1 : i32
    %22 = vector.broadcast %c1_i32_9 : i32 to vector<2x10x10x128xi32>
    %23 = arith.muli %21, %22 : vector<2x10x10x128xi32>
    %c0_i32_10 = arith.constant 0 : i32
    %24 = vector.broadcast %c0_i32_10 : i32 to vector<2x10x10x128xi32>
    %25 = arith.addi %23, %24 : vector<2x10x10x128xi32>
    %c1_i32_11 = arith.constant 1 : i32
    %26 = vector.broadcast %c1_i32_11 : i32 to vector<2x10x10x128xi32>
    %27 = arith.cmpi sge, %20, %26 : vector<2x10x10x128xi32>
    %c9_i32 = arith.constant 9 : i32
    %28 = vector.broadcast %c9_i32 : i32 to vector<2x10x10x128xi32>
    %29 = arith.cmpi slt, %20, %28 : vector<2x10x10x128xi32>
    %30 = arith.andi %27, %29 : vector<2x10x10x128xi1>
    %c1_i32_12 = arith.constant 1 : i32
    %31 = vector.broadcast %c1_i32_12 : i32 to vector<2x10x10x128xi32>
    %32 = arith.cmpi sge, %25, %31 : vector<2x10x10x128xi32>
    %33 = arith.andi %30, %32 : vector<2x10x10x128xi1>
    %c9_i32_13 = arith.constant 9 : i32
    %34 = vector.broadcast %c9_i32_13 : i32 to vector<2x10x10x128xi32>
    %35 = arith.cmpi slt, %25, %34 : vector<2x10x10x128xi32>
    %36 = arith.andi %33, %35 : vector<2x10x10x128xi1>
    %cst_14 = arith.constant 0.000000e+00 : f32
    %37 = vector.broadcast %cst_14 : f32 to vector<2x10x10x128xf32>
    %38 = arith.select %36, %15, %37 : vector<2x10x10x128xi1>, vector<2x10x10x128xf32>
    %39 = arith.truncf %38 : vector<2x10x10x128xf32> to vector<2x10x10x128xbf16>
    %40 = vector.extract_strided_slice %39 {offsets = [0, 0, 0, 0], sizes = [2, 8, 8, 128], strides = [1, 1, 1, 1]} : vector<2x10x10x128xbf16> to vector<2x8x8x128xbf16>
    %41 = vector.shape_cast %40 : vector<2x8x8x128xbf16> to vector<128x128xbf16>
    %42 = vector.extract_strided_slice %39 {offsets = [0, 0, 1, 0], sizes = [2, 8, 8, 128], strides = [1, 1, 1, 1]} : vector<2x10x10x128xbf16> to vector<2x8x8x128xbf16>
    %43 = vector.shape_cast %42 : vector<2x8x8x128xbf16> to vector<128x128xbf16>
    %44 = vector.extract_strided_slice %39 {offsets = [0, 0, 2, 0], sizes = [2, 8, 8, 128], strides = [1, 1, 1, 1]} : vector<2x10x10x128xbf16> to vector<2x8x8x128xbf16>
    %45 = vector.shape_cast %44 : vector<2x8x8x128xbf16> to vector<128x128xbf16>
    %46 = vector.extract_strided_slice %39 {offsets = [0, 1, 0, 0], sizes = [2, 8, 8, 128], strides = [1, 1, 1, 1]} : vector<2x10x10x128xbf16> to vector<2x8x8x128xbf16>
    %47 = vector.shape_cast %46 : vector<2x8x8x128xbf16> to vector<128x128xbf16>
    %48 = vector.extract_strided_slice %39 {offsets = [0, 1, 1, 0], sizes = [2, 8, 8, 128], strides = [1, 1, 1, 1]} : vector<2x10x10x128xbf16> to vector<2x8x8x128xbf16>
    %49 = vector.shape_cast %48 : vector<2x8x8x128xbf16> to vector<128x128xbf16>
    %50 = vector.extract_strided_slice %39 {offsets = [0, 1, 2, 0], sizes = [2, 8, 8, 128], strides = [1, 1, 1, 1]} : vector<2x10x10x128xbf16> to vector<2x8x8x128xbf16>
    %51 = vector.shape_cast %50 : vector<2x8x8x128xbf16> to vector<128x128xbf16>
    %52 = vector.extract_strided_slice %39 {offsets = [0, 2, 0, 0], sizes = [2, 8, 8, 128], strides = [1, 1, 1, 1]} : vector<2x10x10x128xbf16> to vector<2x8x8x128xbf16>
    %53 = vector.shape_cast %52 : vector<2x8x8x128xbf16> to vector<128x128xbf16>
    %54 = vector.extract_strided_slice %39 {offsets = [0, 2, 1, 0], sizes = [2, 8, 8, 128], strides = [1, 1, 1, 1]} : vector<2x10x10x128xbf16> to vector<2x8x8x128xbf16>
    %55 = vector.shape_cast %54 : vector<2x8x8x128xbf16> to vector<128x128xbf16>
    %56 = vector.extract_strided_slice %39 {offsets = [0, 2, 2, 0], sizes = [2, 8, 8, 128], strides = [1, 1, 1, 1]} : vector<2x10x10x128xbf16> to vector<2x8x8x128xbf16>
    %57 = vector.shape_cast %56 : vector<2x8x8x128xbf16> to vector<128x128xbf16>
    %58 = tpu.concatenate %41, %43, %45, %47, %49, %51, %53, %55, %57 in 1 : vector<128x128xbf16>, vector<128x128xbf16>, vector<128x128xbf16>, vector<128x128xbf16>, vector<128x128xbf16>, vector<128x128xbf16>, vector<128x128xbf16>, vector<128x128xbf16>, vector<128x128xbf16> -> vector<128x1152xbf16>
    %c0_15 = arith.constant 0 : index
    %c0_16 = arith.constant 0 : index
    %59 = vector.load %arg5[%c0_15, %c0_16] : memref<1152x128xbf16, #tpu.memory_space<vmem>>, vector<1152x128xbf16>
    %cst_17 = arith.constant dense<0.000000e+00> : vector<128x128xf32>
    %60 = tpu.matmul %58, %59, %cst_17 {dimension_numbers = #tpu.dot_dimension_numbers<[1], [0], [0], [1], [0, 0, 1, 1], [], []>} : vector<128x1152xbf16>, vector<1152x128xbf16>, vector<128x128xf32> -> vector<128x128xf32>
    %c0_18 = arith.constant 0 : index
    %c0_19 = arith.constant 0 : index
    %c0_20 = arith.constant 0 : index
    %61 = vector.load %arg6[%c0_18, %c0_19, %c0_20] : memref<2x64x128xbf16, #tpu.memory_space<vmem>>, vector<2x64x128xbf16>
    %62 = vector.shape_cast %61 : vector<2x64x128xbf16> to vector<128x128xbf16>
    %63 = arith.extf %62 : vector<128x128xbf16> to vector<128x128xf32>
    %64 = arith.addf %60, %63 : vector<128x128xf32>
    %65 = vector.shape_cast %64 : vector<128x128xf32> to vector<2x64x128xf32>
    %66 = arith.truncf %65 : vector<2x64x128xf32> to vector<2x64x128xbf16>
    %c0_21 = arith.constant 0 : index
    %c0_22 = arith.constant 0 : index
    %c0_23 = arith.constant 0 : index
    %67 = vector.load %arg7[%c0_21, %c0_22, %c0_23] : memref<2x64x128xbf16, #tpu.memory_space<vmem>>, vector<2x64x128xbf16>
    tpu.vector_store %arg7[%c0_21, %c0_22, %c0_23], %66 {strides = array<i32>} : memref<2x64x128xbf16, #tpu.memory_space<vmem>>, vector<2x64x128xbf16>,
    %c0_i32_24 = arith.constant 0 : i32
    %68 = arith.cmpi eq, %arg1, %c0_i32_24 : i32
    %69 = arith.extui %68 : i1 to i32
    %c0_i32_25 = arith.constant 0 : i32
    %70 = arith.cmpi ne, %69, %c0_i32_25 : i32
    scf.if %70 {
      %cst_36 = arith.constant 0.000000e+00 : f32
      %82 = vector.broadcast %cst_36 : f32 to vector<1x128xf32>
      %c0_37 = arith.constant 0 : index
      %c0_38 = arith.constant 0 : index
      %83 = vector.load %arg8[%c0_37, %c0_38] : memref<1x128xf32, #tpu.memory_space<vmem>>, vector<1x128xf32>
      tpu.vector_store %arg8[%c0_37, %c0_38], %82 {strides = array<i32>} : memref<1x128xf32, #tpu.memory_space<vmem>>, vector<1x128xf32>,
      %cst_39 = arith.constant 0.000000e+00 : f32
      %84 = vector.broadcast %cst_39 : f32 to vector<1x128xf32>
      %c0_40 = arith.constant 0 : index
      %c0_41 = arith.constant 0 : index
      %85 = vector.load %arg9[%c0_40, %c0_41] : memref<1x128xf32, #tpu.memory_space<vmem>>, vector<1x128xf32>
      tpu.vector_store %arg9[%c0_40, %c0_41], %84 {strides = array<i32>} : memref<1x128xf32, #tpu.memory_space<vmem>>, vector<1x128xf32>,
    } else {
    }
    %c0_26 = arith.constant 0 : index
    %c0_27 = arith.constant 0 : index
    %71 = vector.load %arg8[%c0_26, %c0_27] : memref<1x128xf32, #tpu.memory_space<vmem>>, vector<1x128xf32>
    %cst_28 = arith.constant dense<0.000000e+00> : vector<128xf32>
    %72 = vector.multi_reduction <add>, %64, %cst_28 [0] : vector<128x128xf32> to vector<128xf32>
    %73 = vector.shape_cast %72 : vector<128xf32> to vector<1x128xf32>
    %74 = arith.addf %71, %73 : vector<1x128xf32>
    %c0_29 = arith.constant 0 : index
    %c0_30 = arith.constant 0 : index
    %75 = vector.load %arg8[%c0_29, %c0_30] : memref<1x128xf32, #tpu.memory_space<vmem>>, vector<1x128xf32>
    tpu.vector_store %arg8[%c0_29, %c0_30], %74 {strides = array<i32>} : memref<1x128xf32, #tpu.memory_space<vmem>>, vector<1x128xf32>,
    %c0_31 = arith.constant 0 : index
    %c0_32 = arith.constant 0 : index
    %76 = vector.load %arg9[%c0_31, %c0_32] : memref<1x128xf32, #tpu.memory_space<vmem>>, vector<1x128xf32>
    %77 = arith.mulf %64, %64 : vector<128x128xf32>
    %cst_33 = arith.constant dense<0.000000e+00> : vector<128xf32>
    %78 = vector.multi_reduction <add>, %77, %cst_33 [0] : vector<128x128xf32> to vector<128xf32>
    %79 = vector.shape_cast %78 : vector<128xf32> to vector<1x128xf32>
    %80 = arith.addf %76, %79 : vector<1x128xf32>
    %c0_34 = arith.constant 0 : index
    %c0_35 = arith.constant 0 : index
    %81 = vector.load %arg9[%c0_34, %c0_35] : memref<1x128xf32, #tpu.memory_space<vmem>>, vector<1x128xf32>
    tpu.vector_store %arg9[%c0_34, %c0_35], %80 {strides = array<i32>} : memref<1x128xf32, #tpu.memory_space<vmem>>, vector<1x128xf32>,
    return
  }
  func.func @transform_0(%arg0: i32, %arg1: i32) -> (i32, i32, i32, i32, i32) {
    %c0_i32 = arith.constant 0 : i32
    %c0_i32_0 = arith.constant 0 : i32
    %c0_i32_1 = arith.constant 0 : i32
    %c0_i32_2 = arith.constant 0 : i32
    %c0_i32_3 = arith.constant 0 : i32
    return %arg1, %c0_i32, %c0_i32_0, %c0_i32_1, %c0_i32_2 : i32, i32, i32, i32, i32
  }
  func.func @transform_1(%arg0: i32, %arg1: i32) -> (i32, i32) {
    %c0_i32 = arith.constant 0 : i32
    %c0_i32_0 = arith.constant 0 : i32
    %c0_i32_1 = arith.constant 0 : i32
    return %c0_i32, %c0_i32_0 : i32, i32
  }
  func.func @transform_2(%arg0: i32, %arg1: i32) -> (i32, i32) {
    %c0_i32 = arith.constant 0 : i32
    %c0_i32_0 = arith.constant 0 : i32
    %c0_i32_1 = arith.constant 0 : i32
    return %c0_i32, %c0_i32_0 : i32, i32
  }
  func.func @transform_3(%arg0: i32, %arg1: i32) -> (i32, i32) {
    %c0_i32 = arith.constant 0 : i32
    %c0_i32_0 = arith.constant 0 : i32
    return %c0_i32, %arg0 : i32, i32
  }
  func.func @transform_4(%arg0: i32, %arg1: i32) -> (i32, i32, i32) {
    %c0_i32 = arith.constant 0 : i32
    %c0_i32_0 = arith.constant 0 : i32
    return %arg1, %c0_i32, %arg0 : i32, i32, i32
  }
  func.func @transform_5(%arg0: i32, %arg1: i32) -> (i32, i32, i32) {
    %c0_i32 = arith.constant 0 : i32
    %c0_i32_0 = arith.constant 0 : i32
    return %arg1, %c0_i32, %arg0 : i32, i32, i32
  }
  func.func @transform_6(%arg0: i32, %arg1: i32) -> (i32, i32) {
    %c0_i32 = arith.constant 0 : i32
    %c0_i32_0 = arith.constant 0 : i32
    return %c0_i32, %arg0 : i32, i32
  }
  func.func @transform_7(%arg0: i32, %arg1: i32) -> (i32, i32) {
    %c0_i32 = arith.constant 0 : i32
    %c0_i32_0 = arith.constant 0 : i32
    return %c0_i32, %arg0 : i32, i32
  }
}

</mosaic_0001>

<bundles_post_ra>
// kernel: _lambda_.9
= control target key start
LH: loop header
LB: loop body
LE: loop exit
PB: predicated region body
PF: predicated region fallthrough
CT: control target
= control target key end

     0   :  { %v547_v0 = vmov 0.0   ;;  %s681_s0 = inlined_call_operand.vmem [shape: bf16[512,128], index: 0, kind: input, shape index: {}]   ;;  %s682_s1 = inlined_call_operand.vmem [shape: f32[1,128], index: 1, kind: input, shape index: {}]   ;;  %s683_s2 = inlined_call_operand.vmem [shape: f32[1,128], index: 2, kind: input, shape index: {}]   ;;  %s684_s3 = inlined_call_operand.vmem [shape: f32[1,128], index: 3, kind: output, shape index: {0}]   ;;  %s685_s4 = inlined_call_operand.vmem [shape: f32[1,128], index: 4, kind: output, shape index: {1}]  }
   0x1   :  { %20 = vst [vmem:[#allocation2] sm:$0x1] %v547_v0  ;;  %21 = vst [vmem:[#allocation3] sm:$0x1] %v547_v0  ;;  %v386_v1 = vld [vmem:[%s681_s0] sm:$0xff]   ;;  %v513_v2 = vld [vmem:[%s681_s0 + $0x8] sm:$0xff]  }
   0x2   :  { %v387_v3 = vunpack.c.l.bf16 %v386_v1  ;;  %v388_v4 = vunpack.c.h.bf16 %v386_v1  ;;  %v391_v5 = vunpack.c.l.bf16 %v513_v2  ;;  %v514_v6 = vld [vmem:[%s681_s0 + $0x10] sm:$0xff]   ;;  %v392_v7 = vunpack.c.h.bf16 %v513_v2  ;;  %v515_v11 = vld [vmem:[%s681_s0 + $0x18] sm:$0xff]   ;;  %v516_v16 = vld [vmem:[%s681_s0 + $0x20] sm:$0xff]  }
   0x3   :  { %v395_v9 = vunpack.c.l.bf16 %v514_v6  ;;  %v396_v12 = vunpack.c.h.bf16 %v514_v6  ;;  %v399_v14 = vunpack.c.l.bf16 %v515_v11  ;;  %v400_v17 = vunpack.c.h.bf16 %v515_v11  ;;  %v517_v21 = vld [vmem:[%s681_s0 + $0x28] sm:$0xff]   ;;  %v518_v28 = vld [vmem:[%s681_s0 + $0x30] sm:$0xff]   ;;  %v519_v36 = vld [vmem:[%s681_s0 + $0x38] sm:$0xff]  }
   0x4   :  { %v151_v8 = vadd.f32 %v388_v4, %v387_v3  ;;  %v403_v19 = vunpack.c.l.bf16 %v516_v16  ;;  %v404_v22 = vunpack.c.h.bf16 %v516_v16  ;;  %v407_v24 = vunpack.c.l.bf16 %v517_v21  ;;  %v520_v45 = vld [vmem:[%s681_s0 + $0x40] sm:$0xff]   ;;  %v521_v54 = vld [vmem:[%s681_s0 + $0x48] sm:$0xff]   ;;  %v522_v63 = vld [vmem:[%s681_s0 + $0x50] sm:$0xff]  }
   0x5   :  { %v223_v26 = vmul.f32 %v387_v3, %v387_v3  ;;  %v224_v27 = vmul.f32 %v388_v4, %v388_v4  ;;  %v408_v29 = vunpack.c.h.bf16 %v517_v21  ;;  %v225_v31 = vmul.f32 %v391_v5, %v391_v5 }
   0x6   :  { %v152_v10 = vadd.f32 %v391_v5, %v151_v8  ;;  %v411_v32 = vunpack.c.l.bf16 %v518_v28  ;;  %v226_v34 = vmul.f32 %v392_v7, %v392_v7  ;;  %v412_v37 = vunpack.c.h.bf16 %v518_v28  ;;  %v523_v8 = vld [vmem:[%s681_s0 + $0x58] sm:$0xff]  }
   0x7   :  { %v287_v35 = vadd.f32 %v224_v27, %v223_v26  ;;  %v227_v39 = vmul.f32 %v395_v9, %v395_v9  ;;  %v415_v41 = vunpack.c.l.bf16 %v519_v36  ;;  %v228_v43 = vmul.f32 %v396_v12, %v396_v12  ;;  %v525_v26 = vld [vmem:[%s681_s0 + $0x68] sm:$0xff]  }
   0x8   :  { %v153_v13 = vadd.f32 %v392_v7, %v152_v10  ;;  %v416_v46 = vunpack.c.h.bf16 %v519_v36  ;;  %v229_v48 = vmul.f32 %v399_v14, %v399_v14  ;;  %v419_v50 = vunpack.c.l.bf16 %v520_v45 }
   0x9   :  { %v288_v40 = vadd.f32 %v287_v35, %v225_v31  ;;  %v230_v52 = vmul.f32 %v400_v17, %v400_v17  ;;  %v420_v55 = vunpack.c.h.bf16 %v520_v45  ;;  %v231_v57 = vmul.f32 %v403_v19, %v403_v19  ;;  %v526_v35 = vld [vmem:[%s681_s0 + $0x70] sm:$0xff]  }
   0xa   :  { %v154_v15 = vadd.f32 %v395_v9, %v153_v13  ;;  %v423_v59 = vunpack.c.l.bf16 %v521_v54  ;;  %v232_v61 = vmul.f32 %v404_v22, %v404_v22  ;;  %v424_v0 = vunpack.c.h.bf16 %v521_v54 }
   0xb   :  { %v289_v44 = vadd.f32 %v288_v40, %v226_v34  ;;  %v233_v2 = vmul.f32 %v407_v24, %v407_v24  ;;  %v427_v4 = vunpack.c.l.bf16 %v522_v63  ;;  %v234_v6 = vmul.f32 %v408_v29, %v408_v29 }
   0xc   :  { %v155_v18 = vadd.f32 %v396_v12, %v154_v15  ;;  %v428_v9 = vunpack.c.h.bf16 %v522_v63  ;;  %v235_v11 = vmul.f32 %v411_v32, %v411_v32  ;;  %v431_v13 = vunpack.c.l.bf16 %v523_v8 }
   0xd   :  { %v290_v49 = vadd.f32 %v289_v44, %v227_v39  ;;  %v236_v15 = vmul.f32 %v412_v37, %v412_v37  ;;  %v439_v31 = vunpack.c.l.bf16 %v525_v26  ;;  %v440_v36 = vunpack.c.h.bf16 %v525_v26  ;;  %v527_v44 = vld [vmem:[%s681_s0 + $0x78] sm:$0xff]  }
   0xe   :  { %v156_v20 = vadd.f32 %v399_v14, %v155_v18  ;;  %v432_v18 = vunpack.c.h.bf16 %v523_v8  ;;  %v443_v40 = vunpack.c.l.bf16 %v526_v35  ;;  %v444_v45 = vunpack.c.h.bf16 %v526_v35 }
   0xf   :  { %v291_v53 = vadd.f32 %v290_v49, %v228_v43  ;;  %v447_v49 = vunpack.c.l.bf16 %v527_v44  ;;  %v448_v54 = vunpack.c.h.bf16 %v527_v44 }
  0x10   :  { %v157_v23 = vadd.f32 %v400_v17, %v156_v20  ;;  %v524_v17 = vld [vmem:[%s681_s0 + $0x60] sm:$0xff]   ;;  %v237_v20 = vmul.f32 %v415_v41, %v415_v41 }
  0x11   :  { %v292_v58 = vadd.f32 %v291_v53, %v229_v48  ;;  %v436_v27 = vunpack.c.h.bf16 %v524_v17  ;;  %v528_v53 = vld [vmem:[%s681_s0 + $0x80] sm:$0xff]  }
  0x12   :  { %v158_v25 = vadd.f32 %v403_v19, %v157_v23  ;;  %v452_v63 = vunpack.c.h.bf16 %v528_v53 }
  0x13   :  { %v293_v62 = vadd.f32 %v292_v58, %v230_v52  ;;  %v451_v58 = vunpack.c.l.bf16 %v528_v53 }
  0x14   :  { %v159_v30 = vadd.f32 %v404_v22, %v158_v25  ;;  %v435_v22 = vunpack.c.l.bf16 %v524_v17 }
  0x15   :  { %v294_v3 = vadd.f32 %v293_v62, %v231_v57  ;;  %v529_v62 = vld [vmem:[%s681_s0 + $0x88] sm:$0xff]  }
  0x16   :  { %v160_v33 = vadd.f32 %v407_v24, %v159_v30  ;;  %v238_v24 = vmul.f32 %v416_v46, %v416_v46  ;;  %v456_v8 = vunpack.c.h.bf16 %v529_v62 }
  0x17   :  { %v295_v7 = vadd.f32 %v294_v3, %v232_v61  ;;  %v455_v3 = vunpack.c.l.bf16 %v529_v62 }
  0x18   :  { %v161_v38 = vadd.f32 %v408_v29, %v160_v33  ;;  %v239_v29 = vmul.f32 %v419_v50, %v419_v50  ;;  %v240_v33 = vmul.f32 %v420_v55, %v420_v55 }
  0x19   :  { %v296_v12 = vadd.f32 %v295_v7, %v233_v2  ;;  %v530_v7 = vld [vmem:[%s681_s0 + $0x90] sm:$0xff]  }
  0x1a   :  { %v162_v42 = vadd.f32 %v411_v32, %v161_v38  ;;  %v241_v38 = vmul.f32 %v423_v59, %v423_v59  ;;  %v460_v17 = vunpack.c.h.bf16 %v530_v7 }
  0x1b   :  { %v297_v16 = vadd.f32 %v296_v12, %v234_v6  ;;  %v459_v12 = vunpack.c.l.bf16 %v530_v7 }
  0x1c   :  { %v163_v47 = vadd.f32 %v412_v37, %v162_v42  ;;  %v242_v42 = vmul.f32 %v424_v0, %v424_v0 }
  0x1d   :  { %v298_v21 = vadd.f32 %v297_v16, %v235_v11  ;;  %v531_v16 = vld [vmem:[%s681_s0 + $0x98] sm:$0xff]  }
  0x1e   :  { %v164_v51 = vadd.f32 %v415_v41, %v163_v47  ;;  %v243_v47 = vmul.f32 %v427_v4, %v427_v4  ;;  %v464_v26 = vunpack.c.h.bf16 %v531_v16 }
  0x1f   :  { %v299_v25 = vadd.f32 %v298_v21, %v236_v15  ;;  %v463_v21 = vunpack.c.l.bf16 %v531_v16 }
  0x20   :  { %v165_v56 = vadd.f32 %v416_v46, %v164_v51  ;;  %v244_v51 = vmul.f32 %v428_v9, %v428_v9 }
  0x21   :  { %v300_v30 = vadd.f32 %v299_v25, %v237_v20  ;;  %v532_v25 = vld [vmem:[%s681_s0 + $0xa0] sm:$0xff]  }
  0x22   :  { %v166_v60 = vadd.f32 %v419_v50, %v165_v56  ;;  %v245_v56 = vmul.f32 %v431_v13, %v431_v13  ;;  %v468_v35 = vunpack.c.h.bf16 %v532_v25 }
  0x23   :  { %v301_v34 = vadd.f32 %v300_v30, %v238_v24  ;;  %v467_v30 = vunpack.c.l.bf16 %v532_v25 }
  0x24   :  { %v167_v1 = vadd.f32 %v420_v55, %v166_v60  ;;  %v246_v60 = vmul.f32 %v432_v18, %v432_v18 }
  0x25   :  { %v302_v39 = vadd.f32 %v301_v34, %v239_v29  ;;  %v533_v34 = vld [vmem:[%s681_s0 + $0xa8] sm:$0xff]  }
  0x26   :  { %v168_v5 = vadd.f32 %v423_v59, %v167_v1  ;;  %v247_v1 = vmul.f32 %v435_v22, %v435_v22  ;;  %v472_v44 = vunpack.c.h.bf16 %v533_v34 }
  0x27   :  { %v303_v43 = vadd.f32 %v302_v39, %v240_v33  ;;  %v471_v39 = vunpack.c.l.bf16 %v533_v34 }
  0x28   :  { %v169_v10 = vadd.f32 %v424_v0, %v168_v5  ;;  %v248_v5 = vmul.f32 %v436_v27, %v436_v27 }
  0x29   :  { %v304_v48 = vadd.f32 %v303_v43, %v241_v38  ;;  %v534_v43 = vld [vmem:[%s681_s0 + $0xb0] sm:$0xff]  }
  0x2a   :  { %v170_v14 = vadd.f32 %v427_v4, %v169_v10  ;;  %v249_v10 = vmul.f32 %v439_v31, %v439_v31  ;;  %v476_v53 = vunpack.c.h.bf16 %v534_v43 }
  0x2b   :  { %v305_v52 = vadd.f32 %v304_v48, %v242_v42  ;;  %v475_v48 = vunpack.c.l.bf16 %v534_v43 }
  0x2c   :  { %v171_v19 = vadd.f32 %v428_v9, %v170_v14  ;;  %v250_v14 = vmul.f32 %v440_v36, %v440_v36 }
  0x2d   :  { %v306_v57 = vadd.f32 %v305_v52, %v243_v47  ;;  %v535_v52 = vld [vmem:[%s681_s0 + $0xb8] sm:$0xff]  }
  0x2e   :  { %v172_v23 = vadd.f32 %v431_v13, %v171_v19  ;;  %v251_v19 = vmul.f32 %v443_v40, %v443_v40  ;;  %v480_v62 = vunpack.c.h.bf16 %v535_v52 }
  0x2f   :  { %v307_v61 = vadd.f32 %v306_v57, %v244_v51  ;;  %v479_v57 = vunpack.c.l.bf16 %v535_v52 }
  0x30   :  { %v173_v28 = vadd.f32 %v432_v18, %v172_v23  ;;  %v252_v23 = vmul.f32 %v444_v45, %v444_v45 }
  0x31   :  { %v308_v2 = vadd.f32 %v307_v61, %v245_v56  ;;  %v536_v61 = vld [vmem:[%s681_s0 + $0xc0] sm:$0xff]  }
  0x32   :  { %v174_v32 = vadd.f32 %v435_v22, %v173_v28  ;;  %v253_v28 = vmul.f32 %v447_v49, %v447_v49  ;;  %v484_v7 = vunpack.c.h.bf16 %v536_v61 }
  0x33   :  { %v309_v6 = vadd.f32 %v308_v2, %v246_v60  ;;  %v483_v2 = vunpack.c.l.bf16 %v536_v61 }
  0x34   :  { %v175_v37 = vadd.f32 %v436_v27, %v174_v32  ;;  %v254_v32 = vmul.f32 %v448_v54, %v448_v54 }
  0x35   :  { %v310_v11 = vadd.f32 %v309_v6, %v247_v1  ;;  %v537_v6 = vld [vmem:[%s681_s0 + $0xc8] sm:$0xff]  }
  0x36   :  { %v176_v41 = vadd.f32 %v439_v31, %v175_v37  ;;  %v255_v37 = vmul.f32 %v451_v58, %v451_v58  ;;  %v488_v16 = vunpack.c.h.bf16 %v537_v6 }
  0x37   :  { %v311_v15 = vadd.f32 %v310_v11, %v248_v5  ;;  %v487_v11 = vunpack.c.l.bf16 %v537_v6 }
  0x38   :  { %v177_v46 = vadd.f32 %v440_v36, %v176_v41  ;;  %v256_v41 = vmul.f32 %v452_v63, %v452_v63 }
  0x39   :  { %v312_v20 = vadd.f32 %v311_v15, %v249_v10  ;;  %v538_v15 = vld [vmem:[%s681_s0 + $0xd0] sm:$0xff]  }
  0x3a   :  { %v178_v50 = vadd.f32 %v443_v40, %v177_v46  ;;  %v257_v46 = vmul.f32 %v455_v3, %v455_v3  ;;  %v492_v25 = vunpack.c.h.bf16 %v538_v15 }
  0x3b   :  { %v313_v24 = vadd.f32 %v312_v20, %v250_v14  ;;  %v491_v20 = vunpack.c.l.bf16 %v538_v15 }
  0x3c   :  { %v179_v55 = vadd.f32 %v444_v45, %v178_v50  ;;  %v258_v50 = vmul.f32 %v456_v8, %v456_v8 }
  0x3d   :  { %v314_v29 = vadd.f32 %v313_v24, %v251_v19  ;;  %v539_v24 = vld [vmem:[%s681_s0 + $0xd8] sm:$0xff]  }
  0x3e   :  { %v180_v59 = vadd.f32 %v447_v49, %v179_v55  ;;  %v259_v55 = vmul.f32 %v459_v12, %v459_v12  ;;  %v496_v34 = vunpack.c.h.bf16 %v539_v24 }
  0x3f   :  { %v315_v33 = vadd.f32 %v314_v29, %v252_v23  ;;  %v495_v29 = vunpack.c.l.bf16 %v539_v24 }
  0x40   :  { %v181_v0 = vadd.f32 %v448_v54, %v180_v59  ;;  %v260_v59 = vmul.f32 %v460_v17, %v460_v17 }
  0x41   :  { %v316_v38 = vadd.f32 %v315_v33, %v253_v28  ;;  %v540_v33 = vld [vmem:[%s681_s0 + $0xe0] sm:$0xff]  }
  0x42   :  { %v182_v4 = vadd.f32 %v451_v58, %v181_v0  ;;  %v261_v0 = vmul.f32 %v463_v21, %v463_v21  ;;  %v500_v43 = vunpack.c.h.bf16 %v540_v33 }
  0x43   :  { %v317_v42 = vadd.f32 %v316_v38, %v254_v32  ;;  %v499_v38 = vunpack.c.l.bf16 %v540_v33 }
  0x44   :  { %v183_v9 = vadd.f32 %v452_v63, %v182_v4  ;;  %v262_v4 = vmul.f32 %v464_v26, %v464_v26 }
  0x45   :  { %v318_v47 = vadd.f32 %v317_v42, %v255_v37  ;;  %v541_v42 = vld [vmem:[%s681_s0 + $0xe8] sm:$0xff]  }
  0x46   :  { %v184_v13 = vadd.f32 %v455_v3, %v183_v9  ;;  %v263_v9 = vmul.f32 %v467_v30, %v467_v30  ;;  %v504_v52 = vunpack.c.h.bf16 %v541_v42 }
  0x47   :  { %v319_v51 = vadd.f32 %v318_v47, %v256_v41  ;;  %v503_v47 = vunpack.c.l.bf16 %v541_v42 }
  0x48   :  { %v185_v18 = vadd.f32 %v456_v8, %v184_v13  ;;  %v264_v13 = vmul.f32 %v468_v35, %v468_v35 }
  0x49   :  { %v320_v56 = vadd.f32 %v319_v51, %v257_v46  ;;  %v542_v51 = vld [vmem:[%s681_s0 + $0xf0] sm:$0xff]  }
  0x4a   :  { %v186_v22 = vadd.f32 %v459_v12, %v185_v18  ;;  %v265_v18 = vmul.f32 %v471_v39, %v471_v39  ;;  %v508_v61 = vunpack.c.h.bf16 %v542_v51 }
  0x4b   :  { %v321_v60 = vadd.f32 %v320_v56, %v258_v50  ;;  %v507_v56 = vunpack.c.l.bf16 %v542_v51 }
  0x4c   :  { %v187_v27 = vadd.f32 %v460_v17, %v186_v22  ;;  %v266_v22 = vmul.f32 %v472_v44, %v472_v44 }
  0x4d   :  { %v322_v1 = vadd.f32 %v321_v60, %v259_v55  ;;  %v543_v60 = vld [vmem:[%s681_s0 + $0xf8] sm:$0xff]  }
  0x4e   :  { %v188_v31 = vadd.f32 %v463_v21, %v187_v27  ;;  %v267_v27 = vmul.f32 %v475_v48, %v475_v48 }
  0x4f   :  { %v323_v5 = vadd.f32 %v322_v1, %v260_v59  ;;  %v511_v1 = vunpack.c.l.bf16 %v543_v60 }
  0x50   :  { %v189_v36 = vadd.f32 %v464_v26, %v188_v31  ;;  %v268_v31 = vmul.f32 %v476_v53, %v476_v53 }
  0x51   :  { %v324_v10 = vadd.f32 %v323_v5, %v261_v0  ;;  %v512_v5 = vunpack.c.h.bf16 %v543_v60 }
  0x52   :  { %v190_v40 = vadd.f32 %v467_v30, %v189_v36  ;;  %v269_v36 = vmul.f32 %v479_v57, %v479_v57 }
  0x53   :  { %v325_v14 = vadd.f32 %v324_v10, %v262_v4  ;;  %v278_v10 = vmul.f32 %v496_v34, %v496_v34 }
  0x54   :  { %v191_v45 = vadd.f32 %v468_v35, %v190_v40  ;;  %v270_v40 = vmul.f32 %v480_v62, %v480_v62 }
  0x55   :  { %v326_v19 = vadd.f32 %v325_v14, %v263_v9 }
  0x56   :  { %v192_v49 = vadd.f32 %v471_v39, %v191_v45  ;;  %v271_v45 = vmul.f32 %v483_v2, %v483_v2 }
  0x57   :  { %v327_v23 = vadd.f32 %v326_v19, %v264_v13  ;;  %v279_v13 = vmul.f32 %v499_v38, %v499_v38  ;;  %v281_v19 = vmul.f32 %v503_v47, %v503_v47 }
  0x58   :  { %v193_v54 = vadd.f32 %v472_v44, %v192_v49  ;;  %v272_v49 = vmul.f32 %v484_v7, %v484_v7 }
  0x59   :  { %v328_v28 = vadd.f32 %v327_v23, %v265_v18 }
  0x5a   :  { %v194_v58 = vadd.f32 %v475_v48, %v193_v54  ;;  %v273_v54 = vmul.f32 %v487_v11, %v487_v11 }
  0x5b   :  { %v329_v32 = vadd.f32 %v328_v28, %v266_v22  ;;  %v282_v22 = vmul.f32 %v504_v52, %v504_v52  ;;  %v284_v28 = vmul.f32 %v508_v61, %v508_v61 }
  0x5c   :  { %v195_v63 = vadd.f32 %v476_v53, %v194_v58  ;;  %v274_v58 = vmul.f32 %v488_v16, %v488_v16 }
  0x5d   :  { %v330_v37 = vadd.f32 %v329_v32, %v267_v27  ;;  %v285_v32 = vmul.f32 %v511_v1, %v511_v1 }
  0x5e   :  { %v196_v3 = vadd.f32 %v479_v57, %v195_v63  ;;  %v275_v63 = vmul.f32 %v491_v20, %v491_v20 }
  0x5f   :  { %v331_v41 = vadd.f32 %v330_v37, %v268_v31 }
  0x60   :  { %v197_v8 = vadd.f32 %v480_v62, %v196_v3  ;;  %v276_v3 = vmul.f32 %v492_v25, %v492_v25 }
  0x61   :  { %v332_v46 = vadd.f32 %v331_v41, %v269_v36 }
  0x62   :  { %v198_v12 = vadd.f32 %v483_v2, %v197_v8 }
  0x63   :  { %v333_v50 = vadd.f32 %v332_v46, %v270_v40 }
  0x64   :  { %v199_v17 = vadd.f32 %v484_v7, %v198_v12  ;;  %v277_v7 = vmul.f32 %v495_v29, %v495_v29 }
  0x65   :  { %v334_v55 = vadd.f32 %v333_v50, %v271_v45 }
  0x66   :  { %v200_v21 = vadd.f32 %v487_v11, %v199_v17 }
  0x67   :  { %v335_v59 = vadd.f32 %v334_v55, %v272_v49  ;;  %v368_v55 = vld [vmem:[%s682_s1] sm:$0x1] }
  0x68   :  { %v201_v26 = vadd.f32 %v488_v16, %v200_v21  ;;  %v280_v16 = vmul.f32 %v500_v43, %v500_v43 }
  0x69   :  { %v336_v0 = vadd.f32 %v335_v59, %v273_v54 }
  0x6a   :  { %v202_v30 = vadd.f32 %v491_v20, %v201_v26 }
  0x6b   :  { %v337_v4 = vadd.f32 %v336_v0, %v274_v58  ;;  %v373_v58 = vld [vmem:[%s683_s2] sm:$0x1] }
  0x6c   :  { %v203_v35 = vadd.f32 %v492_v25, %v202_v30  ;;  %v283_v25 = vmul.f32 %v507_v56, %v507_v56  ;;  %v150_v30 = vld [vmem:[#allocation2] sm:$0x1] }
  0x6d   :  { %v338_v8 = vadd.f32 %v337_v4, %v275_v63 }
  0x6e   :  { %v204_v39 = vadd.f32 %v495_v29, %v203_v35  ;;  %v286_v35 = vmul.f32 %v512_v5, %v512_v5 }
  0x6f   :  { %v339_v11 = vadd.f32 %v338_v8, %v276_v3 }
  0x70   :  { %v205_v44 = vadd.f32 %v496_v34, %v204_v39 }
  0x71   :  { %v340_v14 = vadd.f32 %v339_v11, %v277_v7 }
  0x72   :  { %v206_v48 = vadd.f32 %v499_v38, %v205_v44  ;;  %v222_v44 = vld [vmem:[#allocation3] sm:$0x1] }
  0x73   :  { %v341_v17 = vadd.f32 %v340_v14, %v278_v10 }
  0x74   :  { %v207_v53 = vadd.f32 %v500_v43, %v206_v48 }
  0x75   :  { %v342_v20 = vadd.f32 %v341_v17, %v279_v13 }
  0x76   :  { %v208_v57 = vadd.f32 %v503_v47, %v207_v53 }
  0x77   :  { %v343_v23 = vadd.f32 %v342_v20, %v280_v16 }
  0x78   :  { %v209_v62 = vadd.f32 %v504_v52, %v208_v57 }
  0x79   :  { %v344_v26 = vadd.f32 %v343_v23, %v281_v19 }
  0x7a   :  { %v210_v2 = vadd.f32 %v507_v56, %v209_v62 }
  0x7b   :  { %v345_v29 = vadd.f32 %v344_v26, %v282_v22 }
  0x7c   :  { %v211_v6 = vadd.f32 %v508_v61, %v210_v2 }
  0x7d   :  { %v346_v33 = vadd.f32 %v345_v29, %v283_v25 }
  0x7e   :  { %v212_v9 = vadd.f32 %v511_v1, %v211_v6 }
  0x7f   :  { %v347_v36 = vadd.f32 %v346_v33, %v284_v28 }
  0x80   :  { %v213_v12 = vadd.f32 %v512_v5, %v212_v9 }
  0x81   :  { %v348_v37 = vadd.f32 %v347_v36, %v285_v32 }
  0x82   :  { %v214_v15 = vrot.slane %v213_v12, 4 }
  0x83   :  { %v349_v38 = vadd.f32 %v348_v37, %v286_v35 }
  0x84   :  { %v215_v18 = vadd.f32 %v214_v15, %v213_v12 }
  0x85   :  { %v350_v39 = vrot.slane %v349_v38, 4 }
  0x86   :  { %v216_v21 = vrot.slane %v215_v18, 2 }
  0x87   :  { %v351_v40 = vadd.f32 %v350_v39, %v349_v38 }
  0x88   :  { %v217_v24 = vadd.f32 %v216_v21, %v215_v18 }
  0x89   :  { %v352_v41 = vrot.slane %v351_v40, 2 }
  0x8a   :  { %v218_v27 = vrot.slane %v217_v24, 1 }
  0x8b   :  { %v353_v42 = vadd.f32 %v352_v41, %v351_v40 }
  0x8c   :  { %v219_v31 = vadd.f32 %v218_v27, %v217_v24 }
  0x8d   :  { %v354_v43 = vrot.slane %v353_v42, 1 }
  0x8e   :  { %v220_v34 = vadd.f32 %v219_v31, %v150_v30 }
  0x8f   :  { %v355_v45 = vadd.f32 %v354_v43, %v353_v42 }
  0x90   :  { %221 = vst [vmem:[#allocation2] sm:$0x1] %v220_v34 }
  0x91   :  { %v356_v46 = vadd.f32 %v355_v45, %v222_v44 }
  0x93   :  { %357 = vst [vmem:[#allocation3] sm:$0x1] %v356_v46 }
  0x97   :  { %v361_v47 = vld [vmem:[#allocation2] sm:$0x1] }
  0x98   :  { %v362_v48 = vmul.f32 0.001953125, %v361_v47 }
  0x9a   :  { %v365_v49 = vmul.f32 %v362_v48, %v362_v48  ;;  %v363_v50 = vld [vmem:[#allocation3] sm:$0x1] }
  0x9b   :  { %v364_v51 = vmul.f32 0.001953125, %v363_v50 }
  0x9d   :  { %v366_v52 = vsub.f32 %v364_v51, %v365_v49 }
  0x9f   :  { %v367_v53 = vmax.f32 %v366_v52, 0.0 }
  0xa1   :  { %v369_v54 = vadd.f32 1e-05, %v367_v53 }
  0xa3   :  { %545 = vrsqrt.f32 %v369_v54 }
  0xad   :  { %v546_v56 = vpop.eup %545 }
  0xae   :  { %v371_v57 = vmul.f32 %v546_v56, %v368_v55 }
  0xb0   :  { %372 = vst [vmem:[%s684_s3] sm:$0x1] %v371_v57  ;;  %v374_v59 = vmul.f32 %v371_v57, %v362_v48 }
  0xb2   :  { %v375_v60 = vsub.f32 %v373_v58, %v374_v59 }
  0xb4   :  { %376 = vst [vmem:[%s685_s4] sm:$0x1] %v375_v60 }

// kernel: _lambda_.12
= control target key start
LH: loop header
LB: loop body
LE: loop exit
PB: predicated region body
PF: predicated region fallthrough
CT: control target
= control target key end

     0   :  { %s816_s3 = inlined_call_operand.vmem [shape: bf16[128,128], index: 3, kind: input, shape index: {}]   ;;  %s817_s0 = inlined_call_operand.vmem [shape: bf16[2,1,8,8,128], index: 0, kind: input, shape index: {}]   ;;  %s818_s1 = inlined_call_operand.vmem [shape: f32[1,128], index: 1, kind: input, shape index: {}]   ;;  %s819_s2 = inlined_call_operand.vmem [shape: f32[1,128], index: 2, kind: input, shape index: {}]   ;;  %s820_s4 = inlined_call_operand.vmem [shape: bf16[2,64,128], index: 4, kind: output, shape index: {}]  }
   0x1   :  { %v661_v0 = vld [vmem:[%s816_s3] sm:$0xff]   ;;  %v662_v1 = vld [vmem:[%s816_s3 + $0x8] sm:$0xff]   ;;  %v663_v2 = vld [vmem:[%s816_s3 + $0x10] sm:$0xff]  }
   0x2   :  { %613 = vmatprep.subr.bf16.mxu0 %v661_v0  ;;  %645 = vmatprep.subr.bf16.mxu1 %v661_v0  ;;  %v664_v3 = vld [vmem:[%s816_s3 + $0x18] sm:$0xff]   ;;  %v512_v4 = vld [vmem:[%s817_s0] sm:$0xff]   ;;  %v583_v9 = vld [vmem:[%s817_s0 + $0x8] sm:$0xff]  }
   0x3   :  { %614 = vmatpush3.bf16.msra.mxu0 %v661_v0  ;;  %653 = vmatpush3.bf16.msra.mxu1 %v661_v0  ;;  %v712_v5 = vld [vmem:[%s818_s1] ss:$0 sm:$0xff]  ;;  %v513_v6 = vunpack.c.l.bf16 %v512_v4  ;;  %v514_v7 = vunpack.c.h.bf16 %v512_v4  ;;  %v587_v10 = vld [vmem:[%s817_s0 + $0x28] sm:$0xff]   ;;  %v517_v14 = vunpack.c.l.bf16 %v583_v9  ;;  %v518_v15 = vunpack.c.h.bf16 %v583_v9  ;;  %v731_v16 = vld [vmem:[%s817_s0 + $0x10] sm:$0xff]  }
   0x4   :  { %615 = vmatprep.subr.bf16.mxu0 %v662_v1  ;;  %646 = vmatprep.subr.bf16.mxu1 %v662_v1  ;;  %v586_v8 = vld [vmem:[%s817_s0 + $0x20] sm:$0xff]   ;;  %v533_v19 = vunpack.c.l.bf16 %v587_v10  ;;  %v534_v20 = vunpack.c.h.bf16 %v587_v10  ;;  %v521_v25 = vunpack.c.l.bf16 %v731_v16  ;;  %v666_v30 = vld [vmem:[%s816_s3 + $0x28] sm:$0xff]   ;;  %v588_v46 = vld [vmem:[%s817_s0 + $0x30] sm:$0xff]   ;;  %v522_v52 = vunpack.c.h.bf16 %v731_v16 }
   0x5   :  { %v726_v11 = vld [vmem:[%s819_s2] ss:$0 sm:$0xff]  ;;  %v529_v12 = vunpack.c.l.bf16 %v586_v8  ;;  %v530_v13 = vunpack.c.h.bf16 %v586_v8  ;;  %v58_v17 = vmul.f32 %v513_v6, %v712_v5  ;;  %v59_v18 = vmul.f32 %v514_v7, %v712_v5  ;;  %v667_v50 = vld [vmem:[%s816_s3 + $0x30] sm:$0xff]   ;;  %v585_v56 = vld [vmem:[%s817_s0 + $0x18] sm:$0xff]  }
   0x6   :  { %v665_v21 = vld [vmem:[%s816_s3 + $0x20] sm:$0xff]   ;;  %v60_v24 = vmul.f32 %v517_v14, %v712_v5  ;;  %v61_v28 = vmul.f32 %v518_v15, %v712_v5  ;;  %v68_v29 = vmul.f32 %v533_v19, %v712_v5  ;;  %v69_v34 = vmul.f32 %v534_v20, %v712_v5  ;;  %v668_v0 = vld [vmem:[%s816_s3 + $0x38] sm:$0xff]  }
   0x7   :  { %616 = vmatpush3.bf16.msra.mxu0 %v662_v1  ;;  %654 = vmatpush3.bf16.msra.mxu1 %v662_v1  ;;  %v66_v22 = vmul.f32 %v529_v12, %v712_v5  ;;  %v67_v23 = vmul.f32 %v530_v13, %v712_v5  ;;  %v80_v26 = vadd.f32 %v726_v11, %v58_v17  ;;  %v537_v55 = vunpack.c.l.bf16 %v588_v46  ;;  %v589_v6 = vld [vmem:[%s817_s0 + $0x38] sm:$0xff]  }
   0x8   :  { %617 = vmatprep.subr.bf16.mxu0 %v663_v2  ;;  %647 = vmatprep.subr.bf16.mxu1 %v663_v2  ;;  %v81_v27 = vadd.f32 %v726_v11, %v59_v18  ;;  %v82_v33 = vadd.f32 %v726_v11, %v60_v24  ;;  %v83_v41 = vadd.f32 %v726_v11, %v61_v28  ;;  %v538_v62 = vunpack.c.h.bf16 %v588_v46 }
   0x9   :  { %v88_v31 = vadd.f32 %v726_v11, %v66_v22  ;;  %v89_v32 = vadd.f32 %v726_v11, %v67_v23  ;;  %vm96_vm0 = vcmp.ge.f32.partialorder %v80_v26, 0.0  ;;  %v112_v35 = vmul.f32 0.1, %v80_v26 }
   0xa   :  { %vm97_vm1 = vcmp.ge.f32.partialorder %v81_v27, 0.0  ;;  %v113_v36 = vmul.f32 0.1, %v81_v27  ;;  %v114_v45 = vmul.f32 0.1, %v82_v33  ;;  %vm98_vm4 = vcmp.ge.f32.partialorder %v82_v33, 0.0 }
   0xb   :  { %618 = vmatpush3.bf16.msra.mxu0 %v663_v2  ;;  %655 = vmatpush3.bf16.msra.mxu1 %v663_v2  ;;  %vm104_vm2 = vcmp.ge.f32.partialorder %v88_v31, 0.0  ;;  %vm105_vm3 = vcmp.ge.f32.partialorder %v89_v32, 0.0  ;;  %v120_v37 = vmul.f32 0.1, %v88_v31  ;;  %v121_v38 = vmul.f32 0.1, %v89_v32 }
   0xc   :  { %619 = vmatprep.subr.bf16.mxu0 %v664_v3  ;;  %648 = vmatprep.subr.bf16.mxu1 %v664_v3  ;;  %v128_v39 = vsel %vm96_vm0, %v80_v26, %v112_v35  ;;  %v129_v40 = vsel %vm97_vm1, %v81_v27, %v113_v36  ;;  %v115_v48 = vmul.f32 0.1, %v83_v41  ;;  %v90_v49 = vadd.f32 %v726_v11, %v68_v29 }
   0xd   :  { %v487_v42 = vpack.c.bf16 %v129_v40, %v128_v39  ;;  %v136_v43 = vsel %vm104_vm2, %v88_v31, %v120_v37  ;;  %v137_v44 = vsel %vm105_vm3, %v89_v32, %v121_v38  ;;  %vm99_vm5 = vcmp.ge.f32.partialorder %v83_v41, 0.0 }
   0xe   :  { %v491_v47 = vpack.c.bf16 %v137_v44, %v136_v43  ;;  %v91_v51 = vadd.f32 %v726_v11, %v69_v34  ;;  %v62_v53 = vmul.f32 %v521_v25, %v712_v5  ;;  %vm106_vm6 = vcmp.ge.f32.partialorder %v90_v49, 0.0 }
   0xf   :  { %620 = vmatpush3.bf16.msra.mxu0 %v664_v3  ;;  %656 = vmatpush3.bf16.msra.mxu1 %v664_v3  ;;  %v122_v54 = vmul.f32 0.1, %v90_v49  ;;  %v130_v57 = vsel %vm98_vm4, %v82_v33, %v114_v45  ;;  %v63_v59 = vmul.f32 %v522_v52, %v712_v5  ;;  %v131_v60 = vsel %vm99_vm5, %v83_v41, %v115_v48 }
  0x10   :  { %621 = vmatprep.subr.bf16.mxu0 %v665_v21  ;;  %649 = vmatprep.subr.bf16.mxu1 %v665_v21  ;;  %vm107_vm7 = vcmp.ge.f32.partialorder %v91_v51, 0.0  ;;  %v123_v58 = vmul.f32 0.1, %v91_v51  ;;  %v84_v61 = vadd.f32 %v726_v11, %v62_v53  ;;  %v70_v63 = vmul.f32 %v537_v55, %v712_v5 }
  0x11   :  { %629 = vmatprep.mubr.bf16.mxu0 %v487_v42  ;;  %637 = vmatprep.mubr.bf16.mxu1 %v491_v47  ;;  %v138_v1 = vsel %vm106_vm6, %v90_v49, %v122_v54  ;;  %v85_v2 = vadd.f32 %v726_v11, %v63_v59  ;;  %v525_v3 = vunpack.c.l.bf16 %v585_v56  ;;  %v526_v4 = vunpack.c.h.bf16 %v585_v56 }
  0x12   :  { %v139_v7 = vsel %vm107_vm7, %v91_v51, %v123_v58  ;;  %vm100_vm8 = vcmp.ge.f32.partialorder %v84_v61, 0.0  ;;  %v116_v8 = vmul.f32 0.1, %v84_v61  ;;  %v71_v9 = vmul.f32 %v538_v62, %v712_v5 }
  0x13   :  { %622 = vmatpush3.bf16.msra.mxu0 %v665_v21  ;;  %657 = vmatpush3.bf16.msra.mxu1 %v665_v21  ;;  %vm101_vm9 = vcmp.ge.f32.partialorder %v85_v2, 0.0  ;;  %v117_v10 = vmul.f32 0.1, %v85_v2  ;;  %v92_v12 = vadd.f32 %v726_v11, %v70_v63  ;;  %v64_v13 = vmul.f32 %v525_v3, %v712_v5 }
  0x14   :  { %623 = vmatprep.subr.bf16.mxu0 %v666_v30  ;;  %650 = vmatprep.subr.bf16.mxu1 %v666_v30  ;;  %v132_v14 = vsel %vm100_vm8, %v84_v61, %v116_v8  ;;  %v93_v15 = vadd.f32 %v726_v11, %v71_v9  ;;  %v65_v16 = vmul.f32 %v526_v4, %v712_v5  ;;  %v541_v17 = vunpack.c.l.bf16 %v589_v6 }
  0x15   :  { %v133_v18 = vsel %vm101_vm9, %v85_v2, %v117_v10  ;;  %vm108_vm10 = vcmp.ge.f32.partialorder %v92_v12, 0.0  ;;  %v124_v19 = vmul.f32 0.1, %v92_v12  ;;  %v86_v20 = vadd.f32 %v726_v11, %v64_v13 }
  0x16   :  { %v488_v21 = vpack.c.bf16 %v131_v60, %v130_v57  ;;  %vm109_vm11 = vcmp.ge.f32.partialorder %v93_v15, 0.0  ;;  %v125_v22 = vmul.f32 0.1, %v93_v15  ;;  %v87_v23 = vadd.f32 %v726_v11, %v65_v16 }
  0x17   :  { %624 = vmatpush3.bf16.msra.mxu0 %v666_v30  ;;  %658 = vmatpush3.bf16.msra.mxu1 %v666_v30  ;;  %v492_v24 = vpack.c.bf16 %v139_v7, %v138_v1  ;;  %v489_v25 = vpack.c.bf16 %v133_v18, %v132_v14  ;;  %v140_v26 = vsel %vm108_vm10, %v92_v12, %v124_v19  ;;  %v542_v27 = vunpack.c.h.bf16 %v589_v6 }
  0x18   :  { %625 = vmatprep.subr.bf16.mxu0 %v667_v50  ;;  %651 = vmatprep.subr.bf16.mxu1 %v667_v50  ;;  %v141_v28 = vsel %vm109_vm11, %v93_v15, %v125_v22  ;;  %v118_v29 = vmul.f32 0.1, %v86_v20  ;;  %v119_v30 = vmul.f32 0.1, %v87_v23  ;;  %v72_v31 = vmul.f32 %v541_v17, %v712_v5 }
  0x19   :  { %v493_v32 = vpack.c.bf16 %v141_v28, %v140_v26  ;;  %vm102_vm12 = vcmp.ge.f32.partialorder %v86_v20, 0.0  ;;  %vm103_vm13 = vcmp.ge.f32.partialorder %v87_v23, 0.0  ;;  %v73_v33 = vmul.f32 %v542_v27, %v712_v5 }
  0x1a   :  { %v94_v34 = vadd.f32 %v726_v11, %v72_v31  ;;  %v134_v36 = vsel %vm102_vm12, %v86_v20, %v118_v29  ;;  %v135_v37 = vsel %vm103_vm13, %v87_v23, %v119_v30 }
  0x1b   :  { %626 = vmatpush3.bf16.msra.mxu0 %v667_v50  ;;  %659 = vmatpush3.bf16.msra.mxu1 %v667_v50  ;;  %v95_v35 = vadd.f32 %v726_v11, %v73_v33  ;;  %v490_v41 = vpack.c.bf16 %v135_v37, %v134_v36 }
  0x1c   :  { %627 = vmatprep.subr.bf16.mxu0 %v668_v0  ;;  %652 = vmatprep.subr.bf16.mxu1 %v668_v0  ;;  %vm110_vm14 = vcmp.ge.f32.partialorder %v94_v34, 0.0  ;;  %v126_v38 = vmul.f32 0.1, %v94_v34 }
  0x1d   :  { %vm111_vm15 = vcmp.ge.f32.partialorder %v95_v35, 0.0  ;;  %v127_v39 = vmul.f32 0.1, %v95_v35 }
  0x1e   :  { %v142_v40 = vsel %vm110_vm14, %v94_v34, %v126_v38 }
  0x1f   :  { %628 = vmatpush3.bf16.msra.mxu0 %v668_v0  ;;  %660 = vmatpush3.bf16.msra.mxu1 %v668_v0  ;;  %v143_v42 = vsel %vm111_vm15, %v95_v35, %v127_v39 }
  0x20   :  { %v494_v43 = vpack.c.bf16 %v143_v42, %v142_v40 }
  0x22   :  { %630 = vmatmul.mubr.bf16.vlgmr.msra.gmra.mrb[0].mxu0 %v488_v21  ;;  %638 = vmatmul.mubr.bf16.vlgmr.msra.gmra.mrb[0].mxu1 %v492_v24 }
  0x23   :  { %633 = vmatprep.mubr.bf16.mxu0 %v489_v25  ;;  %641 = vmatprep.mubr.bf16.mxu1 %v493_v32 }
  0x2a   :  { %634 = vmatmul.mubr.bf16.gmra.mrb[4].mxu0 %v490_v41  ;;  %642 = vmatmul.mubr.bf16.gmra.mrb[4].mxu1 %v494_v43 }
  0xf5   :  { %v631_v5 = vpop.f32.mrb[0].mxu0  ;;  %v639_v44 = vpop.f32.mrb[0].mxu1 }
  0xf6   :  { %v306_v45 = vpop.f32.mrb[1].mxu0  ;;  %v338_v46 = vpop.f32.mrb[1].mxu1 }
  0xf7   :  { %v632_v47 = vpop.f32.mrb[2].mxu0  ;;  %v640_v11 = vpop.f32.mrb[2].mxu1 }
  0xf8   :  { %v551_v48 = vpack.c.bf16 %v632_v47, %v631_v5  ;;  %v571_v49 = vpack.c.bf16 %v640_v11, %v639_v44  ;;  %v309_v50 = vpop.f32.mrb[3].mxu0  ;;  %v341_v51 = vpop.f32.mrb[3].mxu1 }
  0xf9   :  { %v546_v52 = vpack.c.bf16 %v309_v50, %v306_v45  ;;  %v566_v53 = vpack.c.bf16 %v341_v51, %v338_v46 }
  0xfa   :  { %590 = vst [vmem:[%s820_s4 + $0x8] sm:$0xff] %v551_v48   ;;  %594 = vst [vmem:[%s820_s4 + $0x28] sm:$0xff] %v571_v49  }
  0xfb   :  { %547 = vst [vmem:[%s820_s4] sm:$0xff] %v546_v52   ;;  %593 = vst [vmem:[%s820_s4 + $0x20] sm:$0xff] %v566_v53  }
  0xfd   :  { %v635_v54 = vpop.f32.mrb[4].mxu0  ;;  %v643_v55 = vpop.f32.mrb[4].mxu1 }
  0xfe   :  { %v322_v56 = vpop.f32.mrb[5].mxu0  ;;  %v354_v57 = vpop.f32.mrb[5].mxu1 }
  0xff   :  { %v636_v58 = vpop.f32.mrb[6].mxu0  ;;  %v644_v59 = vpop.f32.mrb[6].mxu1 }
 0x100   :  { %v561_v60 = vpack.c.bf16 %v636_v58, %v635_v54  ;;  %v581_v61 = vpack.c.bf16 %v644_v59, %v643_v55  ;;  %v325_v62 = vpop.f32.mrb[7].mxu0  ;;  %v357_v63 = vpop.f32.mrb[7].mxu1 }
 0x101   :  { %v556_v0 = vpack.c.bf16 %v325_v62, %v322_v56  ;;  %v576_v1 = vpack.c.bf16 %v357_v63, %v354_v57 }
 0x102   :  { %592 = vst [vmem:[%s820_s4 + $0x18] sm:$0xff] %v561_v60   ;;  %596 = vst [vmem:[%s820_s4 + $0x38] sm:$0xff] %v581_v61  }
 0x103   :  { %591 = vst [vmem:[%s820_s4 + $0x10] sm:$0xff] %v556_v0   ;;  %595 = vst [vmem:[%s820_s4 + $0x30] sm:$0xff] %v576_v1  }

// kernel: _lambda_.11
= control target key start
LH: loop header
LB: loop body
LE: loop exit
PB: predicated region body
PF: predicated region fallthrough
CT: control target
= control target key end

     0   :  { %s93_s0 = inlined_call_operand.vmem [shape: f32[1,128], index: 0, kind: input, shape index: {}]   ;;  %s94_s1 = inlined_call_operand.vmem [shape: f32[1,128], index: 1, kind: input, shape index: {}]   ;;  %s95_s2 = inlined_call_operand.vmem [shape: f32[1,128], index: 2, kind: input, shape index: {}]   ;;  %s96_s3 = inlined_call_operand.vmem [shape: f32[1,128], index: 3, kind: input, shape index: {}]   ;;  %s97_s4 = inlined_call_operand.vmem [shape: f32[1,128], index: 4, kind: output, shape index: {0}]   ;;  %s98_s5 = inlined_call_operand.vmem [shape: f32[1,128], index: 5, kind: output, shape index: {1}]  }
   0x1   :  { %v19_v0 = vld [vmem:[%s93_s0] sm:$0x1] }
   0x2   :  { %v21_v1 = vld [vmem:[%s94_s1] sm:$0x1]  ;;  %v20_v2 = vmul.f32 0.0078125, %v19_v0 }
   0x3   :  { %v22_v3 = vmul.f32 0.0078125, %v21_v1  ;;  %v26_v8 = vld [vmem:[%s95_s2] sm:$0x1] }
   0x4   :  { %v23_v4 = vmul.f32 %v20_v2, %v20_v2  ;;  %v31_v11 = vld [vmem:[%s96_s3] sm:$0x1] }
   0x6   :  { %v24_v5 = vsub.f32 %v22_v3, %v23_v4 }
   0x8   :  { %v25_v6 = vmax.f32 %v24_v5, 0.0 }
   0xa   :  { %v27_v7 = vadd.f32 1e-05, %v25_v6 }
   0xc   :  { %43 = vrsqrt.f32 %v27_v7 }
  0x16   :  { %v44_v9 = vpop.eup %43 }
  0x17   :  { %v29_v10 = vmul.f32 %v44_v9, %v26_v8 }
  0x19   :  { %30 = vst [vmem:[%s97_s4] sm:$0x1] %v29_v10  ;;  %v32_v12 = vmul.f32 %v29_v10, %v20_v2 }
  0x1b   :  { %v33_v13 = vsub.f32 %v31_v11, %v32_v12 }
  0x1d   :  { %34 = vst [vmem:[%s98_s5] sm:$0x1] %v33_v13 }

// kernel: _lambda_.15
= control target key start
LH: loop header
LB: loop body
LE: loop exit
PB: predicated region body
PF: predicated region fallthrough
CT: control target
= control target key end

     0   :  { %v4114_v15 = vmov 0.0|0.0   ;;  %v315_v28 = vlaneseq  ;;  %vm470_vm0 = vsmask.f32 3328  ;;  %vm471_vm1 = vsmask.f32 7440  ;;  %s4107_s3 = inlined_call_operand.vmem [shape: bf16[1152,128], index: 3, kind: input, shape index: {}]   ;;  %s4108_s0 = inlined_call_operand.vmem [shape: bf16[2,1,10,10,128], index: 0, kind: input, shape index: {}]   ;;  %s4109_s1 = inlined_call_operand.vmem [shape: f32[1,128], index: 1, kind: input, shape index: {}]   ;;  %s4110_s2 = inlined_call_operand.vmem [shape: f32[1,128], index: 2, kind: input, shape index: {}]   ;;  %s4111_s5 = inlined_call_operand.vmem [shape: f32[1,128], index: 5, kind: output, shape index: {1}]   ;;  %s4112_s6 = inlined_call_operand.vmem [shape: f32[1,128], index: 6, kind: output, shape index: {2}]   ;;  %s4113_s4 = inlined_call_operand.vmem [shape: bf16[2,64,128], index: 4, kind: output, shape index: {0}]  }
   0x1   :  { %v2922_v0 = vld [vmem:[%s4107_s3 + $0x40] sm:$0xff]   ;;  %v2926_v4 = vld [vmem:[%s4107_s3 + $0x48] sm:$0xff]   ;;  %v2930_v8 = vld [vmem:[%s4107_s3 + $0x50] sm:$0xff]   ;;  %v3080_v16 = vcombine.low %v4114_v15, %v4114_v15  ;;  %v3107_v26 = vcombine.high %v4114_v15, %v4114_v15  ;;  %vm697_vm2 = vcmask 1042432   ;;  %vm698_vm3 = vcmask 1046532  }
   0x2   :  { %v2923_v1 = vld [vmem:[%s4107_s3 + $0xc0] sm:$0xff]   ;;  %2600 = vmatprep.subr.bf16.mxu0 %v2922_v0  ;;  %v2927_v5 = vld [vmem:[%s4107_s3 + $0xc8] sm:$0xff]   ;;  %v2931_v9 = vld [vmem:[%s4107_s3 + $0xd0] sm:$0xff]   ;;  %v3125_v36 = vshrl.u32 %v315_v28, 7 }
   0x3   :  { %v2924_v2 = vld [vmem:[%s4107_s3] sm:$0xff]   ;;  %2664 = vmatprep.subr.bf16.mxu1 %v2923_v1  ;;  %v2928_v6 = vld [vmem:[%s4107_s3 + $0x8] sm:$0xff]   ;;  %v2932_v10 = vld [vmem:[%s4107_s3 + $0x10] sm:$0xff]   ;;  %v474_v21 = vshrl.u32 %v3080_v16, 16  ;;  %v477_v23 = vshll.u32 %v3080_v16, 16  ;;  %v483_v34 = vshll.u32 %v3107_v26, 16 }
   0x4   :  { %v2925_v3 = vld [vmem:[%s4107_s3 + $0x80] sm:$0xff]   ;;  %2601 = vmatpush3.bf16.msra.mxu0 %v2924_v2  ;;  %v2929_v7 = vld [vmem:[%s4107_s3 + $0x88] sm:$0xff]   ;;  %v2933_v11 = vld [vmem:[%s4107_s3 + $0x90] sm:$0xff]   ;;  %v3134_v40 = vadd.s32 8, %v3125_v36  ;;  %vm318_vm4 = vcmp.ge.s32.totalorder %v3125_v36, 1  ;;  %v2261_v61 = vrot.slane %v3080_v16, 9 }
   0x5   :  { %2665 = vmatpush3.bf16.msra.mxu1 %v2925_v3  ;;  %2602 = vmatprep.subr.bf16.mxu0 %v2926_v4  ;;  %v2934_v12 = vld [vmem:[%s4107_s3 + $0x58] sm:$0xff]   ;;  %v2938_v18 = vld [vmem:[%s4107_s3 + $0x60] sm:$0xff]   ;;  %v2942_v24 = vld [vmem:[%s4107_s3 + $0x68] sm:$0xff]   ;;  %v476_v29 = vrot.slane %v474_v21, 4  ;;  %v479_v31 = vrot.slane %v477_v23, 5  ;;  %v485_v42 = vrot.slane %v483_v34, 5 }
   0x6   :  { %2666 = vmatprep.subr.bf16.mxu1 %v2927_v5  ;;  %v2935_v13 = vld [vmem:[%s4107_s3 + $0xd8] sm:$0xff]   ;;  %v2939_v19 = vld [vmem:[%s4107_s3 + $0xe0] sm:$0xff]   ;;  %v2943_v25 = vld [vmem:[%s4107_s3 + $0xe8] sm:$0xff]   ;;  %vm325_vm5 = vcmp.lt.s32.totalorder %v3134_v40, 9  ;;  %v702_v62 = vrot.slane %v3107_v26, 5 }
   0x7   :  { %v2936_v14 = vld [vmem:[%s4107_s3 + $0x18] sm:$0xff]   ;;  %v2940_v20 = vld [vmem:[%s4107_s3 + $0x20] sm:$0xff]   ;;  %v2944_v27 = vld [vmem:[%s4107_s3 + $0x28] sm:$0xff]   ;;  %v480_v38 = vor.u32 %v479_v31, %v476_v29 }
   0x8   :  { %2603 = vmatpush3.bf16.msra.mxu0 %v2928_v6  ;;  %v2937_v17 = vld [vmem:[%s4107_s3 + $0x98] sm:$0xff]   ;;  %v2941_v22 = vld [vmem:[%s4107_s3 + $0xa0] sm:$0xff]   ;;  %v2945_v30 = vld [vmem:[%s4107_s3 + $0xa8] sm:$0xff]  }
   0x9   :  { %2667 = vmatpush3.bf16.msra.mxu1 %v2929_v7  ;;  %2604 = vmatprep.subr.bf16.mxu0 %v2930_v8  ;;  %v2946_v32 = vld [vmem:[%s4107_s3 + $0x70] sm:$0xff]   ;;  %v2950_v39 = vld [vmem:[%s4107_s3 + $0x78] sm:$0xff]   ;;  %v481_v45 = vrot.slane %v480_v38, 4  ;;  %v24_v47 = vld [vmem:[%s4108_s0 + $0xc] sm:$0x1] }
   0xa   :  { %2668 = vmatprep.subr.bf16.mxu1 %v2931_v9  ;;  %v2947_v33 = vld [vmem:[%s4107_s3 + $0xf0] sm:$0xff]   ;;  %v2951_v41 = vld [vmem:[%s4107_s3 + $0xf8] sm:$0xff]   ;;  %v3159_v49 = vld [vmem:[%s4109_s1] ss:$0 sm:$0xff]  ;;  %v66_v51 = vunpack.c.l.bf16 %v24_v47 }
   0xb   :  { %v2948_v35 = vld [vmem:[%s4107_s3 + $0x30] sm:$0xff]   ;;  %v2952_v43 = vld [vmem:[%s4107_s3 + $0x38] sm:$0xff]   ;;  %v3164_v54 = vld [vmem:[%s4110_s2] ss:$0 sm:$0xff] }
   0xc   :  { %2605 = vmatpush3.bf16.msra.mxu0 %v2932_v10  ;;  %v2949_v37 = vld [vmem:[%s4107_s3 + $0xb0] sm:$0xff]   ;;  %v2953_v44 = vld [vmem:[%s4107_s3 + $0xb8] sm:$0xff]   ;;  %v112_v56 = vmul.f32 %v3159_v49, %v66_v51  ;;  %vm3172_vm6 = vmor %vm470_vm0, %vm471_vm1 }
   0xd   :  { %2669 = vmatpush3.bf16.msra.mxu1 %v2933_v11  ;;  %2606 = vmatprep.subr.bf16.mxu0 %v2934_v12  ;;  %v23_v46 = vld [vmem:[%s4108_s0 + $0x8] ss:$8 sps:$4 sm:$0xff]   ;;  %v26_v48 = vld [vmem:[%s4108_s0 + $0x14] sm:$0x1]  ;;  %v2954_v60 = vld [vmem:[%s4107_s3 + $0x140] sm:$0xff]   ;;  %v3193_v5 = vsel %vm3172_vm6, %v481_v45, %v485_v42 }
   0xe   :  { %2670 = vmatprep.subr.bf16.mxu1 %v2935_v13  ;;  %v65_v50 = vunpack.c.l.bf16 %v23_v46  ;;  %v67_v52 = vunpack.c.h.bf16 %v23_v46  ;;  %v68_v53 = vunpack.c.l.bf16 %v26_v48  ;;  %v27_v63 = vld [vmem:[%s4108_s0 + $0x18] ss:$8 sps:$4 sm:$0xff]   ;;  %v158_v1 = vadd.f32 %v3164_v54, %v112_v56  ;;  %v28_v4 = vld [vmem:[%s4108_s0 + $0x1c] sm:$0x1]  ;;  %vm3197_vm7 = vmor %vm697_vm2, %vm698_vm3 }
   0xf   :  { %v69_v7 = vunpack.c.l.bf16 %v27_v63  ;;  %v70_v8 = vunpack.c.l.bf16 %v28_v4  ;;  %v71_v9 = vunpack.c.h.bf16 %v27_v63  ;;  %v3204_v16 = vsel %vm3197_vm7, %v2261_v61, %v702_v62  ;;  %vm3225_vm12 = vmpackc.low %vm318_vm4, %vm318_vm4  ;;  %v2989_v40 = vld [vmem:[%s4107_s3 + $0x218] sm:$0xff]  }
  0x10   :  { %2607 = vmatpush3.bf16.msra.mxu0 %v2936_v14  ;;  %v111_v55 = vmul.f32 %v3159_v49, %v65_v50  ;;  %v113_v57 = vmul.f32 %v3159_v49, %v67_v52  ;;  %v114_v58 = vmul.f32 %v3159_v49, %v68_v53  ;;  %vm198_vm9 = vcmp.ge.f32.partialorder %v158_v1, 0.0  ;;  %4132 = vst [vmem:[#allocation2_spill] sm:$0xff] %v3204_v16 }
  0x11   :  { %2671 = vmatpush3.bf16.msra.mxu1 %v2937_v17  ;;  %2608 = vmatprep.subr.bf16.mxu0 %v2938_v18  ;;  %v238_v11 = vmul.f32 0.1, %v158_v1  ;;  %v115_v13 = vmul.f32 %v3159_v49, %v69_v7  ;;  %v116_v17 = vmul.f32 %v3159_v49, %v70_v8  ;;  %v117_v18 = vmul.f32 %v3159_v49, %v71_v9  ;;  %v2963_v7 = vld [vmem:[%s4107_s3 + $0x1c8] sm:$0xff]   ;;  %v2955_v9 = vld [vmem:[%s4107_s3 + $0x100] sm:$0xff]  }
  0x12   :  { %2672 = vmatprep.subr.bf16.mxu1 %v2939_v19  ;;  %v157_v0 = vadd.f32 %v3164_v54, %v111_v55  ;;  %v159_v2 = vadd.f32 %v3164_v54, %v113_v57  ;;  %v160_v3 = vadd.f32 %v3164_v54, %v114_v58 }
  0x13   :  { %v163_v62 = vadd.f32 %v3164_v54, %v117_v18  ;;  %v2956_v18 = vld [vmem:[%s4107_s3 + $0x148] sm:$0xff]  }
  0x14   :  { %2609 = vmatpush3.bf16.msra.mxu0 %v2940_v20  ;;  %vm197_vm8 = vcmp.ge.f32.partialorder %v157_v0, 0.0  ;;  %vm199_vm10 = vcmp.ge.f32.partialorder %v159_v2, 0.0  ;;  %vm200_vm11 = vcmp.ge.f32.partialorder %v160_v3, 0.0  ;;  %v237_v10 = vmul.f32 0.1, %v157_v0 }
  0x15   :  { %2673 = vmatpush3.bf16.msra.mxu1 %v2941_v22  ;;  %2610 = vmatprep.subr.bf16.mxu0 %v2942_v24  ;;  %v239_v12 = vmul.f32 0.1, %v159_v2  ;;  %v240_v14 = vmul.f32 0.1, %v160_v3  ;;  %v278_v20 = vsel %vm198_vm9, %v158_v1, %v238_v11  ;;  %v161_v22 = vadd.f32 %v3164_v54, %v115_v13 }
  0x16   :  { %2674 = vmatprep.subr.bf16.mxu1 %v2943_v25  ;;  %v277_v19 = vsel %vm197_vm8, %v157_v0, %v237_v10  ;;  %v333_v25 = vsel %vm325_vm5, %v278_v20, 0.0  ;;  %v2961_v0 = vld [vmem:[%s4107_s3 + $0x180] sm:$0xff]   ;;  %vm203_vm15 = vcmp.ge.f32.partialorder %v163_v62, 0.0 }
  0x17   :  { %v279_v21 = vsel %vm199_vm10, %v159_v2, %v239_v12  ;;  %v280_v23 = vsel %vm200_vm11, %v160_v3, %v240_v14  ;;  %v332_v24 = vsel %vm318_vm4, %v277_v19, 0.0  ;;  %vm201_vm13 = vcmp.ge.f32.partialorder %v161_v22, 0.0 }
  0x18   :  { %2611 = vmatpush3.bf16.msra.mxu0 %v2944_v27  ;;  %v334_v26 = vsel %vm318_vm4, %v279_v21, 0.0  ;;  %v2959_v27 = vld [vmem:[%s4107_s3 + $0x1c0] sm:$0xff]   ;;  %v335_v28 = vsel %vm325_vm5, %v280_v23, 0.0  ;;  %v2431_v29 = vpack.c.bf16 %v332_v24, %v332_v24  ;;  %v2496_v34 = vpack.c.bf16 %v279_v21, %v277_v19 }
  0x19   :  { %2675 = vmatpush3.bf16.msra.mxu1 %v2945_v30  ;;  %2612 = vmatprep.subr.bf16.mxu0 %v2946_v32  ;;  %v2432_v30 = vpack.c.bf16 %v333_v25, %v333_v25  ;;  %v3220_v31 = vpack.c.bf16 %v334_v26, %v334_v26  ;;  %v241_v57 = vmul.f32 0.1, %v161_v22  ;;  %v30_v19 = vld [vmem:[%s4108_s0 + $0x24] sm:$0x1]  ;;  %v2965_v26 = vld [vmem:[%s4107_s3 + $0x188] sm:$0xff]  }
  0x1a   :  { %2676 = vmatprep.subr.bf16.mxu1 %v2947_v33  ;;  %v3229_v33 = vpack.c.bf16 %v335_v28, %v335_v28  ;;  %v488_v38 = vshrl.u32 %v2431_v29, 16  ;;  %2497 = vmatprep.mubr.msk.bf16.mxu1 %vm3225_vm12, %v2496_v34  ;;  %v2262_v46 = vrot.slane %v2431_v29, 9 }
  0x1b   :  { %v502_v42 = vshrl.u32 %v3220_v31, 16  ;;  %v706_v55 = vrot.slane %v2432_v30, 5  ;;  %v2263_v63 = vrot.slane %v3220_v31, 9  ;;  %v281_v3 = vsel %vm201_vm13, %v161_v22, %v241_v57 }
  0x1c   :  { %2613 = vmatpush3.bf16.msra.mxu0 %v2948_v35  ;;  %v371_v35 = vpack.c.bf16 %v333_v25, %v332_v24  ;;  %v490_v47 = vrot.slane %v488_v38, 4  ;;  %v336_v10 = vsel %vm318_vm4, %v281_v3, 0.0  ;;  %v3275_v23 = vpack.c.bf16 %v281_v3, %v279_v21  ;;  %v31_v25 = vld [vmem:[%s4108_s0 + $0x28] ss:$8 sps:$4 sm:$0xff]   ;;  %v32_v21 = vld [vmem:[%s4108_s0 + $0x2c] sm:$0x1] }
  0x1d   :  { %2677 = vmatpush3.bf16.msra.mxu1 %v2949_v37  ;;  %2614 = vmatprep.subr.bf16.mxu0 %v2950_v39  ;;  %v162_v37 = vadd.f32 %v3164_v54, %v116_v17  ;;  %v491_v39 = vshll.u32 %v2431_v29, 16  ;;  %v504_v51 = vrot.slane %v502_v42, 4  ;;  %v3240_v61 = vsel %vm3197_vm7, %v2262_v46, %v706_v55  ;;  %v2957_v38 = vld [vmem:[%s4107_s3 + $0x108] sm:$0xff]   ;;  %v2969_v55 = vld [vmem:[%s4107_s3 + $0x190] sm:$0xff]  }
  0x1e   :  { %2678 = vmatprep.subr.bf16.mxu1 %v2951_v41  ;;  %v497_v41 = vshll.u32 %v2432_v30, 16  ;;  %v2289_v45 = vcombine.low %v4114_v15, %v371_v35  ;;  %v2305_v2 = vcombine.low %v3204_v16, %v3240_v61  ;;  %v2435_v13 = vpack.c.bf16 %v336_v10, %v336_v10 }
  0x1f   :  { %v493_v48 = vrot.slane %v491_v39, 5  ;;  %vm202_vm14 = vcmp.ge.f32.partialorder %v162_v37, 0.0  ;;  %v242_v58 = vmul.f32 0.1, %v162_v37  ;;  %v243_v17 = vmul.f32 0.1, %v163_v62 }
  0x20   :  { %2615 = vmatpush3.bf16.msra.mxu0 %v2952_v43  ;;  %v505_v43 = vshll.u32 %v3220_v31, 16  ;;  %v499_v50 = vrot.slane %v497_v41, 5  ;;  %v710_v24 = vrot.slane %v3229_v33, 5  ;;  %v516_v28 = vshrl.u32 %v2435_v13, 16  ;;  %v2967_v31 = vld [vmem:[%s4107_s3 + $0x1d0] sm:$0xff]  }
  0x21   :  { %2679 = vmatpush3.bf16.msra.mxu1 %v2953_v44  ;;  %2728 = vmatprep.subr.bf16.mxu0 %v2954_v60  ;;  %v511_v44 = vshll.u32 %v3229_v33, 16  ;;  %v494_v56 = vor.u32 %v493_v48, %v490_v47  ;;  %v282_v4 = vsel %vm202_vm14, %v162_v37, %v242_v58  ;;  %v519_v29 = vshll.u32 %v2435_v13, 16 }
  0x22   :  { %2792 = vmatprep.subr.bf16.mxu1 %v2959_v27  ;;  %v507_v52 = vrot.slane %v505_v43, 5  ;;  %v337_v11 = vsel %vm325_vm5, %v282_v4, 0.0  ;;  %v3293_v33 = vsel %vm203_vm15, %v163_v62, %v243_v17  ;;  %v3297_v34 = vsel %vm3197_vm7, %v2263_v63, %v710_v24  ;;  %v2960_v62 = vld [vmem:[%s4107_s3 + $0x110] sm:$0xff]   ;;  %v3340_v4 = vld [vmem:[%s4108_s0 + $0x38] ss:$8 sps:$4 sm:$0xff]  }
  0x23   :  { %v513_v53 = vrot.slane %v511_v44, 5  ;;  %v495_v1 = vrot.slane %v494_v56, 4  ;;  %v2436_v14 = vpack.c.bf16 %v337_v11, %v337_v11  ;;  %v2264_v35 = vrot.slane %v2435_v13, 9  ;;  %v2958_v44 = vld [vmem:[%s4107_s3 + $0x150] sm:$0xff]   ;;  %v3347_v11 = vld [vmem:[%s4108_s0 + $0x3c] sm:$0x1] }
  0x24   :  { %v508_v60 = vor.u32 %v507_v52, %v504_v51  ;;  %1710 = vmatmul.mubr.bf16.vlgmr.msra.gmra.mrb[0].mxu1 %v2305_v2  ;;  %v518_v39 = vrot.slane %v516_v28, 4  ;;  %v521_v41 = vrot.slane %v519_v29, 5  ;;  %v338_v43 = vsel %vm318_vm4, %v3293_v33, 0.0  ;;  %v34_v63 = vld [vmem:[%s4108_s0 + $0x34] sm:$0x1]  ;;  %v2962_v13 = vld [vmem:[%s4107_s3 + $0x158] sm:$0xff]  }
  0x25   :  { %v3261_v12 = vsel %vm3172_vm6, %v495_v1, %v499_v50  ;;  %2793 = vmatpush3.bf16.msra.mxu1 %v2961_v0  ;;  %v525_v30 = vshll.u32 %v2436_v14, 16  ;;  %v714_v37 = vrot.slane %v2436_v14, 5  ;;  %v3308_v46 = vpack.c.bf16 %v338_v43, %v338_v43  ;;  %v2971_v14 = vld [vmem:[%s4107_s3 + $0x1d8] sm:$0xff]  }
  0x26   :  { %v509_v8 = vrot.slane %v508_v60, 4  ;;  %v2297_v22 = vcombine.low %v3193_v5, %v3261_v12  ;;  %2794 = vmatprep.subr.bf16.mxu1 %v2963_v7  ;;  %v2499_v47 = vpack.c.bf16 %v3293_v33, %v281_v3  ;;  %v522_v50 = vor.u32 %v521_v41, %v518_v39  ;;  %v2964_v28 = vld [vmem:[%s4107_s3 + $0x118] sm:$0xff]  }
  0x27   :  { %v527_v42 = vrot.slane %v525_v30, 5  ;;  %v3313_v48 = vsel %vm3197_vm7, %v2264_v35, %v714_v37  ;;  %v73_v52 = vunpack.c.l.bf16 %v31_v25  ;;  %v530_v57 = vshrl.u32 %v3308_v46, 16 }
  0x28   :  { %v3271_v20 = vsel %vm3172_vm6, %v509_v8, %v513_v53  ;;  %1612 = vmatprep.mubr.bf16.mxu0 %v2297_v22  ;;  %v3317_v51 = vcombine.low %v3297_v34, %v3313_v48  ;;  %v74_v53 = vunpack.c.l.bf16 %v32_v21  ;;  %2500 = vmatprep.mubr.msk.bf16.mxu1 %vm3225_vm12, %v2499_v47  ;;  %v533_v58 = vshll.u32 %v3308_v46, 16 }
  0x29   :  { %1613 = vmatmul.mubr.bf16.vlgmr.msra.gmra.mrb[0].mxu0 %v2289_v45  ;;  %v72_v45 = vunpack.c.l.bf16 %v30_v19  ;;  %2795 = vmatpush3.bf16.msra.mxu1 %v2965_v26  ;;  %v75_v60 = vunpack.c.h.bf16 %v31_v25  ;;  %v523_v0 = vrot.slane %v522_v50, 4  ;;  %v119_v1 = vmul.f32 %v3159_v49, %v73_v52  ;;  %v2968_v52 = vld [vmem:[%s4107_s3 + $0x120] sm:$0xff]  }
  0x2a   :  { %2729 = vmatpush3.bf16.msra.mxu0 %v2955_v9  ;;  %4135 = vst [vmem:[#allocation3_spill] sm:$0xff] %v3317_v51  ;;  %2796 = vmatprep.subr.bf16.mxu1 %v2967_v31  ;;  %v120_v2 = vmul.f32 %v3159_v49, %v74_v53  ;;  %v2265_v3 = vrot.slane %v3308_v46, 9  ;;  %v532_v8 = vrot.slane %v530_v57, 4  ;;  %v535_v9 = vrot.slane %v533_v58, 5  ;;  %v2975_v53 = vld [vmem:[%s4107_s3 + $0x1e0] sm:$0xff]  }
  0x2b   :  { %2730 = vmatprep.subr.bf16.mxu0 %v2956_v18  ;;  %v118_v56 = vmul.f32 %v3159_v49, %v72_v45  ;;  %v121_v10 = vmul.f32 %v3159_v49, %v75_v60  ;;  %v3357_v17 = vsel %vm3172_vm6, %v523_v0, %v527_v42  ;;  %v165_v18 = vadd.f32 %v3164_v54, %v119_v1  ;;  %v2977_v46 = vld [vmem:[%s4107_s3 + $0x1a0] sm:$0xff]  }
  0x2c   :  { %1718 = vmatmul.mubr.bf16.gmra.mrb[4].mxu1 %v3317_v51  ;;  %v166_v19 = vadd.f32 %v3164_v54, %v120_v2  ;;  %v76_v22 = vunpack.c.l.bf16 %v34_v63  ;;  %v3363_v24 = vcombine.low %v3271_v20, %v3357_v17  ;;  %v536_v26 = vor.u32 %v535_v9, %v532_v8 }
  0x2d   :  { %v164_v7 = vadd.f32 %v3164_v54, %v118_v56  ;;  %2797 = vmatpush3.bf16.msra.mxu1 %v2969_v55  ;;  %vm205_vm1 = vcmp.ge.f32.partialorder %v165_v18, 0.0  ;;  %v245_v29 = vmul.f32 0.1, %v165_v18  ;;  %v167_v35 = vadd.f32 %v3164_v54, %v121_v10 }
  0x2e   :  { %2731 = vmatpush3.bf16.msra.mxu0 %v2957_v38  ;;  %2798 = vmatprep.subr.bf16.mxu1 %v2971_v14  ;;  %vm206_vm2 = vcmp.ge.f32.partialorder %v166_v19, 0.0  ;;  %v246_v30 = vmul.f32 0.1, %v166_v19  ;;  %v537_v31 = vrot.slane %v536_v26, 4  ;;  %v77_v37 = vunpack.c.l.bf16 %v3340_v4  ;;  %v2973_v38 = vld [vmem:[%s4107_s3 + $0x198] sm:$0xff]   ;;  %v2972_v14 = vld [vmem:[%s4107_s3 + $0x128] sm:$0xff]  }
  0x2f   :  { %2732 = vmatprep.subr.bf16.mxu0 %v2958_v44  ;;  %vm204_vm0 = vcmp.ge.f32.partialorder %v164_v7, 0.0  ;;  %v244_v25 = vmul.f32 0.1, %v164_v7  ;;  %1620 = vmatprep.mubr.bf16.mxu0 %v3363_v24  ;;  %v285_v39 = vsel %vm205_vm1, %v165_v18, %v245_v29  ;;  %v78_v43 = vunpack.c.l.bf16 %v3347_v11  ;;  %v2966_v44 = vld [vmem:[%s4107_s3 + $0x160] sm:$0xff]   ;;  %v2974_v26 = vld [vmem:[%s4107_s3 + $0x170] sm:$0xff]  }
  0x30   :  { %v286_v41 = vsel %vm206_vm2, %v166_v19, %v246_v30  ;;  %v340_v47 = vsel %vm318_vm4, %v285_v39, 0.0  ;;  %vm207_vm3 = vcmp.ge.f32.partialorder %v167_v35, 0.0  ;;  %v247_v57 = vmul.f32 0.1, %v167_v35 }
  0x31   :  { %v284_v21 = vsel %vm204_vm0, %v164_v7, %v244_v25  ;;  %2479 = vmatmul.mubr.msk.bf16.gmra.mrb[4].mxu0 %vm3225_vm12, %v3275_v23  ;;  %v341_v45 = vsel %vm325_vm5, %v286_v41, 0.0  ;;  %2799 = vmatpush3.bf16.msra.mxu1 %v2973_v38  ;;  %v2439_v55 = vpack.c.bf16 %v340_v47, %v340_v47  ;;  %v3394_v58 = vpack.c.bf16 %v285_v39, %v3293_v33  ;;  %v2970_v33 = vld [vmem:[%s4107_s3 + $0x168] sm:$0xff]  }
  0x32   :  { %2733 = vmatpush3.bf16.msra.mxu0 %v2960_v62  ;;  %v339_v42 = vsel %vm325_vm5, %v284_v21, 0.0  ;;  %v2440_v56 = vpack.c.bf16 %v341_v45, %v341_v45  ;;  %v122_v63 = vmul.f32 %v3159_v49, %v76_v22  ;;  %v123_v0 = vmul.f32 %v3159_v49, %v77_v37  ;;  %2800 = vmatprep.subr.bf16.mxu1 %v2975_v53 }
  0x33   :  { %2734 = vmatprep.subr.bf16.mxu0 %v2962_v13  ;;  %v2438_v50 = vpack.c.bf16 %v339_v42, %v339_v42  ;;  %v544_v1 = vshrl.u32 %v2439_v55, 16  ;;  %v547_v2 = vshll.u32 %v2439_v55, 16  ;;  %v3399_v8 = vsel %vm207_vm3, %v167_v35, %v247_v57 }
  0x34   :  { %v553_v7 = vshll.u32 %v2440_v56, 16  ;;  %v342_v10 = vsel %vm318_vm4, %v3399_v8, 0.0  ;;  %v2502_v11 = vpack.c.bf16 %v3399_v8, %v285_v39  ;;  %v722_v29 = vrot.slane %v2440_v56, 5  ;;  %v3461_v56 = vld [vmem:[%s4108_s0 + $0x58] ss:$8 sps:$4 sm:$0xff]  }
  0x35   :  { %v539_v60 = vshll.u32 %v2438_v50, 16  ;;  %v718_v62 = vrot.slane %v2438_v50, 5  ;;  %v546_v18 = vrot.slane %v544_v1, 4  ;;  %v549_v19 = vrot.slane %v547_v2, 5  ;;  %2801 = vmatpush3.bf16.msra.mxu1 %v2977_v46  ;;  %v2976_v50 = vld [vmem:[%s4107_s3 + $0x130] sm:$0xff]  }
  0x36   :  { %2735 = vmatpush3.bf16.msra.mxu0 %v2964_v28  ;;  %v555_v22 = vrot.slane %v553_v7, 5  ;;  %v3417_v25 = vpack.c.bf16 %v342_v10, %v342_v10  ;;  %2503 = vmatprep.mubr.msk.bf16.mxu1 %vm3225_vm12, %v2502_v11  ;;  %v2266_v28 = vrot.slane %v2439_v55, 9  ;;  %v124_v30 = vmul.f32 %v3159_v49, %v78_v43  ;;  %v44_v46 = vld [vmem:[%s4108_s0 + $0x5c] sm:$0x1] }
  0x37   :  { %2736 = vmatprep.subr.bf16.mxu0 %v2966_v44  ;;  %v541_v9 = vrot.slane %v539_v60, 5  ;;  %v3412_v13 = vsel %vm3197_vm7, %v2265_v3, %v718_v62  ;;  %v550_v21 = vor.u32 %v549_v19, %v546_v18  ;;  %v168_v35 = vadd.f32 %v3164_v54, %v122_v63  ;;  %v2979_v44 = vld [vmem:[%s4107_s3 + $0x1a8] sm:$0xff]  }
  0x38   :  { %v169_v37 = vadd.f32 %v3164_v54, %v123_v0  ;;  %v558_v38 = vshrl.u32 %v3417_v25, 16  ;;  %v3440_v39 = vsel %vm3197_vm7, %v2266_v28, %v722_v29  ;;  %v170_v41 = vadd.f32 %v3164_v54, %v124_v30  ;;  %v2981_v0 = vld [vmem:[%s4107_s3 + $0x1f0] sm:$0xff]  }
  0x39   :  { %v3427_v3 = vsel %vm3172_vm6, %v537_v31, %v541_v9  ;;  %v2978_v31 = vld [vmem:[%s4107_s3 + $0x1e8] sm:$0xff]   ;;  %v561_v42 = vshll.u32 %v3417_v25, 16  ;;  %v79_v43 = vunpack.c.h.bf16 %v3340_v4  ;;  %v551_v47 = vrot.slane %v550_v21, 4  ;;  %v2980_v4 = vld [vmem:[%s4107_s3 + $0x178] sm:$0xff]   ;;  %v2983_v28 = vld [vmem:[%s4107_s3 + $0x1b0] sm:$0xff]  }
  0x3a   :  { %2737 = vmatpush3.bf16.msra.mxu0 %v2968_v52  ;;  %v3450_v45 = vcombine.low %v3412_v13, %v3440_v39  ;;  %vm208_vm8 = vcmp.ge.f32.partialorder %v168_v35, 0.0  ;;  %vm209_vm9 = vcmp.ge.f32.partialorder %v169_v37, 0.0  ;;  %2802 = vmatprep.subr.bf16.mxu1 %v2978_v31  ;;  %vm210_vm10 = vcmp.ge.f32.partialorder %v170_v41, 0.0  ;;  %v2982_v9 = vld [vmem:[%s4107_s3 + $0x138] sm:$0xff]  }
  0x3b   :  { %2738 = vmatprep.subr.bf16.mxu0 %v2970_v33  ;;  %v248_v52 = vmul.f32 0.1, %v168_v35  ;;  %v249_v53 = vmul.f32 0.1, %v169_v37  ;;  %v560_v55 = vrot.slane %v558_v38, 4  ;;  %v3465_v57 = vsel %vm3172_vm6, %v551_v47, %v555_v22  ;;  %2803 = vmatpush3.bf16.msra.mxu1 %v2979_v44 }
  0x3c   :  { %4136 = vst [vmem:[#allocation4_spill] sm:$0xff] %v3450_v45  ;;  %1726 = vmatmul.mubr.bf16.gmra.mrb[8].mxu1 %v3450_v45  ;;  %v250_v60 = vmul.f32 0.1, %v170_v41  ;;  %v563_v62 = vrot.slane %v561_v42, 5  ;;  %v125_v63 = vmul.f32 %v3159_v49, %v79_v43  ;;  %v3474_v1 = vcombine.low %v3427_v3, %v3465_v57  ;;  %2804 = vmatprep.subr.bf16.mxu1 %v2981_v0  ;;  %v46_v47 = vld [vmem:[%s4108_s0 + $0x64] sm:$0x1] }
  0x3d   :  { %v288_v2 = vsel %vm208_vm8, %v168_v35, %v248_v52  ;;  %v289_v7 = vsel %vm209_vm9, %v169_v37, %v249_v53  ;;  %v2267_v33 = vrot.slane %v3417_v25, 9  ;;  %v85_v21 = vunpack.c.l.bf16 %v3461_v56  ;;  %v2984_v35 = vld [vmem:[%s4107_s3 + $0x1f8] sm:$0xff]  }
  0x3e   :  { %2739 = vmatpush3.bf16.msra.mxu0 %v2972_v14  ;;  %v290_v10 = vsel %vm210_vm10, %v170_v41, %v250_v60  ;;  %v343_v11 = vsel %vm325_vm5, %v288_v2, 0.0  ;;  %v344_v14 = vsel %vm318_vm4, %v289_v7, 0.0  ;;  %v564_v18 = vor.u32 %v563_v62, %v560_v55  ;;  %1628 = vmatprep.mubr.bf16.mxu0 %v3474_v1  ;;  %v47_v60 = vld [vmem:[%s4108_s0 + $0x68] ss:$8 sps:$4 sm:$0xff]   ;;  %v48_v62 = vld [vmem:[%s4108_s0 + $0x6c] sm:$0x1] }
  0x3f   :  { %2740 = vmatprep.subr.bf16.mxu0 %v2974_v26  ;;  %v345_v19 = vsel %vm325_vm5, %v290_v10, 0.0  ;;  %v2442_v22 = vpack.c.bf16 %v343_v11, %v343_v11  ;;  %v2443_v25 = vpack.c.bf16 %v344_v14, %v344_v14  ;;  %v171_v26 = vadd.f32 %v3164_v54, %v125_v63  ;;  %2482 = vmatmul.mubr.msk.bf16.gmra.mrb[8].mxu0 %vm3225_vm12, %v3394_v58  ;;  %v3526_v10 = vld [vmem:[%s4107_s3 + $0x200] sm:$0xff]  }
  0x40   :  { %v2444_v29 = vpack.c.bf16 %v345_v19, %v345_v19  ;;  %v565_v30 = vrot.slane %v564_v18, 4  ;;  %2805 = vmatpush3.bf16.msra.mxu1 %v2983_v28  ;;  %v86_v2 = vunpack.c.l.bf16 %v44_v46  ;;  %v3530_v19 = vpack.c.bf16 %v289_v7, %v3399_v8 }
  0x41   :  { %v567_v37 = vshll.u32 %v2442_v22, 16  ;;  %v572_v38 = vshrl.u32 %v2443_v25, 16  ;;  %v575_v31 = vshll.u32 %v2443_v25, 16  ;;  %vm211_vm11 = vcmp.ge.f32.partialorder %v171_v26, 0.0  ;;  %2806 = vmatprep.subr.bf16.mxu1 %v2984_v35 }
  0x42   :  { %2741 = vmatpush3.bf16.msra.mxu0 %v2976_v50  ;;  %v581_v41 = vshll.u32 %v2444_v29, 16  ;;  %v251_v42 = vmul.f32 0.1, %v171_v26  ;;  %v726_v43 = vrot.slane %v2442_v22, 5  ;;  %v2268_v44 = vrot.slane %v2443_v25, 9  ;;  %v2985_v50 = vld [vmem:[%s4107_s3 + $0x1b8] sm:$0xff]  }
  0x43   :  { %2742 = vmatprep.subr.bf16.mxu0 %v2980_v4  ;;  %v569_v4 = vrot.slane %v567_v37, 5  ;;  %v574_v52 = vrot.slane %v572_v38, 4  ;;  %v577_v53 = vrot.slane %v575_v31, 5  ;;  %v730_v55 = vrot.slane %v2444_v29, 5  ;;  %v3563_v31 = vld [vmem:[%s4108_s0 + $0x74] sm:$0x1] }
  0x44   :  { %v3517_v63 = vsel %vm211_vm11, %v171_v26, %v251_v42  ;;  %v3521_v0 = vsel %vm3197_vm7, %v2267_v33, %v726_v43  ;;  %v583_v14 = vrot.slane %v581_v41, 5  ;;  %2807 = vmatpush3.bf16.msra.mxu1 %v2985_v50  ;;  %v131_v22 = vmul.f32 %v3159_v49, %v85_v21 }
  0x45   :  { %v578_v11 = vor.u32 %v577_v53, %v574_v52  ;;  %v2505_v18 = vpack.c.bf16 %v3517_v63, %v289_v7  ;;  %v3538_v33 = vsel %vm3197_vm7, %v2268_v44, %v730_v55  ;;  %v132_v25 = vmul.f32 %v3159_v49, %v86_v2  ;;  %2904 = vmatprep.subr.bf16.mxu1 %v3526_v10 }
  0x46   :  { %2743 = vmatpush3.bf16.msra.mxu0 %v2982_v9  ;;  %v3534_v9 = vsel %vm3172_vm6, %v565_v30, %v569_v4  ;;  %v3547_v8 = vcombine.low %v3521_v0, %v3538_v33  ;;  %v87_v7 = vunpack.c.h.bf16 %v3461_v56  ;;  %v88_v46 = vunpack.c.l.bf16 %v46_v47 }
  0x47   :  { %2872 = vmatprep.subr.bf16.mxu0 %v3526_v10  ;;  %v579_v26 = vrot.slane %v578_v11, 4  ;;  %2506 = vmatprep.mubr.msk.bf16.mxu1 %vm3225_vm12, %v2505_v18  ;;  %v177_v28 = vadd.f32 %v3164_v54, %v131_v22  ;;  %v178_v29 = vadd.f32 %v3164_v54, %v132_v25  ;;  %v89_v30 = vunpack.c.l.bf16 %v47_v60 }
  0x48   :  { %4137 = vst [vmem:[#allocation5_spill] sm:$0xff] %v3547_v8  ;;  %v90_v21 = vunpack.c.l.bf16 %v48_v62  ;;  %1734 = vmatmul.mubr.bf16.gmra.mrb[12].mxu1 %v3547_v8  ;;  %v133_v37 = vmul.f32 %v3159_v49, %v87_v7  ;;  %v134_v38 = vmul.f32 %v3159_v49, %v88_v46  ;;  %v91_v56 = vunpack.c.h.bf16 %v47_v60 }
  0x49   :  { %v3555_v35 = vsel %vm3172_vm6, %v579_v26, %v583_v14  ;;  %vm217_vm13 = vcmp.ge.f32.partialorder %v177_v28, 0.0  ;;  %vm218_vm14 = vcmp.ge.f32.partialorder %v178_v29, 0.0  ;;  %v257_v42 = vmul.f32 0.1, %v177_v28 }
  0x4a   :  { %4138 = vst [vmem:[#allocation6_spill] sm:$0xff] %v3555_v35  ;;  %v3567_v41 = vcombine.low %v3534_v9, %v3555_v35  ;;  %v258_v43 = vmul.f32 0.1, %v178_v29  ;;  %v179_v44 = vadd.f32 %v3164_v54, %v133_v37  ;;  %v135_v47 = vmul.f32 %v3159_v49, %v89_v30 }
  0x4b   :  { %v136_v50 = vmul.f32 %v3159_v49, %v90_v21  ;;  %v297_v4 = vsel %vm217_vm13, %v177_v28, %v257_v42  ;;  %v180_v52 = vadd.f32 %v3164_v54, %v134_v38  ;;  %v137_v53 = vmul.f32 %v3159_v49, %v91_v56 }
  0x4c   :  { %1636 = vmatprep.mubr.bf16.mxu0 %v3567_v41  ;;  %v92_v55 = vunpack.c.l.bf16 %v3563_v31  ;;  %v298_v60 = vsel %vm218_vm14, %v178_v29, %v258_v43  ;;  %v352_v62 = vsel %vm318_vm4, %v297_v4, 0.0  ;;  %vm219_vm15 = vcmp.ge.f32.partialorder %v179_v44, 0.0  ;;  %v54_v31 = vld [vmem:[%s4108_s0 + $0x84] sm:$0x1] }
  0x4d   :  { %2485 = vmatmul.mubr.msk.bf16.gmra.mrb[12].mxu0 %vm3225_vm12, %v3530_v19  ;;  %v259_v2 = vmul.f32 0.1, %v179_v44  ;;  %v353_v11 = vsel %vm325_vm5, %v298_v60, 0.0  ;;  %v2445_v14 = vpack.c.bf16 %v352_v62, %v352_v62  ;;  %v181_v18 = vadd.f32 %v3164_v54, %v135_v47 }
  0x4e   :  { %v182_v49 = vadd.f32 %v3164_v54, %v136_v50  ;;  %v2446_v22 = vpack.c.bf16 %v353_v11, %v353_v11  ;;  %v381_v26 = vpack.c.bf16 %v353_v11, %v352_v62  ;;  %vm220_vm0 = vcmp.ge.f32.partialorder %v180_v52, 0.0 }
  0x4f   :  { %v299_v25 = vsel %vm219_vm15, %v179_v44, %v259_v2  ;;  %v600_v7 = vshrl.u32 %v2445_v14, 16  ;;  %v603_v46 = vshll.u32 %v2445_v14, 16  ;;  %v2270_v38 = vrot.slane %v2445_v14, 9 }
  0x50   :  { %v354_v28 = vsel %vm318_vm4, %v299_v25, 0.0  ;;  %v2508_v29 = vpack.c.bf16 %v299_v25, %v297_v4  ;;  %v609_v30 = vshll.u32 %v2446_v22, 16  ;;  %v2293_v37 = vcombine.low %v4114_v15, %v381_v26 }
  0x51   :  { %v3587_v21 = vpack.c.bf16 %v354_v28, %v354_v28  ;;  %v602_v56 = vrot.slane %v600_v7, 4  ;;  %v605_v42 = vrot.slane %v603_v46, 5  ;;  %v738_v43 = vrot.slane %v2446_v22, 5 }
  0x52   :  { %2509 = vmatprep.mubr.msk.bf16.mxu1 %vm3225_vm12, %v2508_v29  ;;  %vm221_vm1 = vcmp.ge.f32.partialorder %v181_v18, 0.0  ;;  %v611_v44 = vrot.slane %v609_v30, 5  ;;  %vm222_vm2 = vcmp.ge.f32.partialorder %v182_v49, 0.0  ;;  %v260_v47 = vmul.f32 0.1, %v180_v52 }
  0x53   :  { %v261_v50 = vmul.f32 0.1, %v181_v18  ;;  %v606_v60 = vor.u32 %v605_v42, %v602_v56  ;;  %v3594_v4 = vsel %vm3197_vm7, %v2270_v38, %v738_v43  ;;  %v262_v62 = vmul.f32 0.1, %v182_v49 }
  0x54   :  { %v614_v2 = vshrl.u32 %v3587_v21, 16  ;;  %v2309_v11 = vcombine.low %v3204_v16, %v3594_v4  ;;  %v300_v14 = vsel %vm220_vm0, %v180_v52, %v260_v47  ;;  %v617_v22 = vshll.u32 %v3587_v21, 16 }
  0x55   :  { %v301_v26 = vsel %vm221_vm1, %v181_v18, %v261_v50  ;;  %v607_v7 = vrot.slane %v606_v60, 4  ;;  %v302_v46 = vsel %vm222_vm2, %v182_v49, %v262_v62  ;;  %v355_v28 = vsel %vm325_vm5, %v300_v14, 0.0 }
  0x56   :  { %v356_v29 = vsel %vm318_vm4, %v301_v26, 0.0  ;;  %1742 = vmatmul.mubr.bf16.gmra.mrb[16].mxu1 %v2309_v11  ;;  %v357_v30 = vsel %vm325_vm5, %v302_v46, 0.0  ;;  %v2448_v38 = vpack.c.bf16 %v355_v28, %v355_v28  ;;  %v616_v42 = vrot.slane %v614_v2, 4 }
  0x57   :  { %v2449_v56 = vpack.c.bf16 %v356_v29, %v356_v29  ;;  %v3609_v52 = vsel %vm3172_vm6, %v607_v7, %v611_v44  ;;  %v2450_v18 = vpack.c.bf16 %v357_v30, %v357_v30  ;;  %v619_v43 = vrot.slane %v617_v22, 5 }
  0x58   :  { %v183_v49 = vadd.f32 %v3164_v54, %v137_v53  ;;  %v2301_v47 = vcombine.low %v3193_v5, %v3609_v52  ;;  %v623_v50 = vshll.u32 %v2448_v38, 16  ;;  %v3614_v44 = vpack.c.bf16 %v301_v26, %v299_v25  ;;  %v51_v54 = vld [vmem:[%s4108_s0 + $0x78] ss:$8 sps:$4 sm:$0xff]  }
  0x59   :  { %v628_v60 = vshrl.u32 %v2449_v56, 16  ;;  %v631_v62 = vshll.u32 %v2449_v56, 16  ;;  %v620_v11 = vor.u32 %v619_v43, %v616_v42  ;;  %v637_v14 = vshll.u32 %v2450_v18, 16  ;;  %v52_v42 = vld [vmem:[%s4108_s0 + $0x7c] sm:$0x1] }
  0x5a   :  { %vm223_vm3 = vcmp.ge.f32.partialorder %v183_v49, 0.0  ;;  %v263_v46 = vmul.f32 0.1, %v183_v49  ;;  %1644 = vmatprep.mubr.bf16.mxu0 %v2301_v47  ;;  %v625_v2 = vrot.slane %v623_v50, 5  ;;  %4139 = vst [vmem:[#allocation7_spill] sm:$0xff] %v3614_v44  ;;  %v2271_v30 = vrot.slane %v3587_v21, 9 }
  0x5b   :  { %v630_v28 = vrot.slane %v628_v60, 4  ;;  %v633_v29 = vrot.slane %v631_v62, 5  ;;  %1645 = vmatmul.mubr.bf16.gmra.mrb[16].mxu0 %v2293_v37  ;;  %v621_v53 = vrot.slane %v620_v11, 4  ;;  %v639_v22 = vrot.slane %v637_v14, 5 }
  0x5c   :  { %v3619_v7 = vsel %vm223_vm3, %v183_v49, %v263_v46  ;;  %v742_v50 = vrot.slane %v2448_v38, 5  ;;  %v2272_v60 = vrot.slane %v2449_v56, 9  ;;  %v746_v21 = vrot.slane %v2450_v18, 5  ;;  %v3648_v38 = vld [vmem:[%s4109_s1] ss:$0 sm:$0xff] }
  0x5d   :  { %v634_v43 = vor.u32 %v633_v29, %v630_v28  ;;  %v358_v25 = vsel %vm318_vm4, %v3619_v7, 0.0  ;;  %v2511_v47 = vpack.c.bf16 %v3619_v7, %v301_v26  ;;  %v3631_v37 = vsel %vm3172_vm6, %v621_v53, %v625_v2 }
  0x5e   :  { %v3633_v49 = vpack.c.bf16 %v358_v25, %v358_v25  ;;  %v3639_v11 = vsel %vm3197_vm7, %v2271_v30, %v742_v50  ;;  %v93_v14 = vunpack.c.l.bf16 %v51_v54  ;;  %v94_v46 = vunpack.c.l.bf16 %v52_v42 }
  0x5f   :  { %v635_v62 = vrot.slane %v634_v43, 4  ;;  %2512 = vmatprep.mubr.msk.bf16.mxu1 %vm3225_vm12, %v2511_v47  ;;  %v3643_v26 = vsel %vm3197_vm7, %v2272_v60, %v746_v21  ;;  %v138_v56 = vmul.f32 %v3648_v38, %v92_v55  ;;  %v3681_v47 = vsel %vm318_vm4, %v3517_v63, 0.0 }
  0x60   :  { %v642_v18 = vshrl.u32 %v3633_v49, 16  ;;  %v645_v2 = vshll.u32 %v3633_v49, 16  ;;  %v3661_v29 = vcombine.low %v3639_v11, %v3643_v26  ;;  %v139_v53 = vmul.f32 %v3648_v38, %v93_v14 }
  0x61   :  { %v3657_v28 = vsel %vm3172_vm6, %v635_v62, %v639_v22  ;;  %v140_v30 = vmul.f32 %v3648_v38, %v94_v46  ;;  %v3675_v22 = vld [vmem:[%s4110_s2] ss:$0 sm:$0xff]  ;;  %v95_v21 = vunpack.c.h.bf16 %v51_v54  ;;  %v3690_v46 = vld [vmem:[%s4108_s0 + $0x88] ss:$8 sps:$4 sm:$0xff]   ;;  %v2323_v59 = vcombine.low %v3465_v57, %v3534_v9  ;;  %v2993_v57 = vld [vmem:[%s4107_s3 + $0x238] sm:$0xff]  }
  0x62   :  { %4140 = vst [vmem:[#allocation8_spill] sm:$0xff] %v3661_v29  ;;  %v3670_v55 = vcombine.low %v3631_v37, %v3657_v28  ;;  %v184_v42 = vadd.f32 %v3675_v22, %v138_v56  ;;  %v644_v43 = vrot.slane %v642_v18, 4  ;;  %v647_v25 = vrot.slane %v645_v2, 5  ;;  %1750 = vmatmul.mubr.bf16.gmra.mrb[20].mxu1 %v3661_v29 }
  0x63   :  { %v185_v50 = vadd.f32 %v3675_v22, %v139_v53  ;;  %v186_v60 = vadd.f32 %v3675_v22, %v140_v30  ;;  %v96_v56 = vunpack.c.l.bf16 %v54_v31  ;;  %v141_v53 = vmul.f32 %v3648_v38, %v95_v21 }
  0x64   :  { %4141 = vst [vmem:[#allocation9_spill] sm:$0xff] %v3670_v55  ;;  %1652 = vmatprep.mubr.bf16.mxu0 %v3670_v55  ;;  %vm224_vm8 = vcmp.ge.f32.partialorder %v184_v42, 0.0  ;;  %v264_v62 = vmul.f32 0.1, %v184_v42  ;;  %v648_v14 = vor.u32 %v647_v25, %v644_v43  ;;  %v2273_v30 = vrot.slane %v3633_v49, 9 }
  0x65   :  { %2488 = vmatmul.mubr.msk.bf16.gmra.mrb[20].mxu0 %vm3225_vm12, %v3614_v44  ;;  %vm225_vm9 = vcmp.ge.f32.partialorder %v185_v50, 0.0  ;;  %vm226_vm10 = vcmp.ge.f32.partialorder %v186_v60, 0.0  ;;  %v265_v63 = vmul.f32 0.1, %v185_v50  ;;  %v266_v18 = vmul.f32 0.1, %v186_v60 }
  0x66   :  { %v304_v54 = vsel %vm224_vm8, %v184_v42, %v264_v62  ;;  %v649_v2 = vrot.slane %v648_v14, 4  ;;  %v56_v43 = vld [vmem:[%s4108_s0 + $0x8c] sm:$0x1]  ;;  %v97_v27 = vunpack.c.l.bf16 %v3690_v46  ;;  %v187_v49 = vadd.f32 %v3675_v22, %v141_v53 }
  0x67   :  { %v305_v25 = vsel %vm225_vm9, %v185_v50, %v265_v63  ;;  %v306_v31 = vsel %vm226_vm10, %v186_v60, %v266_v18  ;;  %v359_v15 = vsel %vm325_vm5, %v304_v54, 0.0  ;;  %v98_v45 = vunpack.c.l.bf16 %v56_v43 }
  0x68   :  { %v360_v8 = vsel %vm318_vm4, %v305_v25, 0.0  ;;  %v361_v42 = vsel %vm325_vm5, %v306_v31, 0.0  ;;  %v2452_v21 = vpack.c.bf16 %v359_v15, %v359_v15  ;;  %v142_v50 = vmul.f32 %v3648_v38, %v96_v56 }
  0x69   :  { %v2453_v62 = vpack.c.bf16 %v360_v8, %v360_v8  ;;  %v2454_v14 = vpack.c.bf16 %v361_v42, %v361_v42  ;;  %vm227_vm11 = vcmp.ge.f32.partialorder %v187_v49, 0.0  ;;  %v267_v63 = vmul.f32 0.1, %v187_v49  ;;  %v4155_v6 = vld [vmem:[#allocation8_spill] sm:$0xff] }
  0x6a   :  { %v651_v60 = vshll.u32 %v2452_v21, 16  ;;  %v750_v18 = vrot.slane %v2452_v21, 5  ;;  %v3719_v31 = vpack.c.bf16 %v305_v25, %v3619_v7 }
  0x6b   :  { %v656_v54 = vshrl.u32 %v2453_v62, 16  ;;  %v659_v16 = vshll.u32 %v2453_v62, 16  ;;  %v665_v51 = vshll.u32 %v2454_v14, 16  ;;  %v2274_v29 = vrot.slane %v2453_v62, 9 }
  0x6c   :  { %v653_v44 = vrot.slane %v651_v60, 5  ;;  %v3709_v55 = vsel %vm227_vm11, %v187_v49, %v267_v63  ;;  %v3713_v15 = vsel %vm3197_vm7, %v2273_v30, %v750_v18  ;;  %v754_v8 = vrot.slane %v2454_v14, 5  ;;  %4142 = vst [vmem:[#allocation10_spill] sm:$0xff] %v3719_v31 }
  0x6d   :  { %v658_v53 = vrot.slane %v656_v54, 4  ;;  %v661_v43 = vrot.slane %v659_v16, 5  ;;  %v362_v56 = vsel %vm318_vm4, %v3709_v55, 0.0  ;;  %v667_v42 = vrot.slane %v665_v51, 5 }
  0x6e   :  { %v2455_v21 = vpack.c.bf16 %v362_v56, %v362_v56  ;;  %v2514_v62 = vpack.c.bf16 %v3709_v55, %v305_v25  ;;  %v3724_v49 = vsel %vm3197_vm7, %v2274_v29, %v754_v8  ;;  %v143_v16 = vmul.f32 %v3648_v38, %v97_v27 }
  0x6f   :  { %v662_v30 = vor.u32 %v661_v43, %v658_v53  ;;  %v3728_v14 = vcombine.low %v3713_v15, %v3724_v49  ;;  %v144_v60 = vmul.f32 %v3648_v38, %v98_v45  ;;  %v3734_v7 = vsel %vm3172_vm6, %v649_v2, %v653_v44 }
  0x70   :  { %2515 = vmatprep.mubr.msk.bf16.mxu1 %vm3225_vm12, %v2514_v62  ;;  %v188_v51 = vadd.f32 %v3675_v22, %v142_v50  ;;  %v670_v29 = vshrl.u32 %v2455_v21, 16  ;;  %v673_v25 = vshll.u32 %v2455_v21, 16  ;;  %v189_v18 = vadd.f32 %v3675_v22, %v143_v16 }
  0x71   :  { %4143 = vst [vmem:[#allocation11_spill] sm:$0xff] %v3728_v14  ;;  %v663_v63 = vrot.slane %v662_v30, 4  ;;  %1758 = vmatmul.mubr.bf16.gmra.mrb[24].mxu1 %v3728_v14  ;;  %v190_v27 = vadd.f32 %v3675_v22, %v144_v60  ;;  %v99_v45 = vunpack.c.h.bf16 %v3690_v46 }
  0x72   :  { %vm228_vm13 = vcmp.ge.f32.partialorder %v188_v51, 0.0  ;;  %v268_v54 = vmul.f32 0.1, %v188_v51  ;;  %v672_v44 = vrot.slane %v670_v29, 4  ;;  %v675_v2 = vrot.slane %v673_v25, 5 }
  0x73   :  { %v3745_v8 = vsel %vm3172_vm6, %v663_v63, %v667_v42  ;;  %vm229_vm14 = vcmp.ge.f32.partialorder %v189_v18, 0.0  ;;  %vm230_vm15 = vcmp.ge.f32.partialorder %v190_v27, 0.0  ;;  %v269_v50 = vmul.f32 0.1, %v189_v18 }
  0x74   :  { %v3749_v53 = vcombine.low %v3734_v7, %v3745_v8  ;;  %v270_v43 = vmul.f32 0.1, %v190_v27  ;;  %v308_v56 = vsel %vm228_vm13, %v188_v51, %v268_v54  ;;  %v676_v62 = vor.u32 %v675_v2, %v672_v44 }
  0x75   :  { %v309_v30 = vsel %vm229_vm14, %v189_v18, %v269_v50  ;;  %v363_v46 = vsel %vm325_vm5, %v308_v56, 0.0  ;;  %v145_v16 = vmul.f32 %v3648_v38, %v99_v45  ;;  %v2275_v25 = vrot.slane %v2455_v21, 9 }
  0x76   :  { %4144 = vst [vmem:[#allocation12_spill] sm:$0xff] %v3749_v53  ;;  %1660 = vmatprep.mubr.bf16.mxu0 %v3749_v53  ;;  %v310_v42 = vsel %vm230_vm15, %v190_v27, %v270_v43  ;;  %v364_v60 = vsel %vm318_vm4, %v309_v30, 0.0  ;;  %v2456_v29 = vpack.c.bf16 %v363_v46, %v363_v46  ;;  %v3759_v63 = vpack.c.bf16 %v3681_v47, %v3681_v47 }
  0x77   :  { %2491 = vmatmul.mubr.msk.bf16.gmra.mrb[24].mxu0 %vm3225_vm12, %v3719_v31  ;;  %v365_v51 = vsel %vm325_vm5, %v310_v42, 0.0  ;;  %v2457_v18 = vpack.c.bf16 %v364_v60, %v364_v60  ;;  %v191_v45 = vadd.f32 %v3675_v22, %v145_v16  ;;  %v677_v54 = vrot.slane %v676_v62, 4  ;;  %v38_v62 = vld [vmem:[%s4108_s0 + $0x44] sm:$0x1] }
  0x78   :  { %v2458_v27 = vpack.c.bf16 %v365_v51, %v365_v51  ;;  %v679_v44 = vshll.u32 %v2456_v29, 16  ;;  %v758_v2 = vrot.slane %v2456_v29, 5  ;;  %v3791_v36 = vpack.c.bf16 %v309_v30, %v3709_v55  ;;  %v4157_v32 = vld [vmem:[#allocation11_spill] sm:$0xff] }
  0x79   :  { %v684_v50 = vshrl.u32 %v2457_v18, 16  ;;  %v687_v21 = vshll.u32 %v2457_v18, 16  ;;  %vm231_vm0 = vcmp.ge.f32.partialorder %v191_v45, 0.0  ;;  %v271_v43 = vmul.f32 0.1, %v191_v45 }
  0x7a   :  { %v681_v56 = vrot.slane %v679_v44, 5  ;;  %v693_v46 = vshll.u32 %v2458_v27, 16  ;;  %v3769_v14 = vsel %vm3197_vm7, %v2275_v25, %v758_v2  ;;  %v2276_v31 = vrot.slane %v2457_v18, 9 }
  0x7b   :  { %v686_v53 = vrot.slane %v684_v50, 4  ;;  %v689_v42 = vrot.slane %v687_v21, 5  ;;  %v311_v60 = vsel %vm231_vm0, %v191_v45, %v271_v43  ;;  %v762_v35 = vrot.slane %v2458_v27, 5  ;;  %v58_v50 = vld [vmem:[%s4108_s0 + $0x94] sm:$0x1] }
  0x7c   :  { %v3776_v16 = vsel %vm318_vm4, %v311_v60, 0.0  ;;  %v2517_v29 = vpack.c.bf16 %v311_v60, %v309_v30  ;;  %v695_v44 = vrot.slane %v693_v46, 5  ;;  %v2329_v18 = vcombine.low %v3240_v61, %v3297_v34 }
  0x7d   :  { %v690_v51 = vor.u32 %v689_v42, %v686_v53  ;;  %v3780_v25 = vsel %vm3197_vm7, %v2276_v31, %v762_v35  ;;  %v3786_v45 = vsel %vm3172_vm6, %v677_v54, %v681_v56  ;;  %v80_v27 = vunpack.c.l.bf16 %v38_v62 }
  0x7e   :  { %2518 = vmatprep.mubr.msk.bf16.mxu1 %vm3225_vm12, %v2517_v29  ;;  %v3795_v53 = vcombine.low %v3769_v14, %v3780_v25  ;;  %v3799_v31 = vpack.c.bf16 %v3776_v16, %v3776_v16  ;;  %v775_v61 = vshrl.u32 %v3759_v63, 16  ;;  %v778_v34 = vshll.u32 %v3759_v63, 16 }
  0x7f   :  { %v691_v35 = vrot.slane %v690_v51, 4  ;;  %v126_v54 = vmul.f32 %v3648_v38, %v80_v27  ;;  %v2333_v55 = vcombine.low %v3594_v4, %v3639_v11  ;;  %v2325_v30 = vcombine.low %v3609_v52, %v3631_v37 }
  0x80   :  { %1766 = vmatmul.mubr.bf16.gmra.mrb[28].mxu1 %v3795_v53  ;;  %v2334_v2 = vcombine.low %v3643_v26, %v3713_v15  ;;  %v777_v43 = vrot.slane %v775_v61, 4  ;;  %v780_v56 = vrot.slane %v778_v34, 5  ;;  %v100_v51 = vunpack.c.l.bf16 %v58_v50  ;;  %v2987_v61 = vld [vmem:[%s4107_s3 + $0x208] sm:$0xff]  }
  0x81   :  { %v3816_v21 = vsel %vm3172_vm6, %v691_v35, %v695_v44  ;;  %1903 = vmatprep.mubr.bf16.mxu1 %v3363_v24  ;;  %v172_v60 = vadd.f32 %v3675_v22, %v126_v54  ;;  %v789_v24 = vshrl.u32 %v3799_v31, 16  ;;  %v792_v27 = vshll.u32 %v3799_v31, 16 }
  0x82   :  { %v3823_v42 = vcombine.low %v3786_v45, %v3816_v21  ;;  %v146_v35 = vmul.f32 %v3648_v38, %v100_v51  ;;  %v781_v54 = vor.u32 %v780_v56, %v777_v43  ;;  %v2330_v56 = vcombine.low %v3313_v48, %v3412_v13 }
  0x83   :  { %vm212_vm4 = vcmp.ge.f32.partialorder %v172_v60, 0.0  ;;  %v252_v44 = vmul.f32 0.1, %v172_v60  ;;  %v791_v62 = vrot.slane %v789_v24, 4  ;;  %v794_v46 = vrot.slane %v792_v27, 5 }
  0x84   :  { %1668 = vmatprep.mubr.bf16.mxu0 %v3823_v42  ;;  %v192_v29 = vadd.f32 %v3675_v22, %v146_v35  ;;  %v782_v51 = vrot.slane %v781_v54, 4  ;;  %v4145_v48 = vcombine.low %v3261_v12, %v3271_v20  ;;  %v2322_v20 = vcombine.low %v3357_v17, %v3427_v3  ;;  %v2990_v35 = vld [vmem:[%s4107_s3 + $0x220] sm:$0xff]   ;;  %v2991_v3 = vld [vmem:[%s4107_s3 + $0x228] sm:$0xff]   ;;  %v4150_v54 = vld [vmem:[#allocation12_spill] sm:$0xff] }
  0x85   :  { %2494 = vmatmul.mubr.msk.bf16.gmra.mrb[28].mxu0 %vm3225_vm12, %v3791_v36  ;;  %v292_v34 = vsel %vm212_vm4, %v172_v60, %v252_v44  ;;  %v795_v44 = vor.u32 %v794_v46, %v791_v62  ;;  %v2282_v4 = vrot.slane %v3799_v31, 9  ;;  %v4153_v37 = vcombine.low %v3724_v49, %v3769_v14  ;;  %v4156_v49 = vld [vmem:[#allocation3_spill] sm:$0xff]  ;;  %v4158_v14 = vld [vmem:[#allocation2_spill] sm:$0xff] }
  0x86   :  { %1806 = vmatprep.mubr.bf16.mxu0 %v2329_v18  ;;  %v3842_v50 = vsel %vm325_vm5, %v292_v34, 0.0  ;;  %v2281_v18 = vrot.slane %v3759_v63, 9  ;;  %vm232_vm1 = vcmp.ge.f32.partialorder %v192_v29, 0.0  ;;  %v272_v22 = vmul.f32 0.1, %v192_v29  ;;  %v2988_v63 = vld [vmem:[%s4107_s3 + $0x210] sm:$0xff]  }
  0x87   :  { %v2460_v38 = vpack.c.bf16 %v3842_v50, %v3842_v50  ;;  %v378_v43 = vpack.c.bf16 %v3842_v50, %v3681_v47  ;;  %v796_v62 = vrot.slane %v795_v44, 4  ;;  %v4151_v50 = vld [vmem:[#allocation10_spill] sm:$0xff] }
  0x88   :  { %2521 = vmatmul.mubr.msk.bf16.vlgmr.msra.gmra.mrb[32].mxu1 %vm3225_vm12, %v3275_v23  ;;  %v312_v24 = vsel %vm232_vm1, %v192_v29, %v272_v22  ;;  %v2331_v29 = vcombine.low %v3440_v39, %v3521_v0  ;;  %v2992_v0 = vld [vmem:[%s4107_s3 + $0x230] sm:$0xff]  }
  0x89   :  { %1911 = vmatprep.mubr.bf16.mxu1 %v3474_v1  ;;  %2912 = vmatpush3.bf16.msra.mxu1 %v3526_v10  ;;  %v804_v60 = vrot.slane %v2460_v38, 5  ;;  %v784_v23 = vshll.u32 %v2460_v38, 16  ;;  %v3866_v27 = vsel %vm325_vm5, %v312_v24, 0.0 }
  0x8a   :  { %2905 = vmatprep.subr.bf16.mxu1 %v2987_v61  ;;  %v3873_v13 = vpack.c.bf16 %v3866_v27, %v3866_v27  ;;  %v388_v15 = vpack.c.bf16 %v3866_v27, %v3776_v16 }
  0x8b   :  { %v3862_v1 = vsel %vm3197_vm7, %v2281_v18, %v804_v60  ;;  %v786_v47 = vrot.slane %v784_v23, 5 }
  0x8c   :  { %v798_v12 = vshll.u32 %v3873_v13, 16  ;;  %v2332_v39 = vcombine.low %v3538_v33, %v3862_v1  ;;  %v4148_v33 = vld [vmem:[#allocation9_spill] sm:$0xff]  ;;  %v808_v11 = vrot.slane %v3873_v13, 5 }
  0x8d   :  { %1807 = vmatmul.mubr.bf16.vlgmr.msra.gmra.mrb[32].mxu0 %v4145_v48  ;;  %2913 = vmatpush3.bf16.msra.mxu1 %v2987_v61  ;;  %v787_v46 = vsel %vm3172_vm6, %v782_v51, %v786_v47 }
  0x8e   :  { %2873 = vmatpush3.bf16.msra.mxu0 %v3526_v10  ;;  %1814 = vmatprep.mubr.bf16.mxu0 %v2330_v56  ;;  %v800_v10 = vrot.slane %v798_v12, 5  ;;  %v2339_v17 = vcombine.low %v787_v46, %v3193_v5  ;;  %v809_v26 = vsel %vm3197_vm7, %v2282_v4, %v808_v11 }
  0x8f   :  { %2874 = vmatprep.subr.bf16.mxu0 %v2987_v61  ;;  %2906 = vmatprep.subr.bf16.mxu1 %v2988_v63  ;;  %v2342_v16 = vcombine.low %v809_v26, %v4158_v14 }
  0x90   :  { %2524 = vmatmul.mubr.msk.bf16.gmra.mrb[36].mxu1 %vm3225_vm12, %v3394_v58  ;;  %v801_v58 = vsel %vm3172_vm6, %v796_v62, %v800_v10 }
  0x91   :  { %1919 = vmatprep.mubr.bf16.mxu1 %v3567_v41  ;;  %2914 = vmatpush3.bf16.msra.mxu1 %v2988_v63  ;;  %v2328_v34 = vcombine.low %v3816_v21, %v801_v58  ;;  %v4146_v41 = vmov 0.0|0.0   ;;  %v2340_v52 = vcombine.low %v801_v58, %v3193_v5  ;;  %v4154_v5 = vcombine.low %v3745_v8, %v3786_v45 }
  0x92   :  { %2875 = vmatpush3.bf16.msra.mxu0 %v2987_v61  ;;  %2907 = vmatprep.subr.bf16.mxu1 %v2989_v40  ;;  %v2337_v21 = vcombine.low %v378_v43, %v4146_v41  ;;  %v4149_v61 = vld [vmem:[#allocation7_spill] sm:$0xff]  ;;  %v2341_v8 = vcombine.low %v3862_v1, %v4158_v14 }
  0x93   :  { %2876 = vmatprep.subr.bf16.mxu0 %v2988_v63 }
  0x95   :  { %1815 = vmatmul.mubr.bf16.gmra.mrb[36].mxu0 %v2322_v20  ;;  %2915 = vmatpush3.bf16.msra.mxu1 %v2989_v40 }
  0x96   :  { %1822 = vmatprep.mubr.bf16.mxu0 %v2331_v29  ;;  %2877 = vmatpush3.bf16.msra.mxu0 %v2988_v63 }
  0x97   :  { %2878 = vmatprep.subr.bf16.mxu0 %v2989_v40  ;;  %2908 = vmatprep.subr.bf16.mxu1 %v2990_v35 }
  0x98   :  { %2527 = vmatmul.mubr.msk.bf16.gmra.mrb[40].mxu1 %vm3225_vm12, %v3530_v19  ;;  %v4147_v19 = vld [vmem:[#allocation6_spill] sm:$0xff] }
  0x99   :  { %1927 = vmatprep.mubr.bf16.mxu1 %v2339_v17  ;;  %2916 = vmatpush3.bf16.msra.mxu1 %v2990_v35  ;;  %v2324_v9 = vcombine.low %v4147_v19, %v787_v46 }
  0x9a   :  { %2879 = vmatpush3.bf16.msra.mxu0 %v2989_v40  ;;  %2909 = vmatprep.subr.bf16.mxu1 %v2991_v3 }
  0x9b   :  { %2880 = vmatprep.subr.bf16.mxu0 %v2990_v35 }
  0x9d   :  { %1823 = vmatmul.mubr.bf16.gmra.mrb[40].mxu0 %v2323_v59  ;;  %2917 = vmatpush3.bf16.msra.mxu1 %v2991_v3 }
  0x9e   :  { %1830 = vmatprep.mubr.bf16.mxu0 %v2332_v39  ;;  %2881 = vmatpush3.bf16.msra.mxu0 %v2990_v35 }
  0x9f   :  { %2882 = vmatprep.subr.bf16.mxu0 %v2991_v3  ;;  %2910 = vmatprep.subr.bf16.mxu1 %v2992_v0 }
  0xa0   :  { %1928 = vmatmul.mubr.bf16.gmra.mrb[44].mxu1 %v2337_v21 }
  0xa1   :  { %1935 = vmatprep.mubr.bf16.mxu1 %v4148_v33  ;;  %2918 = vmatpush3.bf16.msra.mxu1 %v2992_v0 }
  0xa2   :  { %2883 = vmatpush3.bf16.msra.mxu0 %v2991_v3  ;;  %2911 = vmatprep.subr.bf16.mxu1 %v2993_v57 }
  0xa3   :  { %2884 = vmatprep.subr.bf16.mxu0 %v2992_v0 }
  0xa5   :  { %1831 = vmatmul.mubr.bf16.gmra.mrb[44].mxu0 %v2324_v9  ;;  %2919 = vmatpush3.bf16.msra.mxu1 %v2993_v57 }
  0xa6   :  { %1838 = vmatprep.mubr.bf16.mxu0 %v2333_v55  ;;  %2885 = vmatpush3.bf16.msra.mxu0 %v2992_v0  ;;  %v4152_v55 = vcombine.low %v3657_v28, %v3734_v7  ;;  %v2336_v28 = vcombine.low %v3780_v25, %v809_v26  ;;  %v2338_v7 = vcombine.low %v388_v15, %v4146_v41  ;;  %v4159_v25 = vld [vmem:[#allocation4_spill] sm:$0xff] }
  0xa7   :  { %2886 = vmatprep.subr.bf16.mxu0 %v2993_v57 }
  0xa8   :  { %2530 = vmatmul.mubr.msk.bf16.gmra.mrb[48].mxu1 %vm3225_vm12, %v4149_v61 }
  0xa9   :  { %1943 = vmatprep.mubr.bf16.mxu1 %v4150_v54 }
  0xaa   :  { %2887 = vmatpush3.bf16.msra.mxu0 %v2993_v57 }
  0xad   :  { %1839 = vmatmul.mubr.bf16.gmra.mrb[48].mxu0 %v2325_v30 }
  0xae   :  { %1846 = vmatprep.mubr.bf16.mxu0 %v2334_v2 }
  0xb0   :  { %2533 = vmatmul.mubr.msk.bf16.gmra.mrb[52].mxu1 %vm3225_vm12, %v4151_v50 }
  0xb1   :  { %1951 = vmatprep.mubr.bf16.mxu1 %v3823_v42 }
  0xb5   :  { %1847 = vmatmul.mubr.bf16.gmra.mrb[52].mxu0 %v4152_v55 }
  0xb6   :  { %1854 = vmatprep.mubr.bf16.mxu0 %v4153_v37 }
  0xb8   :  { %2536 = vmatmul.mubr.msk.bf16.gmra.mrb[56].mxu1 %vm3225_vm12, %v3791_v36  ;;  %v4160_v36 = vld [vmem:[#allocation5_spill] sm:$0xff] }
  0xb9   :  { %1959 = vmatprep.mubr.bf16.mxu1 %v2340_v52 }
  0xbd   :  { %1855 = vmatmul.mubr.bf16.gmra.mrb[56].mxu0 %v4154_v5 }
  0xbe   :  { %1862 = vmatprep.mubr.bf16.mxu0 %v2336_v28 }
  0xc0   :  { %1960 = vmatmul.mubr.bf16.gmra.mrb[60].mxu1 %v2338_v7 }
  0xc1   :  { %2896 = vmatprep.mubr.bf16.mxu1 %v4155_v6 }
  0xc5   :  { %1863 = vmatmul.mubr.bf16.gmra.mrb[60].mxu0 %v2328_v34 }
  0xc6   :  { %2888 = vmatprep.mubr.bf16.mxu0 %v4156_v49 }
  0xc8   :  { %2897 = vmatmul.mubr.bf16.vlgmr.msra.gmra.mrb[64].mxu1 %v4157_v32 }
  0xc9   :  { %2900 = vmatprep.mubr.bf16.mxu1 %v3795_v53 }
  0xcd   :  { %2889 = vmatmul.mubr.bf16.vlgmr.msra.gmra.mrb[64].mxu0 %v4159_v25 }
  0xce   :  { %2892 = vmatprep.mubr.bf16.mxu0 %v4160_v36 }
  0xd0   :  { %2901 = vmatmul.mubr.bf16.gmra.mrb[68].mxu1 %v2342_v16 }
  0xd5   :  { %2893 = vmatmul.mubr.bf16.gmra.mrb[68].mxu0 %v2341_v8 }
  0xf7   :  { %v2680_v45 = vpop.f32.mrb[0].mxu1 }
  0xf8   :  { %v2681_v31 = vpop.f32.mrb[1].mxu1 }
  0xf9   :  { %v2682_v30 = vadd.f32 %v2681_v31, %v2680_v45  ;;  %v2683_v2 = vpop.f32.mrb[2].mxu1 }
  0xfa   :  { %v2684_v42 = vpop.f32.mrb[3].mxu1 }
  0xfb   :  { %v2685_v18 = vadd.f32 %v2684_v42, %v2683_v2 }
  0xfc   :  { %v2616_v38 = vpop.f32.mrb[0].mxu0 }
  0xfd   :  { %v2617_v43 = vpop.f32.mrb[1].mxu0 }
  0xfe   :  { %v2618_v53 = vadd.f32 %v2617_v43, %v2616_v38  ;;  %v2619_v22 = vpop.f32.mrb[2].mxu0 }
  0xff   :  { %v2620_v56 = vpop.f32.mrb[3].mxu0  ;;  %v2686_v23 = vpop.f32.mrb[4].mxu1 }
 0x100   :  { %v3963_v60 = vadd.f32 %v2682_v30, %v2618_v53  ;;  %v2621_v51 = vadd.f32 %v2620_v56, %v2619_v22  ;;  %v2687_v63 = vpop.f32.mrb[5].mxu1  ;;  %v2997_v53 = vmov 0.0  }
 0x101   :  { %v2688_v44 = vadd.f32 %v2687_v63, %v2686_v23  ;;  %v2689_v1 = vpop.f32.mrb[6].mxu1  ;;  %2149 = vst [vmem:[%s4111_s5] sm:$0x1] %v2997_v53  ;;  %2150 = vst [vmem:[%s4112_s6] sm:$0x1] %v2997_v53 }
 0x102   :  { %v3965_v24 = vadd.f32 %v2685_v18, %v2621_v51  ;;  %v2690_v47 = vpop.f32.mrb[7].mxu1 }
 0x103   :  { %v2691_v27 = vadd.f32 %v2690_v47, %v2689_v1 }
 0x104   :  { %v2622_v48 = vpop.f32.mrb[4].mxu0 }
 0x105   :  { %v2623_v13 = vpop.f32.mrb[5].mxu0 }
 0x106   :  { %v2624_v46 = vadd.f32 %v2623_v13, %v2622_v48  ;;  %v2625_v40 = vpop.f32.mrb[6].mxu0 }
 0x107   :  { %v2626_v62 = vpop.f32.mrb[7].mxu0 }
 0x108   :  { %v3967_v12 = vadd.f32 %v2688_v44, %v2624_v46  ;;  %v2627_v20 = vadd.f32 %v2626_v62, %v2625_v40 }
 0x10a   :  { %v3969_v10 = vadd.f32 %v2691_v27, %v2627_v20 }
 0x10f   :  { %v2692_v29 = vpop.f32.mrb[8].mxu1 }
 0x110   :  { %v2693_v35 = vpop.f32.mrb[9].mxu1 }
 0x111   :  { %v2694_v58 = vadd.f32 %v2693_v35, %v2692_v29  ;;  %v2695_v34 = vpop.f32.mrb[10].mxu1 }
 0x112   :  { %v2696_v17 = vpop.f32.mrb[11].mxu1  ;;  %v2628_v3 = vpop.f32.mrb[8].mxu0 }
 0x113   :  { %v2697_v59 = vadd.f32 %v2696_v17, %v2695_v34  ;;  %v2629_v39 = vpop.f32.mrb[9].mxu0 }
 0x114   :  { %v2630_v0 = vadd.f32 %v2629_v39, %v2628_v3  ;;  %v2631_v41 = vpop.f32.mrb[10].mxu0 }
 0x115   :  { %v2632_v21 = vpop.f32.mrb[11].mxu0 }
 0x116   :  { %v3971_v57 = vadd.f32 %v2694_v58, %v2630_v0  ;;  %v2633_v19 = vadd.f32 %v2632_v21, %v2631_v41 }
 0x118   :  { %v3973_v9 = vadd.f32 %v2697_v59, %v2633_v19 }
 0x11b   :  { %v2698_v33 = vpop.f32.mrb[12].mxu1 }
 0x11c   :  { %v2699_v61 = vpop.f32.mrb[13].mxu1 }
 0x11d   :  { %v2700_v54 = vadd.f32 %v2699_v61, %v2698_v33  ;;  %v2701_v50 = vpop.f32.mrb[14].mxu1 }
 0x11e   :  { %v2702_v4 = vpop.f32.mrb[15].mxu1 }
 0x11f   :  { %v2703_v55 = vadd.f32 %v2702_v4, %v2701_v50 }
 0x120   :  { %v2634_v11 = vpop.f32.mrb[12].mxu0 }
 0x121   :  { %v2635_v52 = vpop.f32.mrb[13].mxu0 }
 0x122   :  { %v2636_v37 = vadd.f32 %v2635_v52, %v2634_v11  ;;  %v2637_v26 = vpop.f32.mrb[14].mxu0 }
 0x123   :  { %v2638_v15 = vpop.f32.mrb[15].mxu0 }
 0x124   :  { %v3975_v28 = vadd.f32 %v2700_v54, %v2636_v37  ;;  %v2639_v7 = vadd.f32 %v2638_v15, %v2637_v26 }
 0x126   :  { %v3977_v5 = vadd.f32 %v2703_v55, %v2639_v7 }
 0x129   :  { %v2704_v6 = vpop.f32.mrb[16].mxu1 }
 0x12a   :  { %v2705_v49 = vpop.f32.mrb[17].mxu1 }
 0x12b   :  { %v2706_v32 = vadd.f32 %v2705_v49, %v2704_v6  ;;  %v2707_v14 = vpop.f32.mrb[18].mxu1 }
 0x12c   :  { %v2708_v16 = vpop.f32.mrb[19].mxu1 }
 0x12d   :  { %v2709_v25 = vadd.f32 %v2708_v16, %v2707_v14 }
 0x12e   :  { %v2640_v36 = vpop.f32.mrb[16].mxu0 }
 0x12f   :  { %v2641_v8 = vpop.f32.mrb[17].mxu0 }
 0x130   :  { %v2642_v45 = vadd.f32 %v2641_v8, %v2640_v36  ;;  %v2643_v31 = vpop.f32.mrb[18].mxu0 }
 0x131   :  { %v2644_v30 = vpop.f32.mrb[19].mxu0 }
 0x132   :  { %v3979_v2 = vadd.f32 %v2706_v32, %v2642_v45  ;;  %v2645_v42 = vadd.f32 %v2644_v30, %v2643_v31 }
 0x134   :  { %v3981_v38 = vadd.f32 %v2709_v25, %v2645_v42 }
 0x135   :  { %v2710_v18 = vpop.f32.mrb[20].mxu1 }
 0x136   :  { %v2711_v43 = vpop.f32.mrb[21].mxu1 }
 0x137   :  { %v2712_v56 = vadd.f32 %v2711_v43, %v2710_v18  ;;  %v2713_v51 = vpop.f32.mrb[22].mxu1 }
 0x138   :  { %v2646_v22 = vpop.f32.mrb[20].mxu0  ;;  %v2714_v63 = vpop.f32.mrb[23].mxu1 }
 0x139   :  { %v2647_v23 = vpop.f32.mrb[21].mxu0  ;;  %v2715_v47 = vadd.f32 %v2714_v63, %v2713_v51 }
 0x13a   :  { %v2648_v44 = vadd.f32 %v2647_v23, %v2646_v22  ;;  %v2649_v1 = vpop.f32.mrb[22].mxu0 }
 0x13b   :  { %v2650_v27 = vpop.f32.mrb[23].mxu0 }
 0x13c   :  { %v3989_v48 = vadd.f32 %v2712_v56, %v2648_v44  ;;  %v2651_v13 = vadd.f32 %v2650_v27, %v2649_v1 }
 0x13e   :  { %v3991_v46 = vadd.f32 %v2715_v47, %v2651_v13 }
 0x144   :  { %v2716_v40 = vpop.f32.mrb[24].mxu1 }
 0x145   :  { %v2717_v62 = vpop.f32.mrb[25].mxu1 }
 0x146   :  { %v2718_v20 = vadd.f32 %v2717_v62, %v2716_v40  ;;  %v2719_v29 = vpop.f32.mrb[26].mxu1 }
 0x147   :  { %v2720_v35 = vpop.f32.mrb[27].mxu1 }
 0x148   :  { %v2721_v58 = vadd.f32 %v2720_v35, %v2719_v29 }
 0x14a   :  { %v2652_v34 = vpop.f32.mrb[24].mxu0 }
 0x14b   :  { %v2653_v17 = vpop.f32.mrb[25].mxu0 }
 0x14c   :  { %v2654_v3 = vadd.f32 %v2653_v17, %v2652_v34  ;;  %v2655_v59 = vpop.f32.mrb[26].mxu0 }
 0x14d   :  { %v2656_v39 = vpop.f32.mrb[27].mxu0 }
 0x14e   :  { %v3993_v0 = vadd.f32 %v2718_v20, %v2654_v3  ;;  %v2657_v41 = vadd.f32 %v2656_v39, %v2655_v59 }
 0x150   :  { %v3995_v21 = vadd.f32 %v2721_v58, %v2657_v41 }
 0x153   :  { %v2722_v19 = vpop.f32.mrb[28].mxu1 }
 0x154   :  { %v2723_v33 = vpop.f32.mrb[29].mxu1 }
 0x155   :  { %v2724_v61 = vadd.f32 %v2723_v33, %v2722_v19  ;;  %v2725_v54 = vpop.f32.mrb[30].mxu1 }
 0x156   :  { %v2726_v50 = vpop.f32.mrb[31].mxu1 }
 0x157   :  { %v2727_v4 = vadd.f32 %v2726_v50, %v2725_v54 }
 0x158   :  { %v2658_v11 = vpop.f32.mrb[28].mxu0 }
 0x159   :  { %v2659_v55 = vpop.f32.mrb[29].mxu0 }
 0x15a   :  { %v2660_v52 = vadd.f32 %v2659_v55, %v2658_v11  ;;  %v2661_v37 = vpop.f32.mrb[30].mxu0 }
 0x15b   :  { %v2662_v26 = vpop.f32.mrb[31].mxu0  ;;  %v2808_v15 = vpop.f32.mrb[32].mxu1 }
 0x15c   :  { %v3997_v7 = vadd.f32 %v2724_v61, %v2660_v52  ;;  %v2663_v6 = vadd.f32 %v2662_v26, %v2661_v37  ;;  %v2809_v49 = vpop.f32.mrb[33].mxu1 }
 0x15d   :  { %v2810_v32 = vadd.f32 %v2809_v49, %v2808_v15  ;;  %v2811_v14 = vpop.f32.mrb[34].mxu1 }
 0x15e   :  { %v3999_v16 = vadd.f32 %v2727_v4, %v2663_v6  ;;  %v2812_v25 = vpop.f32.mrb[35].mxu1 }
 0x15f   :  { %v2813_v36 = vadd.f32 %v2812_v25, %v2811_v14 }
 0x160   :  { %v2744_v8 = vpop.f32.mrb[32].mxu0 }
 0x161   :  { %v2745_v45 = vpop.f32.mrb[33].mxu0 }
 0x162   :  { %v2746_v31 = vadd.f32 %v2745_v45, %v2744_v8  ;;  %v2747_v30 = vpop.f32.mrb[34].mxu0 }
 0x163   :  { %v2748_v42 = vpop.f32.mrb[35].mxu0  ;;  %v2814_v18 = vpop.f32.mrb[36].mxu1 }
 0x164   :  { %v1809_v43 = vadd.f32 %v2746_v31, %v3963_v60  ;;  %v2749_v53 = vadd.f32 %v2748_v42, %v2747_v30  ;;  %v2815_v22 = vpop.f32.mrb[37].mxu1 }
 0x165   :  { %v2816_v56 = vadd.f32 %v2815_v22, %v2814_v18  ;;  %v2817_v51 = vpop.f32.mrb[38].mxu1 }
 0x166   :  { %v1812_v23 = vadd.f32 %v2749_v53, %v3965_v24  ;;  %v2818_v63 = vpop.f32.mrb[39].mxu1  ;;  %v4003_v44 = vadd.f32 %v2810_v32, %v1809_v43 }
 0x167   :  { %v2819_v1 = vadd.f32 %v2818_v63, %v2817_v51 }
 0x168   :  { %v2750_v47 = vpop.f32.mrb[36].mxu0  ;;  %v4005_v27 = vadd.f32 %v2813_v36, %v1812_v23 }
 0x169   :  { %v2751_v13 = vpop.f32.mrb[37].mxu0 }
 0x16a   :  { %v2752_v40 = vadd.f32 %v2751_v13, %v2750_v47  ;;  %v2753_v62 = vpop.f32.mrb[38].mxu0 }
 0x16b   :  { %v2754_v20 = vpop.f32.mrb[39].mxu0  ;;  %v2820_v29 = vpop.f32.mrb[40].mxu1 }
 0x16c   :  { %v1817_v60 = vadd.f32 %v2752_v40, %v3967_v12  ;;  %v2755_v35 = vadd.f32 %v2754_v20, %v2753_v62  ;;  %v2821_v58 = vpop.f32.mrb[41].mxu1 }
 0x16d   :  { %v2822_v34 = vadd.f32 %v2821_v58, %v2820_v29  ;;  %v2823_v17 = vpop.f32.mrb[42].mxu1 }
 0x16e   :  { %v1820_v24 = vadd.f32 %v2755_v35, %v3969_v10  ;;  %v2824_v3 = vpop.f32.mrb[43].mxu1  ;;  %v4009_v59 = vadd.f32 %v2816_v56, %v1817_v60 }
 0x16f   :  { %v2825_v39 = vadd.f32 %v2824_v3, %v2823_v17 }
 0x170   :  { %v2756_v41 = vpop.f32.mrb[40].mxu0  ;;  %v4011_v19 = vadd.f32 %v2819_v1, %v1820_v24 }
 0x171   :  { %v2757_v33 = vpop.f32.mrb[41].mxu0 }
 0x172   :  { %v2758_v61 = vadd.f32 %v2757_v33, %v2756_v41  ;;  %v2759_v54 = vpop.f32.mrb[42].mxu0 }
 0x173   :  { %v2760_v50 = vpop.f32.mrb[43].mxu0  ;;  %v2826_v4 = vpop.f32.mrb[44].mxu1 }
 0x174   :  { %v1825_v12 = vadd.f32 %v2758_v61, %v3971_v57  ;;  %v2761_v11 = vadd.f32 %v2760_v50, %v2759_v54  ;;  %v2827_v55 = vpop.f32.mrb[45].mxu1 }
 0x175   :  { %v2828_v52 = vadd.f32 %v2827_v55, %v2826_v4  ;;  %v2829_v37 = vpop.f32.mrb[46].mxu1 }
 0x176   :  { %v1828_v10 = vadd.f32 %v2761_v11, %v3973_v9  ;;  %v2830_v26 = vpop.f32.mrb[47].mxu1  ;;  %v4015_v15 = vadd.f32 %v2822_v34, %v1825_v12 }
 0x177   :  { %v2831_v6 = vadd.f32 %v2830_v26, %v2829_v37 }
 0x178   :  { %v2762_v49 = vpop.f32.mrb[44].mxu0  ;;  %v4017_v32 = vadd.f32 %v2825_v39, %v1828_v10 }
 0x179   :  { %v2763_v14 = vpop.f32.mrb[45].mxu0 }
 0x17a   :  { %v2764_v25 = vadd.f32 %v2763_v14, %v2762_v49  ;;  %v2765_v36 = vpop.f32.mrb[46].mxu0 }
 0x17b   :  { %v2766_v8 = vpop.f32.mrb[47].mxu0  ;;  %v2832_v45 = vpop.f32.mrb[48].mxu1 }
 0x17c   :  { %v1833_v57 = vadd.f32 %v2764_v25, %v3975_v28  ;;  %v2767_v31 = vadd.f32 %v2766_v8, %v2765_v36  ;;  %v2833_v30 = vpop.f32.mrb[49].mxu1 }
 0x17d   :  { %v2834_v42 = vadd.f32 %v2833_v30, %v2832_v45  ;;  %v2835_v18 = vpop.f32.mrb[50].mxu1 }
 0x17e   :  { %v1836_v9 = vadd.f32 %v2767_v31, %v3977_v5  ;;  %v2836_v43 = vpop.f32.mrb[51].mxu1  ;;  %v4021_v53 = vadd.f32 %v2828_v52, %v1833_v57 }
 0x17f   :  { %v2837_v22 = vadd.f32 %v2836_v43, %v2835_v18 }
 0x180   :  { %v2768_v56 = vpop.f32.mrb[48].mxu0  ;;  %v4023_v51 = vadd.f32 %v2831_v6, %v1836_v9 }
 0x181   :  { %v2769_v23 = vpop.f32.mrb[49].mxu0 }
 0x182   :  { %v2770_v63 = vadd.f32 %v2769_v23, %v2768_v56  ;;  %v2771_v1 = vpop.f32.mrb[50].mxu0 }
 0x183   :  { %v2772_v47 = vpop.f32.mrb[51].mxu0  ;;  %v2838_v13 = vpop.f32.mrb[52].mxu1 }
 0x184   :  { %v1841_v28 = vadd.f32 %v2770_v63, %v3979_v2  ;;  %v2773_v40 = vadd.f32 %v2772_v47, %v2771_v1  ;;  %v2839_v62 = vpop.f32.mrb[53].mxu1 }
 0x185   :  { %v2840_v20 = vadd.f32 %v2839_v62, %v2838_v13  ;;  %v2841_v29 = vpop.f32.mrb[54].mxu1 }
 0x186   :  { %v1844_v5 = vadd.f32 %v2773_v40, %v3981_v38  ;;  %v2842_v60 = vpop.f32.mrb[55].mxu1  ;;  %v1938_v35 = vadd.f32 %v2834_v42, %v1841_v28 }
 0x187   :  { %v2843_v58 = vadd.f32 %v2842_v60, %v2841_v29 }
 0x188   :  { %v2774_v34 = vpop.f32.mrb[52].mxu0  ;;  %v1941_v17 = vadd.f32 %v2837_v22, %v1844_v5 }
 0x189   :  { %v2775_v24 = vpop.f32.mrb[53].mxu0 }
 0x18a   :  { %v2776_v3 = vadd.f32 %v2775_v24, %v2774_v34  ;;  %v2777_v39 = vpop.f32.mrb[54].mxu0 }
 0x18b   :  { %v2778_v41 = vpop.f32.mrb[55].mxu0  ;;  %v2844_v33 = vpop.f32.mrb[56].mxu1 }
 0x18c   :  { %v1849_v61 = vadd.f32 %v2776_v3, %v3989_v48  ;;  %v2779_v54 = vadd.f32 %v2778_v41, %v2777_v39  ;;  %v2845_v2 = vpop.f32.mrb[57].mxu1 }
 0x18d   :  { %v2846_v50 = vadd.f32 %v2845_v2, %v2844_v33  ;;  %v2847_v4 = vpop.f32.mrb[58].mxu1 }
 0x18e   :  { %v1852_v12 = vadd.f32 %v2779_v54, %v3991_v46  ;;  %v2848_v11 = vpop.f32.mrb[59].mxu1  ;;  %v1946_v38 = vadd.f32 %v2840_v20, %v1849_v61 }
 0x18f   :  { %v2849_v55 = vadd.f32 %v2848_v11, %v2847_v4 }
 0x190   :  { %v2780_v52 = vpop.f32.mrb[56].mxu0  ;;  %v1949_v37 = vadd.f32 %v2843_v58, %v1852_v12 }
 0x191   :  { %v2781_v10 = vpop.f32.mrb[57].mxu0 }
 0x192   :  { %v2782_v26 = vadd.f32 %v2781_v10, %v2780_v52  ;;  %v2783_v6 = vpop.f32.mrb[58].mxu0 }
 0x193   :  { %v2784_v49 = vpop.f32.mrb[59].mxu0  ;;  %v2850_v14 = vpop.f32.mrb[60].mxu1 }
 0x194   :  { %v1857_v25 = vadd.f32 %v2782_v26, %v3993_v0  ;;  %v2785_v36 = vadd.f32 %v2784_v49, %v2783_v6  ;;  %v2851_v48 = vpop.f32.mrb[61].mxu1 }
 0x195   :  { %v2852_v8 = vadd.f32 %v2851_v48, %v2850_v14  ;;  %v2853_v45 = vpop.f32.mrb[62].mxu1 }
 0x196   :  { %v1860_v57 = vadd.f32 %v2785_v36, %v3995_v21  ;;  %v2854_v31 = vpop.f32.mrb[63].mxu1  ;;  %v1954_v46 = vadd.f32 %v2846_v50, %v1857_v25 }
 0x197   :  { %v2855_v30 = vadd.f32 %v2854_v31, %v2853_v45 }
 0x198   :  { %v2786_v42 = vpop.f32.mrb[60].mxu0  ;;  %v1957_v18 = vadd.f32 %v2849_v55, %v1860_v57 }
 0x199   :  { %v2787_v9 = vpop.f32.mrb[61].mxu0 }
 0x19a   :  { %v2788_v43 = vadd.f32 %v2787_v9, %v2786_v42  ;;  %v2789_v22 = vpop.f32.mrb[62].mxu0 }
 0x19b   :  { %v2790_v56 = vpop.f32.mrb[63].mxu0  ;;  %v2898_v23 = vpop.f32.mrb[64].mxu1 }
 0x19c   :  { %v1865_v63 = vadd.f32 %v2788_v43, %v3997_v7  ;;  %v2791_v1 = vadd.f32 %v2790_v56, %v2789_v22  ;;  %v4032_v0 = vadd.f32 %v2898_v23, %v1946_v38  ;;  %v2034_v47 = vpop.f32.mrb[65].mxu1 }
 0x19d   :  { %v4034_v13 = vadd.f32 %v2034_v47, %v1938_v35  ;;  %v2899_v28 = vpop.f32.mrb[66].mxu1 }
 0x19e   :  { %v1868_v21 = vadd.f32 %v2791_v1, %v3999_v16  ;;  %v4037_v40 = vadd.f32 %v2899_v28, %v1949_v37  ;;  %v2037_v62 = vpop.f32.mrb[67].mxu1  ;;  %v1962_v20 = vadd.f32 %v2852_v8, %v1865_v63 }
 0x19f   :  { %v4039_v29 = vadd.f32 %v2037_v62, %v1941_v17 }
 0x1a0   :  { %v2890_v5 = vpop.f32.mrb[64].mxu0  ;;  %v2581_v60 = vpack.c.bf16 %v4037_v40, %v4032_v0  ;;  %v1965_v7 = vadd.f32 %v2855_v30, %v1868_v21 }
 0x1a1   :  { %v2011_v58 = vadd.f32 %v2890_v5, %v4009_v59  ;;  %v2002_v34 = vpop.f32.mrb[65].mxu0  ;;  %v2576_v35 = vpack.c.bf16 %v4039_v29, %v4034_v13  ;;  %v2185_v21 = vmul.f32 %v4039_v29, %v4039_v29  ;;  %v2186_v5 = vmul.f32 %v4032_v0, %v4032_v0 }
 0x1a2   :  { %v2003_v24 = vadd.f32 %v2002_v34, %v4003_v44  ;;  %v2891_v16 = vpop.f32.mrb[66].mxu0  ;;  %2597 = vst [vmem:[%s4113_s4 + $0x28] sm:$0xff] %v2581_v60  }
 0x1a3   :  { %v2014_v17 = vadd.f32 %v2891_v16, %v4011_v19  ;;  %v2005_v3 = vpop.f32.mrb[67].mxu0  ;;  %2596 = vst [vmem:[%s4113_s4 + $0x20] sm:$0xff] %v2576_v35   ;;  %v2902_v39 = vpop.f32.mrb[68].mxu1  ;;  %v2178_v55 = vmul.f32 %v2011_v58, %v2011_v58 }
 0x1a4   :  { %v2006_v59 = vadd.f32 %v2005_v3, %v4005_v27  ;;  %v4055_v41 = vadd.f32 %v2902_v39, %v1962_v20  ;;  %v2050_v33 = vpop.f32.mrb[69].mxu1  ;;  %v2176_v2 = vmul.f32 %v2003_v24, %v2003_v24 }
 0x1a5   :  { %v2561_v61 = vpack.c.bf16 %v2014_v17, %v2011_v58  ;;  %v2051_v44 = vadd.f32 %v2050_v33, %v1954_v46  ;;  %v2903_v54 = vpop.f32.mrb[70].mxu1  ;;  %v2179_v14 = vmul.f32 %v2014_v17, %v2014_v17 }
 0x1a6   :  { %v2556_v50 = vpack.c.bf16 %v2006_v59, %v2003_v24  ;;  %v2152_v4 = vadd.f32 %v2006_v59, %v2003_v24  ;;  %v2177_v12 = vmul.f32 %v2006_v59, %v2006_v59  ;;  %v2053_v11 = vpop.f32.mrb[71].mxu1  ;;  %v2062_v19 = vadd.f32 %v2903_v54, %v1965_v7 }
 0x1a7   :  { %2593 = vst [vmem:[%s4113_s4 + $0x8] sm:$0xff] %v2561_v61   ;;  %v2054_v38 = vadd.f32 %v2053_v11, %v1957_v18 }
 0x1a8   :  { %2557 = vst [vmem:[%s4113_s4] sm:$0xff] %v2556_v50   ;;  %v2153_v27 = vadd.f32 %v2152_v4, %v2011_v58  ;;  %v2192_v52 = vadd.f32 %v2177_v12, %v2176_v2  ;;  %v2894_v37 = vpop.f32.mrb[68].mxu0  ;;  %v2591_v6 = vpack.c.bf16 %v2062_v19, %v4055_v41  ;;  %v2187_v58 = vmul.f32 %v4037_v40, %v4037_v40 }
 0x1a9   :  { %v2027_v10 = vadd.f32 %v2894_v37, %v4021_v53  ;;  %v2018_v26 = vpop.f32.mrb[69].mxu0  ;;  %v2586_v49 = vpack.c.bf16 %v2054_v38, %v2051_v44  ;;  %v2189_v3 = vmul.f32 %v2054_v38, %v2054_v38 }
 0x1aa   :  { %v2193_v25 = vadd.f32 %v2192_v52, %v2178_v55  ;;  %v2019_v36 = vadd.f32 %v2018_v26, %v4015_v15  ;;  %v2154_v48 = vadd.f32 %v2153_v27, %v2014_v17  ;;  %v2895_v8 = vpop.f32.mrb[70].mxu0  ;;  %2599 = vst [vmem:[%s4113_s4 + $0x38] sm:$0xff] %v2591_v6   ;;  %v2151_v52 = vld [vmem:[%s4111_s5] sm:$0x1] }
 0x1ab   :  { %v2030_v45 = vadd.f32 %v2895_v8, %v4023_v51  ;;  %v2021_v57 = vpop.f32.mrb[71].mxu0  ;;  %2598 = vst [vmem:[%s4113_s4 + $0x30] sm:$0xff] %v2586_v49   ;;  %v2182_v51 = vmul.f32 %v2027_v10, %v2027_v10 }
 0x1ac   :  { %v2155_v53 = vadd.f32 %v2154_v48, %v2019_v36  ;;  %v2180_v31 = vmul.f32 %v2019_v36, %v2019_v36  ;;  %v2194_v46 = vadd.f32 %v2193_v25, %v2179_v14  ;;  %v2022_v30 = vadd.f32 %v2021_v57, %v4017_v32 }
 0x1ad   :  { %v2571_v42 = vpack.c.bf16 %v2030_v45, %v2027_v10  ;;  %v2183_v23 = vmul.f32 %v2030_v45, %v2030_v45  ;;  %v2184_v32 = vmul.f32 %v4034_v13, %v4034_v13 }
 0x1ae   :  { %v2195_v15 = vadd.f32 %v2194_v46, %v2180_v31  ;;  %v2566_v18 = vpack.c.bf16 %v2022_v30, %v2019_v36  ;;  %v2156_v9 = vadd.f32 %v2155_v53, %v2022_v30  ;;  %v2181_v43 = vmul.f32 %v2022_v30, %v2022_v30 }
 0x1af   :  { %2595 = vst [vmem:[%s4113_s4 + $0x18] sm:$0xff] %v2571_v42  }
 0x1b0   :  { %2594 = vst [vmem:[%s4113_s4 + $0x10] sm:$0xff] %v2566_v18   ;;  %v2157_v22 = vadd.f32 %v2156_v9, %v2027_v10  ;;  %v2196_v56 = vadd.f32 %v2195_v15, %v2181_v43 }
 0x1b2   :  { %v2158_v63 = vadd.f32 %v2157_v22, %v2030_v45  ;;  %v2197_v1 = vadd.f32 %v2196_v56, %v2182_v51 }
 0x1b4   :  { %v2159_v47 = vadd.f32 %v2158_v63, %v4034_v13  ;;  %v2198_v28 = vadd.f32 %v2197_v1, %v2183_v23  ;;  %v2188_v13 = vmul.f32 %v2051_v44, %v2051_v44 }
 0x1b6   :  { %v2199_v62 = vadd.f32 %v2198_v28, %v2184_v32  ;;  %v2160_v20 = vadd.f32 %v2159_v47, %v4039_v29  ;;  %v2190_v29 = vmul.f32 %v4055_v41, %v4055_v41 }
 0x1b8   :  { %v2161_v60 = vadd.f32 %v2160_v20, %v4032_v0  ;;  %v2200_v7 = vadd.f32 %v2199_v62, %v2185_v21  ;;  %v2191_v0 = vmul.f32 %v2062_v19, %v2062_v19 }
 0x1ba   :  { %v2162_v34 = vadd.f32 %v2161_v60, %v4037_v40  ;;  %v2201_v35 = vadd.f32 %v2200_v7, %v2186_v5 }
 0x1bc   :  { %v2163_v24 = vadd.f32 %v2162_v34, %v2051_v44  ;;  %v2202_v16 = vadd.f32 %v2201_v35, %v2187_v58 }
 0x1be   :  { %v2164_v17 = vadd.f32 %v2163_v24, %v2054_v38  ;;  %v2203_v39 = vadd.f32 %v2202_v16, %v2188_v13 }
 0x1c0   :  { %v2165_v59 = vadd.f32 %v2164_v17, %v4055_v41  ;;  %v2204_v33 = vadd.f32 %v2203_v39, %v2189_v3 }
 0x1c2   :  { %v2166_v61 = vadd.f32 %v2165_v59, %v2062_v19  ;;  %v2205_v54 = vadd.f32 %v2204_v33, %v2190_v29  ;;  %v2175_v19 = vld [vmem:[%s4112_s6] sm:$0x1] }
 0x1c4   :  { %v2167_v2 = vrot.slane %v2166_v61, 4  ;;  %v2206_v50 = vadd.f32 %v2205_v54, %v2191_v0 }
 0x1c6   :  { %v2168_v4 = vadd.f32 %v2167_v2, %v2166_v61  ;;  %v2207_v40 = vrot.slane %v2206_v50, 4 }
 0x1c8   :  { %v2169_v12 = vrot.slane %v2168_v4, 2  ;;  %v2208_v11 = vadd.f32 %v2207_v40, %v2206_v50 }
 0x1ca   :  { %v2170_v44 = vadd.f32 %v2169_v12, %v2168_v4  ;;  %v2209_v55 = vrot.slane %v2208_v11, 2 }
 0x1cc   :  { %v2171_v27 = vrot.slane %v2170_v44, 1  ;;  %v2210_v38 = vadd.f32 %v2209_v55, %v2208_v11 }
 0x1ce   :  { %v2172_v37 = vadd.f32 %v2171_v27, %v2170_v44  ;;  %v2211_v41 = vrot.slane %v2210_v38, 1 }
 0x1d0   :  { %v2173_v10 = vadd.f32 %v2172_v37, %v2151_v52  ;;  %v2212_v26 = vadd.f32 %v2211_v41, %v2210_v38 }
 0x1d2   :  { %2174 = vst [vmem:[%s4111_s5] sm:$0x1] %v2173_v10  ;;  %v2213_v6 = vadd.f32 %v2212_v26, %v2175_v19 }
 0x1d4   :  { %2214 = vst [vmem:[%s4112_s6] sm:$0x1] %v2213_v6 }

// kernel: _lambda_.17
= control target key start
LH: loop header
LB: loop body
LE: loop exit
PB: predicated region body
PF: predicated region fallthrough
CT: control target
= control target key end

     0   :  { %v4068_v15 = vmov 0.0|0.0   ;;  %v315_v27 = vlaneseq  ;;  %vm470_vm0 = vsmask.f32 3328  ;;  %vm471_vm1 = vsmask.f32 7440  ;;  %s4062_s3 = inlined_call_operand.vmem [shape: bf16[1152,128], index: 3, kind: input, shape index: {}]   ;;  %s4063_s0 = inlined_call_operand.vmem [shape: bf16[2,1,10,10,128], index: 0, kind: input, shape index: {}]   ;;  %s4064_s1 = inlined_call_operand.vmem [shape: f32[1,128], index: 1, kind: input, shape index: {}]   ;;  %s4065_s2 = inlined_call_operand.vmem [shape: f32[1,128], index: 2, kind: input, shape index: {}]   ;;  %s4066_s4 = inlined_call_operand.vmem [shape: bf16[2,64,128], index: 4, kind: input, shape index: {}]   ;;  %s4067_s5 = inlined_call_operand.vmem [shape: bf16[2,64,128], index: 5, kind: output, shape index: {}]  }
   0x1   :  { %v2914_v0 = vld [vmem:[%s4062_s3 + $0x40] sm:$0xff]   ;;  %v2918_v4 = vld [vmem:[%s4062_s3 + $0x48] sm:$0xff]   ;;  %v2922_v8 = vld [vmem:[%s4062_s3 + $0x50] sm:$0xff]   ;;  %v3066_v16 = vcombine.low %v4068_v15, %v4068_v15  ;;  %v3090_v25 = vcombine.high %v4068_v15, %v4068_v15  ;;  %vm697_vm2 = vcmask 1042432   ;;  %vm698_vm3 = vcmask 1046532  }
   0x2   :  { %v2915_v1 = vld [vmem:[%s4062_s3 + $0xc0] sm:$0xff]   ;;  %2593 = vmatprep.subr.bf16.mxu0 %v2914_v0  ;;  %v2919_v5 = vld [vmem:[%s4062_s3 + $0xc8] sm:$0xff]   ;;  %v2923_v9 = vld [vmem:[%s4062_s3 + $0xd0] sm:$0xff]   ;;  %v3108_v35 = vshrl.u32 %v315_v27, 7 }
   0x3   :  { %v2916_v2 = vld [vmem:[%s4062_s3] sm:$0xff]   ;;  %2657 = vmatprep.subr.bf16.mxu1 %v2915_v1  ;;  %v2920_v6 = vld [vmem:[%s4062_s3 + $0x8] sm:$0xff]   ;;  %v2924_v10 = vld [vmem:[%s4062_s3 + $0x10] sm:$0xff]   ;;  %v474_v21 = vshrl.u32 %v3066_v16, 16  ;;  %v477_v23 = vshll.u32 %v3066_v16, 16  ;;  %v483_v33 = vshll.u32 %v3090_v25, 16 }
   0x4   :  { %v2917_v3 = vld [vmem:[%s4062_s3 + $0x80] sm:$0xff]   ;;  %2594 = vmatpush3.bf16.msra.mxu0 %v2916_v2  ;;  %v2921_v7 = vld [vmem:[%s4062_s3 + $0x88] sm:$0xff]   ;;  %v2925_v11 = vld [vmem:[%s4062_s3 + $0x90] sm:$0xff]   ;;  %v3117_v38 = vadd.s32 8, %v3108_v35  ;;  %v2215_v44 = vrot.slane %v3066_v16, 9  ;;  %v702_v62 = vrot.slane %v3090_v25, 5 }
   0x5   :  { %2658 = vmatpush3.bf16.msra.mxu1 %v2917_v3  ;;  %2595 = vmatprep.subr.bf16.mxu0 %v2918_v4  ;;  %v2926_v12 = vld [vmem:[%s4062_s3 + $0x58] sm:$0xff]   ;;  %v2930_v18 = vld [vmem:[%s4062_s3 + $0x60] sm:$0xff]   ;;  %v2934_v24 = vld [vmem:[%s4062_s3 + $0x68] sm:$0xff]   ;;  %v476_v29 = vrot.slane %v474_v21, 4  ;;  %v479_v31 = vrot.slane %v477_v23, 5  ;;  %v485_v41 = vrot.slane %v483_v33, 5 }
   0x6   :  { %2659 = vmatprep.subr.bf16.mxu1 %v2919_v5  ;;  %v2927_v13 = vld [vmem:[%s4062_s3 + $0xd8] sm:$0xff]   ;;  %v2931_v19 = vld [vmem:[%s4062_s3 + $0xe0] sm:$0xff]   ;;  %v2935_v26 = vld [vmem:[%s4062_s3 + $0xe8] sm:$0xff]   ;;  %vm318_vm5 = vcmp.ge.s32.totalorder %v3108_v35, 1  ;;  %vm325_vm6 = vcmp.lt.s32.totalorder %v3117_v38, 9 }
   0x7   :  { %v2928_v14 = vld [vmem:[%s4062_s3 + $0x18] sm:$0xff]   ;;  %v2932_v20 = vld [vmem:[%s4062_s3 + $0x20] sm:$0xff]   ;;  %v2936_v28 = vld [vmem:[%s4062_s3 + $0x28] sm:$0xff]   ;;  %v480_v39 = vor.u32 %v479_v31, %v476_v29 }
   0x8   :  { %2596 = vmatpush3.bf16.msra.mxu0 %v2920_v6  ;;  %v2929_v17 = vld [vmem:[%s4062_s3 + $0x98] sm:$0xff]   ;;  %v2933_v22 = vld [vmem:[%s4062_s3 + $0xa0] sm:$0xff]   ;;  %v2937_v30 = vld [vmem:[%s4062_s3 + $0xa8] sm:$0xff]  }
   0x9   :  { %2660 = vmatpush3.bf16.msra.mxu1 %v2921_v7  ;;  %2597 = vmatprep.subr.bf16.mxu0 %v2922_v8  ;;  %v2938_v32 = vld [vmem:[%s4062_s3 + $0x70] sm:$0xff]   ;;  %v2942_v40 = vld [vmem:[%s4062_s3 + $0x78] sm:$0xff]   ;;  %v481_v46 = vrot.slane %v480_v39, 4  ;;  %v24_v48 = vld [vmem:[%s4063_s0 + $0xc] sm:$0x1] }
   0xa   :  { %2661 = vmatprep.subr.bf16.mxu1 %v2923_v9  ;;  %v2939_v34 = vld [vmem:[%s4062_s3 + $0xf0] sm:$0xff]   ;;  %v2943_v42 = vld [vmem:[%s4062_s3 + $0xf8] sm:$0xff]   ;;  %v3144_v50 = vld [vmem:[%s4064_s1] ss:$0 sm:$0xff]  ;;  %v66_v52 = vunpack.c.l.bf16 %v24_v48 }
   0xb   :  { %v2940_v36 = vld [vmem:[%s4062_s3 + $0x30] sm:$0xff]   ;;  %v2944_v43 = vld [vmem:[%s4062_s3 + $0x38] sm:$0xff]   ;;  %v3149_v55 = vld [vmem:[%s4065_s2] ss:$0 sm:$0xff] }
   0xc   :  { %2598 = vmatpush3.bf16.msra.mxu0 %v2924_v10  ;;  %v2941_v37 = vld [vmem:[%s4062_s3 + $0xb0] sm:$0xff]   ;;  %v2945_v45 = vld [vmem:[%s4062_s3 + $0xb8] sm:$0xff]   ;;  %v112_v57 = vmul.f32 %v3144_v50, %v66_v52  ;;  %vm3157_vm4 = vmor %vm470_vm0, %vm471_vm1 }
   0xd   :  { %2662 = vmatpush3.bf16.msra.mxu1 %v2925_v11  ;;  %2599 = vmatprep.subr.bf16.mxu0 %v2926_v12  ;;  %v23_v47 = vld [vmem:[%s4063_s0 + $0x8] ss:$8 sps:$4 sm:$0xff]   ;;  %v26_v49 = vld [vmem:[%s4063_s0 + $0x14] sm:$0x1]  ;;  %v2946_v61 = vld [vmem:[%s4062_s3 + $0x140] sm:$0xff]   ;;  %v3176_v4 = vsel %vm3157_vm4, %v481_v46, %v485_v41 }
   0xe   :  { %2663 = vmatprep.subr.bf16.mxu1 %v2927_v13  ;;  %v65_v51 = vunpack.c.l.bf16 %v23_v47  ;;  %v67_v53 = vunpack.c.h.bf16 %v23_v47  ;;  %v68_v54 = vunpack.c.l.bf16 %v26_v49  ;;  %v2947_v63 = vld [vmem:[%s4062_s3 + $0x1c0] sm:$0xff]   ;;  %v158_v1 = vadd.f32 %v3149_v55, %v112_v57  ;;  %vm3180_vm7 = vmor %vm697_vm2, %vm698_vm3  ;;  %v28_v7 = vld [vmem:[%s4063_s0 + $0x1c] sm:$0x1] }
   0xf   :  { %v27_v6 = vld [vmem:[%s4063_s0 + $0x18] ss:$8 sps:$4 sm:$0xff]   ;;  %v3192_v13 = vsel %vm3180_vm7, %v2215_v44, %v702_v62  ;;  %vm3208_vm12 = vmpackc.low %vm318_vm5, %vm318_vm5 }
  0x10   :  { %2600 = vmatpush3.bf16.msra.mxu0 %v2928_v14  ;;  %v111_v56 = vmul.f32 %v3144_v50, %v65_v51  ;;  %v113_v58 = vmul.f32 %v3144_v50, %v67_v53  ;;  %v114_v59 = vmul.f32 %v3144_v50, %v68_v54  ;;  %vm198_vm9 = vcmp.ge.f32.partialorder %v158_v1, 0.0  ;;  %4085 = vst [vmem:[#allocation2_spill] sm:$0xff] %v3192_v13  ;;  %v2949_v54 = vld [vmem:[%s4062_s3 + $0x180] sm:$0xff]  }
  0x11   :  { %2664 = vmatpush3.bf16.msra.mxu1 %v2929_v17  ;;  %2601 = vmatprep.subr.bf16.mxu0 %v2930_v18  ;;  %v238_v9 = vmul.f32 0.1, %v158_v1  ;;  %v69_v11 = vunpack.c.l.bf16 %v27_v6  ;;  %v70_v14 = vunpack.c.l.bf16 %v28_v7  ;;  %v71_v16 = vunpack.c.h.bf16 %v27_v6 }
  0x12   :  { %2665 = vmatprep.subr.bf16.mxu1 %v2931_v19  ;;  %v157_v0 = vadd.f32 %v3149_v55, %v111_v56  ;;  %v159_v2 = vadd.f32 %v3149_v55, %v113_v58  ;;  %v160_v3 = vadd.f32 %v3149_v55, %v114_v59 }
  0x13   :  { %v278_v18 = vsel %vm198_vm9, %v158_v1, %v238_v9  ;;  %v116_v33 = vmul.f32 %v3144_v50, %v70_v14  ;;  %v117_v57 = vmul.f32 %v3144_v50, %v71_v16  ;;  %v2950_v16 = vld [vmem:[%s4062_s3 + $0x148] sm:$0xff]  }
  0x14   :  { %2602 = vmatpush3.bf16.msra.mxu0 %v2932_v20  ;;  %vm197_vm8 = vcmp.ge.f32.partialorder %v157_v0, 0.0  ;;  %vm199_vm10 = vcmp.ge.f32.partialorder %v159_v2, 0.0  ;;  %vm200_vm11 = vcmp.ge.f32.partialorder %v160_v3, 0.0  ;;  %v237_v8 = vmul.f32 0.1, %v157_v0 }
  0x15   :  { %2666 = vmatpush3.bf16.msra.mxu1 %v2933_v22  ;;  %2603 = vmatprep.subr.bf16.mxu0 %v2934_v24  ;;  %v239_v10 = vmul.f32 0.1, %v159_v2  ;;  %v240_v12 = vmul.f32 0.1, %v160_v3  ;;  %v115_v20 = vmul.f32 %v3144_v50, %v69_v11  ;;  %v333_v23 = vsel %vm325_vm6, %v278_v18, 0.0 }
  0x16   :  { %2667 = vmatprep.subr.bf16.mxu1 %v2935_v26  ;;  %v277_v17 = vsel %vm197_vm8, %v157_v0, %v237_v8  ;;  %v2386_v27 = vpack.c.bf16 %v333_v23, %v333_v23  ;;  %v162_v56 = vadd.f32 %v3149_v55, %v116_v33  ;;  %v163_v7 = vadd.f32 %v3149_v55, %v117_v57  ;;  %v2956_v57 = vld [vmem:[%s4062_s3 + $0x110] sm:$0xff]  }
  0x17   :  { %v279_v19 = vsel %vm199_vm10, %v159_v2, %v239_v10  ;;  %v280_v21 = vsel %vm200_vm11, %v160_v3, %v240_v12  ;;  %v332_v22 = vsel %vm318_vm5, %v277_v17, 0.0  ;;  %v161_v52 = vadd.f32 %v3149_v55, %v115_v20  ;;  %v2948_v10 = vld [vmem:[%s4062_s3 + $0x100] sm:$0xff]  }
  0x18   :  { %2604 = vmatpush3.bf16.msra.mxu0 %v2936_v28  ;;  %v334_v24 = vsel %vm318_vm5, %v279_v19, 0.0  ;;  %v335_v25 = vsel %vm325_vm6, %v280_v21, 0.0  ;;  %v2385_v26 = vpack.c.bf16 %v332_v22, %v332_v22  ;;  %v2450_v31 = vpack.c.bf16 %v279_v19, %v277_v17  ;;  %v30_v17 = vld [vmem:[%s4063_s0 + $0x24] sm:$0x1] }
  0x19   :  { %2668 = vmatpush3.bf16.msra.mxu1 %v2937_v30  ;;  %2605 = vmatprep.subr.bf16.mxu0 %v2938_v32  ;;  %v3203_v28 = vpack.c.bf16 %v334_v24, %v334_v24  ;;  %v3212_v30 = vpack.c.bf16 %v335_v25, %v335_v25  ;;  %v371_v32 = vpack.c.bf16 %v333_v23, %v332_v22  ;;  %v706_v51 = vrot.slane %v2386_v27, 5  ;;  %v2953_v22 = vld [vmem:[%s4062_s3 + $0x188] sm:$0xff]  }
  0x1a   :  { %2669 = vmatprep.subr.bf16.mxu1 %v2939_v34  ;;  %v488_v34 = vshrl.u32 %v2385_v26, 16  ;;  %2451 = vmatprep.mubr.msk.bf16.mxu1 %vm3208_vm12, %v2450_v31  ;;  %vm201_vm13 = vcmp.ge.f32.partialorder %v161_v52, 0.0  ;;  %v241_v62 = vmul.f32 0.1, %v161_v52  ;;  %vm202_vm14 = vcmp.ge.f32.partialorder %v162_v56, 0.0 }
  0x1b   :  { %v502_v39 = vshrl.u32 %v3203_v28, 16  ;;  %v511_v41 = vshll.u32 %v3212_v30, 16  ;;  %v2217_v58 = vrot.slane %v3203_v28, 9  ;;  %v242_v2 = vmul.f32 0.1, %v162_v56 }
  0x1c   :  { %2606 = vmatpush3.bf16.msra.mxu0 %v2940_v36  ;;  %v491_v36 = vshll.u32 %v2385_v26, 16  ;;  %v490_v44 = vrot.slane %v488_v34, 4  ;;  %v281_v6 = vsel %vm201_vm13, %v161_v52, %v241_v62  ;;  %v710_v8 = vrot.slane %v3212_v30, 5  ;;  %v31_v23 = vld [vmem:[%s4063_s0 + $0x28] ss:$8 sps:$4 sm:$0xff]  }
  0x1d   :  { %2670 = vmatpush3.bf16.msra.mxu1 %v2941_v37  ;;  %2607 = vmatprep.subr.bf16.mxu0 %v2942_v40  ;;  %v497_v37 = vshll.u32 %v2386_v27, 16  ;;  %v505_v40 = vshll.u32 %v3203_v28, 16  ;;  %v504_v47 = vrot.slane %v502_v39, 4  ;;  %v513_v49 = vrot.slane %v511_v41, 5  ;;  %v32_v27 = vld [vmem:[%s4063_s0 + $0x2c] sm:$0x1] }
  0x1e   :  { %2671 = vmatprep.subr.bf16.mxu1 %v2943_v42  ;;  %v2243_v42 = vcombine.low %v4068_v15, %v371_v32  ;;  %v282_v11 = vsel %vm202_vm14, %v162_v56, %v242_v2  ;;  %v336_v12 = vsel %vm318_vm5, %v281_v6, 0.0  ;;  %v3248_v14 = vpack.c.bf16 %v281_v6, %v279_v19  ;;  %v2955_v28 = vld [vmem:[%s4062_s3 + $0x1d0] sm:$0xff]   ;;  %v2952_v34 = vld [vmem:[%s4062_s3 + $0x108] sm:$0xff]  }
  0x1f   :  { %v499_v46 = vrot.slane %v497_v37, 5  ;;  %v507_v48 = vrot.slane %v505_v40, 5  ;;  %v337_v19 = vsel %vm325_vm6, %v282_v11, 0.0  ;;  %v2389_v21 = vpack.c.bf16 %v336_v12, %v336_v12 }
  0x20   :  { %2608 = vmatpush3.bf16.msra.mxu0 %v2944_v43  ;;  %v2216_v43 = vrot.slane %v2385_v26, 9  ;;  %v2390_v25 = vpack.c.bf16 %v337_v19, %v337_v19  ;;  %vm203_vm15 = vcmp.ge.f32.partialorder %v163_v7, 0.0  ;;  %v243_v26 = vmul.f32 0.1, %v163_v7 }
  0x21   :  { %2672 = vmatpush3.bf16.msra.mxu1 %v2945_v45  ;;  %2721 = vmatprep.subr.bf16.mxu0 %v2946_v61  ;;  %v493_v45 = vrot.slane %v491_v36, 5  ;;  %v508_v59 = vor.u32 %v507_v48, %v504_v47  ;;  %v516_v30 = vshrl.u32 %v2389_v21, 16  ;;  %v519_v31 = vshll.u32 %v2389_v21, 16 }
  0x22   :  { %2785 = vmatprep.subr.bf16.mxu1 %v2947_v63  ;;  %v3230_v61 = vsel %vm3180_vm7, %v2216_v43, %v706_v51  ;;  %v2951_v63 = vld [vmem:[%s4062_s3 + $0x1c8] sm:$0xff]   ;;  %v3280_v32 = vsel %vm3180_vm7, %v2217_v58, %v710_v8  ;;  %v2218_v33 = vrot.slane %v2389_v21, 9  ;;  %v525_v36 = vshll.u32 %v2390_v25, 16  ;;  %v2957_v51 = vld [vmem:[%s4062_s3 + $0x190] sm:$0xff]   ;;  %v2959_v58 = vld [vmem:[%s4062_s3 + $0x1d8] sm:$0xff]  }
  0x23   :  { %v494_v53 = vor.u32 %v493_v45, %v490_v44  ;;  %v2259_v1 = vcombine.low %v3192_v13, %v3230_v61  ;;  %v509_v3 = vrot.slane %v508_v59, 4  ;;  %v3285_v37 = vsel %vm203_vm15, %v163_v7, %v243_v26  ;;  %v3326_v7 = vld [vmem:[%s4063_s0 + $0x34] sm:$0x1]  ;;  %v2961_v21 = vld [vmem:[%s4062_s3 + $0x198] sm:$0xff]   ;;  %v2963_v26 = vld [vmem:[%s4062_s3 + $0x1e0] sm:$0xff]  }
  0x24   :  { %v714_v39 = vrot.slane %v2390_v25, 5  ;;  %v72_v40 = vunpack.c.l.bf16 %v30_v17  ;;  %v518_v41 = vrot.slane %v516_v30, 4  ;;  %v521_v43 = vrot.slane %v519_v31, 5  ;;  %v2960_v31 = vld [vmem:[%s4062_s3 + $0x118] sm:$0xff]  }
  0x25   :  { %v495_v0 = vrot.slane %v494_v53, 4  ;;  %1742 = vmatmul.mubr.bf16.vlgmr.msra.gmra.mrb[0].mxu1 %v2259_v1  ;;  %v3258_v18 = vsel %vm3157_vm4, %v509_v3, %v513_v49  ;;  %v338_v44 = vsel %vm318_vm5, %v3285_v37, 0.0  ;;  %v2453_v45 = vpack.c.bf16 %v3285_v37, %v281_v6 }
  0x26   :  { %2786 = vmatpush3.bf16.msra.mxu1 %v2949_v54  ;;  %v3294_v47 = vpack.c.bf16 %v338_v44, %v338_v44  ;;  %v3298_v48 = vsel %vm3180_vm7, %v2218_v33, %v714_v39  ;;  %v73_v49 = vunpack.c.l.bf16 %v31_v23  ;;  %v522_v52 = vor.u32 %v521_v43, %v518_v41  ;;  %v3358_v39 = vld [vmem:[%s4063_s0 + $0x38] ss:$8 sps:$4 sm:$0xff]  }
  0x27   :  { %v3241_v9 = vsel %vm3157_vm4, %v495_v0, %v499_v46  ;;  %2787 = vmatprep.subr.bf16.mxu1 %v2951_v63  ;;  %v2954_v46 = vld [vmem:[%s4062_s3 + $0x150] sm:$0xff]   ;;  %2454 = vmatprep.mubr.msk.bf16.mxu1 %vm3208_vm12, %v2453_v45  ;;  %v3307_v53 = vcombine.low %v3280_v32, %v3298_v48  ;;  %v74_v54 = vunpack.c.l.bf16 %v32_v27  ;;  %v118_v56 = vmul.f32 %v3144_v50, %v72_v40  ;;  %v2962_v41 = vld [vmem:[%s4062_s3 + $0x160] sm:$0xff]  }
  0x28   :  { %v2251_v20 = vcombine.low %v3176_v4, %v3241_v9  ;;  %v119_v59 = vmul.f32 %v3144_v50, %v73_v49  ;;  %v530_v62 = vshrl.u32 %v3294_v47, 16  ;;  %v533_v63 = vshll.u32 %v3294_v47, 16  ;;  %v2965_v43 = vld [vmem:[%s4062_s3 + $0x1a0] sm:$0xff]  }
  0x29   :  { %4088 = vst [vmem:[#allocation3_spill] sm:$0xff] %v3307_v53  ;;  %v75_v0 = vunpack.c.h.bf16 %v31_v23  ;;  %v523_v1 = vrot.slane %v522_v52, 4  ;;  %v120_v2 = vmul.f32 %v3144_v50, %v74_v54  ;;  %v164_v3 = vadd.f32 %v3149_v55, %v118_v56  ;;  %v36_v56 = vld [vmem:[%s4063_s0 + $0x3c] sm:$0x1] }
  0x2a   :  { %1644 = vmatprep.mubr.bf16.mxu0 %v2251_v20  ;;  %2788 = vmatpush3.bf16.msra.mxu1 %v2953_v22  ;;  %v2219_v6 = vrot.slane %v3294_v47, 9  ;;  %v165_v8 = vadd.f32 %v3149_v55, %v119_v59  ;;  %v535_v11 = vrot.slane %v533_v63, 5  ;;  %v76_v40 = vunpack.c.l.bf16 %v3326_v7  ;;  %v2968_v47 = vld [vmem:[%s4062_s3 + $0x128] sm:$0xff]  }
  0x2b   :  { %1645 = vmatmul.mubr.bf16.vlgmr.msra.gmra.mrb[0].mxu0 %v2243_v42  ;;  %v527_v42 = vrot.slane %v525_v36, 5  ;;  %2789 = vmatprep.subr.bf16.mxu1 %v2955_v28  ;;  %v121_v12 = vmul.f32 %v3144_v50, %v75_v0  ;;  %v166_v20 = vadd.f32 %v3149_v55, %v120_v2  ;;  %vm204_vm0 = vcmp.ge.f32.partialorder %v164_v3, 0.0 }
  0x2c   :  { %2722 = vmatpush3.bf16.msra.mxu0 %v2948_v10  ;;  %v532_v10 = vrot.slane %v530_v62, 4  ;;  %v244_v19 = vmul.f32 0.1, %v164_v3  ;;  %vm205_vm1 = vcmp.ge.f32.partialorder %v165_v8, 0.0  ;;  %v245_v23 = vmul.f32 0.1, %v165_v8 }
  0x2d   :  { %2723 = vmatprep.subr.bf16.mxu0 %v2950_v16  ;;  %1750 = vmatmul.mubr.bf16.gmra.mrb[4].mxu1 %v3307_v53  ;;  %v2958_v16 = vld [vmem:[%s4062_s3 + $0x158] sm:$0xff]   ;;  %v3335_v17 = vsel %vm3157_vm4, %v523_v1, %v527_v42  ;;  %vm206_vm2 = vcmp.ge.f32.partialorder %v166_v20, 0.0  ;;  %v246_v27 = vmul.f32 0.1, %v166_v20  ;;  %v167_v30 = vadd.f32 %v3149_v55, %v121_v12  ;;  %v2964_v42 = vld [vmem:[%s4062_s3 + $0x120] sm:$0xff]   ;;  %v2969_v12 = vld [vmem:[%s4062_s3 + $0x1a8] sm:$0xff]  }
  0x2e   :  { %2790 = vmatpush3.bf16.msra.mxu1 %v2957_v51  ;;  %v3343_v22 = vcombine.low %v3258_v18, %v3335_v17  ;;  %v536_v25 = vor.u32 %v535_v11, %v532_v10  ;;  %v284_v28 = vsel %vm204_vm0, %v164_v3, %v244_v19  ;;  %v285_v33 = vsel %vm205_vm1, %v165_v8, %v245_v23  ;;  %v2966_v3 = vld [vmem:[%s4062_s3 + $0x168] sm:$0xff]   ;;  %v2971_v23 = vld [vmem:[%s4062_s3 + $0x1f0] sm:$0xff]  }
  0x2f   :  { %2791 = vmatprep.subr.bf16.mxu1 %v2959_v58  ;;  %v286_v44 = vsel %vm206_vm2, %v166_v20, %v246_v27  ;;  %v340_v45 = vsel %vm318_vm5, %v285_v33, 0.0  ;;  %vm207_vm3 = vcmp.ge.f32.partialorder %v167_v30, 0.0  ;;  %v247_v52 = vmul.f32 0.1, %v167_v30 }
  0x30   :  { %2724 = vmatpush3.bf16.msra.mxu0 %v2952_v34  ;;  %1652 = vmatprep.mubr.bf16.mxu0 %v3343_v22  ;;  %v339_v34 = vsel %vm325_vm6, %v284_v28, 0.0  ;;  %v537_v36 = vrot.slane %v536_v25, 4  ;;  %v341_v49 = vsel %vm325_vm6, %v286_v44, 0.0  ;;  %v2393_v51 = vpack.c.bf16 %v340_v45, %v340_v45 }
  0x31   :  { %2725 = vmatprep.subr.bf16.mxu0 %v2954_v46  ;;  %v2392_v46 = vpack.c.bf16 %v339_v34, %v339_v34  ;;  %v3379_v54 = vpack.c.bf16 %v285_v33, %v3285_v37  ;;  %v2394_v58 = vpack.c.bf16 %v341_v49, %v341_v49  ;;  %v77_v63 = vunpack.c.l.bf16 %v3358_v39  ;;  %v2970_v34 = vld [vmem:[%s4062_s3 + $0x170] sm:$0xff]  }
  0x32   :  { %2792 = vmatpush3.bf16.msra.mxu1 %v2961_v21  ;;  %v544_v0 = vshrl.u32 %v2393_v51, 16  ;;  %v547_v1 = vshll.u32 %v2393_v51, 16  ;;  %v3389_v37 = vsel %vm207_vm3, %v167_v30, %v247_v52  ;;  %v2220_v2 = vrot.slane %v2393_v51, 9  ;;  %v2972_v51 = vld [vmem:[%s4062_s3 + $0x130] sm:$0xff]  }
  0x33   :  { %2433 = vmatmul.mubr.msk.bf16.gmra.mrb[4].mxu0 %vm3208_vm12, %v3248_v14  ;;  %2793 = vmatprep.subr.bf16.mxu1 %v2963_v26  ;;  %v539_v59 = vshll.u32 %v2392_v46, 16  ;;  %v718_v62 = vrot.slane %v2392_v46, 5  ;;  %v553_v8 = vshll.u32 %v2394_v58, 16  ;;  %v342_v10 = vsel %vm318_vm5, %v3389_v37, 0.0 }
  0x34   :  { %2726 = vmatpush3.bf16.msra.mxu0 %v2956_v57  ;;  %v2967_v57 = vld [vmem:[%s4062_s3 + $0x1e8] sm:$0xff]   ;;  %v2456_v11 = vpack.c.bf16 %v3389_v37, %v285_v33  ;;  %v549_v20 = vrot.slane %v547_v1, 5  ;;  %v3401_v19 = vpack.c.bf16 %v342_v10, %v342_v10  ;;  %v722_v27 = vrot.slane %v2394_v58, 5 }
  0x35   :  { %2727 = vmatprep.subr.bf16.mxu0 %v2958_v16  ;;  %v541_v7 = vrot.slane %v539_v59, 5  ;;  %v546_v16 = vrot.slane %v544_v0, 4  ;;  %v3407_v21 = vsel %vm3180_vm7, %v2219_v6, %v718_v62  ;;  %v555_v26 = vrot.slane %v553_v8, 5  ;;  %v2974_v62 = vld [vmem:[%s4062_s3 + $0x178] sm:$0xff]  }
  0x36   :  { %2794 = vmatpush3.bf16.msra.mxu1 %v2965_v43  ;;  %2457 = vmatprep.mubr.msk.bf16.mxu1 %vm3208_vm12, %v2456_v11  ;;  %v78_v28 = vunpack.c.l.bf16 %v36_v56  ;;  %v122_v30 = vmul.f32 %v3144_v50, %v76_v40  ;;  %v558_v33 = vshrl.u32 %v3401_v19, 16  ;;  %v561_v43 = vshll.u32 %v3401_v19, 16  ;;  %v2973_v40 = vld [vmem:[%s4062_s3 + $0x1b0] sm:$0xff]   ;;  %v43_v11 = vld [vmem:[%s4063_s0 + $0x58] ss:$8 sps:$4 sm:$0xff]  }
  0x37   :  { %2795 = vmatprep.subr.bf16.mxu1 %v2967_v57  ;;  %v3414_v25 = vsel %vm3157_vm4, %v537_v36, %v541_v7  ;;  %v550_v6 = vor.u32 %v549_v20, %v546_v16  ;;  %v3429_v36 = vsel %vm3180_vm7, %v2220_v2, %v722_v27  ;;  %v79_v44 = vunpack.c.h.bf16 %v3358_v39  ;;  %v2975_v2 = vld [vmem:[%s4062_s3 + $0x1f8] sm:$0xff]  }
  0x38   :  { %2728 = vmatpush3.bf16.msra.mxu0 %v2960_v31  ;;  %v123_v31 = vmul.f32 %v3144_v50, %v77_v63  ;;  %v3439_v46 = vcombine.low %v3407_v21, %v3429_v36  ;;  %v560_v52 = vrot.slane %v558_v33, 4  ;;  %v563_v56 = vrot.slane %v561_v43, 5  ;;  %v2976_v16 = vld [vmem:[%s4062_s3 + $0x138] sm:$0xff]  }
  0x39   :  { %2729 = vmatprep.subr.bf16.mxu0 %v2962_v41  ;;  %v124_v41 = vmul.f32 %v3144_v50, %v78_v28  ;;  %v551_v45 = vrot.slane %v550_v6, 4  ;;  %v125_v57 = vmul.f32 %v3144_v50, %v79_v44  ;;  %v2221_v10 = vrot.slane %v3401_v19, 9 }
  0x3a   :  { %2796 = vmatpush3.bf16.msra.mxu1 %v2969_v12  ;;  %4089 = vst [vmem:[#allocation4_spill] sm:$0xff] %v3439_v46  ;;  %v169_v49 = vadd.f32 %v3149_v55, %v123_v31  ;;  %v564_v7 = vor.u32 %v563_v56, %v560_v52  ;;  %v44_v12 = vld [vmem:[%s4063_s0 + $0x5c] sm:$0x1]  ;;  %v85_v44 = vunpack.c.l.bf16 %v43_v11  ;;  %v3501_v52 = vld [vmem:[%s4063_s0 + $0x68] ss:$8 sps:$4 sm:$0xff]  }
  0x3b   :  { %2797 = vmatprep.subr.bf16.mxu1 %v2971_v23  ;;  %v170_v39 = vadd.f32 %v3149_v55, %v124_v41  ;;  %v3450_v58 = vsel %vm3157_vm4, %v551_v45, %v555_v26  ;;  %1758 = vmatmul.mubr.bf16.gmra.mrb[8].mxu1 %v3439_v46  ;;  %v171_v8 = vadd.f32 %v3149_v55, %v125_v57  ;;  %v2977_v26 = vld [vmem:[%s4062_s3 + $0x1b8] sm:$0xff]   ;;  %v46_v45 = vld [vmem:[%s4063_s0 + $0x64] sm:$0x1]  ;;  %v48_v56 = vld [vmem:[%s4063_s0 + $0x6c] sm:$0x1] }
  0x3c   :  { %2730 = vmatpush3.bf16.msra.mxu0 %v2964_v42  ;;  %v168_v42 = vadd.f32 %v3149_v55, %v122_v30  ;;  %vm209_vm9 = vcmp.ge.f32.partialorder %v169_v49, 0.0  ;;  %v3458_v63 = vcombine.low %v3414_v25, %v3450_v58  ;;  %v249_v0 = vmul.f32 0.1, %v169_v49  ;;  %v3491_v30 = vld [vmem:[%s4062_s3 + $0x200] sm:$0xff]  }
  0x3d   :  { %2731 = vmatprep.subr.bf16.mxu0 %v2966_v3  ;;  %vm210_vm10 = vcmp.ge.f32.partialorder %v170_v39, 0.0  ;;  %v250_v1 = vmul.f32 0.1, %v170_v39  ;;  %v565_v6 = vrot.slane %v564_v7, 4  ;;  %vm211_vm11 = vcmp.ge.f32.partialorder %v171_v8, 0.0 }
  0x3e   :  { %vm208_vm8 = vcmp.ge.f32.partialorder %v168_v42, 0.0  ;;  %v248_v59 = vmul.f32 0.1, %v168_v42  ;;  %2798 = vmatpush3.bf16.msra.mxu1 %v2973_v40  ;;  %1660 = vmatprep.mubr.bf16.mxu0 %v3458_v63  ;;  %v289_v20 = vsel %vm209_vm9, %v169_v49, %v249_v0  ;;  %v86_v40 = vunpack.c.l.bf16 %v44_v12 }
  0x3f   :  { %v290_v23 = vsel %vm210_vm10, %v170_v39, %v250_v1  ;;  %2436 = vmatmul.mubr.msk.bf16.gmra.mrb[8].mxu0 %vm3208_vm12, %v3379_v54  ;;  %v344_v27 = vsel %vm318_vm5, %v289_v20, 0.0  ;;  %2799 = vmatprep.subr.bf16.mxu1 %v2975_v2 }
  0x40   :  { %2732 = vmatpush3.bf16.msra.mxu0 %v2968_v47  ;;  %v288_v3 = vsel %vm208_vm8, %v168_v42, %v248_v59  ;;  %v345_v28 = vsel %vm325_vm6, %v290_v23, 0.0  ;;  %v2397_v31 = vpack.c.bf16 %v344_v27, %v344_v27  ;;  %v87_v23 = vunpack.c.h.bf16 %v43_v11 }
  0x41   :  { %2733 = vmatprep.subr.bf16.mxu0 %v2970_v34  ;;  %v343_v19 = vsel %vm325_vm6, %v288_v3, 0.0  ;;  %v2398_v33 = vpack.c.bf16 %v345_v28, %v345_v28  ;;  %v251_v34 = vmul.f32 0.1, %v171_v8  ;;  %v89_v27 = vunpack.c.l.bf16 %v3501_v52 }
  0x42   :  { %v2396_v47 = vpack.c.bf16 %v343_v19, %v343_v19  ;;  %2800 = vmatpush3.bf16.msra.mxu1 %v2977_v26  ;;  %v572_v42 = vshrl.u32 %v2397_v31, 16  ;;  %v575_v49 = vshll.u32 %v2397_v31, 16  ;;  %v88_v19 = vunpack.c.l.bf16 %v46_v45 }
  0x43   :  { %v3496_v39 = vsel %vm211_vm11, %v171_v8, %v251_v34  ;;  %2897 = vmatprep.subr.bf16.mxu1 %v3491_v30  ;;  %v2222_v8 = vrot.slane %v2397_v31, 9  ;;  %v730_v12 = vrot.slane %v2398_v33, 5  ;;  %v90_v28 = vunpack.c.l.bf16 %v48_v56 }
  0x44   :  { %2734 = vmatpush3.bf16.msra.mxu0 %v2972_v51  ;;  %v567_v41 = vshll.u32 %v2396_v47, 16  ;;  %v726_v43 = vrot.slane %v2396_v47, 5  ;;  %v581_v51 = vshll.u32 %v2398_v33, 16  ;;  %v2459_v59 = vpack.c.bf16 %v3496_v39, %v289_v20 }
  0x45   :  { %2735 = vmatprep.subr.bf16.mxu0 %v2974_v62  ;;  %v3509_v62 = vpack.c.bf16 %v289_v20, %v3389_v37  ;;  %v574_v0 = vrot.slane %v572_v42, 4  ;;  %v577_v1 = vrot.slane %v575_v49, 5  ;;  %v131_v37 = vmul.f32 %v3144_v50, %v85_v44 }
  0x46   :  { %v569_v57 = vrot.slane %v567_v41, 5  ;;  %v583_v2 = vrot.slane %v581_v51, 5  ;;  %v3514_v3 = vsel %vm3180_vm7, %v2221_v10, %v726_v43  ;;  %2460 = vmatprep.mubr.msk.bf16.mxu1 %vm3208_vm12, %v2459_v59  ;;  %v132_v20 = vmul.f32 %v3144_v50, %v86_v40 }
  0x47   :  { %v3526_v10 = vsel %vm3180_vm7, %v2222_v8, %v730_v12  ;;  %v177_v26 = vadd.f32 %v3149_v55, %v131_v37  ;;  %v133_v33 = vmul.f32 %v3144_v50, %v87_v23  ;;  %v134_v34 = vmul.f32 %v3144_v50, %v88_v19 }
  0x48   :  { %2736 = vmatpush3.bf16.msra.mxu0 %v2976_v16  ;;  %v3518_v7 = vsel %vm3157_vm4, %v565_v6, %v569_v57  ;;  %v578_v16 = vor.u32 %v577_v1, %v574_v0  ;;  %v3532_v6 = vcombine.low %v3514_v3, %v3526_v10  ;;  %v178_v31 = vadd.f32 %v3149_v55, %v132_v20 }
  0x49   :  { %2865 = vmatprep.subr.bf16.mxu0 %v3491_v30  ;;  %vm217_vm13 = vcmp.ge.f32.partialorder %v177_v26, 0.0  ;;  %v257_v11 = vmul.f32 0.1, %v177_v26  ;;  %v135_v41 = vmul.f32 %v3144_v50, %v89_v27  ;;  %v179_v40 = vadd.f32 %v3149_v55, %v133_v33 }
  0x4a   :  { %v579_v47 = vrot.slane %v578_v16, 4  ;;  %4090 = vst [vmem:[#allocation5_spill] sm:$0xff] %v3532_v6  ;;  %1766 = vmatmul.mubr.bf16.gmra.mrb[12].mxu1 %v3532_v6  ;;  %vm218_vm14 = vcmp.ge.f32.partialorder %v178_v31, 0.0  ;;  %v258_v44 = vmul.f32 0.1, %v178_v31  ;;  %v136_v49 = vmul.f32 %v3144_v50, %v90_v28 }
  0x4b   :  { %v297_v42 = vsel %vm217_vm13, %v177_v26, %v257_v11  ;;  %v180_v51 = vadd.f32 %v3149_v55, %v134_v34  ;;  %vm219_vm15 = vcmp.ge.f32.partialorder %v179_v40, 0.0  ;;  %v259_v59 = vmul.f32 0.1, %v179_v40 }
  0x4c   :  { %v3540_v43 = vsel %vm3157_vm4, %v579_v47, %v583_v2  ;;  %v298_v56 = vsel %vm218_vm14, %v178_v31, %v258_v44  ;;  %v352_v57 = vsel %vm318_vm5, %v297_v42, 0.0  ;;  %v181_v2 = vadd.f32 %v3149_v55, %v135_v41 }
  0x4d   :  { %v3546_v45 = vcombine.low %v3518_v7, %v3540_v43  ;;  %v353_v0 = vsel %vm325_vm6, %v298_v56, 0.0  ;;  %v2399_v1 = vpack.c.bf16 %v352_v57, %v352_v57  ;;  %v182_v8 = vadd.f32 %v3149_v55, %v136_v49 }
  0x4e   :  { %v2400_v12 = vpack.c.bf16 %v353_v0, %v353_v0  ;;  %v299_v37 = vsel %vm219_vm15, %v179_v40, %v259_v59  ;;  %v381_v16 = vpack.c.bf16 %v353_v0, %v352_v57  ;;  %vm220_vm0 = vcmp.ge.f32.partialorder %v180_v51, 0.0 }
  0x4f   :  { %1668 = vmatprep.mubr.bf16.mxu0 %v3546_v45  ;;  %v600_v20 = vshrl.u32 %v2399_v1, 16  ;;  %v603_v23 = vshll.u32 %v2399_v1, 16  ;;  %v354_v19 = vsel %vm318_vm5, %v299_v37, 0.0  ;;  %v2462_v26 = vpack.c.bf16 %v299_v37, %v297_v42 }
  0x50   :  { %2439 = vmatmul.mubr.msk.bf16.gmra.mrb[12].mxu0 %vm3208_vm12, %v3509_v62  ;;  %v609_v27 = vshll.u32 %v2400_v12, 16  ;;  %v3562_v28 = vpack.c.bf16 %v354_v19, %v354_v19  ;;  %v2247_v47 = vcombine.low %v4068_v15, %v381_v16  ;;  %v2224_v31 = vrot.slane %v2399_v1, 9 }
  0x51   :  { %v602_v33 = vrot.slane %v600_v20, 4  ;;  %v605_v11 = vrot.slane %v603_v23, 5  ;;  %2463 = vmatprep.mubr.msk.bf16.mxu1 %vm3208_vm12, %v2462_v26  ;;  %v738_v34 = vrot.slane %v2400_v12, 5  ;;  %vm221_vm1 = vcmp.ge.f32.partialorder %v181_v2, 0.0 }
  0x52   :  { %v611_v41 = vrot.slane %v609_v27, 5  ;;  %vm222_vm2 = vcmp.ge.f32.partialorder %v182_v8, 0.0  ;;  %v260_v44 = vmul.f32 0.1, %v180_v51  ;;  %v261_v40 = vmul.f32 0.1, %v181_v2 }
  0x53   :  { %v606_v49 = vor.u32 %v605_v11, %v602_v33  ;;  %v3569_v42 = vsel %vm3180_vm7, %v2224_v31, %v738_v34  ;;  %v262_v56 = vmul.f32 0.1, %v182_v8  ;;  %v614_v57 = vshrl.u32 %v3562_v28, 16 }
  0x54   :  { %v2263_v59 = vcombine.low %v3192_v13, %v3569_v42  ;;  %v300_v0 = vsel %vm220_vm0, %v180_v51, %v260_v44  ;;  %v3575_v1 = vsel %vm221_vm1, %v181_v2, %v261_v40  ;;  %v617_v12 = vshll.u32 %v3562_v28, 16 }
  0x55   :  { %v607_v16 = vrot.slane %v606_v49, 4  ;;  %v302_v20 = vsel %vm222_vm2, %v182_v8, %v262_v56  ;;  %v355_v23 = vsel %vm325_vm6, %v300_v0, 0.0  ;;  %v356_v19 = vsel %vm318_vm5, %v3575_v1, 0.0 }
  0x56   :  { %1774 = vmatmul.mubr.bf16.gmra.mrb[16].mxu1 %v2263_v59  ;;  %v357_v26 = vsel %vm325_vm6, %v302_v20, 0.0  ;;  %v2402_v27 = vpack.c.bf16 %v355_v23, %v355_v23  ;;  %v2403_v31 = vpack.c.bf16 %v356_v19, %v356_v19  ;;  %v616_v51 = vrot.slane %v614_v57, 4  ;;  %v51_v23 = vld [vmem:[%s4063_s0 + $0x78] ss:$8 sps:$4 sm:$0xff]  }
  0x57   :  { %v3587_v2 = vsel %vm3157_vm4, %v607_v16, %v611_v41  ;;  %v2404_v33 = vpack.c.bf16 %v357_v26, %v357_v26  ;;  %v619_v8 = vrot.slane %v617_v12, 5  ;;  %v91_v11 = vunpack.c.h.bf16 %v3501_v52  ;;  %v50_v41 = vld [vmem:[%s4063_s0 + $0x74] sm:$0x1] }
  0x58   :  { %v2255_v34 = vcombine.low %v3176_v4, %v3587_v2  ;;  %v623_v44 = vshll.u32 %v2402_v27, 16  ;;  %v628_v40 = vshrl.u32 %v2403_v31, 16  ;;  %v631_v49 = vshll.u32 %v2403_v31, 16 }
  0x59   :  { %v620_v56 = vor.u32 %v619_v8, %v616_v51  ;;  %v637_v59 = vshll.u32 %v2404_v33, 16  ;;  %v137_v0 = vmul.f32 %v3144_v50, %v91_v11  ;;  %v3594_v57 = vpack.c.bf16 %v3575_v1, %v299_v37  ;;  %v52_v51 = vld [vmem:[%s4063_s0 + $0x7c] sm:$0x1] }
  0x5a   :  { %1676 = vmatprep.mubr.bf16.mxu0 %v2255_v34  ;;  %v625_v12 = vrot.slane %v623_v44, 5  ;;  %v630_v52 = vrot.slane %v628_v40, 4  ;;  %v633_v16 = vrot.slane %v631_v49, 5  ;;  %v2225_v20 = vrot.slane %v3562_v28, 9 }
  0x5b   :  { %4091 = vst [vmem:[#allocation6_spill] sm:$0xff] %v3594_v57  ;;  %1677 = vmatmul.mubr.bf16.gmra.mrb[16].mxu0 %v2247_v47  ;;  %v621_v19 = vrot.slane %v620_v56, 4  ;;  %v639_v50 = vrot.slane %v637_v59, 5  ;;  %v183_v37 = vadd.f32 %v3149_v55, %v137_v0  ;;  %v742_v26 = vrot.slane %v2402_v27, 5  ;;  %v3626_v59 = vld [vmem:[%s4064_s1] ss:$0 sm:$0xff] }
  0x5c   :  { %v634_v8 = vor.u32 %v633_v16, %v630_v52  ;;  %v2226_v11 = vrot.slane %v2403_v31, 9  ;;  %v746_v34 = vrot.slane %v2404_v33, 5  ;;  %v92_v44 = vunpack.c.l.bf16 %v50_v41  ;;  %v3637_v52 = vld [vmem:[%s4063_s0 + $0x88] ss:$8 sps:$4 sm:$0xff]  }
  0x5d   :  { %v3609_v28 = vsel %vm3157_vm4, %v621_v19, %v625_v12  ;;  %vm223_vm3 = vcmp.ge.f32.partialorder %v183_v37, 0.0  ;;  %v263_v40 = vmul.f32 0.1, %v183_v37  ;;  %v3613_v47 = vsel %vm3180_vm7, %v2225_v20, %v742_v26  ;;  %v3632_v12 = vld [vmem:[%s4063_s0 + $0x84] sm:$0x1] }
  0x5e   :  { %v635_v55 = vrot.slane %v634_v8, 4  ;;  %v3617_v27 = vsel %vm3180_vm7, %v2226_v11, %v746_v34  ;;  %v93_v49 = vunpack.c.l.bf16 %v51_v23  ;;  %v94_v56 = vunpack.c.l.bf16 %v52_v51  ;;  %v3655_v8 = vld [vmem:[%s4065_s2] ss:$0 sm:$0xff] }
  0x5f   :  { %v303_v31 = vsel %vm223_vm3, %v183_v37, %v263_v40  ;;  %v3621_v33 = vcombine.low %v3613_v47, %v3617_v27  ;;  %v138_v0 = vmul.f32 %v3626_v59, %v92_v44  ;;  %v95_v41 = vunpack.c.h.bf16 %v51_v23 }
  0x60   :  { %v3641_v16 = vsel %vm3157_vm4, %v635_v55, %v639_v50  ;;  %v358_v20 = vsel %vm318_vm5, %v303_v31, 0.0  ;;  %v2465_v19 = vpack.c.bf16 %v303_v31, %v3575_v1  ;;  %v139_v23 = vmul.f32 %v3626_v59, %v93_v49 }
  0x61   :  { %4092 = vst [vmem:[#allocation7_spill] sm:$0xff] %v3621_v33  ;;  %v3649_v37 = vcombine.low %v3609_v28, %v3641_v16  ;;  %v2405_v26 = vpack.c.bf16 %v358_v20, %v358_v20  ;;  %v140_v51 = vmul.f32 %v3626_v59, %v94_v56  ;;  %v184_v50 = vadd.f32 %v3655_v8, %v138_v0 }
  0x62   :  { %2466 = vmatprep.mubr.msk.bf16.mxu1 %vm3208_vm12, %v2465_v19  ;;  %v185_v1 = vadd.f32 %v3655_v8, %v139_v23  ;;  %v141_v11 = vmul.f32 %v3626_v59, %v95_v41  ;;  %v96_v34 = vunpack.c.l.bf16 %v3632_v12  ;;  %v97_v44 = vunpack.c.l.bf16 %v3637_v52 }
  0x63   :  { %4093 = vst [vmem:[#allocation8_spill] sm:$0xff] %v3649_v37  ;;  %1684 = vmatprep.mubr.bf16.mxu0 %v3649_v37  ;;  %1782 = vmatmul.mubr.bf16.gmra.mrb[20].mxu1 %v3621_v33  ;;  %v186_v40 = vadd.f32 %v3655_v8, %v140_v51  ;;  %vm224_vm8 = vcmp.ge.f32.partialorder %v184_v50, 0.0  ;;  %v264_v55 = vmul.f32 0.1, %v184_v50  ;;  %v642_v49 = vshrl.u32 %v2405_v26, 16 }
  0x64   :  { %2442 = vmatmul.mubr.msk.bf16.gmra.mrb[20].mxu0 %vm3208_vm12, %v3594_v57  ;;  %vm225_vm9 = vcmp.ge.f32.partialorder %v185_v1, 0.0  ;;  %v265_v56 = vmul.f32 0.1, %v185_v1  ;;  %v645_v0 = vshll.u32 %v2405_v26, 16  ;;  %v187_v41 = vadd.f32 %v3655_v8, %v141_v11 }
  0x65   :  { %vm226_vm10 = vcmp.ge.f32.partialorder %v186_v40, 0.0  ;;  %v266_v12 = vmul.f32 0.1, %v186_v40  ;;  %v304_v20 = vsel %vm224_vm8, %v184_v50, %v264_v55  ;;  %v644_v19 = vrot.slane %v642_v49, 4 }
  0x66   :  { %v305_v23 = vsel %vm225_vm9, %v185_v1, %v265_v56  ;;  %v359_v51 = vsel %vm325_vm6, %v304_v20, 0.0  ;;  %v647_v15 = vrot.slane %v645_v0, 5  ;;  %vm227_vm11 = vcmp.ge.f32.partialorder %v187_v41, 0.0 }
  0x67   :  { %v306_v24 = vsel %vm226_vm10, %v186_v40, %v266_v12  ;;  %v360_v6 = vsel %vm318_vm5, %v305_v23, 0.0  ;;  %v2406_v46 = vpack.c.bf16 %v359_v51, %v359_v51  ;;  %v267_v13 = vmul.f32 0.1, %v187_v41 }
  0x68   :  { %v361_v53 = vsel %vm325_vm6, %v306_v24, 0.0  ;;  %v2407_v11 = vpack.c.bf16 %v360_v6, %v360_v6  ;;  %v648_v33 = vor.u32 %v647_v15, %v644_v19  ;;  %v3677_v57 = vpack.c.bf16 %v305_v23, %v303_v31  ;;  %v56_v24 = vld [vmem:[%s4063_s0 + $0x8c] sm:$0x1] }
  0x69   :  { %v2408_v50 = vpack.c.bf16 %v361_v53, %v361_v53  ;;  %v651_v1 = vshll.u32 %v2406_v46, 16  ;;  %v3679_v55 = vsel %vm227_vm11, %v187_v41, %v267_v13  ;;  %v2227_v49 = vrot.slane %v2405_v26, 9  ;;  %v4108_v5 = vld [vmem:[#allocation7_spill] sm:$0xff] }
  0x6a   :  { %4094 = vst [vmem:[#allocation9_spill] sm:$0xff] %v3677_v57  ;;  %v649_v56 = vrot.slane %v648_v33, 4  ;;  %v656_v0 = vshrl.u32 %v2407_v11, 16  ;;  %v659_v40 = vshll.u32 %v2407_v11, 16  ;;  %v362_v12 = vsel %vm318_vm5, %v3679_v55, 0.0 }
  0x6b   :  { %v653_v6 = vrot.slane %v651_v1, 5  ;;  %v665_v15 = vshll.u32 %v2408_v50, 16  ;;  %v3687_v31 = vpack.c.bf16 %v362_v12, %v362_v12  ;;  %v2468_v53 = vpack.c.bf16 %v3679_v55, %v305_v23 }
  0x6c   :  { %v658_v13 = vrot.slane %v656_v0, 4  ;;  %v661_v41 = vrot.slane %v659_v40, 5  ;;  %v750_v26 = vrot.slane %v2406_v46, 5  ;;  %v2228_v33 = vrot.slane %v2407_v11, 9 }
  0x6d   :  { %v3692_v20 = vsel %vm3157_vm4, %v649_v56, %v653_v6  ;;  %v667_v19 = vrot.slane %v665_v15, 5  ;;  %2469 = vmatprep.mubr.msk.bf16.mxu1 %vm3208_vm12, %v2468_v53  ;;  %v754_v51 = vrot.slane %v2408_v50, 5  ;;  %v98_v37 = vunpack.c.l.bf16 %v56_v24 }
  0x6e   :  { %v662_v1 = vor.u32 %v661_v41, %v658_v13  ;;  %v3698_v12 = vsel %vm3180_vm7, %v2227_v49, %v750_v26  ;;  %v142_v23 = vmul.f32 %v3626_v59, %v96_v34  ;;  %v143_v46 = vmul.f32 %v3626_v59, %v97_v44 }
  0x6f   :  { %v3704_v11 = vsel %vm3180_vm7, %v2228_v33, %v754_v51  ;;  %v144_v56 = vmul.f32 %v3626_v59, %v98_v37  ;;  %v670_v0 = vshrl.u32 %v3687_v31, 16  ;;  %v673_v50 = vshll.u32 %v3687_v31, 16 }
  0x70   :  { %v663_v40 = vrot.slane %v662_v1, 4  ;;  %v3711_v24 = vcombine.low %v3698_v12, %v3704_v11  ;;  %v188_v49 = vadd.f32 %v3655_v8, %v142_v23  ;;  %v189_v34 = vadd.f32 %v3655_v8, %v143_v46 }
  0x71   :  { %v190_v44 = vadd.f32 %v3655_v8, %v144_v56  ;;  %v672_v6 = vrot.slane %v670_v0, 4  ;;  %v675_v15 = vrot.slane %v673_v50, 5  ;;  %v99_v53 = vunpack.c.h.bf16 %v3637_v52 }
  0x72   :  { %4095 = vst [vmem:[#allocation10_spill] sm:$0xff] %v3711_v24  ;;  %v3719_v37 = vsel %vm3157_vm4, %v663_v40, %v667_v19  ;;  %1790 = vmatmul.mubr.bf16.gmra.mrb[24].mxu1 %v3711_v24  ;;  %vm228_vm13 = vcmp.ge.f32.partialorder %v188_v49, 0.0  ;;  %vm229_vm14 = vcmp.ge.f32.partialorder %v189_v34, 0.0  ;;  %v268_v13 = vmul.f32 0.1, %v188_v49 }
  0x73   :  { %v3724_v41 = vcombine.low %v3692_v20, %v3719_v37  ;;  %vm230_vm15 = vcmp.ge.f32.partialorder %v190_v44, 0.0  ;;  %v269_v26 = vmul.f32 0.1, %v189_v34  ;;  %v270_v33 = vmul.f32 0.1, %v190_v44 }
  0x74   :  { %v308_v51 = vsel %vm228_vm13, %v188_v49, %v268_v13  ;;  %v145_v1 = vmul.f32 %v3626_v59, %v99_v53  ;;  %v3730_v52 = vsel %vm318_vm5, %v3496_v39, 0.0  ;;  %v676_v39 = vor.u32 %v675_v15, %v672_v6 }
  0x75   :  { %4096 = vst [vmem:[#allocation11_spill] sm:$0xff] %v3724_v41  ;;  %1692 = vmatprep.mubr.bf16.mxu0 %v3724_v41  ;;  %v309_v19 = vsel %vm229_vm14, %v189_v34, %v269_v26  ;;  %v310_v23 = vsel %vm230_vm15, %v190_v44, %v270_v33  ;;  %v363_v46 = vsel %vm325_vm6, %v308_v51, 0.0  ;;  %v2229_v44 = vrot.slane %v3687_v31, 9 }
  0x76   :  { %2445 = vmatmul.mubr.msk.bf16.gmra.mrb[24].mxu0 %vm3208_vm12, %v3677_v57  ;;  %v364_v56 = vsel %vm318_vm5, %v309_v19, 0.0  ;;  %v365_v0 = vsel %vm325_vm6, %v310_v23, 0.0  ;;  %v2410_v50 = vpack.c.bf16 %v363_v46, %v363_v46  ;;  %v191_v34 = vadd.f32 %v3655_v8, %v145_v1 }
  0x77   :  { %v2411_v40 = vpack.c.bf16 %v364_v56, %v364_v56  ;;  %v2412_v49 = vpack.c.bf16 %v365_v0, %v365_v0  ;;  %v3746_v53 = vpack.c.bf16 %v3730_v52, %v3730_v52  ;;  %v2283_v33 = vcombine.low %v3230_v61, %v3280_v32 }
  0x78   :  { %v679_v13 = vshll.u32 %v2410_v50, 16  ;;  %v758_v26 = vrot.slane %v2410_v50, 5  ;;  %vm231_vm0 = vcmp.ge.f32.partialorder %v191_v34, 0.0  ;;  %v677_v6 = vrot.slane %v676_v39, 4  ;;  %v38_v50 = vld [vmem:[%s4063_s0 + $0x44] sm:$0x1] }
  0x79   :  { %v684_v51 = vshrl.u32 %v2411_v40, 16  ;;  %v687_v24 = vshll.u32 %v2411_v40, 16  ;;  %v693_v23 = vshll.u32 %v2412_v49, 16  ;;  %v271_v46 = vmul.f32 0.1, %v191_v34  ;;  %v4110_v29 = vld [vmem:[#allocation10_spill] sm:$0xff] }
  0x7a   :  { %v681_v15 = vrot.slane %v679_v13, 5  ;;  %v2230_v56 = vrot.slane %v2411_v40, 9  ;;  %v3752_v31 = vsel %vm3180_vm7, %v2229_v44, %v758_v26  ;;  %v762_v57 = vrot.slane %v2412_v49, 5 }
  0x7b   :  { %v686_v1 = vrot.slane %v684_v51, 4  ;;  %v689_v0 = vrot.slane %v687_v24, 5  ;;  %v695_v61 = vrot.slane %v693_v23, 5  ;;  %v311_v32 = vsel %vm231_vm0, %v191_v34, %v271_v46  ;;  %v58_v23 = vld [vmem:[%s4063_s0 + $0x94] sm:$0x1] }
  0x7c   :  { %v3758_v41 = vpack.c.bf16 %v309_v19, %v3679_v55  ;;  %v2277_v39 = vcombine.low %v3450_v58, %v3518_v7  ;;  %v3764_v24 = vsel %vm318_vm5, %v311_v32, 0.0  ;;  %v2471_v44 = vpack.c.bf16 %v311_v32, %v309_v19  ;;  %v4100_v58 = vld [vmem:[#allocation6_spill] sm:$0xff]  ;;  %v4101_v7 = vld [vmem:[#allocation11_spill] sm:$0xff] }
  0x7d   :  { %v690_v40 = vor.u32 %v689_v0, %v686_v1  ;;  %v3768_v49 = vsel %vm3180_vm7, %v2230_v56, %v762_v57  ;;  %v3772_v13 = vsel %vm3157_vm4, %v677_v6, %v681_v15  ;;  %v3776_v55 = vpack.c.bf16 %v3764_v24, %v3764_v24 }
  0x7e   :  { %v3780_v34 = vcombine.low %v3752_v31, %v3768_v49  ;;  %v80_v35 = vunpack.c.l.bf16 %v38_v50  ;;  %2472 = vmatprep.mubr.msk.bf16.mxu1 %vm3208_vm12, %v2471_v44  ;;  %v775_v57 = vshrl.u32 %v3746_v53, 16  ;;  %v778_v19 = vshll.u32 %v3746_v53, 16 }
  0x7f   :  { %v691_v26 = vrot.slane %v690_v40, 4  ;;  %v2287_v51 = vcombine.low %v3569_v42, %v3613_v47  ;;  %v100_v56 = vunpack.c.l.bf16 %v58_v23  ;;  %v2979_v23 = vld [vmem:[%s4062_s3 + $0x208] sm:$0xff]   ;;  %v2236_v42 = vrot.slane %v3776_v55, 9 }
  0x80   :  { %1798 = vmatmul.mubr.bf16.gmra.mrb[28].mxu1 %v3780_v34  ;;  %v126_v6 = vmul.f32 %v3626_v59, %v80_v35  ;;  %v777_v0 = vrot.slane %v775_v57, 4  ;;  %v780_v50 = vrot.slane %v778_v19, 5 }
  0x81   :  { %v3801_v1 = vsel %vm3157_vm4, %v691_v26, %v695_v61  ;;  %1935 = vmatprep.mubr.bf16.mxu1 %v3343_v22  ;;  %v789_v61 = vshrl.u32 %v3776_v55, 16  ;;  %v792_v26 = vshll.u32 %v3776_v55, 16  ;;  %v146_v57 = vmul.f32 %v3626_v59, %v100_v56  ;;  %v2508_v55 = vld [vmem:[%s4066_s4] sm:$0xff]  }
  0x82   :  { %v3808_v40 = vcombine.low %v3772_v13, %v3801_v1  ;;  %v172_v44 = vadd.f32 %v3655_v8, %v126_v6  ;;  %v781_v19 = vor.u32 %v780_v50, %v777_v0  ;;  %v2235_v59 = vrot.slane %v3746_v53, 9 }
  0x83   :  { %v192_v35 = vadd.f32 %v3655_v8, %v146_v57  ;;  %v791_v32 = vrot.slane %v789_v61, 4  ;;  %v794_v46 = vrot.slane %v792_v26, 5  ;;  %v2284_v8 = vcombine.low %v3298_v48, %v3407_v21 }
  0x84   :  { %1700 = vmatprep.mubr.bf16.mxu0 %v3808_v40  ;;  %vm212_vm5 = vcmp.ge.f32.partialorder %v172_v44, 0.0  ;;  %v252_v22 = vmul.f32 0.1, %v172_v44  ;;  %v782_v50 = vrot.slane %v781_v19, 4  ;;  %v4104_v19 = vld [vmem:[#allocation9_spill] sm:$0xff] }
  0x85   :  { %2448 = vmatmul.mubr.msk.bf16.gmra.mrb[28].mxu0 %vm3208_vm12, %v3758_v41  ;;  %vm232_vm1 = vcmp.ge.f32.partialorder %v192_v35, 0.0  ;;  %v272_v0 = vmul.f32 0.1, %v192_v35  ;;  %v795_v26 = vor.u32 %v794_v46, %v791_v32  ;;  %v2981_v46 = vld [vmem:[%s4062_s3 + $0x218] sm:$0xff]  }
  0x86   :  { %1838 = vmatprep.mubr.bf16.mxu0 %v2283_v33  ;;  %v292_v6 = vsel %vm212_vm5, %v172_v44, %v252_v22 }
  0x87   :  { %v347_v15 = vsel %vm325_vm6, %v292_v6, 0.0  ;;  %v312_v61 = vsel %vm232_vm1, %v192_v35, %v272_v0  ;;  %v796_v32 = vrot.slane %v795_v26, 4 }
  0x88   :  { %2475 = vmatmul.mubr.msk.bf16.vlgmr.msra.gmra.mrb[32].mxu1 %vm3208_vm12, %v3248_v14  ;;  %v2414_v56 = vpack.c.bf16 %v347_v15, %v347_v15  ;;  %v378_v33 = vpack.c.bf16 %v347_v15, %v3730_v52  ;;  %v2980_v14 = vld [vmem:[%s4062_s3 + $0x210] sm:$0xff]   ;;  %v3840_v52 = vsel %vm325_vm6, %v312_v61, 0.0 }
  0x89   :  { %2905 = vmatpush3.bf16.msra.mxu1 %v3491_v30  ;;  %1943 = vmatprep.mubr.bf16.mxu1 %v3458_v63  ;;  %v3848_v21 = vpack.c.bf16 %v3840_v52, %v3840_v52  ;;  %v4097_v63 = vcombine.low %v3241_v9, %v3258_v18  ;;  %v2276_v18 = vcombine.low %v3335_v17, %v3414_v25  ;;  %v2983_v25 = vld [vmem:[%s4062_s3 + $0x228] sm:$0xff]  }
  0x8a   :  { %2898 = vmatprep.subr.bf16.mxu1 %v2979_v23  ;;  %v804_v44 = vrot.slane %v2414_v56, 5  ;;  %v784_v53 = vshll.u32 %v2414_v56, 16  ;;  %v2509_v56 = vunpack.c.l.bf16 %v2508_v55 }
  0x8b   :  { %v798_v35 = vshll.u32 %v3848_v21, 16  ;;  %v808_v47 = vrot.slane %v3848_v21, 5 }
  0x8c   :  { %v3844_v15 = vsel %vm3180_vm7, %v2235_v59, %v804_v44  ;;  %v786_v48 = vrot.slane %v784_v53, 5  ;;  %v2510_v44 = vunpack.c.h.bf16 %v2508_v55 }
  0x8d   :  { %1839 = vmatmul.mubr.bf16.vlgmr.msra.gmra.mrb[32].mxu0 %v4097_v63  ;;  %2906 = vmatpush3.bf16.msra.mxu1 %v2979_v23  ;;  %v800_v9 = vrot.slane %v798_v35, 5  ;;  %v2286_v60 = vcombine.low %v3526_v10, %v3844_v15 }
  0x8e   :  { %2866 = vmatpush3.bf16.msra.mxu0 %v3491_v30  ;;  %1846 = vmatprep.mubr.bf16.mxu0 %v2284_v8  ;;  %v787_v38 = vsel %vm3157_vm4, %v782_v50, %v786_v48  ;;  %v2285_v30 = vcombine.low %v3429_v36, %v3514_v3  ;;  %v2984_v36 = vld [vmem:[%s4062_s3 + $0x230] sm:$0xff]   ;;  %v4098_v3 = vmov 0.0|0.0  }
  0x8f   :  { %2867 = vmatprep.subr.bf16.mxu0 %v2979_v23  ;;  %2899 = vmatprep.subr.bf16.mxu1 %v2980_v14  ;;  %v801_v22 = vsel %vm3157_vm4, %v796_v32, %v800_v9  ;;  %v2293_v17 = vcombine.low %v787_v38, %v3176_v4  ;;  %v2278_v10 = vcombine.low %v3540_v43, %v787_v38 }
  0x90   :  { %2478 = vmatmul.mubr.msk.bf16.gmra.mrb[36].mxu1 %vm3208_vm12, %v3379_v54  ;;  %v2982_v54 = vld [vmem:[%s4062_s3 + $0x220] sm:$0xff]   ;;  %v2282_v57 = vcombine.low %v3801_v1, %v801_v22  ;;  %v4099_v1 = vld [vmem:[#allocation8_spill] sm:$0xff]  ;;  %v4102_v43 = vcombine.low %v3587_v2, %v3609_v28  ;;  %v2294_v2 = vcombine.low %v801_v22, %v3176_v4  ;;  %v4106_v28 = vcombine.low %v3704_v11, %v3752_v31  ;;  %v4109_v11 = vld [vmem:[#allocation3_spill] sm:$0xff] }
  0x91   :  { %1951 = vmatprep.mubr.bf16.mxu1 %v3546_v45  ;;  %2907 = vmatpush3.bf16.msra.mxu1 %v2980_v14  ;;  %v2291_v45 = vcombine.low %v378_v33, %v4098_v3  ;;  %v4107_v4 = vcombine.low %v3719_v37, %v3772_v13 }
  0x92   :  { %2868 = vmatpush3.bf16.msra.mxu0 %v2979_v23  ;;  %2900 = vmatprep.subr.bf16.mxu1 %v2981_v46 }
  0x93   :  { %2869 = vmatprep.subr.bf16.mxu0 %v2980_v14 }
  0x95   :  { %1847 = vmatmul.mubr.bf16.gmra.mrb[36].mxu0 %v2276_v18  ;;  %2908 = vmatpush3.bf16.msra.mxu1 %v2981_v46 }
  0x96   :  { %1854 = vmatprep.mubr.bf16.mxu0 %v2285_v30  ;;  %2870 = vmatpush3.bf16.msra.mxu0 %v2980_v14 }
  0x97   :  { %2871 = vmatprep.subr.bf16.mxu0 %v2981_v46  ;;  %2901 = vmatprep.subr.bf16.mxu1 %v2982_v54 }
  0x98   :  { %2481 = vmatmul.mubr.msk.bf16.gmra.mrb[40].mxu1 %vm3208_vm12, %v3509_v62  ;;  %v2985_v62 = vld [vmem:[%s4062_s3 + $0x238] sm:$0xff]  }
  0x99   :  { %1959 = vmatprep.mubr.bf16.mxu1 %v2293_v17  ;;  %2909 = vmatpush3.bf16.msra.mxu1 %v2982_v54 }
  0x9a   :  { %2872 = vmatpush3.bf16.msra.mxu0 %v2981_v46  ;;  %2902 = vmatprep.subr.bf16.mxu1 %v2983_v25  ;;  %v2579_v46 = vld [vmem:[%s4066_s4 + $0x8] sm:$0xff]  }
  0x9b   :  { %2873 = vmatprep.subr.bf16.mxu0 %v2982_v54  ;;  %v2513_v18 = vunpack.c.l.bf16 %v2579_v46 }
  0x9d   :  { %1855 = vmatmul.mubr.bf16.gmra.mrb[40].mxu0 %v2277_v39  ;;  %2910 = vmatpush3.bf16.msra.mxu1 %v2983_v25  ;;  %v4103_v39 = vcombine.low %v3617_v27, %v3698_v12  ;;  %v809_v27 = vsel %vm3180_vm7, %v2236_v42, %v808_v47  ;;  %v388_v12 = vpack.c.bf16 %v3840_v52, %v3764_v24  ;;  %v4112_v24 = vld [vmem:[#allocation4_spill] sm:$0xff] }
  0x9e   :  { %1862 = vmatprep.mubr.bf16.mxu0 %v2286_v60  ;;  %2874 = vmatpush3.bf16.msra.mxu0 %v2982_v54 }
  0x9f   :  { %2875 = vmatprep.subr.bf16.mxu0 %v2983_v25  ;;  %2903 = vmatprep.subr.bf16.mxu1 %v2984_v36 }
  0xa0   :  { %1960 = vmatmul.mubr.bf16.gmra.mrb[44].mxu1 %v2291_v45 }
  0xa1   :  { %1967 = vmatprep.mubr.bf16.mxu1 %v4099_v1  ;;  %2911 = vmatpush3.bf16.msra.mxu1 %v2984_v36 }
  0xa2   :  { %2876 = vmatpush3.bf16.msra.mxu0 %v2983_v25  ;;  %2904 = vmatprep.subr.bf16.mxu1 %v2985_v62 }
  0xa3   :  { %2877 = vmatprep.subr.bf16.mxu0 %v2984_v36 }
  0xa5   :  { %1863 = vmatmul.mubr.bf16.gmra.mrb[44].mxu0 %v2278_v10  ;;  %2912 = vmatpush3.bf16.msra.mxu1 %v2985_v62  ;;  %v2580_v10 = vld [vmem:[%s4066_s4 + $0x10] sm:$0xff]  }
  0xa6   :  { %1870 = vmatprep.mubr.bf16.mxu0 %v2287_v51  ;;  %2878 = vmatpush3.bf16.msra.mxu0 %v2984_v36  ;;  %v4105_v51 = vcombine.low %v3641_v16, %v3692_v20  ;;  %v2290_v16 = vcombine.low %v3768_v49, %v809_v27  ;;  %v2292_v20 = vcombine.low %v388_v12, %v4098_v3  ;;  %v4113_v49 = vld [vmem:[#allocation5_spill] sm:$0xff] }
  0xa7   :  { %2879 = vmatprep.subr.bf16.mxu0 %v2985_v62 }
  0xa8   :  { %2484 = vmatmul.mubr.msk.bf16.gmra.mrb[48].mxu1 %vm3208_vm12, %v4100_v58 }
  0xa9   :  { %1975 = vmatprep.mubr.bf16.mxu1 %v4101_v7 }
  0xaa   :  { %2880 = vmatpush3.bf16.msra.mxu0 %v2985_v62 }
  0xad   :  { %1871 = vmatmul.mubr.bf16.gmra.mrb[48].mxu0 %v4102_v43 }
  0xae   :  { %1878 = vmatprep.mubr.bf16.mxu0 %v4103_v39 }
  0xb0   :  { %2487 = vmatmul.mubr.msk.bf16.gmra.mrb[52].mxu1 %vm3208_vm12, %v4104_v19  ;;  %v2517_v19 = vunpack.c.l.bf16 %v2580_v10 }
  0xb1   :  { %1983 = vmatprep.mubr.bf16.mxu1 %v3808_v40 }
  0xb5   :  { %1879 = vmatmul.mubr.bf16.gmra.mrb[52].mxu0 %v4105_v51 }
  0xb6   :  { %1886 = vmatprep.mubr.bf16.mxu0 %v4106_v28  ;;  %v2518_v28 = vunpack.c.h.bf16 %v2580_v10 }
  0xb8   :  { %2490 = vmatmul.mubr.msk.bf16.gmra.mrb[56].mxu1 %vm3208_vm12, %v3758_v41  ;;  %v4111_v41 = vld [vmem:[#allocation2_spill] sm:$0xff] }
  0xb9   :  { %1991 = vmatprep.mubr.bf16.mxu1 %v2294_v2  ;;  %v2296_v31 = vcombine.low %v809_v27, %v4111_v41  ;;  %v2295_v37 = vcombine.low %v3844_v15, %v4111_v41 }
  0xbd   :  { %1887 = vmatmul.mubr.bf16.gmra.mrb[56].mxu0 %v4107_v4 }
  0xbe   :  { %1894 = vmatprep.mubr.bf16.mxu0 %v2290_v16 }
  0xc0   :  { %1992 = vmatmul.mubr.bf16.gmra.mrb[60].mxu1 %v2292_v20 }
  0xc1   :  { %2889 = vmatprep.mubr.bf16.mxu1 %v4108_v5 }
  0xc5   :  { %1895 = vmatmul.mubr.bf16.gmra.mrb[60].mxu0 %v2282_v57  ;;  %v2514_v57 = vunpack.c.h.bf16 %v2579_v46 }
  0xc6   :  { %2881 = vmatprep.mubr.bf16.mxu0 %v4109_v11 }
  0xc8   :  { %2890 = vmatmul.mubr.bf16.vlgmr.msra.gmra.mrb[64].mxu1 %v4110_v29  ;;  %v2581_v29 = vld [vmem:[%s4066_s4 + $0x18] sm:$0xff]  }
  0xc9   :  { %2893 = vmatprep.mubr.bf16.mxu1 %v3780_v34 }
  0xcd   :  { %2882 = vmatmul.mubr.bf16.vlgmr.msra.gmra.mrb[64].mxu0 %v4112_v24 }
  0xce   :  { %2885 = vmatprep.mubr.bf16.mxu0 %v4113_v49 }
  0xd0   :  { %2894 = vmatmul.mubr.bf16.gmra.mrb[68].mxu1 %v2296_v31 }
  0xd5   :  { %2886 = vmatmul.mubr.bf16.gmra.mrb[68].mxu0 %v2295_v37 }
  0xf8   :  { %v2673_v13 = vpop.f32.mrb[0].mxu1 }
  0xf9   :  { %v2674_v40 = vpop.f32.mrb[1].mxu1 }
  0xfa   :  { %v2675_v23 = vadd.f32 %v2674_v40, %v2673_v13  ;;  %v2676_v6 = vpop.f32.mrb[2].mxu1  ;;  %v2521_v13 = vunpack.c.l.bf16 %v2581_v29 }
  0xfb   :  { %v2677_v34 = vpop.f32.mrb[3].mxu1 }
  0xfc   :  { %v2678_v33 = vadd.f32 %v2677_v34, %v2676_v6  ;;  %v2522_v34 = vunpack.c.h.bf16 %v2581_v29 }
  0xfe   :  { %v2609_v59 = vpop.f32.mrb[0].mxu0 }
  0xff   :  { %v2610_v0 = vpop.f32.mrb[1].mxu0 }
 0x100   :  { %v2611_v8 = vadd.f32 %v2610_v0, %v2609_v59  ;;  %v2612_v50 = vpop.f32.mrb[2].mxu0  ;;  %v2679_v14 = vpop.f32.mrb[4].mxu1 }
 0x101   :  { %v2613_v53 = vpop.f32.mrb[3].mxu0  ;;  %v2680_v48 = vpop.f32.mrb[5].mxu1 }
 0x102   :  { %v1647_v61 = vadd.f32 %v2611_v8, %v2509_v56  ;;  %v2614_v26 = vadd.f32 %v2613_v53, %v2612_v50  ;;  %v2681_v21 = vadd.f32 %v2680_v48, %v2679_v14  ;;  %v2682_v63 = vpop.f32.mrb[6].mxu1 }
 0x103   :  { %v2683_v32 = vpop.f32.mrb[7].mxu1 }
 0x104   :  { %v3945_v52 = vadd.f32 %v2675_v23, %v1647_v61  ;;  %v1650_v15 = vadd.f32 %v2614_v26, %v2510_v44  ;;  %v2684_v35 = vadd.f32 %v2683_v32, %v2682_v63  ;;  %v2582_v61 = vld [vmem:[%s4066_s4 + $0x20] sm:$0xff]  }
 0x105   :  { %v2525_v63 = vunpack.c.l.bf16 %v2582_v61 }
 0x106   :  { %v3947_v38 = vadd.f32 %v2678_v33, %v1650_v15  ;;  %v2615_v9 = vpop.f32.mrb[4].mxu0 }
 0x107   :  { %v2616_v30 = vpop.f32.mrb[5].mxu0 }
 0x108   :  { %v2617_v22 = vadd.f32 %v2616_v30, %v2615_v9  ;;  %v2618_v54 = vpop.f32.mrb[6].mxu0  ;;  %v2526_v9 = vunpack.c.h.bf16 %v2582_v61 }
 0x109   :  { %v2619_v17 = vpop.f32.mrb[7].mxu0 }
 0x10a   :  { %v1655_v25 = vadd.f32 %v2617_v22, %v2513_v18  ;;  %v2620_v60 = vadd.f32 %v2619_v17, %v2618_v54  ;;  %v2583_v17 = vld [vmem:[%s4066_s4 + $0x28] sm:$0xff]  }
 0x10c   :  { %v3952_v36 = vadd.f32 %v2681_v21, %v1655_v25  ;;  %v1658_v3 = vadd.f32 %v2620_v60, %v2514_v57 }
 0x10e   :  { %v3954_v45 = vadd.f32 %v2684_v35, %v1658_v3  ;;  %v2685_v62 = vpop.f32.mrb[8].mxu1 }
 0x10f   :  { %v2686_v1 = vpop.f32.mrb[9].mxu1 }
 0x110   :  { %v2687_v58 = vadd.f32 %v2686_v1, %v2685_v62  ;;  %v2688_v7 = vpop.f32.mrb[10].mxu1  ;;  %v2529_v62 = vunpack.c.l.bf16 %v2583_v17 }
 0x111   :  { %v2689_v43 = vpop.f32.mrb[11].mxu1 }
 0x112   :  { %v2621_v39 = vpop.f32.mrb[8].mxu0  ;;  %v2690_v42 = vadd.f32 %v2689_v43, %v2688_v7 }
 0x113   :  { %v2622_v47 = vpop.f32.mrb[9].mxu0 }
 0x114   :  { %v2623_v51 = vadd.f32 %v2622_v47, %v2621_v39  ;;  %v2624_v2 = vpop.f32.mrb[10].mxu0 }
 0x115   :  { %v2625_v27 = vpop.f32.mrb[11].mxu0 }
 0x116   :  { %v1663_v12 = vadd.f32 %v2623_v51, %v2517_v19  ;;  %v2626_v16 = vadd.f32 %v2625_v27, %v2624_v2  ;;  %v2530_v19 = vunpack.c.h.bf16 %v2583_v17 }
 0x118   :  { %v3959_v20 = vadd.f32 %v2687_v58, %v1663_v12  ;;  %v1666_v4 = vadd.f32 %v2626_v16, %v2518_v28 }
 0x11a   :  { %v3961_v5 = vadd.f32 %v2690_v42, %v1666_v4 }
 0x11d   :  { %v2691_v11 = vpop.f32.mrb[12].mxu1 }
 0x11e   :  { %v2692_v41 = vpop.f32.mrb[13].mxu1 }
 0x11f   :  { %v2693_v31 = vadd.f32 %v2692_v41, %v2691_v11  ;;  %v2694_v24 = vpop.f32.mrb[14].mxu1  ;;  %v2584_v11 = vld [vmem:[%s4066_s4 + $0x30] sm:$0xff]  }
 0x120   :  { %v2695_v49 = vpop.f32.mrb[15].mxu1 }
 0x121   :  { %v2696_v55 = vadd.f32 %v2695_v49, %v2694_v24 }
 0x123   :  { %v2627_v37 = vpop.f32.mrb[12].mxu0 }
 0x124   :  { %v2628_v40 = vpop.f32.mrb[13].mxu0 }
 0x125   :  { %v2629_v23 = vadd.f32 %v2628_v40, %v2627_v37  ;;  %v2630_v6 = vpop.f32.mrb[14].mxu0  ;;  %v2533_v37 = vunpack.c.l.bf16 %v2584_v11 }
 0x126   :  { %v2631_v59 = vpop.f32.mrb[15].mxu0 }
 0x127   :  { %v1671_v56 = vadd.f32 %v2629_v23, %v2521_v13  ;;  %v2632_v33 = vadd.f32 %v2631_v59, %v2630_v6  ;;  %v2534_v6 = vunpack.c.h.bf16 %v2584_v11 }
 0x129   :  { %v3966_v0 = vadd.f32 %v2693_v31, %v1671_v56  ;;  %v1674_v8 = vadd.f32 %v2632_v33, %v2522_v34  ;;  %v2697_v44 = vpop.f32.mrb[16].mxu1 }
 0x12a   :  { %v2698_v53 = vpop.f32.mrb[17].mxu1 }
 0x12b   :  { %v3968_v50 = vadd.f32 %v2696_v55, %v1674_v8  ;;  %v2699_v26 = vadd.f32 %v2698_v53, %v2697_v44  ;;  %v2700_v14 = vpop.f32.mrb[18].mxu1 }
 0x12c   :  { %v2701_v15 = vpop.f32.mrb[19].mxu1 }
 0x12d   :  { %v2702_v48 = vadd.f32 %v2701_v15, %v2700_v14 }
 0x12e   :  { %v2633_v21 = vpop.f32.mrb[16].mxu0 }
 0x12f   :  { %v2634_v46 = vpop.f32.mrb[17].mxu0 }
 0x130   :  { %v2635_v32 = vadd.f32 %v2634_v46, %v2633_v21  ;;  %v2636_v35 = vpop.f32.mrb[18].mxu0 }
 0x131   :  { %v2637_v18 = vpop.f32.mrb[19].mxu0 }
 0x132   :  { %v1679_v30 = vadd.f32 %v2635_v32, %v2525_v63  ;;  %v2638_v22 = vadd.f32 %v2637_v18, %v2636_v35 }
 0x134   :  { %v3973_v54 = vadd.f32 %v2699_v26, %v1679_v30  ;;  %v1682_v57 = vadd.f32 %v2638_v22, %v2526_v9  ;;  %v2585_v26 = vld [vmem:[%s4066_s4 + $0x38] sm:$0xff]  }
 0x135   :  { %v2537_v46 = vunpack.c.l.bf16 %v2585_v26  ;;  %v2538_v18 = vunpack.c.h.bf16 %v2585_v26 }
 0x136   :  { %v3978_v25 = vadd.f32 %v2702_v48, %v1682_v57  ;;  %v2703_v60 = vpop.f32.mrb[20].mxu1 }
 0x137   :  { %v2639_v3 = vpop.f32.mrb[20].mxu0  ;;  %v2704_v10 = vpop.f32.mrb[21].mxu1 }
 0x138   :  { %v2640_v1 = vpop.f32.mrb[21].mxu0  ;;  %v2705_v58 = vadd.f32 %v2704_v10, %v2703_v60  ;;  %v2706_v7 = vpop.f32.mrb[22].mxu1 }
 0x139   :  { %v2641_v43 = vadd.f32 %v2640_v1, %v2639_v3  ;;  %v2642_v39 = vpop.f32.mrb[22].mxu0  ;;  %v2707_v42 = vpop.f32.mrb[23].mxu1 }
 0x13a   :  { %v2643_v47 = vpop.f32.mrb[23].mxu0  ;;  %v2708_v51 = vadd.f32 %v2707_v42, %v2706_v7 }
 0x13b   :  { %v1687_v2 = vadd.f32 %v2641_v43, %v2529_v62  ;;  %v2644_v28 = vadd.f32 %v2643_v47, %v2642_v39 }
 0x13d   :  { %v3980_v27 = vadd.f32 %v2705_v58, %v1687_v2  ;;  %v1690_v12 = vadd.f32 %v2644_v28, %v2530_v19 }
 0x13f   :  { %v3982_v16 = vadd.f32 %v2708_v51, %v1690_v12 }
 0x145   :  { %v2709_v4 = vpop.f32.mrb[24].mxu1 }
 0x146   :  { %v2710_v29 = vpop.f32.mrb[25].mxu1 }
 0x147   :  { %v2711_v41 = vadd.f32 %v2710_v29, %v2709_v4  ;;  %v2712_v31 = vpop.f32.mrb[26].mxu1 }
 0x148   :  { %v2713_v24 = vpop.f32.mrb[27].mxu1 }
 0x149   :  { %v2645_v49 = vpop.f32.mrb[24].mxu0  ;;  %v2714_v13 = vadd.f32 %v2713_v24, %v2712_v31 }
 0x14a   :  { %v2646_v55 = vpop.f32.mrb[25].mxu0 }
 0x14b   :  { %v2647_v40 = vadd.f32 %v2646_v55, %v2645_v49  ;;  %v2648_v23 = vpop.f32.mrb[26].mxu0 }
 0x14c   :  { %v2649_v34 = vpop.f32.mrb[27].mxu0 }
 0x14d   :  { %v1695_v59 = vadd.f32 %v2647_v40, %v2533_v37  ;;  %v2650_v56 = vadd.f32 %v2649_v34, %v2648_v23 }
 0x14f   :  { %v3987_v33 = vadd.f32 %v2711_v41, %v1695_v59  ;;  %v1698_v8 = vadd.f32 %v2650_v56, %v2534_v6 }
 0x151   :  { %v3989_v44 = vadd.f32 %v2714_v13, %v1698_v8 }
 0x153   :  { %v2715_v53 = vpop.f32.mrb[28].mxu1 }
 0x154   :  { %v2716_v61 = vpop.f32.mrb[29].mxu1 }
 0x155   :  { %v2717_v14 = vadd.f32 %v2716_v61, %v2715_v53  ;;  %v2718_v15 = vpop.f32.mrb[30].mxu1 }
 0x156   :  { %v2719_v48 = vpop.f32.mrb[31].mxu1 }
 0x157   :  { %v2720_v21 = vadd.f32 %v2719_v48, %v2718_v15 }
 0x158   :  { %v2651_v63 = vpop.f32.mrb[28].mxu0 }
 0x159   :  { %v2652_v32 = vpop.f32.mrb[29].mxu0 }
 0x15a   :  { %v2653_v35 = vadd.f32 %v2652_v32, %v2651_v63  ;;  %v2654_v9 = vpop.f32.mrb[30].mxu0 }
 0x15b   :  { %v2655_v30 = vpop.f32.mrb[31].mxu0  ;;  %v2801_v22 = vpop.f32.mrb[32].mxu1 }
 0x15c   :  { %v1703_v57 = vadd.f32 %v2653_v35, %v2537_v46  ;;  %v2656_v17 = vadd.f32 %v2655_v30, %v2654_v9  ;;  %v2802_v60 = vpop.f32.mrb[33].mxu1 }
 0x15d   :  { %v2803_v3 = vadd.f32 %v2802_v60, %v2801_v22  ;;  %v2804_v62 = vpop.f32.mrb[34].mxu1 }
 0x15e   :  { %v3994_v10 = vadd.f32 %v2717_v14, %v1703_v57  ;;  %v1706_v1 = vadd.f32 %v2656_v17, %v2538_v18  ;;  %v2805_v58 = vpop.f32.mrb[35].mxu1 }
 0x15f   :  { %v2806_v7 = vadd.f32 %v2805_v58, %v2804_v62 }
 0x160   :  { %v3996_v43 = vadd.f32 %v2720_v21, %v1706_v1  ;;  %v2737_v39 = vpop.f32.mrb[32].mxu0 }
 0x161   :  { %v2738_v19 = vpop.f32.mrb[33].mxu0 }
 0x162   :  { %v2739_v42 = vadd.f32 %v2738_v19, %v2737_v39  ;;  %v2740_v47 = vpop.f32.mrb[34].mxu0 }
 0x163   :  { %v2741_v51 = vpop.f32.mrb[35].mxu0  ;;  %v2807_v2 = vpop.f32.mrb[36].mxu1 }
 0x164   :  { %v1841_v28 = vadd.f32 %v2739_v42, %v3945_v52  ;;  %v2742_v12 = vadd.f32 %v2741_v51, %v2740_v47  ;;  %v2808_v4 = vpop.f32.mrb[37].mxu1 }
 0x165   :  { %v2809_v11 = vadd.f32 %v2808_v4, %v2807_v2  ;;  %v2810_v29 = vpop.f32.mrb[38].mxu1 }
 0x166   :  { %v1844_v41 = vadd.f32 %v2742_v12, %v3947_v38  ;;  %v2811_v31 = vpop.f32.mrb[39].mxu1  ;;  %v4000_v24 = vadd.f32 %v2803_v3, %v1841_v28 }
 0x167   :  { %v2812_v49 = vadd.f32 %v2811_v31, %v2810_v29 }
 0x168   :  { %v2743_v37 = vpop.f32.mrb[36].mxu0  ;;  %v4002_v13 = vadd.f32 %v2806_v7, %v1844_v41 }
 0x169   :  { %v2744_v55 = vpop.f32.mrb[37].mxu0 }
 0x16a   :  { %v2745_v40 = vadd.f32 %v2744_v55, %v2743_v37  ;;  %v2746_v23 = vpop.f32.mrb[38].mxu0 }
 0x16b   :  { %v2747_v6 = vpop.f32.mrb[39].mxu0  ;;  %v2813_v34 = vpop.f32.mrb[40].mxu1 }
 0x16c   :  { %v1849_v52 = vadd.f32 %v2745_v40, %v3952_v36  ;;  %v2748_v59 = vadd.f32 %v2747_v6, %v2746_v23  ;;  %v2814_v56 = vpop.f32.mrb[41].mxu1 }
 0x16d   :  { %v2815_v8 = vadd.f32 %v2814_v56, %v2813_v34  ;;  %v2816_v53 = vpop.f32.mrb[42].mxu1 }
 0x16e   :  { %v1852_v38 = vadd.f32 %v2748_v59, %v3954_v45  ;;  %v2817_v61 = vpop.f32.mrb[43].mxu1  ;;  %v4006_v26 = vadd.f32 %v2809_v11, %v1849_v52 }
 0x16f   :  { %v2818_v14 = vadd.f32 %v2817_v61, %v2816_v53 }
 0x170   :  { %v2749_v15 = vpop.f32.mrb[40].mxu0  ;;  %v4008_v48 = vadd.f32 %v2812_v49, %v1852_v38 }
 0x171   :  { %v2750_v21 = vpop.f32.mrb[41].mxu0 }
 0x172   :  { %v2751_v63 = vadd.f32 %v2750_v21, %v2749_v15  ;;  %v2752_v46 = vpop.f32.mrb[42].mxu0 }
 0x173   :  { %v2753_v32 = vpop.f32.mrb[43].mxu0  ;;  %v2819_v35 = vpop.f32.mrb[44].mxu1 }
 0x174   :  { %v1857_v36 = vadd.f32 %v2751_v63, %v3959_v20  ;;  %v2754_v9 = vadd.f32 %v2753_v32, %v2752_v46  ;;  %v2820_v18 = vpop.f32.mrb[45].mxu1 }
 0x175   :  { %v2821_v30 = vadd.f32 %v2820_v18, %v2819_v35  ;;  %v2822_v22 = vpop.f32.mrb[46].mxu1 }
 0x176   :  { %v1860_v45 = vadd.f32 %v2754_v9, %v3961_v5  ;;  %v2823_v57 = vpop.f32.mrb[47].mxu1  ;;  %v4012_v17 = vadd.f32 %v2815_v8, %v1857_v36 }
 0x177   :  { %v2824_v60 = vadd.f32 %v2823_v57, %v2822_v22 }
 0x178   :  { %v2755_v3 = vpop.f32.mrb[44].mxu0  ;;  %v4014_v62 = vadd.f32 %v2818_v14, %v1860_v45 }
 0x179   :  { %v2756_v1 = vpop.f32.mrb[45].mxu0 }
 0x17a   :  { %v2757_v58 = vadd.f32 %v2756_v1, %v2755_v3  ;;  %v2758_v7 = vpop.f32.mrb[46].mxu0 }
 0x17b   :  { %v2759_v39 = vpop.f32.mrb[47].mxu0  ;;  %v2825_v19 = vpop.f32.mrb[48].mxu1 }
 0x17c   :  { %v1865_v20 = vadd.f32 %v2757_v58, %v3966_v0  ;;  %v2760_v42 = vadd.f32 %v2759_v39, %v2758_v7  ;;  %v2826_v47 = vpop.f32.mrb[49].mxu1 }
 0x17d   :  { %v2827_v51 = vadd.f32 %v2826_v47, %v2825_v19  ;;  %v2828_v2 = vpop.f32.mrb[50].mxu1 }
 0x17e   :  { %v1868_v5 = vadd.f32 %v2760_v42, %v3968_v50  ;;  %v2829_v28 = vpop.f32.mrb[51].mxu1  ;;  %v4018_v12 = vadd.f32 %v2821_v30, %v1865_v20 }
 0x17f   :  { %v2830_v4 = vadd.f32 %v2829_v28, %v2828_v2 }
 0x180   :  { %v2761_v11 = vpop.f32.mrb[48].mxu0  ;;  %v4020_v29 = vadd.f32 %v2824_v60, %v1868_v5 }
 0x181   :  { %v2762_v41 = vpop.f32.mrb[49].mxu0 }
 0x182   :  { %v2763_v31 = vadd.f32 %v2762_v41, %v2761_v11  ;;  %v2764_v49 = vpop.f32.mrb[50].mxu0 }
 0x183   :  { %v2765_v37 = vpop.f32.mrb[51].mxu0  ;;  %v2831_v55 = vpop.f32.mrb[52].mxu1 }
 0x184   :  { %v1873_v0 = vadd.f32 %v2763_v31, %v3973_v54  ;;  %v2766_v40 = vadd.f32 %v2765_v37, %v2764_v49  ;;  %v2832_v23 = vpop.f32.mrb[53].mxu1 }
 0x185   :  { %v2833_v6 = vadd.f32 %v2832_v23, %v2831_v55  ;;  %v2834_v34 = vpop.f32.mrb[54].mxu1 }
 0x186   :  { %v1876_v50 = vadd.f32 %v2766_v40, %v3978_v25  ;;  %v2835_v52 = vpop.f32.mrb[55].mxu1  ;;  %v1970_v59 = vadd.f32 %v2827_v51, %v1873_v0 }
 0x187   :  { %v2836_v56 = vadd.f32 %v2835_v52, %v2834_v34 }
 0x188   :  { %v2767_v8 = vpop.f32.mrb[52].mxu0  ;;  %v1973_v53 = vadd.f32 %v2830_v4, %v1876_v50 }
 0x189   :  { %v2768_v38 = vpop.f32.mrb[53].mxu0 }
 0x18a   :  { %v2769_v61 = vadd.f32 %v2768_v38, %v2767_v8  ;;  %v2770_v14 = vpop.f32.mrb[54].mxu0 }
 0x18b   :  { %v2771_v15 = vpop.f32.mrb[55].mxu0  ;;  %v2837_v21 = vpop.f32.mrb[56].mxu1 }
 0x18c   :  { %v1881_v63 = vadd.f32 %v2769_v61, %v3980_v27  ;;  %v2772_v46 = vadd.f32 %v2771_v15, %v2770_v14  ;;  %v2838_v54 = vpop.f32.mrb[57].mxu1 }
 0x18d   :  { %v2839_v32 = vadd.f32 %v2838_v54, %v2837_v21  ;;  %v2840_v35 = vpop.f32.mrb[58].mxu1 }
 0x18e   :  { %v1884_v36 = vadd.f32 %v2772_v46, %v3982_v16  ;;  %v2841_v9 = vpop.f32.mrb[59].mxu1  ;;  %v1978_v25 = vadd.f32 %v2833_v6, %v1881_v63 }
 0x18f   :  { %v2842_v18 = vadd.f32 %v2841_v9, %v2840_v35 }
 0x190   :  { %v2773_v30 = vpop.f32.mrb[56].mxu0  ;;  %v1981_v22 = vadd.f32 %v2836_v56, %v1884_v36 }
 0x191   :  { %v2774_v45 = vpop.f32.mrb[57].mxu0 }
 0x192   :  { %v2775_v57 = vadd.f32 %v2774_v45, %v2773_v30  ;;  %v2776_v60 = vpop.f32.mrb[58].mxu0 }
 0x193   :  { %v2777_v3 = vpop.f32.mrb[59].mxu0  ;;  %v2843_v1 = vpop.f32.mrb[60].mxu1 }
 0x194   :  { %v1889_v58 = vadd.f32 %v2775_v57, %v3987_v33  ;;  %v2778_v7 = vadd.f32 %v2777_v3, %v2776_v60  ;;  %v2844_v27 = vpop.f32.mrb[61].mxu1 }
 0x195   :  { %v2845_v39 = vadd.f32 %v2844_v27, %v2843_v1  ;;  %v2846_v19 = vpop.f32.mrb[62].mxu1 }
 0x196   :  { %v1892_v20 = vadd.f32 %v2778_v7, %v3989_v44  ;;  %v2847_v42 = vpop.f32.mrb[63].mxu1  ;;  %v1986_v16 = vadd.f32 %v2839_v32, %v1889_v58 }
 0x197   :  { %v2848_v47 = vadd.f32 %v2847_v42, %v2846_v19 }
 0x198   :  { %v2779_v51 = vpop.f32.mrb[60].mxu0  ;;  %v1989_v2 = vadd.f32 %v2842_v18, %v1892_v20 }
 0x199   :  { %v2780_v5 = vpop.f32.mrb[61].mxu0 }
 0x19a   :  { %v2781_v28 = vadd.f32 %v2780_v5, %v2779_v51  ;;  %v2782_v4 = vpop.f32.mrb[62].mxu0 }
 0x19b   :  { %v2783_v11 = vpop.f32.mrb[63].mxu0  ;;  %v2891_v41 = vpop.f32.mrb[64].mxu1 }
 0x19c   :  { %v1897_v31 = vadd.f32 %v2781_v28, %v3994_v10  ;;  %v2784_v49 = vadd.f32 %v2783_v11, %v2782_v4  ;;  %v2075_v33 = vadd.f32 %v2891_v41, %v1978_v25  ;;  %v2066_v37 = vpop.f32.mrb[65].mxu1 }
 0x19d   :  { %v2067_v55 = vadd.f32 %v2066_v37, %v1970_v59  ;;  %v2892_v0 = vpop.f32.mrb[66].mxu1 }
 0x19e   :  { %v1900_v40 = vadd.f32 %v2784_v49, %v3996_v43  ;;  %v2078_v44 = vadd.f32 %v2892_v0, %v1981_v22  ;;  %v2069_v23 = vpop.f32.mrb[67].mxu1  ;;  %v1994_v6 = vadd.f32 %v2845_v39, %v1897_v31 }
 0x19f   :  { %v2070_v34 = vadd.f32 %v2069_v23, %v1973_v53 }
 0x1a0   :  { %v2883_v50 = vpop.f32.mrb[64].mxu0  ;;  %v2567_v52 = vpack.c.bf16 %v2078_v44, %v2075_v33  ;;  %v1997_v56 = vadd.f32 %v2848_v47, %v1900_v40 }
 0x1a1   :  { %v2043_v8 = vadd.f32 %v2883_v50, %v4006_v26  ;;  %v2034_v38 = vpop.f32.mrb[65].mxu0  ;;  %v2562_v61 = vpack.c.bf16 %v2070_v34, %v2067_v55 }
 0x1a2   :  { %v2035_v10 = vadd.f32 %v2034_v38, %v4000_v24  ;;  %v2884_v14 = vpop.f32.mrb[66].mxu0  ;;  %2590 = vst [vmem:[%s4067_s5 + $0x28] sm:$0xff] %v2567_v52  }
 0x1a3   :  { %v2046_v43 = vadd.f32 %v2884_v14, %v4008_v48  ;;  %v2037_v59 = vpop.f32.mrb[67].mxu0  ;;  %2589 = vst [vmem:[%s4067_s5 + $0x20] sm:$0xff] %v2562_v61   ;;  %v2895_v53 = vpop.f32.mrb[68].mxu1 }
 0x1a4   :  { %v2038_v15 = vadd.f32 %v2037_v59, %v4002_v13  ;;  %v2091_v26 = vadd.f32 %v2895_v53, %v1994_v6  ;;  %v2082_v21 = vpop.f32.mrb[69].mxu1 }
 0x1a5   :  { %v2547_v63 = vpack.c.bf16 %v2046_v43, %v2043_v8  ;;  %v2083_v46 = vadd.f32 %v2082_v21, %v1986_v16  ;;  %v2896_v24 = vpop.f32.mrb[70].mxu1 }
 0x1a6   :  { %v2542_v54 = vpack.c.bf16 %v2038_v15, %v2035_v10  ;;  %v2094_v32 = vadd.f32 %v2896_v24, %v1997_v56  ;;  %v2085_v35 = vpop.f32.mrb[71].mxu1 }
 0x1a7   :  { %2586 = vst [vmem:[%s4067_s5 + $0x8] sm:$0xff] %v2547_v63   ;;  %v2086_v48 = vadd.f32 %v2085_v35, %v1989_v2 }
 0x1a8   :  { %2543 = vst [vmem:[%s4067_s5] sm:$0xff] %v2542_v54   ;;  %v2887_v36 = vpop.f32.mrb[68].mxu0  ;;  %v2577_v9 = vpack.c.bf16 %v2094_v32, %v2091_v26 }
 0x1a9   :  { %v2059_v13 = vadd.f32 %v2887_v36, %v4018_v12  ;;  %v2050_v25 = vpop.f32.mrb[69].mxu0  ;;  %v2572_v18 = vpack.c.bf16 %v2086_v48, %v2083_v46 }
 0x1aa   :  { %v2051_v30 = vadd.f32 %v2050_v25, %v4012_v17  ;;  %v2888_v22 = vpop.f32.mrb[70].mxu0  ;;  %2592 = vst [vmem:[%s4067_s5 + $0x38] sm:$0xff] %v2577_v9  }
 0x1ab   :  { %v2062_v45 = vadd.f32 %v2888_v22, %v4020_v29  ;;  %v2053_v57 = vpop.f32.mrb[71].mxu0  ;;  %2591 = vst [vmem:[%s4067_s5 + $0x30] sm:$0xff] %v2572_v18  }
 0x1ac   :  { %v2054_v60 = vadd.f32 %v2053_v57, %v4014_v62 }
 0x1ad   :  { %v2557_v3 = vpack.c.bf16 %v2062_v45, %v2059_v13 }
 0x1ae   :  { %v2552_v12 = vpack.c.bf16 %v2054_v60, %v2051_v30 }
 0x1af   :  { %2588 = vst [vmem:[%s4067_s5 + $0x18] sm:$0xff] %v2557_v3  }
 0x1b0   :  { %2587 = vst [vmem:[%s4067_s5 + $0x10] sm:$0xff] %v2552_v12  }

// kernel: _lambda_.13
= control target key start
LH: loop header
LB: loop body
LE: loop exit
PB: predicated region body
PF: predicated region fallthrough
CT: control target
= control target key end

     0   :  { %v4218_v15 = vmov 0.0|0.0   ;;  %v318_v28 = vlaneseq  ;;  %vm473_vm0 = vsmask.f32 3328  ;;  %vm474_vm1 = vsmask.f32 7440  ;;  %s4210_s3 = inlined_call_operand.vmem [shape: bf16[1152,128], index: 3, kind: input, shape index: {}]   ;;  %s4211_s0 = inlined_call_operand.vmem [shape: bf16[2,1,10,10,128], index: 0, kind: input, shape index: {}]   ;;  %s4212_s1 = inlined_call_operand.vmem [shape: f32[1,128], index: 1, kind: input, shape index: {}]   ;;  %s4213_s2 = inlined_call_operand.vmem [shape: f32[1,128], index: 2, kind: input, shape index: {}]   ;;  %s4214_s4 = inlined_call_operand.vmem [shape: bf16[2,64,128], index: 4, kind: input, shape index: {}]   ;;  %s4215_s6 = inlined_call_operand.vmem [shape: f32[1,128], index: 6, kind: output, shape index: {1}]   ;;  %s4216_s7 = inlined_call_operand.vmem [shape: f32[1,128], index: 7, kind: output, shape index: {2}]   ;;  %s4217_s5 = inlined_call_operand.vmem [shape: bf16[2,64,128], index: 5, kind: output, shape index: {0}]  }
   0x1   :  { %v2996_v0 = vld [vmem:[%s4210_s3 + $0x40] sm:$0xff]   ;;  %v3000_v4 = vld [vmem:[%s4210_s3 + $0x48] sm:$0xff]   ;;  %v3004_v8 = vld [vmem:[%s4210_s3 + $0x50] sm:$0xff]   ;;  %v3159_v16 = vcombine.low %v4218_v15, %v4218_v15  ;;  %v3186_v26 = vcombine.high %v4218_v15, %v4218_v15  ;;  %vm700_vm2 = vcmask 1042432   ;;  %vm701_vm3 = vcmask 1046532  }
   0x2   :  { %v2997_v1 = vld [vmem:[%s4210_s3 + $0xc0] sm:$0xff]   ;;  %2674 = vmatprep.subr.bf16.mxu0 %v2996_v0  ;;  %v3001_v5 = vld [vmem:[%s4210_s3 + $0xc8] sm:$0xff]   ;;  %v3005_v9 = vld [vmem:[%s4210_s3 + $0xd0] sm:$0xff]   ;;  %v3204_v36 = vshrl.u32 %v318_v28, 7 }
   0x3   :  { %v2998_v2 = vld [vmem:[%s4210_s3] sm:$0xff]   ;;  %2738 = vmatprep.subr.bf16.mxu1 %v2997_v1  ;;  %v3002_v6 = vld [vmem:[%s4210_s3 + $0x8] sm:$0xff]   ;;  %v3006_v10 = vld [vmem:[%s4210_s3 + $0x10] sm:$0xff]   ;;  %v477_v21 = vshrl.u32 %v3159_v16, 16  ;;  %v480_v23 = vshll.u32 %v3159_v16, 16  ;;  %v486_v34 = vshll.u32 %v3186_v26, 16 }
   0x4   :  { %v2999_v3 = vld [vmem:[%s4210_s3 + $0x80] sm:$0xff]   ;;  %2675 = vmatpush3.bf16.msra.mxu0 %v2998_v2  ;;  %v3003_v7 = vld [vmem:[%s4210_s3 + $0x88] sm:$0xff]   ;;  %v3007_v11 = vld [vmem:[%s4210_s3 + $0x90] sm:$0xff]   ;;  %v3213_v40 = vadd.s32 8, %v3204_v36  ;;  %vm321_vm4 = vcmp.ge.s32.totalorder %v3204_v36, 1  ;;  %v2296_v61 = vrot.slane %v3159_v16, 9 }
   0x5   :  { %2739 = vmatpush3.bf16.msra.mxu1 %v2999_v3  ;;  %2676 = vmatprep.subr.bf16.mxu0 %v3000_v4  ;;  %v3008_v12 = vld [vmem:[%s4210_s3 + $0x58] sm:$0xff]   ;;  %v3012_v18 = vld [vmem:[%s4210_s3 + $0x60] sm:$0xff]   ;;  %v3016_v24 = vld [vmem:[%s4210_s3 + $0x68] sm:$0xff]   ;;  %v479_v29 = vrot.slane %v477_v21, 4  ;;  %v482_v31 = vrot.slane %v480_v23, 5  ;;  %v488_v42 = vrot.slane %v486_v34, 5 }
   0x6   :  { %2740 = vmatprep.subr.bf16.mxu1 %v3001_v5  ;;  %v3009_v13 = vld [vmem:[%s4210_s3 + $0xd8] sm:$0xff]   ;;  %v3013_v19 = vld [vmem:[%s4210_s3 + $0xe0] sm:$0xff]   ;;  %v3017_v25 = vld [vmem:[%s4210_s3 + $0xe8] sm:$0xff]   ;;  %vm328_vm5 = vcmp.lt.s32.totalorder %v3213_v40, 9  ;;  %v705_v62 = vrot.slane %v3186_v26, 5 }
   0x7   :  { %v3010_v14 = vld [vmem:[%s4210_s3 + $0x18] sm:$0xff]   ;;  %v3014_v20 = vld [vmem:[%s4210_s3 + $0x20] sm:$0xff]   ;;  %v3018_v27 = vld [vmem:[%s4210_s3 + $0x28] sm:$0xff]   ;;  %v483_v38 = vor.u32 %v482_v31, %v479_v29 }
   0x8   :  { %2677 = vmatpush3.bf16.msra.mxu0 %v3002_v6  ;;  %v3011_v17 = vld [vmem:[%s4210_s3 + $0x98] sm:$0xff]   ;;  %v3015_v22 = vld [vmem:[%s4210_s3 + $0xa0] sm:$0xff]   ;;  %v3019_v30 = vld [vmem:[%s4210_s3 + $0xa8] sm:$0xff]  }
   0x9   :  { %2741 = vmatpush3.bf16.msra.mxu1 %v3003_v7  ;;  %2678 = vmatprep.subr.bf16.mxu0 %v3004_v8  ;;  %v3020_v32 = vld [vmem:[%s4210_s3 + $0x70] sm:$0xff]   ;;  %v3024_v39 = vld [vmem:[%s4210_s3 + $0x78] sm:$0xff]   ;;  %v484_v45 = vrot.slane %v483_v38, 4  ;;  %v27_v47 = vld [vmem:[%s4211_s0 + $0xc] sm:$0x1] }
   0xa   :  { %2742 = vmatprep.subr.bf16.mxu1 %v3005_v9  ;;  %v3021_v33 = vld [vmem:[%s4210_s3 + $0xf0] sm:$0xff]   ;;  %v3025_v41 = vld [vmem:[%s4210_s3 + $0xf8] sm:$0xff]   ;;  %v3238_v49 = vld [vmem:[%s4212_s1] ss:$0 sm:$0xff]  ;;  %v69_v51 = vunpack.c.l.bf16 %v27_v47 }
   0xb   :  { %v3022_v35 = vld [vmem:[%s4210_s3 + $0x30] sm:$0xff]   ;;  %v3026_v43 = vld [vmem:[%s4210_s3 + $0x38] sm:$0xff]   ;;  %v3243_v54 = vld [vmem:[%s4213_s2] ss:$0 sm:$0xff] }
   0xc   :  { %2679 = vmatpush3.bf16.msra.mxu0 %v3006_v10  ;;  %v3023_v37 = vld [vmem:[%s4210_s3 + $0xb0] sm:$0xff]   ;;  %v3027_v44 = vld [vmem:[%s4210_s3 + $0xb8] sm:$0xff]   ;;  %v115_v56 = vmul.f32 %v3238_v49, %v69_v51  ;;  %vm3251_vm6 = vmor %vm473_vm0, %vm474_vm1 }
   0xd   :  { %2743 = vmatpush3.bf16.msra.mxu1 %v3007_v11  ;;  %2680 = vmatprep.subr.bf16.mxu0 %v3008_v12  ;;  %v26_v46 = vld [vmem:[%s4211_s0 + $0x8] ss:$8 sps:$4 sm:$0xff]   ;;  %v29_v48 = vld [vmem:[%s4211_s0 + $0x14] sm:$0x1]  ;;  %v3028_v60 = vld [vmem:[%s4210_s3 + $0x140] sm:$0xff]   ;;  %v3272_v5 = vsel %vm3251_vm6, %v484_v45, %v488_v42 }
   0xe   :  { %2744 = vmatprep.subr.bf16.mxu1 %v3009_v13  ;;  %v68_v50 = vunpack.c.l.bf16 %v26_v46  ;;  %v70_v52 = vunpack.c.h.bf16 %v26_v46  ;;  %v71_v53 = vunpack.c.l.bf16 %v29_v48  ;;  %v30_v63 = vld [vmem:[%s4211_s0 + $0x18] ss:$8 sps:$4 sm:$0xff]   ;;  %v161_v1 = vadd.f32 %v3243_v54, %v115_v56  ;;  %v31_v4 = vld [vmem:[%s4211_s0 + $0x1c] sm:$0x1]  ;;  %vm3276_vm7 = vmor %vm700_vm2, %vm701_vm3 }
   0xf   :  { %v72_v7 = vunpack.c.l.bf16 %v30_v63  ;;  %v73_v8 = vunpack.c.l.bf16 %v31_v4  ;;  %v74_v9 = vunpack.c.h.bf16 %v30_v63  ;;  %v3283_v16 = vsel %vm3276_vm7, %v2296_v61, %v705_v62  ;;  %vm3304_vm12 = vmpackc.low %vm321_vm4, %vm321_vm4  ;;  %v3063_v40 = vld [vmem:[%s4210_s3 + $0x218] sm:$0xff]  }
  0x10   :  { %2681 = vmatpush3.bf16.msra.mxu0 %v3010_v14  ;;  %v114_v55 = vmul.f32 %v3238_v49, %v68_v50  ;;  %v116_v57 = vmul.f32 %v3238_v49, %v70_v52  ;;  %v117_v58 = vmul.f32 %v3238_v49, %v71_v53  ;;  %vm201_vm9 = vcmp.ge.f32.partialorder %v161_v1, 0.0  ;;  %4236 = vst [vmem:[#allocation2_spill] sm:$0xff] %v3283_v16 }
  0x11   :  { %2745 = vmatpush3.bf16.msra.mxu1 %v3011_v17  ;;  %2682 = vmatprep.subr.bf16.mxu0 %v3012_v18  ;;  %v241_v11 = vmul.f32 0.1, %v161_v1  ;;  %v118_v13 = vmul.f32 %v3238_v49, %v72_v7  ;;  %v119_v17 = vmul.f32 %v3238_v49, %v73_v8  ;;  %v120_v18 = vmul.f32 %v3238_v49, %v74_v9  ;;  %v3037_v7 = vld [vmem:[%s4210_s3 + $0x1c8] sm:$0xff]   ;;  %v3029_v9 = vld [vmem:[%s4210_s3 + $0x100] sm:$0xff]  }
  0x12   :  { %2746 = vmatprep.subr.bf16.mxu1 %v3013_v19  ;;  %v160_v0 = vadd.f32 %v3243_v54, %v114_v55  ;;  %v162_v2 = vadd.f32 %v3243_v54, %v116_v57  ;;  %v163_v3 = vadd.f32 %v3243_v54, %v117_v58 }
  0x13   :  { %v166_v62 = vadd.f32 %v3243_v54, %v120_v18  ;;  %v3030_v18 = vld [vmem:[%s4210_s3 + $0x148] sm:$0xff]  }
  0x14   :  { %2683 = vmatpush3.bf16.msra.mxu0 %v3014_v20  ;;  %vm200_vm8 = vcmp.ge.f32.partialorder %v160_v0, 0.0  ;;  %vm202_vm10 = vcmp.ge.f32.partialorder %v162_v2, 0.0  ;;  %vm203_vm11 = vcmp.ge.f32.partialorder %v163_v3, 0.0  ;;  %v240_v10 = vmul.f32 0.1, %v160_v0 }
  0x15   :  { %2747 = vmatpush3.bf16.msra.mxu1 %v3015_v22  ;;  %2684 = vmatprep.subr.bf16.mxu0 %v3016_v24  ;;  %v242_v12 = vmul.f32 0.1, %v162_v2  ;;  %v243_v14 = vmul.f32 0.1, %v163_v3  ;;  %v281_v20 = vsel %vm201_vm9, %v161_v1, %v241_v11  ;;  %v164_v22 = vadd.f32 %v3243_v54, %v118_v13 }
  0x16   :  { %2748 = vmatprep.subr.bf16.mxu1 %v3017_v25  ;;  %v280_v19 = vsel %vm200_vm8, %v160_v0, %v240_v10  ;;  %v336_v25 = vsel %vm328_vm5, %v281_v20, 0.0  ;;  %v3035_v0 = vld [vmem:[%s4210_s3 + $0x180] sm:$0xff]   ;;  %vm206_vm15 = vcmp.ge.f32.partialorder %v166_v62, 0.0 }
  0x17   :  { %v282_v21 = vsel %vm202_vm10, %v162_v2, %v242_v12  ;;  %v283_v23 = vsel %vm203_vm11, %v163_v3, %v243_v14  ;;  %v335_v24 = vsel %vm321_vm4, %v280_v19, 0.0  ;;  %vm204_vm13 = vcmp.ge.f32.partialorder %v164_v22, 0.0 }
  0x18   :  { %2685 = vmatpush3.bf16.msra.mxu0 %v3018_v27  ;;  %v337_v26 = vsel %vm321_vm4, %v282_v21, 0.0  ;;  %v3033_v27 = vld [vmem:[%s4210_s3 + $0x1c0] sm:$0xff]   ;;  %v338_v28 = vsel %vm328_vm5, %v283_v23, 0.0  ;;  %v2466_v29 = vpack.c.bf16 %v335_v24, %v335_v24  ;;  %v2531_v34 = vpack.c.bf16 %v282_v21, %v280_v19 }
  0x19   :  { %2749 = vmatpush3.bf16.msra.mxu1 %v3019_v30  ;;  %2686 = vmatprep.subr.bf16.mxu0 %v3020_v32  ;;  %v2467_v30 = vpack.c.bf16 %v336_v25, %v336_v25  ;;  %v3299_v31 = vpack.c.bf16 %v337_v26, %v337_v26  ;;  %v244_v57 = vmul.f32 0.1, %v164_v22  ;;  %v33_v19 = vld [vmem:[%s4211_s0 + $0x24] sm:$0x1]  ;;  %v3039_v26 = vld [vmem:[%s4210_s3 + $0x188] sm:$0xff]  }
  0x1a   :  { %2750 = vmatprep.subr.bf16.mxu1 %v3021_v33  ;;  %v3308_v33 = vpack.c.bf16 %v338_v28, %v338_v28  ;;  %v491_v38 = vshrl.u32 %v2466_v29, 16  ;;  %2532 = vmatprep.mubr.msk.bf16.mxu1 %vm3304_vm12, %v2531_v34  ;;  %v2297_v46 = vrot.slane %v2466_v29, 9 }
  0x1b   :  { %v505_v42 = vshrl.u32 %v3299_v31, 16  ;;  %v709_v55 = vrot.slane %v2467_v30, 5  ;;  %v2298_v63 = vrot.slane %v3299_v31, 9  ;;  %v284_v3 = vsel %vm204_vm13, %v164_v22, %v244_v57 }
  0x1c   :  { %2687 = vmatpush3.bf16.msra.mxu0 %v3022_v35  ;;  %v374_v35 = vpack.c.bf16 %v336_v25, %v335_v24  ;;  %v493_v47 = vrot.slane %v491_v38, 4  ;;  %v339_v10 = vsel %vm321_vm4, %v284_v3, 0.0  ;;  %v3354_v23 = vpack.c.bf16 %v284_v3, %v282_v21  ;;  %v34_v25 = vld [vmem:[%s4211_s0 + $0x28] ss:$8 sps:$4 sm:$0xff]   ;;  %v35_v21 = vld [vmem:[%s4211_s0 + $0x2c] sm:$0x1] }
  0x1d   :  { %2751 = vmatpush3.bf16.msra.mxu1 %v3023_v37  ;;  %2688 = vmatprep.subr.bf16.mxu0 %v3024_v39  ;;  %v165_v37 = vadd.f32 %v3243_v54, %v119_v17  ;;  %v494_v39 = vshll.u32 %v2466_v29, 16  ;;  %v507_v51 = vrot.slane %v505_v42, 4  ;;  %v3319_v61 = vsel %vm3276_vm7, %v2297_v46, %v709_v55  ;;  %v3031_v38 = vld [vmem:[%s4210_s3 + $0x108] sm:$0xff]   ;;  %v3043_v55 = vld [vmem:[%s4210_s3 + $0x190] sm:$0xff]  }
  0x1e   :  { %2752 = vmatprep.subr.bf16.mxu1 %v3025_v41  ;;  %v500_v41 = vshll.u32 %v2467_v30, 16  ;;  %v2324_v45 = vcombine.low %v4218_v15, %v374_v35  ;;  %v2340_v2 = vcombine.low %v3283_v16, %v3319_v61  ;;  %v2470_v13 = vpack.c.bf16 %v339_v10, %v339_v10 }
  0x1f   :  { %v496_v48 = vrot.slane %v494_v39, 5  ;;  %vm205_vm14 = vcmp.ge.f32.partialorder %v165_v37, 0.0  ;;  %v245_v58 = vmul.f32 0.1, %v165_v37  ;;  %v246_v17 = vmul.f32 0.1, %v166_v62 }
  0x20   :  { %2689 = vmatpush3.bf16.msra.mxu0 %v3026_v43  ;;  %v508_v43 = vshll.u32 %v3299_v31, 16  ;;  %v502_v50 = vrot.slane %v500_v41, 5  ;;  %v713_v24 = vrot.slane %v3308_v33, 5  ;;  %v519_v28 = vshrl.u32 %v2470_v13, 16  ;;  %v3041_v31 = vld [vmem:[%s4210_s3 + $0x1d0] sm:$0xff]  }
  0x21   :  { %2753 = vmatpush3.bf16.msra.mxu1 %v3027_v44  ;;  %2802 = vmatprep.subr.bf16.mxu0 %v3028_v60  ;;  %v514_v44 = vshll.u32 %v3308_v33, 16  ;;  %v497_v56 = vor.u32 %v496_v48, %v493_v47  ;;  %v285_v4 = vsel %vm205_vm14, %v165_v37, %v245_v58  ;;  %v522_v29 = vshll.u32 %v2470_v13, 16 }
  0x22   :  { %2866 = vmatprep.subr.bf16.mxu1 %v3033_v27  ;;  %v510_v52 = vrot.slane %v508_v43, 5  ;;  %v340_v11 = vsel %vm328_vm5, %v285_v4, 0.0  ;;  %v3372_v33 = vsel %vm206_vm15, %v166_v62, %v246_v17  ;;  %v3376_v34 = vsel %vm3276_vm7, %v2298_v63, %v713_v24  ;;  %v3034_v62 = vld [vmem:[%s4210_s3 + $0x110] sm:$0xff]   ;;  %v3419_v4 = vld [vmem:[%s4211_s0 + $0x38] ss:$8 sps:$4 sm:$0xff]  }
  0x23   :  { %v516_v53 = vrot.slane %v514_v44, 5  ;;  %v498_v1 = vrot.slane %v497_v56, 4  ;;  %v2471_v14 = vpack.c.bf16 %v340_v11, %v340_v11  ;;  %v2299_v35 = vrot.slane %v2470_v13, 9  ;;  %v3032_v44 = vld [vmem:[%s4210_s3 + $0x150] sm:$0xff]   ;;  %v3426_v11 = vld [vmem:[%s4211_s0 + $0x3c] sm:$0x1] }
  0x24   :  { %v511_v60 = vor.u32 %v510_v52, %v507_v51  ;;  %1745 = vmatmul.mubr.bf16.vlgmr.msra.gmra.mrb[0].mxu1 %v2340_v2  ;;  %v521_v39 = vrot.slane %v519_v28, 4  ;;  %v524_v41 = vrot.slane %v522_v29, 5  ;;  %v341_v43 = vsel %vm321_vm4, %v3372_v33, 0.0  ;;  %v37_v63 = vld [vmem:[%s4211_s0 + $0x34] sm:$0x1]  ;;  %v3036_v13 = vld [vmem:[%s4210_s3 + $0x158] sm:$0xff]  }
  0x25   :  { %v3340_v12 = vsel %vm3251_vm6, %v498_v1, %v502_v50  ;;  %2867 = vmatpush3.bf16.msra.mxu1 %v3035_v0  ;;  %v528_v30 = vshll.u32 %v2471_v14, 16  ;;  %v717_v37 = vrot.slane %v2471_v14, 5  ;;  %v3387_v46 = vpack.c.bf16 %v341_v43, %v341_v43  ;;  %v3045_v14 = vld [vmem:[%s4210_s3 + $0x1d8] sm:$0xff]  }
  0x26   :  { %v512_v8 = vrot.slane %v511_v60, 4  ;;  %v2332_v22 = vcombine.low %v3272_v5, %v3340_v12  ;;  %2868 = vmatprep.subr.bf16.mxu1 %v3037_v7  ;;  %v2534_v47 = vpack.c.bf16 %v3372_v33, %v284_v3  ;;  %v525_v50 = vor.u32 %v524_v41, %v521_v39  ;;  %v3038_v28 = vld [vmem:[%s4210_s3 + $0x118] sm:$0xff]  }
  0x27   :  { %v530_v42 = vrot.slane %v528_v30, 5  ;;  %v3392_v48 = vsel %vm3276_vm7, %v2299_v35, %v717_v37  ;;  %v76_v52 = vunpack.c.l.bf16 %v34_v25  ;;  %v533_v57 = vshrl.u32 %v3387_v46, 16 }
  0x28   :  { %v3350_v20 = vsel %vm3251_vm6, %v512_v8, %v516_v53  ;;  %1647 = vmatprep.mubr.bf16.mxu0 %v2332_v22  ;;  %v3396_v51 = vcombine.low %v3376_v34, %v3392_v48  ;;  %v77_v53 = vunpack.c.l.bf16 %v35_v21  ;;  %2535 = vmatprep.mubr.msk.bf16.mxu1 %vm3304_vm12, %v2534_v47  ;;  %v536_v58 = vshll.u32 %v3387_v46, 16 }
  0x29   :  { %1648 = vmatmul.mubr.bf16.vlgmr.msra.gmra.mrb[0].mxu0 %v2324_v45  ;;  %v75_v45 = vunpack.c.l.bf16 %v33_v19  ;;  %2869 = vmatpush3.bf16.msra.mxu1 %v3039_v26  ;;  %v78_v60 = vunpack.c.h.bf16 %v34_v25  ;;  %v526_v0 = vrot.slane %v525_v50, 4  ;;  %v122_v1 = vmul.f32 %v3238_v49, %v76_v52  ;;  %v3042_v52 = vld [vmem:[%s4210_s3 + $0x120] sm:$0xff]  }
  0x2a   :  { %2803 = vmatpush3.bf16.msra.mxu0 %v3029_v9  ;;  %4239 = vst [vmem:[#allocation3_spill] sm:$0xff] %v3396_v51  ;;  %2870 = vmatprep.subr.bf16.mxu1 %v3041_v31  ;;  %v123_v2 = vmul.f32 %v3238_v49, %v77_v53  ;;  %v2300_v3 = vrot.slane %v3387_v46, 9  ;;  %v535_v8 = vrot.slane %v533_v57, 4  ;;  %v538_v9 = vrot.slane %v536_v58, 5  ;;  %v3049_v53 = vld [vmem:[%s4210_s3 + $0x1e0] sm:$0xff]  }
  0x2b   :  { %2804 = vmatprep.subr.bf16.mxu0 %v3030_v18  ;;  %v121_v56 = vmul.f32 %v3238_v49, %v75_v45  ;;  %v124_v10 = vmul.f32 %v3238_v49, %v78_v60  ;;  %v3436_v17 = vsel %vm3251_vm6, %v526_v0, %v530_v42  ;;  %v168_v18 = vadd.f32 %v3243_v54, %v122_v1  ;;  %v3051_v46 = vld [vmem:[%s4210_s3 + $0x1a0] sm:$0xff]  }
  0x2c   :  { %1753 = vmatmul.mubr.bf16.gmra.mrb[4].mxu1 %v3396_v51  ;;  %v169_v19 = vadd.f32 %v3243_v54, %v123_v2  ;;  %v79_v22 = vunpack.c.l.bf16 %v37_v63  ;;  %v3442_v24 = vcombine.low %v3350_v20, %v3436_v17  ;;  %v539_v26 = vor.u32 %v538_v9, %v535_v8 }
  0x2d   :  { %v167_v7 = vadd.f32 %v3243_v54, %v121_v56  ;;  %2871 = vmatpush3.bf16.msra.mxu1 %v3043_v55  ;;  %vm208_vm1 = vcmp.ge.f32.partialorder %v168_v18, 0.0  ;;  %v248_v29 = vmul.f32 0.1, %v168_v18  ;;  %v170_v35 = vadd.f32 %v3243_v54, %v124_v10 }
  0x2e   :  { %2805 = vmatpush3.bf16.msra.mxu0 %v3031_v38  ;;  %2872 = vmatprep.subr.bf16.mxu1 %v3045_v14  ;;  %vm209_vm2 = vcmp.ge.f32.partialorder %v169_v19, 0.0  ;;  %v249_v30 = vmul.f32 0.1, %v169_v19  ;;  %v540_v31 = vrot.slane %v539_v26, 4  ;;  %v80_v37 = vunpack.c.l.bf16 %v3419_v4  ;;  %v3047_v38 = vld [vmem:[%s4210_s3 + $0x198] sm:$0xff]   ;;  %v3046_v14 = vld [vmem:[%s4210_s3 + $0x128] sm:$0xff]  }
  0x2f   :  { %2806 = vmatprep.subr.bf16.mxu0 %v3032_v44  ;;  %vm207_vm0 = vcmp.ge.f32.partialorder %v167_v7, 0.0  ;;  %v247_v25 = vmul.f32 0.1, %v167_v7  ;;  %1655 = vmatprep.mubr.bf16.mxu0 %v3442_v24  ;;  %v288_v39 = vsel %vm208_vm1, %v168_v18, %v248_v29  ;;  %v81_v43 = vunpack.c.l.bf16 %v3426_v11  ;;  %v3040_v44 = vld [vmem:[%s4210_s3 + $0x160] sm:$0xff]   ;;  %v3048_v26 = vld [vmem:[%s4210_s3 + $0x170] sm:$0xff]  }
  0x30   :  { %v289_v41 = vsel %vm209_vm2, %v169_v19, %v249_v30  ;;  %v343_v47 = vsel %vm321_vm4, %v288_v39, 0.0  ;;  %vm210_vm3 = vcmp.ge.f32.partialorder %v170_v35, 0.0  ;;  %v250_v57 = vmul.f32 0.1, %v170_v35 }
  0x31   :  { %v287_v21 = vsel %vm207_vm0, %v167_v7, %v247_v25  ;;  %2514 = vmatmul.mubr.msk.bf16.gmra.mrb[4].mxu0 %vm3304_vm12, %v3354_v23  ;;  %v344_v45 = vsel %vm328_vm5, %v289_v41, 0.0  ;;  %2873 = vmatpush3.bf16.msra.mxu1 %v3047_v38  ;;  %v2474_v55 = vpack.c.bf16 %v343_v47, %v343_v47  ;;  %v3473_v58 = vpack.c.bf16 %v288_v39, %v3372_v33  ;;  %v3044_v33 = vld [vmem:[%s4210_s3 + $0x168] sm:$0xff]  }
  0x32   :  { %2807 = vmatpush3.bf16.msra.mxu0 %v3034_v62  ;;  %v342_v42 = vsel %vm328_vm5, %v287_v21, 0.0  ;;  %v2475_v56 = vpack.c.bf16 %v344_v45, %v344_v45  ;;  %v125_v63 = vmul.f32 %v3238_v49, %v79_v22  ;;  %v126_v0 = vmul.f32 %v3238_v49, %v80_v37  ;;  %2874 = vmatprep.subr.bf16.mxu1 %v3049_v53 }
  0x33   :  { %2808 = vmatprep.subr.bf16.mxu0 %v3036_v13  ;;  %v2473_v50 = vpack.c.bf16 %v342_v42, %v342_v42  ;;  %v547_v1 = vshrl.u32 %v2474_v55, 16  ;;  %v550_v2 = vshll.u32 %v2474_v55, 16  ;;  %v3478_v8 = vsel %vm210_vm3, %v170_v35, %v250_v57 }
  0x34   :  { %v556_v7 = vshll.u32 %v2475_v56, 16  ;;  %v345_v10 = vsel %vm321_vm4, %v3478_v8, 0.0  ;;  %v2537_v11 = vpack.c.bf16 %v3478_v8, %v288_v39  ;;  %v725_v29 = vrot.slane %v2475_v56, 5  ;;  %v3540_v56 = vld [vmem:[%s4211_s0 + $0x58] ss:$8 sps:$4 sm:$0xff]  }
  0x35   :  { %v542_v60 = vshll.u32 %v2473_v50, 16  ;;  %v721_v62 = vrot.slane %v2473_v50, 5  ;;  %v549_v18 = vrot.slane %v547_v1, 4  ;;  %v552_v19 = vrot.slane %v550_v2, 5  ;;  %2875 = vmatpush3.bf16.msra.mxu1 %v3051_v46  ;;  %v3050_v50 = vld [vmem:[%s4210_s3 + $0x130] sm:$0xff]  }
  0x36   :  { %2809 = vmatpush3.bf16.msra.mxu0 %v3038_v28  ;;  %v558_v22 = vrot.slane %v556_v7, 5  ;;  %v3496_v25 = vpack.c.bf16 %v345_v10, %v345_v10  ;;  %2538 = vmatprep.mubr.msk.bf16.mxu1 %vm3304_vm12, %v2537_v11  ;;  %v2301_v28 = vrot.slane %v2474_v55, 9  ;;  %v127_v30 = vmul.f32 %v3238_v49, %v81_v43  ;;  %v47_v46 = vld [vmem:[%s4211_s0 + $0x5c] sm:$0x1] }
  0x37   :  { %2810 = vmatprep.subr.bf16.mxu0 %v3040_v44  ;;  %v544_v9 = vrot.slane %v542_v60, 5  ;;  %v3491_v13 = vsel %vm3276_vm7, %v2300_v3, %v721_v62  ;;  %v553_v21 = vor.u32 %v552_v19, %v549_v18  ;;  %v171_v35 = vadd.f32 %v3243_v54, %v125_v63  ;;  %v3053_v44 = vld [vmem:[%s4210_s3 + $0x1a8] sm:$0xff]  }
  0x38   :  { %v172_v37 = vadd.f32 %v3243_v54, %v126_v0  ;;  %v561_v38 = vshrl.u32 %v3496_v25, 16  ;;  %v3519_v39 = vsel %vm3276_vm7, %v2301_v28, %v725_v29  ;;  %v173_v41 = vadd.f32 %v3243_v54, %v127_v30  ;;  %v3055_v0 = vld [vmem:[%s4210_s3 + $0x1f0] sm:$0xff]  }
  0x39   :  { %v3506_v3 = vsel %vm3251_vm6, %v540_v31, %v544_v9  ;;  %v3052_v31 = vld [vmem:[%s4210_s3 + $0x1e8] sm:$0xff]   ;;  %v564_v42 = vshll.u32 %v3496_v25, 16  ;;  %v82_v43 = vunpack.c.h.bf16 %v3419_v4  ;;  %v554_v47 = vrot.slane %v553_v21, 4  ;;  %v3054_v4 = vld [vmem:[%s4210_s3 + $0x178] sm:$0xff]   ;;  %v3057_v28 = vld [vmem:[%s4210_s3 + $0x1b0] sm:$0xff]  }
  0x3a   :  { %2811 = vmatpush3.bf16.msra.mxu0 %v3042_v52  ;;  %v3529_v45 = vcombine.low %v3491_v13, %v3519_v39  ;;  %vm211_vm8 = vcmp.ge.f32.partialorder %v171_v35, 0.0  ;;  %vm212_vm9 = vcmp.ge.f32.partialorder %v172_v37, 0.0  ;;  %2876 = vmatprep.subr.bf16.mxu1 %v3052_v31  ;;  %vm213_vm10 = vcmp.ge.f32.partialorder %v173_v41, 0.0  ;;  %v3056_v9 = vld [vmem:[%s4210_s3 + $0x138] sm:$0xff]  }
  0x3b   :  { %2812 = vmatprep.subr.bf16.mxu0 %v3044_v33  ;;  %v251_v52 = vmul.f32 0.1, %v171_v35  ;;  %v252_v53 = vmul.f32 0.1, %v172_v37  ;;  %v563_v55 = vrot.slane %v561_v38, 4  ;;  %v3544_v57 = vsel %vm3251_vm6, %v554_v47, %v558_v22  ;;  %2877 = vmatpush3.bf16.msra.mxu1 %v3053_v44 }
  0x3c   :  { %4240 = vst [vmem:[#allocation4_spill] sm:$0xff] %v3529_v45  ;;  %1761 = vmatmul.mubr.bf16.gmra.mrb[8].mxu1 %v3529_v45  ;;  %v253_v60 = vmul.f32 0.1, %v173_v41  ;;  %v566_v62 = vrot.slane %v564_v42, 5  ;;  %v128_v63 = vmul.f32 %v3238_v49, %v82_v43  ;;  %v3553_v1 = vcombine.low %v3506_v3, %v3544_v57  ;;  %2878 = vmatprep.subr.bf16.mxu1 %v3055_v0  ;;  %v49_v47 = vld [vmem:[%s4211_s0 + $0x64] sm:$0x1] }
  0x3d   :  { %v291_v2 = vsel %vm211_vm8, %v171_v35, %v251_v52  ;;  %v292_v7 = vsel %vm212_vm9, %v172_v37, %v252_v53  ;;  %v2302_v33 = vrot.slane %v3496_v25, 9  ;;  %v88_v21 = vunpack.c.l.bf16 %v3540_v56  ;;  %v3058_v35 = vld [vmem:[%s4210_s3 + $0x1f8] sm:$0xff]  }
  0x3e   :  { %2813 = vmatpush3.bf16.msra.mxu0 %v3046_v14  ;;  %v293_v10 = vsel %vm213_vm10, %v173_v41, %v253_v60  ;;  %v346_v11 = vsel %vm328_vm5, %v291_v2, 0.0  ;;  %v347_v14 = vsel %vm321_vm4, %v292_v7, 0.0  ;;  %v567_v18 = vor.u32 %v566_v62, %v563_v55  ;;  %1663 = vmatprep.mubr.bf16.mxu0 %v3553_v1  ;;  %v50_v60 = vld [vmem:[%s4211_s0 + $0x68] ss:$8 sps:$4 sm:$0xff]   ;;  %v51_v62 = vld [vmem:[%s4211_s0 + $0x6c] sm:$0x1] }
  0x3f   :  { %2814 = vmatprep.subr.bf16.mxu0 %v3048_v26  ;;  %v348_v19 = vsel %vm328_vm5, %v293_v10, 0.0  ;;  %v2477_v22 = vpack.c.bf16 %v346_v11, %v346_v11  ;;  %v2478_v25 = vpack.c.bf16 %v347_v14, %v347_v14  ;;  %v174_v26 = vadd.f32 %v3243_v54, %v128_v63  ;;  %2517 = vmatmul.mubr.msk.bf16.gmra.mrb[8].mxu0 %vm3304_vm12, %v3473_v58  ;;  %v3605_v10 = vld [vmem:[%s4210_s3 + $0x200] sm:$0xff]  }
  0x40   :  { %v2479_v29 = vpack.c.bf16 %v348_v19, %v348_v19  ;;  %v568_v30 = vrot.slane %v567_v18, 4  ;;  %2879 = vmatpush3.bf16.msra.mxu1 %v3057_v28  ;;  %v89_v2 = vunpack.c.l.bf16 %v47_v46  ;;  %v3609_v19 = vpack.c.bf16 %v292_v7, %v3478_v8 }
  0x41   :  { %v570_v37 = vshll.u32 %v2477_v22, 16  ;;  %v575_v38 = vshrl.u32 %v2478_v25, 16  ;;  %v578_v31 = vshll.u32 %v2478_v25, 16  ;;  %vm214_vm11 = vcmp.ge.f32.partialorder %v174_v26, 0.0  ;;  %2880 = vmatprep.subr.bf16.mxu1 %v3058_v35 }
  0x42   :  { %2815 = vmatpush3.bf16.msra.mxu0 %v3050_v50  ;;  %v584_v41 = vshll.u32 %v2479_v29, 16  ;;  %v254_v42 = vmul.f32 0.1, %v174_v26  ;;  %v729_v43 = vrot.slane %v2477_v22, 5  ;;  %v2303_v44 = vrot.slane %v2478_v25, 9  ;;  %v3059_v50 = vld [vmem:[%s4210_s3 + $0x1b8] sm:$0xff]  }
  0x43   :  { %2816 = vmatprep.subr.bf16.mxu0 %v3054_v4  ;;  %v572_v4 = vrot.slane %v570_v37, 5  ;;  %v577_v52 = vrot.slane %v575_v38, 4  ;;  %v580_v53 = vrot.slane %v578_v31, 5  ;;  %v733_v55 = vrot.slane %v2479_v29, 5  ;;  %v3642_v31 = vld [vmem:[%s4211_s0 + $0x74] sm:$0x1] }
  0x44   :  { %v3596_v63 = vsel %vm214_vm11, %v174_v26, %v254_v42  ;;  %v3600_v0 = vsel %vm3276_vm7, %v2302_v33, %v729_v43  ;;  %v586_v14 = vrot.slane %v584_v41, 5  ;;  %2881 = vmatpush3.bf16.msra.mxu1 %v3059_v50  ;;  %v134_v22 = vmul.f32 %v3238_v49, %v88_v21 }
  0x45   :  { %v581_v11 = vor.u32 %v580_v53, %v577_v52  ;;  %v2540_v18 = vpack.c.bf16 %v3596_v63, %v292_v7  ;;  %v3617_v33 = vsel %vm3276_vm7, %v2303_v44, %v733_v55  ;;  %v135_v25 = vmul.f32 %v3238_v49, %v89_v2  ;;  %2978 = vmatprep.subr.bf16.mxu1 %v3605_v10 }
  0x46   :  { %2817 = vmatpush3.bf16.msra.mxu0 %v3056_v9  ;;  %v3613_v9 = vsel %vm3251_vm6, %v568_v30, %v572_v4  ;;  %v3626_v8 = vcombine.low %v3600_v0, %v3617_v33  ;;  %v90_v7 = vunpack.c.h.bf16 %v3540_v56  ;;  %v91_v46 = vunpack.c.l.bf16 %v49_v47 }
  0x47   :  { %2946 = vmatprep.subr.bf16.mxu0 %v3605_v10  ;;  %v582_v26 = vrot.slane %v581_v11, 4  ;;  %2541 = vmatprep.mubr.msk.bf16.mxu1 %vm3304_vm12, %v2540_v18  ;;  %v180_v28 = vadd.f32 %v3243_v54, %v134_v22  ;;  %v181_v29 = vadd.f32 %v3243_v54, %v135_v25  ;;  %v92_v30 = vunpack.c.l.bf16 %v50_v60 }
  0x48   :  { %4241 = vst [vmem:[#allocation5_spill] sm:$0xff] %v3626_v8  ;;  %v93_v21 = vunpack.c.l.bf16 %v51_v62  ;;  %1769 = vmatmul.mubr.bf16.gmra.mrb[12].mxu1 %v3626_v8  ;;  %v136_v37 = vmul.f32 %v3238_v49, %v90_v7  ;;  %v137_v38 = vmul.f32 %v3238_v49, %v91_v46  ;;  %v94_v56 = vunpack.c.h.bf16 %v50_v60 }
  0x49   :  { %v3634_v35 = vsel %vm3251_vm6, %v582_v26, %v586_v14  ;;  %vm220_vm13 = vcmp.ge.f32.partialorder %v180_v28, 0.0  ;;  %vm221_vm14 = vcmp.ge.f32.partialorder %v181_v29, 0.0  ;;  %v260_v42 = vmul.f32 0.1, %v180_v28 }
  0x4a   :  { %4242 = vst [vmem:[#allocation6_spill] sm:$0xff] %v3634_v35  ;;  %v3646_v41 = vcombine.low %v3613_v9, %v3634_v35  ;;  %v261_v43 = vmul.f32 0.1, %v181_v29  ;;  %v182_v44 = vadd.f32 %v3243_v54, %v136_v37  ;;  %v138_v47 = vmul.f32 %v3238_v49, %v92_v30 }
  0x4b   :  { %v139_v50 = vmul.f32 %v3238_v49, %v93_v21  ;;  %v300_v4 = vsel %vm220_vm13, %v180_v28, %v260_v42  ;;  %v183_v52 = vadd.f32 %v3243_v54, %v137_v38  ;;  %v140_v53 = vmul.f32 %v3238_v49, %v94_v56 }
  0x4c   :  { %1671 = vmatprep.mubr.bf16.mxu0 %v3646_v41  ;;  %v95_v55 = vunpack.c.l.bf16 %v3642_v31  ;;  %v301_v60 = vsel %vm221_vm14, %v181_v29, %v261_v43  ;;  %v355_v62 = vsel %vm321_vm4, %v300_v4, 0.0  ;;  %vm222_vm15 = vcmp.ge.f32.partialorder %v182_v44, 0.0  ;;  %v57_v31 = vld [vmem:[%s4211_s0 + $0x84] sm:$0x1] }
  0x4d   :  { %2520 = vmatmul.mubr.msk.bf16.gmra.mrb[12].mxu0 %vm3304_vm12, %v3609_v19  ;;  %v262_v2 = vmul.f32 0.1, %v182_v44  ;;  %v356_v11 = vsel %vm328_vm5, %v301_v60, 0.0  ;;  %v2480_v14 = vpack.c.bf16 %v355_v62, %v355_v62  ;;  %v184_v18 = vadd.f32 %v3243_v54, %v138_v47 }
  0x4e   :  { %v185_v49 = vadd.f32 %v3243_v54, %v139_v50  ;;  %v2481_v22 = vpack.c.bf16 %v356_v11, %v356_v11  ;;  %v384_v26 = vpack.c.bf16 %v356_v11, %v355_v62  ;;  %vm223_vm0 = vcmp.ge.f32.partialorder %v183_v52, 0.0 }
  0x4f   :  { %v302_v25 = vsel %vm222_vm15, %v182_v44, %v262_v2  ;;  %v603_v7 = vshrl.u32 %v2480_v14, 16  ;;  %v606_v46 = vshll.u32 %v2480_v14, 16  ;;  %v2305_v38 = vrot.slane %v2480_v14, 9 }
  0x50   :  { %v357_v28 = vsel %vm321_vm4, %v302_v25, 0.0  ;;  %v2543_v29 = vpack.c.bf16 %v302_v25, %v300_v4  ;;  %v612_v30 = vshll.u32 %v2481_v22, 16  ;;  %v2328_v37 = vcombine.low %v4218_v15, %v384_v26 }
  0x51   :  { %v3666_v21 = vpack.c.bf16 %v357_v28, %v357_v28  ;;  %v605_v56 = vrot.slane %v603_v7, 4  ;;  %v608_v42 = vrot.slane %v606_v46, 5  ;;  %v741_v43 = vrot.slane %v2481_v22, 5 }
  0x52   :  { %2544 = vmatprep.mubr.msk.bf16.mxu1 %vm3304_vm12, %v2543_v29  ;;  %vm224_vm1 = vcmp.ge.f32.partialorder %v184_v18, 0.0  ;;  %v614_v44 = vrot.slane %v612_v30, 5  ;;  %vm225_vm2 = vcmp.ge.f32.partialorder %v185_v49, 0.0  ;;  %v263_v47 = vmul.f32 0.1, %v183_v52 }
  0x53   :  { %v264_v50 = vmul.f32 0.1, %v184_v18  ;;  %v609_v60 = vor.u32 %v608_v42, %v605_v56  ;;  %v3673_v4 = vsel %vm3276_vm7, %v2305_v38, %v741_v43  ;;  %v265_v62 = vmul.f32 0.1, %v185_v49 }
  0x54   :  { %v617_v2 = vshrl.u32 %v3666_v21, 16  ;;  %v2344_v11 = vcombine.low %v3283_v16, %v3673_v4  ;;  %v303_v14 = vsel %vm223_vm0, %v183_v52, %v263_v47  ;;  %v620_v22 = vshll.u32 %v3666_v21, 16 }
  0x55   :  { %v304_v26 = vsel %vm224_vm1, %v184_v18, %v264_v50  ;;  %v610_v7 = vrot.slane %v609_v60, 4  ;;  %v305_v46 = vsel %vm225_vm2, %v185_v49, %v265_v62  ;;  %v358_v28 = vsel %vm328_vm5, %v303_v14, 0.0 }
  0x56   :  { %v359_v29 = vsel %vm321_vm4, %v304_v26, 0.0  ;;  %1777 = vmatmul.mubr.bf16.gmra.mrb[16].mxu1 %v2344_v11  ;;  %v360_v30 = vsel %vm328_vm5, %v305_v46, 0.0  ;;  %v2483_v38 = vpack.c.bf16 %v358_v28, %v358_v28  ;;  %v619_v42 = vrot.slane %v617_v2, 4 }
  0x57   :  { %v2484_v56 = vpack.c.bf16 %v359_v29, %v359_v29  ;;  %v3688_v52 = vsel %vm3251_vm6, %v610_v7, %v614_v44  ;;  %v2485_v18 = vpack.c.bf16 %v360_v30, %v360_v30  ;;  %v622_v43 = vrot.slane %v620_v22, 5 }
  0x58   :  { %v186_v49 = vadd.f32 %v3243_v54, %v140_v53  ;;  %v2336_v47 = vcombine.low %v3272_v5, %v3688_v52  ;;  %v626_v50 = vshll.u32 %v2483_v38, 16  ;;  %v3693_v44 = vpack.c.bf16 %v304_v26, %v302_v25  ;;  %v54_v54 = vld [vmem:[%s4211_s0 + $0x78] ss:$8 sps:$4 sm:$0xff]  }
  0x59   :  { %v631_v60 = vshrl.u32 %v2484_v56, 16  ;;  %v634_v62 = vshll.u32 %v2484_v56, 16  ;;  %v623_v11 = vor.u32 %v622_v43, %v619_v42  ;;  %v640_v14 = vshll.u32 %v2485_v18, 16  ;;  %v55_v42 = vld [vmem:[%s4211_s0 + $0x7c] sm:$0x1] }
  0x5a   :  { %vm226_vm3 = vcmp.ge.f32.partialorder %v186_v49, 0.0  ;;  %v266_v46 = vmul.f32 0.1, %v186_v49  ;;  %1679 = vmatprep.mubr.bf16.mxu0 %v2336_v47  ;;  %v628_v2 = vrot.slane %v626_v50, 5  ;;  %4243 = vst [vmem:[#allocation7_spill] sm:$0xff] %v3693_v44  ;;  %v2306_v30 = vrot.slane %v3666_v21, 9 }
  0x5b   :  { %v633_v28 = vrot.slane %v631_v60, 4  ;;  %v636_v29 = vrot.slane %v634_v62, 5  ;;  %1680 = vmatmul.mubr.bf16.gmra.mrb[16].mxu0 %v2328_v37  ;;  %v624_v53 = vrot.slane %v623_v11, 4  ;;  %v642_v22 = vrot.slane %v640_v14, 5 }
  0x5c   :  { %v3698_v7 = vsel %vm226_vm3, %v186_v49, %v266_v46  ;;  %v745_v50 = vrot.slane %v2483_v38, 5  ;;  %v2307_v60 = vrot.slane %v2484_v56, 9  ;;  %v749_v21 = vrot.slane %v2485_v18, 5  ;;  %v3727_v38 = vld [vmem:[%s4212_s1] ss:$0 sm:$0xff] }
  0x5d   :  { %v637_v43 = vor.u32 %v636_v29, %v633_v28  ;;  %v361_v25 = vsel %vm321_vm4, %v3698_v7, 0.0  ;;  %v2546_v47 = vpack.c.bf16 %v3698_v7, %v304_v26  ;;  %v3710_v37 = vsel %vm3251_vm6, %v624_v53, %v628_v2 }
  0x5e   :  { %v3712_v49 = vpack.c.bf16 %v361_v25, %v361_v25  ;;  %v3718_v11 = vsel %vm3276_vm7, %v2306_v30, %v745_v50  ;;  %v96_v14 = vunpack.c.l.bf16 %v54_v54  ;;  %v97_v46 = vunpack.c.l.bf16 %v55_v42 }
  0x5f   :  { %v638_v62 = vrot.slane %v637_v43, 4  ;;  %2547 = vmatprep.mubr.msk.bf16.mxu1 %vm3304_vm12, %v2546_v47  ;;  %v3722_v26 = vsel %vm3276_vm7, %v2307_v60, %v749_v21  ;;  %v141_v56 = vmul.f32 %v3727_v38, %v95_v55  ;;  %v3760_v47 = vsel %vm321_vm4, %v3596_v63, 0.0 }
  0x60   :  { %v645_v18 = vshrl.u32 %v3712_v49, 16  ;;  %v648_v2 = vshll.u32 %v3712_v49, 16  ;;  %v3740_v29 = vcombine.low %v3718_v11, %v3722_v26  ;;  %v142_v53 = vmul.f32 %v3727_v38, %v96_v14 }
  0x61   :  { %v3736_v28 = vsel %vm3251_vm6, %v638_v62, %v642_v22  ;;  %v143_v30 = vmul.f32 %v3727_v38, %v97_v46  ;;  %v3754_v22 = vld [vmem:[%s4213_s2] ss:$0 sm:$0xff]  ;;  %v98_v21 = vunpack.c.h.bf16 %v54_v54  ;;  %v3769_v46 = vld [vmem:[%s4211_s0 + $0x88] ss:$8 sps:$4 sm:$0xff]   ;;  %v2358_v59 = vcombine.low %v3544_v57, %v3613_v9  ;;  %v3067_v57 = vld [vmem:[%s4210_s3 + $0x238] sm:$0xff]  }
  0x62   :  { %4244 = vst [vmem:[#allocation8_spill] sm:$0xff] %v3740_v29  ;;  %v3749_v55 = vcombine.low %v3710_v37, %v3736_v28  ;;  %v187_v42 = vadd.f32 %v3754_v22, %v141_v56  ;;  %v647_v43 = vrot.slane %v645_v18, 4  ;;  %v650_v25 = vrot.slane %v648_v2, 5  ;;  %1785 = vmatmul.mubr.bf16.gmra.mrb[20].mxu1 %v3740_v29 }
  0x63   :  { %v188_v50 = vadd.f32 %v3754_v22, %v142_v53  ;;  %v189_v60 = vadd.f32 %v3754_v22, %v143_v30  ;;  %v99_v56 = vunpack.c.l.bf16 %v57_v31  ;;  %v144_v53 = vmul.f32 %v3727_v38, %v98_v21 }
  0x64   :  { %4245 = vst [vmem:[#allocation9_spill] sm:$0xff] %v3749_v55  ;;  %1687 = vmatprep.mubr.bf16.mxu0 %v3749_v55  ;;  %vm227_vm8 = vcmp.ge.f32.partialorder %v187_v42, 0.0  ;;  %v267_v62 = vmul.f32 0.1, %v187_v42  ;;  %v651_v14 = vor.u32 %v650_v25, %v647_v43  ;;  %v2308_v30 = vrot.slane %v3712_v49, 9 }
  0x65   :  { %2523 = vmatmul.mubr.msk.bf16.gmra.mrb[20].mxu0 %vm3304_vm12, %v3693_v44  ;;  %vm228_vm9 = vcmp.ge.f32.partialorder %v188_v50, 0.0  ;;  %vm229_vm10 = vcmp.ge.f32.partialorder %v189_v60, 0.0  ;;  %v268_v63 = vmul.f32 0.1, %v188_v50  ;;  %v269_v18 = vmul.f32 0.1, %v189_v60 }
  0x66   :  { %v307_v54 = vsel %vm227_vm8, %v187_v42, %v267_v62  ;;  %v652_v2 = vrot.slane %v651_v14, 4  ;;  %v59_v43 = vld [vmem:[%s4211_s0 + $0x8c] sm:$0x1]  ;;  %v100_v27 = vunpack.c.l.bf16 %v3769_v46  ;;  %v190_v49 = vadd.f32 %v3754_v22, %v144_v53 }
  0x67   :  { %v308_v25 = vsel %vm228_vm9, %v188_v50, %v268_v63  ;;  %v309_v31 = vsel %vm229_vm10, %v189_v60, %v269_v18  ;;  %v362_v15 = vsel %vm328_vm5, %v307_v54, 0.0  ;;  %v101_v45 = vunpack.c.l.bf16 %v59_v43 }
  0x68   :  { %v363_v8 = vsel %vm321_vm4, %v308_v25, 0.0  ;;  %v364_v42 = vsel %vm328_vm5, %v309_v31, 0.0  ;;  %v2487_v21 = vpack.c.bf16 %v362_v15, %v362_v15  ;;  %v145_v50 = vmul.f32 %v3727_v38, %v99_v56 }
  0x69   :  { %v2488_v62 = vpack.c.bf16 %v363_v8, %v363_v8  ;;  %v2489_v14 = vpack.c.bf16 %v364_v42, %v364_v42  ;;  %vm230_vm11 = vcmp.ge.f32.partialorder %v190_v49, 0.0  ;;  %v270_v63 = vmul.f32 0.1, %v190_v49  ;;  %v4259_v6 = vld [vmem:[#allocation8_spill] sm:$0xff] }
  0x6a   :  { %v654_v60 = vshll.u32 %v2487_v21, 16  ;;  %v753_v18 = vrot.slane %v2487_v21, 5  ;;  %v3798_v31 = vpack.c.bf16 %v308_v25, %v3698_v7 }
  0x6b   :  { %v659_v54 = vshrl.u32 %v2488_v62, 16  ;;  %v662_v16 = vshll.u32 %v2488_v62, 16  ;;  %v668_v51 = vshll.u32 %v2489_v14, 16  ;;  %v2309_v29 = vrot.slane %v2488_v62, 9 }
  0x6c   :  { %v656_v44 = vrot.slane %v654_v60, 5  ;;  %v3788_v55 = vsel %vm230_vm11, %v190_v49, %v270_v63  ;;  %v3792_v15 = vsel %vm3276_vm7, %v2308_v30, %v753_v18  ;;  %v757_v8 = vrot.slane %v2489_v14, 5  ;;  %4246 = vst [vmem:[#allocation10_spill] sm:$0xff] %v3798_v31 }
  0x6d   :  { %v661_v53 = vrot.slane %v659_v54, 4  ;;  %v664_v43 = vrot.slane %v662_v16, 5  ;;  %v365_v56 = vsel %vm321_vm4, %v3788_v55, 0.0  ;;  %v670_v42 = vrot.slane %v668_v51, 5 }
  0x6e   :  { %v2490_v21 = vpack.c.bf16 %v365_v56, %v365_v56  ;;  %v2549_v62 = vpack.c.bf16 %v3788_v55, %v308_v25  ;;  %v3803_v49 = vsel %vm3276_vm7, %v2309_v29, %v757_v8  ;;  %v146_v16 = vmul.f32 %v3727_v38, %v100_v27 }
  0x6f   :  { %v665_v30 = vor.u32 %v664_v43, %v661_v53  ;;  %v3807_v14 = vcombine.low %v3792_v15, %v3803_v49  ;;  %v147_v60 = vmul.f32 %v3727_v38, %v101_v45  ;;  %v3813_v7 = vsel %vm3251_vm6, %v652_v2, %v656_v44 }
  0x70   :  { %2550 = vmatprep.mubr.msk.bf16.mxu1 %vm3304_vm12, %v2549_v62  ;;  %v191_v51 = vadd.f32 %v3754_v22, %v145_v50  ;;  %v673_v29 = vshrl.u32 %v2490_v21, 16  ;;  %v676_v25 = vshll.u32 %v2490_v21, 16  ;;  %v192_v18 = vadd.f32 %v3754_v22, %v146_v16 }
  0x71   :  { %4247 = vst [vmem:[#allocation11_spill] sm:$0xff] %v3807_v14  ;;  %v666_v63 = vrot.slane %v665_v30, 4  ;;  %1793 = vmatmul.mubr.bf16.gmra.mrb[24].mxu1 %v3807_v14  ;;  %v193_v27 = vadd.f32 %v3754_v22, %v147_v60  ;;  %v102_v45 = vunpack.c.h.bf16 %v3769_v46 }
  0x72   :  { %vm231_vm13 = vcmp.ge.f32.partialorder %v191_v51, 0.0  ;;  %v271_v54 = vmul.f32 0.1, %v191_v51  ;;  %v675_v44 = vrot.slane %v673_v29, 4  ;;  %v678_v2 = vrot.slane %v676_v25, 5 }
  0x73   :  { %v3824_v8 = vsel %vm3251_vm6, %v666_v63, %v670_v42  ;;  %vm232_vm14 = vcmp.ge.f32.partialorder %v192_v18, 0.0  ;;  %vm233_vm15 = vcmp.ge.f32.partialorder %v193_v27, 0.0  ;;  %v272_v50 = vmul.f32 0.1, %v192_v18 }
  0x74   :  { %v3828_v53 = vcombine.low %v3813_v7, %v3824_v8  ;;  %v273_v43 = vmul.f32 0.1, %v193_v27  ;;  %v311_v56 = vsel %vm231_vm13, %v191_v51, %v271_v54  ;;  %v679_v62 = vor.u32 %v678_v2, %v675_v44 }
  0x75   :  { %v312_v30 = vsel %vm232_vm14, %v192_v18, %v272_v50  ;;  %v366_v46 = vsel %vm328_vm5, %v311_v56, 0.0  ;;  %v148_v16 = vmul.f32 %v3727_v38, %v102_v45  ;;  %v2310_v25 = vrot.slane %v2490_v21, 9 }
  0x76   :  { %4248 = vst [vmem:[#allocation12_spill] sm:$0xff] %v3828_v53  ;;  %1695 = vmatprep.mubr.bf16.mxu0 %v3828_v53  ;;  %v313_v42 = vsel %vm233_vm15, %v193_v27, %v273_v43  ;;  %v367_v60 = vsel %vm321_vm4, %v312_v30, 0.0  ;;  %v2491_v29 = vpack.c.bf16 %v366_v46, %v366_v46  ;;  %v3838_v63 = vpack.c.bf16 %v3760_v47, %v3760_v47 }
  0x77   :  { %2526 = vmatmul.mubr.msk.bf16.gmra.mrb[24].mxu0 %vm3304_vm12, %v3798_v31  ;;  %v368_v51 = vsel %vm328_vm5, %v313_v42, 0.0  ;;  %v2492_v18 = vpack.c.bf16 %v367_v60, %v367_v60  ;;  %v194_v45 = vadd.f32 %v3754_v22, %v148_v16  ;;  %v680_v54 = vrot.slane %v679_v62, 4  ;;  %v41_v62 = vld [vmem:[%s4211_s0 + $0x44] sm:$0x1] }
  0x78   :  { %v2493_v27 = vpack.c.bf16 %v368_v51, %v368_v51  ;;  %v682_v44 = vshll.u32 %v2491_v29, 16  ;;  %v761_v2 = vrot.slane %v2491_v29, 5  ;;  %v3870_v36 = vpack.c.bf16 %v312_v30, %v3788_v55  ;;  %v4261_v32 = vld [vmem:[#allocation11_spill] sm:$0xff] }
  0x79   :  { %v687_v50 = vshrl.u32 %v2492_v18, 16  ;;  %v690_v21 = vshll.u32 %v2492_v18, 16  ;;  %vm234_vm0 = vcmp.ge.f32.partialorder %v194_v45, 0.0  ;;  %v274_v43 = vmul.f32 0.1, %v194_v45 }
  0x7a   :  { %v684_v56 = vrot.slane %v682_v44, 5  ;;  %v696_v46 = vshll.u32 %v2493_v27, 16  ;;  %v3848_v14 = vsel %vm3276_vm7, %v2310_v25, %v761_v2  ;;  %v2311_v31 = vrot.slane %v2492_v18, 9 }
  0x7b   :  { %v689_v53 = vrot.slane %v687_v50, 4  ;;  %v692_v42 = vrot.slane %v690_v21, 5  ;;  %v314_v60 = vsel %vm234_vm0, %v194_v45, %v274_v43  ;;  %v765_v35 = vrot.slane %v2493_v27, 5  ;;  %v61_v50 = vld [vmem:[%s4211_s0 + $0x94] sm:$0x1] }
  0x7c   :  { %v3855_v16 = vsel %vm321_vm4, %v314_v60, 0.0  ;;  %v2552_v29 = vpack.c.bf16 %v314_v60, %v312_v30  ;;  %v698_v44 = vrot.slane %v696_v46, 5  ;;  %v2364_v18 = vcombine.low %v3319_v61, %v3376_v34 }
  0x7d   :  { %v693_v51 = vor.u32 %v692_v42, %v689_v53  ;;  %v3859_v25 = vsel %vm3276_vm7, %v2311_v31, %v765_v35  ;;  %v3865_v45 = vsel %vm3251_vm6, %v680_v54, %v684_v56  ;;  %v83_v27 = vunpack.c.l.bf16 %v41_v62 }
  0x7e   :  { %2553 = vmatprep.mubr.msk.bf16.mxu1 %vm3304_vm12, %v2552_v29  ;;  %v3874_v53 = vcombine.low %v3848_v14, %v3859_v25  ;;  %v3878_v31 = vpack.c.bf16 %v3855_v16, %v3855_v16  ;;  %v778_v61 = vshrl.u32 %v3838_v63, 16  ;;  %v781_v34 = vshll.u32 %v3838_v63, 16 }
  0x7f   :  { %v694_v35 = vrot.slane %v693_v51, 4  ;;  %v129_v54 = vmul.f32 %v3727_v38, %v83_v27  ;;  %v2368_v55 = vcombine.low %v3673_v4, %v3718_v11  ;;  %v2360_v30 = vcombine.low %v3688_v52, %v3710_v37 }
  0x80   :  { %1801 = vmatmul.mubr.bf16.gmra.mrb[28].mxu1 %v3874_v53  ;;  %v2369_v2 = vcombine.low %v3722_v26, %v3792_v15  ;;  %v780_v43 = vrot.slane %v778_v61, 4  ;;  %v783_v56 = vrot.slane %v781_v34, 5  ;;  %v103_v51 = vunpack.c.l.bf16 %v61_v50  ;;  %v3061_v61 = vld [vmem:[%s4210_s3 + $0x208] sm:$0xff]  }
  0x81   :  { %v3895_v21 = vsel %vm3251_vm6, %v694_v35, %v698_v44  ;;  %1938 = vmatprep.mubr.bf16.mxu1 %v3442_v24  ;;  %v175_v60 = vadd.f32 %v3754_v22, %v129_v54  ;;  %v792_v24 = vshrl.u32 %v3878_v31, 16  ;;  %v795_v27 = vshll.u32 %v3878_v31, 16 }
  0x82   :  { %v3902_v42 = vcombine.low %v3865_v45, %v3895_v21  ;;  %v149_v35 = vmul.f32 %v3727_v38, %v103_v51  ;;  %v784_v54 = vor.u32 %v783_v56, %v780_v43  ;;  %v2365_v56 = vcombine.low %v3392_v48, %v3491_v13 }
  0x83   :  { %vm215_vm4 = vcmp.ge.f32.partialorder %v175_v60, 0.0  ;;  %v255_v44 = vmul.f32 0.1, %v175_v60  ;;  %v794_v62 = vrot.slane %v792_v24, 4  ;;  %v797_v46 = vrot.slane %v795_v27, 5 }
  0x84   :  { %1703 = vmatprep.mubr.bf16.mxu0 %v3902_v42  ;;  %v195_v29 = vadd.f32 %v3754_v22, %v149_v35  ;;  %v785_v51 = vrot.slane %v784_v54, 4  ;;  %v4249_v48 = vcombine.low %v3340_v12, %v3350_v20  ;;  %v2357_v20 = vcombine.low %v3436_v17, %v3506_v3  ;;  %v3064_v35 = vld [vmem:[%s4210_s3 + $0x220] sm:$0xff]   ;;  %v3065_v3 = vld [vmem:[%s4210_s3 + $0x228] sm:$0xff]   ;;  %v4254_v54 = vld [vmem:[#allocation12_spill] sm:$0xff] }
  0x85   :  { %2529 = vmatmul.mubr.msk.bf16.gmra.mrb[28].mxu0 %vm3304_vm12, %v3870_v36  ;;  %v295_v34 = vsel %vm215_vm4, %v175_v60, %v255_v44  ;;  %v798_v44 = vor.u32 %v797_v46, %v794_v62  ;;  %v2317_v4 = vrot.slane %v3878_v31, 9  ;;  %v4257_v37 = vcombine.low %v3803_v49, %v3848_v14  ;;  %v4260_v49 = vld [vmem:[#allocation3_spill] sm:$0xff]  ;;  %v4262_v14 = vld [vmem:[#allocation2_spill] sm:$0xff] }
  0x86   :  { %1841 = vmatprep.mubr.bf16.mxu0 %v2364_v18  ;;  %v3921_v50 = vsel %vm328_vm5, %v295_v34, 0.0  ;;  %v2316_v18 = vrot.slane %v3838_v63, 9  ;;  %vm235_vm1 = vcmp.ge.f32.partialorder %v195_v29, 0.0  ;;  %v275_v22 = vmul.f32 0.1, %v195_v29  ;;  %v3062_v63 = vld [vmem:[%s4210_s3 + $0x210] sm:$0xff]  }
  0x87   :  { %v2495_v38 = vpack.c.bf16 %v3921_v50, %v3921_v50  ;;  %v381_v43 = vpack.c.bf16 %v3921_v50, %v3760_v47  ;;  %v799_v62 = vrot.slane %v798_v44, 4  ;;  %v4255_v50 = vld [vmem:[#allocation10_spill] sm:$0xff] }
  0x88   :  { %2556 = vmatmul.mubr.msk.bf16.vlgmr.msra.gmra.mrb[32].mxu1 %vm3304_vm12, %v3354_v23  ;;  %v315_v24 = vsel %vm235_vm1, %v195_v29, %v275_v22  ;;  %v2366_v29 = vcombine.low %v3519_v39, %v3600_v0  ;;  %v3066_v0 = vld [vmem:[%s4210_s3 + $0x230] sm:$0xff]   ;;  %v2589_v31 = vld [vmem:[%s4214_s4] sm:$0xff]  }
  0x89   :  { %1946 = vmatprep.mubr.bf16.mxu1 %v3553_v1  ;;  %2986 = vmatpush3.bf16.msra.mxu1 %v3605_v10  ;;  %v807_v60 = vrot.slane %v2495_v38, 5  ;;  %v787_v23 = vshll.u32 %v2495_v38, 16  ;;  %v3945_v27 = vsel %vm328_vm5, %v315_v24, 0.0 }
  0x8a   :  { %2979 = vmatprep.subr.bf16.mxu1 %v3061_v61  ;;  %v3952_v13 = vpack.c.bf16 %v3945_v27, %v3945_v27  ;;  %v391_v15 = vpack.c.bf16 %v3945_v27, %v3855_v16 }
  0x8b   :  { %v3941_v1 = vsel %vm3276_vm7, %v2316_v18, %v807_v60  ;;  %v789_v47 = vrot.slane %v787_v23, 5  ;;  %v2590_v18 = vunpack.c.l.bf16 %v2589_v31 }
  0x8c   :  { %v801_v12 = vshll.u32 %v3952_v13, 16  ;;  %v2367_v39 = vcombine.low %v3617_v33, %v3941_v1  ;;  %v4252_v33 = vld [vmem:[#allocation9_spill] sm:$0xff]  ;;  %v811_v11 = vrot.slane %v3952_v13, 5 }
  0x8d   :  { %1842 = vmatmul.mubr.bf16.vlgmr.msra.gmra.mrb[32].mxu0 %v4249_v48  ;;  %2987 = vmatpush3.bf16.msra.mxu1 %v3061_v61  ;;  %v790_v46 = vsel %vm3251_vm6, %v785_v51, %v789_v47  ;;  %v2591_v51 = vunpack.c.h.bf16 %v2589_v31 }
  0x8e   :  { %2947 = vmatpush3.bf16.msra.mxu0 %v3605_v10  ;;  %1849 = vmatprep.mubr.bf16.mxu0 %v2365_v56  ;;  %v803_v10 = vrot.slane %v801_v12, 5  ;;  %v2374_v17 = vcombine.low %v790_v46, %v3272_v5  ;;  %v812_v26 = vsel %vm3276_vm7, %v2317_v4, %v811_v11 }
  0x8f   :  { %2948 = vmatprep.subr.bf16.mxu0 %v3061_v61  ;;  %2980 = vmatprep.subr.bf16.mxu1 %v3062_v63  ;;  %v2377_v16 = vcombine.low %v812_v26, %v4262_v14 }
  0x90   :  { %2559 = vmatmul.mubr.msk.bf16.gmra.mrb[36].mxu1 %vm3304_vm12, %v3473_v58  ;;  %v804_v58 = vsel %vm3251_vm6, %v799_v62, %v803_v10 }
  0x91   :  { %1954 = vmatprep.mubr.bf16.mxu1 %v3646_v41  ;;  %2988 = vmatpush3.bf16.msra.mxu1 %v3062_v63  ;;  %v2363_v34 = vcombine.low %v3895_v21, %v804_v58  ;;  %v4250_v41 = vmov 0.0|0.0   ;;  %v2375_v52 = vcombine.low %v804_v58, %v3272_v5  ;;  %v4258_v5 = vcombine.low %v3824_v8, %v3865_v45 }
  0x92   :  { %2949 = vmatpush3.bf16.msra.mxu0 %v3061_v61  ;;  %2981 = vmatprep.subr.bf16.mxu1 %v3063_v40  ;;  %v2372_v21 = vcombine.low %v381_v43, %v4250_v41  ;;  %v4253_v61 = vld [vmem:[#allocation7_spill] sm:$0xff]  ;;  %v2376_v8 = vcombine.low %v3941_v1, %v4262_v14 }
  0x93   :  { %2950 = vmatprep.subr.bf16.mxu0 %v3062_v63 }
  0x95   :  { %1850 = vmatmul.mubr.bf16.gmra.mrb[36].mxu0 %v2357_v20  ;;  %2989 = vmatpush3.bf16.msra.mxu1 %v3063_v40 }
  0x96   :  { %1857 = vmatprep.mubr.bf16.mxu0 %v2366_v29  ;;  %2951 = vmatpush3.bf16.msra.mxu0 %v3062_v63 }
  0x97   :  { %2952 = vmatprep.subr.bf16.mxu0 %v3063_v40  ;;  %2982 = vmatprep.subr.bf16.mxu1 %v3064_v35 }
  0x98   :  { %2562 = vmatmul.mubr.msk.bf16.gmra.mrb[40].mxu1 %vm3304_vm12, %v3609_v19  ;;  %v4251_v19 = vld [vmem:[#allocation6_spill] sm:$0xff] }
  0x99   :  { %1962 = vmatprep.mubr.bf16.mxu1 %v2374_v17  ;;  %2990 = vmatpush3.bf16.msra.mxu1 %v3064_v35  ;;  %v2359_v9 = vcombine.low %v4251_v19, %v790_v46  ;;  %v2660_v46 = vld [vmem:[%s4214_s4 + $0x8] sm:$0xff]  }
  0x9a   :  { %2953 = vmatpush3.bf16.msra.mxu0 %v3063_v40  ;;  %2983 = vmatprep.subr.bf16.mxu1 %v3065_v3  ;;  %v2594_v10 = vunpack.c.l.bf16 %v2660_v46 }
  0x9b   :  { %2954 = vmatprep.subr.bf16.mxu0 %v3064_v35 }
  0x9d   :  { %1858 = vmatmul.mubr.bf16.gmra.mrb[40].mxu0 %v2358_v59  ;;  %2991 = vmatpush3.bf16.msra.mxu1 %v3065_v3 }
  0x9e   :  { %1865 = vmatprep.mubr.bf16.mxu0 %v2367_v39  ;;  %2955 = vmatpush3.bf16.msra.mxu0 %v3064_v35 }
  0x9f   :  { %2956 = vmatprep.subr.bf16.mxu0 %v3065_v3  ;;  %2984 = vmatprep.subr.bf16.mxu1 %v3066_v0 }
  0xa0   :  { %1963 = vmatmul.mubr.bf16.gmra.mrb[44].mxu1 %v2372_v21 }
  0xa1   :  { %1970 = vmatprep.mubr.bf16.mxu1 %v4252_v33  ;;  %2992 = vmatpush3.bf16.msra.mxu1 %v3066_v0 }
  0xa2   :  { %2957 = vmatpush3.bf16.msra.mxu0 %v3065_v3  ;;  %2985 = vmatprep.subr.bf16.mxu1 %v3067_v57 }
  0xa3   :  { %2958 = vmatprep.subr.bf16.mxu0 %v3066_v0 }
  0xa5   :  { %1866 = vmatmul.mubr.bf16.gmra.mrb[44].mxu0 %v2359_v9  ;;  %2993 = vmatpush3.bf16.msra.mxu1 %v3067_v57 }
  0xa6   :  { %1873 = vmatprep.mubr.bf16.mxu0 %v2368_v55  ;;  %2959 = vmatpush3.bf16.msra.mxu0 %v3066_v0  ;;  %v4256_v55 = vcombine.low %v3736_v28, %v3813_v7  ;;  %v2371_v28 = vcombine.low %v3859_v25, %v812_v26  ;;  %v2373_v7 = vcombine.low %v391_v15, %v4250_v41  ;;  %v4263_v25 = vld [vmem:[#allocation4_spill] sm:$0xff] }
  0xa7   :  { %2960 = vmatprep.subr.bf16.mxu0 %v3067_v57 }
  0xa8   :  { %2565 = vmatmul.mubr.msk.bf16.gmra.mrb[48].mxu1 %vm3304_vm12, %v4253_v61 }
  0xa9   :  { %1978 = vmatprep.mubr.bf16.mxu1 %v4254_v54 }
  0xaa   :  { %2961 = vmatpush3.bf16.msra.mxu0 %v3067_v57  ;;  %v2661_v57 = vld [vmem:[%s4214_s4 + $0x10] sm:$0xff]  }
  0xad   :  { %1874 = vmatmul.mubr.bf16.gmra.mrb[48].mxu0 %v2360_v30 }
  0xae   :  { %1881 = vmatprep.mubr.bf16.mxu0 %v2369_v2 }
  0xb0   :  { %2568 = vmatmul.mubr.msk.bf16.gmra.mrb[52].mxu1 %vm3304_vm12, %v4255_v50  ;;  %v2598_v50 = vunpack.c.l.bf16 %v2661_v57 }
  0xb1   :  { %1986 = vmatprep.mubr.bf16.mxu1 %v3902_v42 }
  0xb5   :  { %1882 = vmatmul.mubr.bf16.gmra.mrb[52].mxu0 %v4256_v55 }
  0xb6   :  { %1889 = vmatprep.mubr.bf16.mxu0 %v4257_v37  ;;  %v2599_v37 = vunpack.c.h.bf16 %v2661_v57 }
  0xb8   :  { %2571 = vmatmul.mubr.msk.bf16.gmra.mrb[56].mxu1 %vm3304_vm12, %v3870_v36  ;;  %v4264_v36 = vld [vmem:[#allocation5_spill] sm:$0xff] }
  0xb9   :  { %1994 = vmatprep.mubr.bf16.mxu1 %v2375_v52 }
  0xbd   :  { %1890 = vmatmul.mubr.bf16.gmra.mrb[56].mxu0 %v4258_v5 }
  0xbe   :  { %1897 = vmatprep.mubr.bf16.mxu0 %v2371_v28 }
  0xc0   :  { %1995 = vmatmul.mubr.bf16.gmra.mrb[60].mxu1 %v2373_v7 }
  0xc1   :  { %2970 = vmatprep.mubr.bf16.mxu1 %v4259_v6 }
  0xc5   :  { %1898 = vmatmul.mubr.bf16.gmra.mrb[60].mxu0 %v2363_v34  ;;  %v2595_v34 = vunpack.c.h.bf16 %v2660_v46 }
  0xc6   :  { %2962 = vmatprep.mubr.bf16.mxu0 %v4260_v49 }
  0xc8   :  { %2971 = vmatmul.mubr.bf16.vlgmr.msra.gmra.mrb[64].mxu1 %v4261_v32  ;;  %v2662_v32 = vld [vmem:[%s4214_s4 + $0x18] sm:$0xff]  }
  0xc9   :  { %2974 = vmatprep.mubr.bf16.mxu1 %v3874_v53 }
  0xcd   :  { %2963 = vmatmul.mubr.bf16.vlgmr.msra.gmra.mrb[64].mxu0 %v4263_v25 }
  0xce   :  { %2966 = vmatprep.mubr.bf16.mxu0 %v4264_v36 }
  0xd0   :  { %2975 = vmatmul.mubr.bf16.gmra.mrb[68].mxu1 %v2377_v16 }
  0xd5   :  { %2967 = vmatmul.mubr.bf16.gmra.mrb[68].mxu0 %v2376_v8 }
  0xf7   :  { %v2754_v45 = vpop.f32.mrb[0].mxu1 }
  0xf8   :  { %v2755_v30 = vpop.f32.mrb[1].mxu1 }
  0xf9   :  { %v2756_v2 = vadd.f32 %v2755_v30, %v2754_v45  ;;  %v2757_v42 = vpop.f32.mrb[2].mxu1  ;;  %v2602_v45 = vunpack.c.l.bf16 %v2662_v32 }
  0xfa   :  { %v2758_v53 = vpop.f32.mrb[3].mxu1 }
  0xfb   :  { %v2759_v43 = vadd.f32 %v2758_v53, %v2757_v42  ;;  %v2603_v53 = vunpack.c.h.bf16 %v2662_v32 }
  0xfc   :  { %v2690_v38 = vpop.f32.mrb[0].mxu0 }
  0xfd   :  { %v2691_v22 = vpop.f32.mrb[1].mxu0 }
  0xfe   :  { %v2692_v56 = vadd.f32 %v2691_v22, %v2690_v38  ;;  %v2693_v60 = vpop.f32.mrb[2].mxu0 }
  0xff   :  { %v2694_v23 = vpop.f32.mrb[3].mxu0  ;;  %v2760_v44 = vpop.f32.mrb[4].mxu1 }
 0x100   :  { %v1650_v63 = vadd.f32 %v2692_v56, %v2590_v18  ;;  %v2695_v24 = vadd.f32 %v2694_v23, %v2693_v60  ;;  %v2761_v1 = vpop.f32.mrb[5].mxu1 }
 0x101   :  { %v2762_v48 = vadd.f32 %v2761_v1, %v2760_v44  ;;  %v2763_v13 = vpop.f32.mrb[6].mxu1 }
 0x102   :  { %v1653_v47 = vadd.f32 %v2695_v24, %v2591_v51  ;;  %v4045_v27 = vadd.f32 %v2756_v2, %v1650_v63  ;;  %v2764_v40 = vpop.f32.mrb[7].mxu1  ;;  %v2663_v63 = vld [vmem:[%s4214_s4 + $0x20] sm:$0xff]  }
 0x103   :  { %v2765_v12 = vadd.f32 %v2764_v40, %v2763_v13  ;;  %v2606_v13 = vunpack.c.l.bf16 %v2663_v63 }
 0x104   :  { %v4050_v62 = vadd.f32 %v2759_v43, %v1653_v47  ;;  %v2696_v20 = vpop.f32.mrb[4].mxu0 }
 0x105   :  { %v2697_v29 = vpop.f32.mrb[5].mxu0 }
 0x106   :  { %v2698_v35 = vadd.f32 %v2697_v29, %v2696_v20  ;;  %v2699_v58 = vpop.f32.mrb[6].mxu0  ;;  %v2607_v20 = vunpack.c.h.bf16 %v2663_v63 }
 0x107   :  { %v2700_v17 = vpop.f32.mrb[7].mxu0 }
 0x108   :  { %v1658_v3 = vadd.f32 %v2698_v35, %v2594_v10  ;;  %v2701_v59 = vadd.f32 %v2700_v17, %v2699_v58  ;;  %v2664_v17 = vld [vmem:[%s4214_s4 + $0x28] sm:$0xff]  }
 0x10a   :  { %v1661_v39 = vadd.f32 %v2701_v59, %v2595_v34  ;;  %v4052_v0 = vadd.f32 %v2762_v48, %v1658_v3 }
 0x10c   :  { %v4054_v41 = vadd.f32 %v2765_v12, %v1661_v39 }
 0x10f   :  { %v2766_v21 = vpop.f32.mrb[8].mxu1 }
 0x110   :  { %v2767_v19 = vpop.f32.mrb[9].mxu1 }
 0x111   :  { %v2768_v9 = vadd.f32 %v2767_v19, %v2766_v21  ;;  %v2769_v33 = vpop.f32.mrb[10].mxu1  ;;  %v3071_v21 = vmov 0.0   ;;  %v2610_v19 = vunpack.c.l.bf16 %v2664_v17 }
 0x112   :  { %v2770_v61 = vpop.f32.mrb[11].mxu1  ;;  %v2702_v54 = vpop.f32.mrb[8].mxu0  ;;  %2184 = vst [vmem:[%s4215_s6] sm:$0x1] %v3071_v21  ;;  %2185 = vst [vmem:[%s4216_s7] sm:$0x1] %v3071_v21 }
 0x113   :  { %v2771_v4 = vadd.f32 %v2770_v61, %v2769_v33  ;;  %v2703_v11 = vpop.f32.mrb[9].mxu0 }
 0x114   :  { %v2704_v55 = vadd.f32 %v2703_v11, %v2702_v54  ;;  %v2705_v52 = vpop.f32.mrb[10].mxu0  ;;  %v2611_v11 = vunpack.c.h.bf16 %v2664_v17 }
 0x115   :  { %v2706_v26 = vpop.f32.mrb[11].mxu0 }
 0x116   :  { %v1666_v15 = vadd.f32 %v2704_v55, %v2598_v50  ;;  %v2707_v28 = vadd.f32 %v2706_v26, %v2705_v52 }
 0x118   :  { %v1669_v7 = vadd.f32 %v2707_v28, %v2599_v37  ;;  %v4059_v5 = vadd.f32 %v2768_v9, %v1666_v15 }
 0x11a   :  { %v4061_v6 = vadd.f32 %v2771_v4, %v1669_v7 }
 0x11b   :  { %v2772_v49 = vpop.f32.mrb[12].mxu1 }
 0x11c   :  { %v2773_v14 = vpop.f32.mrb[13].mxu1 }
 0x11d   :  { %v2774_v16 = vadd.f32 %v2773_v14, %v2772_v49  ;;  %v2775_v25 = vpop.f32.mrb[14].mxu1 }
 0x11e   :  { %v2776_v36 = vpop.f32.mrb[15].mxu1 }
 0x11f   :  { %v2777_v31 = vadd.f32 %v2776_v36, %v2775_v25  ;;  %v2665_v25 = vld [vmem:[%s4214_s4 + $0x30] sm:$0xff]  }
 0x120   :  { %v2708_v8 = vpop.f32.mrb[12].mxu0 }
 0x121   :  { %v2709_v30 = vpop.f32.mrb[13].mxu0 }
 0x122   :  { %v2710_v2 = vadd.f32 %v2709_v30, %v2708_v8  ;;  %v2711_v42 = vpop.f32.mrb[14].mxu0 }
 0x123   :  { %v2712_v38 = vpop.f32.mrb[15].mxu0 }
 0x124   :  { %v1674_v18 = vadd.f32 %v2710_v2, %v2602_v45  ;;  %v2713_v43 = vadd.f32 %v2712_v38, %v2711_v42 }
 0x126   :  { %v1677_v22 = vadd.f32 %v2713_v43, %v2603_v53  ;;  %v4066_v56 = vadd.f32 %v2774_v16, %v1674_v18  ;;  %v2615_v53 = vunpack.c.h.bf16 %v2665_v25 }
 0x128   :  { %v4068_v60 = vadd.f32 %v2777_v31, %v1677_v22  ;;  %v2614_v31 = vunpack.c.l.bf16 %v2665_v25 }
 0x129   :  { %v2778_v51 = vpop.f32.mrb[16].mxu1 }
 0x12a   :  { %v2779_v23 = vpop.f32.mrb[17].mxu1 }
 0x12b   :  { %v2780_v24 = vadd.f32 %v2779_v23, %v2778_v51  ;;  %v2781_v44 = vpop.f32.mrb[18].mxu1 }
 0x12c   :  { %v2782_v1 = vpop.f32.mrb[19].mxu1 }
 0x12d   :  { %v2783_v47 = vadd.f32 %v2782_v1, %v2781_v44  ;;  %v2666_v44 = vld [vmem:[%s4214_s4 + $0x38] sm:$0xff]  }
 0x12e   :  { %v2714_v48 = vpop.f32.mrb[16].mxu0 }
 0x12f   :  { %v2715_v46 = vpop.f32.mrb[17].mxu0 }
 0x130   :  { %v2716_v40 = vadd.f32 %v2715_v46, %v2714_v48  ;;  %v2717_v12 = vpop.f32.mrb[18].mxu0 }
 0x131   :  { %v2718_v10 = vpop.f32.mrb[19].mxu0 }
 0x132   :  { %v1682_v29 = vadd.f32 %v2716_v40, %v2606_v13  ;;  %v2719_v35 = vadd.f32 %v2718_v10, %v2717_v12  ;;  %v2618_v40 = vunpack.c.l.bf16 %v2666_v44 }
 0x134   :  { %v1685_v58 = vadd.f32 %v2719_v35, %v2607_v20  ;;  %v4073_v34 = vadd.f32 %v2780_v24, %v1682_v29  ;;  %v2619_v29 = vunpack.c.h.bf16 %v2666_v44 }
 0x135   :  { %v2784_v3 = vpop.f32.mrb[20].mxu1 }
 0x136   :  { %v4078_v59 = vadd.f32 %v2783_v47, %v1685_v58  ;;  %v2785_v39 = vpop.f32.mrb[21].mxu1 }
 0x137   :  { %v2786_v9 = vadd.f32 %v2785_v39, %v2784_v3  ;;  %v2787_v33 = vpop.f32.mrb[22].mxu1 }
 0x138   :  { %v2720_v57 = vpop.f32.mrb[20].mxu0  ;;  %v2788_v54 = vpop.f32.mrb[23].mxu1 }
 0x139   :  { %v2721_v61 = vpop.f32.mrb[21].mxu0  ;;  %v2789_v55 = vadd.f32 %v2788_v54, %v2787_v33 }
 0x13a   :  { %v2722_v50 = vadd.f32 %v2721_v61, %v2720_v57  ;;  %v2723_v4 = vpop.f32.mrb[22].mxu0 }
 0x13b   :  { %v2724_v52 = vpop.f32.mrb[23].mxu0 }
 0x13c   :  { %v1690_v37 = vadd.f32 %v2722_v50, %v2610_v19  ;;  %v2725_v26 = vadd.f32 %v2724_v52, %v2723_v4 }
 0x13e   :  { %v1693_v15 = vadd.f32 %v2725_v26, %v2611_v11  ;;  %v4086_v28 = vadd.f32 %v2786_v9, %v1690_v37 }
 0x140   :  { %v4088_v7 = vadd.f32 %v2789_v55, %v1693_v15 }
 0x144   :  { %v2790_v49 = vpop.f32.mrb[24].mxu1 }
 0x145   :  { %v2791_v32 = vpop.f32.mrb[25].mxu1 }
 0x146   :  { %v2792_v14 = vadd.f32 %v2791_v32, %v2790_v49  ;;  %v2793_v16 = vpop.f32.mrb[26].mxu1 }
 0x147   :  { %v2794_v36 = vpop.f32.mrb[27].mxu1 }
 0x148   :  { %v2795_v8 = vadd.f32 %v2794_v36, %v2793_v16 }
 0x14a   :  { %v2726_v45 = vpop.f32.mrb[24].mxu0 }
 0x14b   :  { %v2727_v30 = vpop.f32.mrb[25].mxu0 }
 0x14c   :  { %v2728_v2 = vadd.f32 %v2727_v30, %v2726_v45  ;;  %v2729_v42 = vpop.f32.mrb[26].mxu0 }
 0x14d   :  { %v2730_v38 = vpop.f32.mrb[27].mxu0 }
 0x14e   :  { %v1698_v18 = vadd.f32 %v2728_v2, %v2614_v31  ;;  %v2731_v43 = vadd.f32 %v2730_v38, %v2729_v42 }
 0x150   :  { %v1701_v22 = vadd.f32 %v2731_v43, %v2615_v53  ;;  %v4093_v51 = vadd.f32 %v2792_v14, %v1698_v18 }
 0x152   :  { %v4095_v23 = vadd.f32 %v2795_v8, %v1701_v22 }
 0x153   :  { %v2796_v63 = vpop.f32.mrb[28].mxu1 }
 0x154   :  { %v2797_v24 = vpop.f32.mrb[29].mxu1 }
 0x155   :  { %v2798_v1 = vadd.f32 %v2797_v24, %v2796_v63  ;;  %v2799_v47 = vpop.f32.mrb[30].mxu1 }
 0x156   :  { %v2800_v48 = vpop.f32.mrb[31].mxu1 }
 0x157   :  { %v2801_v13 = vadd.f32 %v2800_v48, %v2799_v47 }
 0x158   :  { %v2732_v46 = vpop.f32.mrb[28].mxu0 }
 0x159   :  { %v2733_v12 = vpop.f32.mrb[29].mxu0 }
 0x15a   :  { %v2734_v20 = vadd.f32 %v2733_v12, %v2732_v46  ;;  %v2735_v10 = vpop.f32.mrb[30].mxu0 }
 0x15b   :  { %v2736_v35 = vpop.f32.mrb[31].mxu0  ;;  %v2882_v58 = vpop.f32.mrb[32].mxu1 }
 0x15c   :  { %v1706_v17 = vadd.f32 %v2734_v20, %v2618_v40  ;;  %v2737_v3 = vadd.f32 %v2736_v35, %v2735_v10  ;;  %v2883_v39 = vpop.f32.mrb[33].mxu1 }
 0x15d   :  { %v2884_v21 = vadd.f32 %v2883_v39, %v2882_v58  ;;  %v2885_v57 = vpop.f32.mrb[34].mxu1 }
 0x15e   :  { %v1709_v19 = vadd.f32 %v2737_v3, %v2619_v29  ;;  %v4100_v9 = vadd.f32 %v2798_v1, %v1706_v17  ;;  %v2886_v33 = vpop.f32.mrb[35].mxu1 }
 0x15f   :  { %v2887_v61 = vadd.f32 %v2886_v33, %v2885_v57 }
 0x160   :  { %v4102_v54 = vadd.f32 %v2801_v13, %v1709_v19  ;;  %v2818_v50 = vpop.f32.mrb[32].mxu0 }
 0x161   :  { %v2819_v4 = vpop.f32.mrb[33].mxu0 }
 0x162   :  { %v2820_v11 = vadd.f32 %v2819_v4, %v2818_v50  ;;  %v2821_v55 = vpop.f32.mrb[34].mxu0 }
 0x163   :  { %v2822_v52 = vpop.f32.mrb[35].mxu0  ;;  %v2888_v37 = vpop.f32.mrb[36].mxu1 }
 0x164   :  { %v1844_v26 = vadd.f32 %v2820_v11, %v4045_v27  ;;  %v2823_v15 = vadd.f32 %v2822_v52, %v2821_v55  ;;  %v2889_v49 = vpop.f32.mrb[37].mxu1 }
 0x165   :  { %v2890_v32 = vadd.f32 %v2889_v49, %v2888_v37  ;;  %v2891_v14 = vpop.f32.mrb[38].mxu1 }
 0x166   :  { %v1847_v16 = vadd.f32 %v2823_v15, %v4050_v62  ;;  %v2892_v25 = vpop.f32.mrb[39].mxu1  ;;  %v4106_v36 = vadd.f32 %v2884_v21, %v1844_v26 }
 0x167   :  { %v2893_v8 = vadd.f32 %v2892_v25, %v2891_v14 }
 0x168   :  { %v2824_v45 = vpop.f32.mrb[36].mxu0  ;;  %v4108_v31 = vadd.f32 %v2887_v61, %v1847_v16 }
 0x169   :  { %v2825_v30 = vpop.f32.mrb[37].mxu0 }
 0x16a   :  { %v2826_v2 = vadd.f32 %v2825_v30, %v2824_v45  ;;  %v2827_v42 = vpop.f32.mrb[38].mxu0 }
 0x16b   :  { %v2828_v53 = vpop.f32.mrb[39].mxu0  ;;  %v2894_v38 = vpop.f32.mrb[40].mxu1 }
 0x16c   :  { %v1852_v27 = vadd.f32 %v2826_v2, %v4052_v0  ;;  %v2829_v18 = vadd.f32 %v2828_v53, %v2827_v42  ;;  %v2895_v43 = vpop.f32.mrb[41].mxu1 }
 0x16d   :  { %v2896_v22 = vadd.f32 %v2895_v43, %v2894_v38  ;;  %v2897_v63 = vpop.f32.mrb[42].mxu1 }
 0x16e   :  { %v1855_v62 = vadd.f32 %v2829_v18, %v4054_v41  ;;  %v2898_v24 = vpop.f32.mrb[43].mxu1  ;;  %v4112_v44 = vadd.f32 %v2890_v32, %v1852_v27 }
 0x16f   :  { %v2899_v1 = vadd.f32 %v2898_v24, %v2897_v63 }
 0x170   :  { %v2830_v47 = vpop.f32.mrb[40].mxu0  ;;  %v4114_v48 = vadd.f32 %v2893_v8, %v1855_v62 }
 0x171   :  { %v2831_v13 = vpop.f32.mrb[41].mxu0 }
 0x172   :  { %v2832_v46 = vadd.f32 %v2831_v13, %v2830_v47  ;;  %v2833_v40 = vpop.f32.mrb[42].mxu0 }
 0x173   :  { %v2834_v12 = vpop.f32.mrb[43].mxu0  ;;  %v2900_v20 = vpop.f32.mrb[44].mxu1 }
 0x174   :  { %v1860_v0 = vadd.f32 %v2832_v46, %v4059_v5  ;;  %v2835_v10 = vadd.f32 %v2834_v12, %v2833_v40  ;;  %v2901_v29 = vpop.f32.mrb[45].mxu1 }
 0x175   :  { %v2902_v35 = vadd.f32 %v2901_v29, %v2900_v20  ;;  %v2903_v58 = vpop.f32.mrb[46].mxu1 }
 0x176   :  { %v1863_v41 = vadd.f32 %v2835_v10, %v4061_v6  ;;  %v2904_v17 = vpop.f32.mrb[47].mxu1  ;;  %v4118_v3 = vadd.f32 %v2896_v22, %v1860_v0 }
 0x177   :  { %v2905_v39 = vadd.f32 %v2904_v17, %v2903_v58 }
 0x178   :  { %v2836_v21 = vpop.f32.mrb[44].mxu0  ;;  %v4120_v57 = vadd.f32 %v2899_v1, %v1863_v41 }
 0x179   :  { %v2837_v19 = vpop.f32.mrb[45].mxu0 }
 0x17a   :  { %v2838_v33 = vadd.f32 %v2837_v19, %v2836_v21  ;;  %v2839_v61 = vpop.f32.mrb[46].mxu0 }
 0x17b   :  { %v2840_v50 = vpop.f32.mrb[47].mxu0  ;;  %v2906_v4 = vpop.f32.mrb[48].mxu1 }
 0x17c   :  { %v1868_v5 = vadd.f32 %v2838_v33, %v4066_v56  ;;  %v2841_v11 = vadd.f32 %v2840_v50, %v2839_v61  ;;  %v2907_v55 = vpop.f32.mrb[49].mxu1 }
 0x17d   :  { %v2908_v52 = vadd.f32 %v2907_v55, %v2906_v4  ;;  %v2909_v37 = vpop.f32.mrb[50].mxu1 }
 0x17e   :  { %v1871_v6 = vadd.f32 %v2841_v11, %v4068_v60  ;;  %v2910_v26 = vpop.f32.mrb[51].mxu1  ;;  %v4124_v15 = vadd.f32 %v2902_v35, %v1868_v5 }
 0x17f   :  { %v2911_v49 = vadd.f32 %v2910_v26, %v2909_v37 }
 0x180   :  { %v2842_v32 = vpop.f32.mrb[48].mxu0  ;;  %v4126_v14 = vadd.f32 %v2905_v39, %v1871_v6 }
 0x181   :  { %v2843_v16 = vpop.f32.mrb[49].mxu0 }
 0x182   :  { %v2844_v25 = vadd.f32 %v2843_v16, %v2842_v32  ;;  %v2845_v8 = vpop.f32.mrb[50].mxu0 }
 0x183   :  { %v2846_v45 = vpop.f32.mrb[51].mxu0  ;;  %v2912_v30 = vpop.f32.mrb[52].mxu1 }
 0x184   :  { %v1876_v56 = vadd.f32 %v2844_v25, %v4073_v34  ;;  %v2847_v2 = vadd.f32 %v2846_v45, %v2845_v8  ;;  %v2913_v42 = vpop.f32.mrb[53].mxu1 }
 0x185   :  { %v2914_v53 = vadd.f32 %v2913_v42, %v2912_v30  ;;  %v2915_v38 = vpop.f32.mrb[54].mxu1 }
 0x186   :  { %v1879_v60 = vadd.f32 %v2847_v2, %v4078_v59  ;;  %v2916_v27 = vpop.f32.mrb[55].mxu1  ;;  %v1973_v18 = vadd.f32 %v2908_v52, %v1876_v56 }
 0x187   :  { %v2917_v43 = vadd.f32 %v2916_v27, %v2915_v38 }
 0x188   :  { %v2848_v22 = vpop.f32.mrb[52].mxu0  ;;  %v1976_v63 = vadd.f32 %v2911_v49, %v1879_v60 }
 0x189   :  { %v2849_v62 = vpop.f32.mrb[53].mxu0 }
 0x18a   :  { %v2850_v24 = vadd.f32 %v2849_v62, %v2848_v22  ;;  %v2851_v1 = vpop.f32.mrb[54].mxu0 }
 0x18b   :  { %v2852_v47 = vpop.f32.mrb[55].mxu0  ;;  %v2918_v13 = vpop.f32.mrb[56].mxu1 }
 0x18c   :  { %v1884_v46 = vadd.f32 %v2850_v24, %v4086_v28  ;;  %v2853_v40 = vadd.f32 %v2852_v47, %v2851_v1  ;;  %v2919_v34 = vpop.f32.mrb[57].mxu1 }
 0x18d   :  { %v2920_v12 = vadd.f32 %v2919_v34, %v2918_v13  ;;  %v2921_v20 = vpop.f32.mrb[58].mxu1 }
 0x18e   :  { %v1887_v0 = vadd.f32 %v2853_v40, %v4088_v7  ;;  %v2922_v10 = vpop.f32.mrb[59].mxu1  ;;  %v1981_v59 = vadd.f32 %v2914_v53, %v1884_v46 }
 0x18f   :  { %v2923_v29 = vadd.f32 %v2922_v10, %v2921_v20 }
 0x190   :  { %v2854_v35 = vpop.f32.mrb[56].mxu0  ;;  %v1984_v58 = vadd.f32 %v2917_v43, %v1887_v0 }
 0x191   :  { %v2855_v41 = vpop.f32.mrb[57].mxu0 }
 0x192   :  { %v2856_v17 = vadd.f32 %v2855_v41, %v2854_v35  ;;  %v2857_v39 = vpop.f32.mrb[58].mxu0 }
 0x193   :  { %v2858_v21 = vpop.f32.mrb[59].mxu0  ;;  %v2924_v19 = vpop.f32.mrb[60].mxu1 }
 0x194   :  { %v1892_v33 = vadd.f32 %v2856_v17, %v4093_v51  ;;  %v2859_v61 = vadd.f32 %v2858_v21, %v2857_v39  ;;  %v2925_v28 = vpop.f32.mrb[61].mxu1 }
 0x195   :  { %v2926_v50 = vadd.f32 %v2925_v28, %v2924_v19  ;;  %v2927_v4 = vpop.f32.mrb[62].mxu1 }
 0x196   :  { %v1895_v5 = vadd.f32 %v2859_v61, %v4095_v23  ;;  %v2928_v11 = vpop.f32.mrb[63].mxu1  ;;  %v1989_v7 = vadd.f32 %v2920_v12, %v1892_v33 }
 0x197   :  { %v2929_v55 = vadd.f32 %v2928_v11, %v2927_v4 }
 0x198   :  { %v2860_v52 = vpop.f32.mrb[60].mxu0  ;;  %v1992_v37 = vadd.f32 %v2923_v29, %v1895_v5 }
 0x199   :  { %v2861_v6 = vpop.f32.mrb[61].mxu0 }
 0x19a   :  { %v2862_v26 = vadd.f32 %v2861_v6, %v2860_v52  ;;  %v2863_v49 = vpop.f32.mrb[62].mxu0 }
 0x19b   :  { %v2864_v32 = vpop.f32.mrb[63].mxu0  ;;  %v2972_v16 = vpop.f32.mrb[64].mxu1 }
 0x19c   :  { %v1900_v25 = vadd.f32 %v2862_v26, %v4100_v9  ;;  %v2865_v8 = vadd.f32 %v2864_v32, %v2863_v49  ;;  %v4135_v51 = vadd.f32 %v2972_v16, %v1981_v59  ;;  %v2069_v45 = vpop.f32.mrb[65].mxu1 }
 0x19d   :  { %v4137_v30 = vadd.f32 %v2069_v45, %v1973_v18  ;;  %v2973_v56 = vpop.f32.mrb[66].mxu1 }
 0x19e   :  { %v1903_v23 = vadd.f32 %v2865_v8, %v4102_v54  ;;  %v4140_v2 = vadd.f32 %v2973_v56, %v1984_v58  ;;  %v2072_v42 = vpop.f32.mrb[67].mxu1  ;;  %v1997_v53 = vadd.f32 %v2926_v50, %v1900_v25 }
 0x19f   :  { %v4142_v38 = vadd.f32 %v2072_v42, %v1976_v63 }
 0x1a0   :  { %v2964_v60 = vpop.f32.mrb[64].mxu0  ;;  %v2648_v27 = vpack.c.bf16 %v4140_v2, %v4135_v51  ;;  %v2000_v9 = vadd.f32 %v2929_v55, %v1903_v23 }
 0x1a1   :  { %v2046_v43 = vadd.f32 %v2964_v60, %v4112_v44  ;;  %v2037_v22 = vpop.f32.mrb[65].mxu0  ;;  %v2643_v18 = vpack.c.bf16 %v4142_v38, %v4137_v30  ;;  %v2220_v23 = vmul.f32 %v4142_v38, %v4142_v38  ;;  %v2221_v60 = vmul.f32 %v4135_v51, %v4135_v51 }
 0x1a2   :  { %v2038_v62 = vadd.f32 %v2037_v22, %v4106_v36  ;;  %v2965_v54 = vpop.f32.mrb[66].mxu0  ;;  %2671 = vst [vmem:[%s4217_s5 + $0x28] sm:$0xff] %v2648_v27  }
 0x1a3   :  { %v2049_v63 = vadd.f32 %v2965_v54, %v4114_v48  ;;  %v2040_v24 = vpop.f32.mrb[67].mxu0  ;;  %2670 = vst [vmem:[%s4217_s5 + $0x20] sm:$0xff] %v2643_v18   ;;  %v2976_v1 = vpop.f32.mrb[68].mxu1  ;;  %v2213_v29 = vmul.f32 %v2046_v43, %v2046_v43 }
 0x1a4   :  { %v2041_v44 = vadd.f32 %v2040_v24, %v4108_v31  ;;  %v4158_v47 = vadd.f32 %v2976_v1, %v1997_v53  ;;  %v2085_v13 = vpop.f32.mrb[69].mxu1  ;;  %v2211_v34 = vmul.f32 %v2038_v62, %v2038_v62 }
 0x1a5   :  { %v2628_v46 = vpack.c.bf16 %v2049_v63, %v2046_v43  ;;  %v2086_v36 = vadd.f32 %v2085_v13, %v1989_v7  ;;  %v2977_v40 = vpop.f32.mrb[70].mxu1  ;;  %v2214_v19 = vmul.f32 %v2049_v63, %v2049_v63 }
 0x1a6   :  { %v2623_v12 = vpack.c.bf16 %v2041_v44, %v2038_v62  ;;  %v2187_v20 = vadd.f32 %v2041_v44, %v2038_v62  ;;  %v2212_v0 = vmul.f32 %v2041_v44, %v2041_v44  ;;  %v2088_v10 = vpop.f32.mrb[71].mxu1  ;;  %v2097_v48 = vadd.f32 %v2977_v40, %v2000_v9 }
 0x1a7   :  { %2667 = vst [vmem:[%s4217_s5 + $0x8] sm:$0xff] %v2628_v46   ;;  %v2089_v59 = vadd.f32 %v2088_v10, %v1992_v37 }
 0x1a8   :  { %2624 = vst [vmem:[%s4217_s5] sm:$0xff] %v2623_v12   ;;  %v2188_v31 = vadd.f32 %v2187_v20, %v2046_v43  ;;  %v2227_v35 = vadd.f32 %v2212_v0, %v2211_v34  ;;  %v2968_v58 = vpop.f32.mrb[68].mxu0  ;;  %v2658_v39 = vpack.c.bf16 %v2097_v48, %v4158_v47  ;;  %v2222_v43 = vmul.f32 %v4140_v2, %v4140_v2 }
 0x1a9   :  { %v2062_v41 = vadd.f32 %v2968_v58, %v4124_v15  ;;  %v2053_v17 = vpop.f32.mrb[69].mxu0  ;;  %v2653_v21 = vpack.c.bf16 %v2089_v59, %v2086_v36  ;;  %v2224_v24 = vmul.f32 %v2089_v59, %v2089_v59 }
 0x1aa   :  { %v2228_v33 = vadd.f32 %v2227_v35, %v2213_v29  ;;  %v2054_v61 = vadd.f32 %v2053_v17, %v4118_v3  ;;  %v2189_v28 = vadd.f32 %v2188_v31, %v2049_v63  ;;  %v2969_v50 = vpop.f32.mrb[70].mxu0  ;;  %2673 = vst [vmem:[%s4217_s5 + $0x38] sm:$0xff] %v2658_v39   ;;  %v2186_v35 = vld [vmem:[%s4215_s6] sm:$0x1] }
 0x1ab   :  { %v2065_v4 = vadd.f32 %v2969_v50, %v4126_v14  ;;  %v2056_v5 = vpop.f32.mrb[71].mxu0  ;;  %2672 = vst [vmem:[%s4217_s5 + $0x30] sm:$0xff] %v2653_v21   ;;  %v2217_v14 = vmul.f32 %v2062_v41, %v2062_v41 }
 0x1ac   :  { %v2190_v15 = vadd.f32 %v2189_v28, %v2054_v61  ;;  %v2215_v11 = vmul.f32 %v2054_v61, %v2054_v61  ;;  %v2229_v7 = vadd.f32 %v2228_v33, %v2214_v19  ;;  %v2057_v55 = vadd.f32 %v2056_v5, %v4120_v57 }
 0x1ad   :  { %v2638_v52 = vpack.c.bf16 %v2065_v4, %v2062_v41  ;;  %v2218_v16 = vmul.f32 %v2065_v4, %v2065_v4  ;;  %v2219_v57 = vmul.f32 %v4137_v30, %v4137_v30 }
 0x1ae   :  { %v2230_v3 = vadd.f32 %v2229_v7, %v2215_v11  ;;  %v2633_v37 = vpack.c.bf16 %v2057_v55, %v2054_v61  ;;  %v2191_v6 = vadd.f32 %v2190_v15, %v2057_v55  ;;  %v2216_v26 = vmul.f32 %v2057_v55, %v2057_v55 }
 0x1af   :  { %2669 = vst [vmem:[%s4217_s5 + $0x18] sm:$0xff] %v2638_v52  }
 0x1b0   :  { %2668 = vst [vmem:[%s4217_s5 + $0x10] sm:$0xff] %v2633_v37   ;;  %v2192_v49 = vadd.f32 %v2191_v6, %v2062_v41  ;;  %v2231_v32 = vadd.f32 %v2230_v3, %v2216_v26 }
 0x1b2   :  { %v2193_v25 = vadd.f32 %v2192_v49, %v2065_v4  ;;  %v2232_v8 = vadd.f32 %v2231_v32, %v2217_v14 }
 0x1b4   :  { %v2194_v45 = vadd.f32 %v2193_v25, %v4137_v30  ;;  %v2233_v56 = vadd.f32 %v2232_v8, %v2218_v16  ;;  %v2223_v30 = vmul.f32 %v2086_v36, %v2086_v36 }
 0x1b6   :  { %v2234_v42 = vadd.f32 %v2233_v56, %v2219_v57  ;;  %v2195_v53 = vadd.f32 %v2194_v45, %v4142_v38  ;;  %v2225_v38 = vmul.f32 %v4158_v47, %v4158_v47 }
 0x1b8   :  { %v2196_v27 = vadd.f32 %v2195_v53, %v4135_v51  ;;  %v2235_v9 = vadd.f32 %v2234_v42, %v2220_v23  ;;  %v2226_v51 = vmul.f32 %v2097_v48, %v2097_v48 }
 0x1ba   :  { %v2197_v22 = vadd.f32 %v2196_v27, %v4140_v2  ;;  %v2236_v18 = vadd.f32 %v2235_v9, %v2221_v60 }
 0x1bc   :  { %v2198_v62 = vadd.f32 %v2197_v22, %v2086_v36  ;;  %v2237_v54 = vadd.f32 %v2236_v18, %v2222_v43 }
 0x1be   :  { %v2199_v63 = vadd.f32 %v2198_v62, %v2089_v59  ;;  %v2238_v1 = vadd.f32 %v2237_v54, %v2223_v30 }
 0x1c0   :  { %v2200_v44 = vadd.f32 %v2199_v63, %v4158_v47  ;;  %v2239_v13 = vadd.f32 %v2238_v1, %v2224_v24 }
 0x1c2   :  { %v2201_v46 = vadd.f32 %v2200_v44, %v2097_v48  ;;  %v2240_v40 = vadd.f32 %v2239_v13, %v2225_v38  ;;  %v2210_v48 = vld [vmem:[%s4216_s7] sm:$0x1] }
 0x1c4   :  { %v2202_v34 = vrot.slane %v2201_v46, 4  ;;  %v2241_v12 = vadd.f32 %v2240_v40, %v2226_v51 }
 0x1c6   :  { %v2203_v20 = vadd.f32 %v2202_v34, %v2201_v46  ;;  %v2242_v2 = vrot.slane %v2241_v12, 4 }
 0x1c8   :  { %v2204_v0 = vrot.slane %v2203_v20, 2  ;;  %v2243_v10 = vadd.f32 %v2242_v2, %v2241_v12 }
 0x1ca   :  { %v2205_v36 = vadd.f32 %v2204_v0, %v2203_v20  ;;  %v2244_v29 = vrot.slane %v2243_v10, 2 }
 0x1cc   :  { %v2206_v31 = vrot.slane %v2205_v36, 1  ;;  %v2245_v59 = vadd.f32 %v2244_v29, %v2243_v10 }
 0x1ce   :  { %v2207_v58 = vadd.f32 %v2206_v31, %v2205_v36  ;;  %v2246_v47 = vrot.slane %v2245_v59, 1 }
 0x1d0   :  { %v2208_v41 = vadd.f32 %v2207_v58, %v2186_v35  ;;  %v2247_v17 = vadd.f32 %v2246_v47, %v2245_v59 }
 0x1d2   :  { %2209 = vst [vmem:[%s4215_s6] sm:$0x1] %v2208_v41  ;;  %v2248_v39 = vadd.f32 %v2247_v17, %v2210_v48 }
 0x1d4   :  { %2249 = vst [vmem:[%s4216_s7] sm:$0x1] %v2248_v39 }

// kernel: _lambda_.10
= control target key start
LH: loop header
LB: loop body
LE: loop exit
PB: predicated region body
PF: predicated region fallthrough
CT: control target
= control target key end

     0   :  { %v387_v14 = vlaneseq  ;;  %v4272_v20 = vmov 0.0|0.0   ;;  %vm1302_vm15 = vsmask.f32 3328  ;;  %vm1303_vm10 = vsmask.f32 7440  ;;  %s5872_s3 = inlined_call_operand.vmem [shape: bf16[1152,128], index: 3, kind: input, shape index: {}]   ;;  %s5873_s0 = inlined_call_operand.vmem [shape: bf16[2,4,9,9,128], index: 0, kind: input, shape index: {}]   ;;  %s5874_s1 = inlined_call_operand.vmem [shape: f32[1,128], index: 1, kind: input, shape index: {}]   ;;  %s5875_s2 = inlined_call_operand.vmem [shape: f32[1,128], index: 2, kind: input, shape index: {}]   ;;  %s5876_s5 = inlined_call_operand.vmem [shape: f32[1,128], index: 5, kind: output, shape index: {1}]   ;;  %s5877_s6 = inlined_call_operand.vmem [shape: f32[1,128], index: 6, kind: output, shape index: {2}]   ;;  %s5878_s4 = inlined_call_operand.vmem [shape: bf16[2,64,128], index: 4, kind: output, shape index: {0}]  }
   0x1   :  { %v4195_v0 = vld [vmem:[%s5872_s3 + $0x40] sm:$0xff]   ;;  %v4199_v4 = vld [vmem:[%s5872_s3 + $0x48] sm:$0xff]   ;;  %v4203_v8 = vld [vmem:[%s5872_s3 + $0x50] sm:$0xff]   ;;  %v3342_v21 = vcombine.low %v4272_v20, %v4272_v20  ;;  %v3343_v39 = vcombine.high %v4272_v20, %v4272_v20 }
   0x2   :  { %v4196_v1 = vld [vmem:[%s5872_s3 + $0xc0] sm:$0xff]   ;;  %3873 = vmatprep.subr.bf16.mxu0 %v4195_v0  ;;  %v4200_v5 = vld [vmem:[%s5872_s3 + $0xc8] sm:$0xff]   ;;  %v4204_v9 = vld [vmem:[%s5872_s3 + $0xd0] sm:$0xff]   ;;  %v388_v19 = vshrl.u32 %v387_v14, 7 }
   0x3   :  { %v4197_v2 = vld [vmem:[%s5872_s3] sm:$0xff]   ;;  %3937 = vmatprep.subr.bf16.mxu1 %v4196_v1  ;;  %v4201_v6 = vld [vmem:[%s5872_s3 + $0x8] sm:$0xff]   ;;  %v4205_v10 = vld [vmem:[%s5872_s3 + $0x10] sm:$0xff]   ;;  %v1306_v27 = vshrl.u32 %v3342_v21, 16  ;;  %v1309_v37 = vshll.u32 %v3342_v21, 16  ;;  %v1315_v46 = vshll.u32 %v3343_v39, 16 }
   0x4   :  { %v4198_v3 = vld [vmem:[%s5872_s3 + $0x80] sm:$0xff]   ;;  %3874 = vmatpush3.bf16.msra.mxu0 %v4197_v2  ;;  %v4202_v7 = vld [vmem:[%s5872_s3 + $0x88] sm:$0xff]   ;;  %v4206_v11 = vld [vmem:[%s5872_s3 + $0x90] sm:$0xff]   ;;  %v389_v24 = vadd.s32 8, %v388_v19  ;;  %v4380_v29 = vmul.u32 2, %v388_v19 }
   0x5   :  { %3938 = vmatpush3.bf16.msra.mxu1 %v4198_v3  ;;  %3875 = vmatprep.subr.bf16.mxu0 %v4199_v4  ;;  %v4207_v12 = vld [vmem:[%s5872_s3 + $0x58] sm:$0xff]   ;;  %v4211_v17 = vld [vmem:[%s5872_s3 + $0x60] sm:$0xff]   ;;  %v4215_v25 = vld [vmem:[%s5872_s3 + $0x68] sm:$0xff]   ;;  %v1308_v42 = vrot.slane %v1306_v27, 4  ;;  %v1311_v44 = vrot.slane %v1309_v37, 5  ;;  %v4456_v4 = vrot.slane %v1315_v46, 5 }
   0x6   :  { %3939 = vmatprep.subr.bf16.mxu1 %v4200_v5  ;;  %v4208_v13 = vld [vmem:[%s5872_s3 + $0xd8] sm:$0xff]   ;;  %v4212_v18 = vld [vmem:[%s5872_s3 + $0xe0] sm:$0xff]   ;;  %v4216_v26 = vld [vmem:[%s5872_s3 + $0xe8] sm:$0xff]   ;;  %v4385_v31 = vmul.u32 2, %v389_v24  ;;  %v4391_v33 = vadd.s32 1, %v4380_v29  ;;  %vm392_vm4 = vcmp.ge.s32.totalorder %v4380_v29, 1 }
   0x7   :  { %v4209_v15 = vld [vmem:[%s5872_s3 + $0x18] sm:$0xff]   ;;  %v4213_v22 = vld [vmem:[%s5872_s3 + $0x20] sm:$0xff]   ;;  %v4217_v28 = vld [vmem:[%s5872_s3 + $0x28] sm:$0xff]   ;;  %v1312_v58 = vor.u32 %v1311_v44, %v1308_v42  ;;  %vm398_vm5 = vcmp.lt.s32.totalorder %v4380_v29, 17 }
   0x8   :  { %3876 = vmatpush3.bf16.msra.mxu0 %v4201_v6  ;;  %v4210_v16 = vld [vmem:[%s5872_s3 + $0x98] sm:$0xff]   ;;  %v4214_v23 = vld [vmem:[%s5872_s3 + $0xa0] sm:$0xff]   ;;  %v4218_v30 = vld [vmem:[%s5872_s3 + $0xa8] sm:$0xff]   ;;  %v4397_v35 = vadd.s32 1, %v4385_v31  ;;  %vm676_vm0 = vcmp.ge.s32.totalorder %v4391_v33, 1  ;;  %vm682_vm1 = vcmp.lt.s32.totalorder %v4391_v33, 17 }
   0x9   :  { %3940 = vmatpush3.bf16.msra.mxu1 %v4202_v7  ;;  %3877 = vmatprep.subr.bf16.mxu0 %v4203_v8  ;;  %v4219_v32 = vld [vmem:[%s5872_s3 + $0x70] sm:$0xff]   ;;  %v4223_v40 = vld [vmem:[%s5872_s3 + $0x78] sm:$0xff]   ;;  %v4437_v55 = vld [vmem:[%s5874_s1] ss:$0 sm:$0xff]  ;;  %v4471_v14 = vrot.slane %v1312_v58, 4  ;;  %vm399_vm11 = vcmp.lt.s32.totalorder %v4385_v31, 17 }
   0xa   :  { %3941 = vmatprep.subr.bf16.mxu1 %v4204_v9  ;;  %v4220_v34 = vld [vmem:[%s5872_s3 + $0xf0] sm:$0xff]   ;;  %v4224_v41 = vld [vmem:[%s5872_s3 + $0xf8] sm:$0xff]   ;;  %vm677_vm2 = vcmp.ge.s32.totalorder %v4397_v35, 1  ;;  %vm683_vm3 = vcmp.lt.s32.totalorder %v4397_v35, 17  ;;  %v4452_v0 = vld [vmem:[%s5875_s2] ss:$0 sm:$0xff] }
   0xb   :  { %v4221_v36 = vld [vmem:[%s5872_s3 + $0x30] sm:$0xff]   ;;  %v4225_v43 = vld [vmem:[%s5872_s3 + $0x38] sm:$0xff]   ;;  %v4227_v5 = vld [vmem:[%s5872_s3 + $0x140] sm:$0xff]  }
   0xc   :  { %3878 = vmatpush3.bf16.msra.mxu0 %v4205_v10  ;;  %v4222_v38 = vld [vmem:[%s5872_s3 + $0xb0] sm:$0xff]   ;;  %v4226_v45 = vld [vmem:[%s5872_s3 + $0xb8] sm:$0xff]   ;;  %vm4484_vm13 = vmand %vm676_vm0, %vm682_vm1 }
   0xd   :  { %3942 = vmatpush3.bf16.msra.mxu1 %v4206_v11  ;;  %3879 = vmatprep.subr.bf16.mxu0 %v4207_v12  ;;  %v41_v47 = vld [vmem:[%s5873_s0 + $0x50] ss:$8 sps:$4 sm:$0xff]   ;;  %v42_v48 = vld [vmem:[%s5873_s0 + $0x54] sm:$0x1]  ;;  %vm4493_vm14 = vmand %vm677_vm2, %vm683_vm3 }
   0xe   :  { %3943 = vmatprep.subr.bf16.mxu1 %v4208_v13  ;;  %v45_v49 = vld [vmem:[%s5873_s0 + $0x60] ss:$48 sps:$4 sm:$0xff]   ;;  %v110_v50 = vld [vmem:[%s5873_s0 + $0x174] sm:$0x1]  ;;  %v460_v51 = vunpack.c.l.bf16 %v41_v47  ;;  %v461_v52 = vunpack.c.l.bf16 %v42_v48  ;;  %v462_v53 = vunpack.c.h.bf16 %v41_v47  ;;  %v59_v63 = vld [vmem:[%s5873_s0 + $0x8] ss:$144 sps:$4 sm:$0xff]  }
   0xf   :  { %v464_v54 = vunpack.c.l.bf16 %v45_v49  ;;  %v479_v56 = vunpack.c.l.bf16 %v110_v50  ;;  %v742_v57 = vunpack.c.h.bf16 %v45_v49  ;;  %v744_v2 = vunpack.c.h.bf16 %v59_v63  ;;  %v24_v13 = vld [vmem:[%s5873_s0 + $0xc] sm:$0x1]  ;;  %vm4523_vm2 = vmand %vm392_vm4, %vm398_vm5  ;;  %v129_v24 = vld [vmem:[%s5873_s0 + $0x1c0] ss:$8 sps:$4 sm:$0xff]  }
  0x10   :  { %3880 = vmatpush3.bf16.msra.mxu0 %v4209_v15  ;;  %v496_v59 = vmul.f32 %v4437_v55, %v460_v51  ;;  %v497_v60 = vmul.f32 %v4437_v55, %v461_v52  ;;  %v498_v61 = vmul.f32 %v4437_v55, %v462_v53  ;;  %v4476_v15 = vld [vmem:[%s5873_s0 + $0x10] ss:$144 sps:$4 sm:$0xff]   ;;  %vm4537_vm3 = vmpackc.low %vm4523_vm2, %vm4523_vm2  ;;  %v4545_v51 = vld [vmem:[%s5873_s0 + $0x18] ss:$144 sps:$4 sm:$0xff]  }
  0x11   :  { %3944 = vmatpush3.bf16.msra.mxu1 %v4210_v16  ;;  %3881 = vmatprep.subr.bf16.mxu0 %v4211_v17  ;;  %v500_v62 = vmul.f32 %v4437_v55, %v464_v54  ;;  %v515_v1 = vmul.f32 %v4437_v55, %v479_v56  ;;  %v774_v3 = vmul.f32 %v4437_v55, %v742_v57  ;;  %v746_v46 = vunpack.c.h.bf16 %v4476_v15 }
  0x12   :  { %3945 = vmatprep.subr.bf16.mxu1 %v4212_v18  ;;  %v532_v6 = vadd.f32 %v4452_v0, %v496_v59  ;;  %v533_v7 = vadd.f32 %v4452_v0, %v497_v60  ;;  %v534_v8 = vadd.f32 %v4452_v0, %v498_v61  ;;  %v776_v11 = vmul.f32 %v4437_v55, %v744_v2  ;;  %v4232_v60 = vld [vmem:[%s5872_s3 + $0x1c0] sm:$0xff]  }
  0x13   :  { %v536_v9 = vadd.f32 %v4452_v0, %v500_v62  ;;  %v551_v10 = vadd.f32 %v4452_v0, %v515_v1  ;;  %v806_v12 = vadd.f32 %v4452_v0, %v774_v3 }
  0x14   :  { %3882 = vmatpush3.bf16.msra.mxu0 %v4213_v22  ;;  %vm568_vm6 = vcmp.ge.f32.partialorder %v532_v6, 0.0  ;;  %vm569_vm7 = vcmp.ge.f32.partialorder %v533_v7, 0.0  ;;  %vm570_vm8 = vcmp.ge.f32.partialorder %v534_v8, 0.0  ;;  %v604_v16 = vmul.f32 0.1, %v532_v6 }
  0x15   :  { %3946 = vmatpush3.bf16.msra.mxu1 %v4214_v23  ;;  %3883 = vmatprep.subr.bf16.mxu0 %v4215_v25  ;;  %vm572_vm9 = vcmp.ge.f32.partialorder %v536_v9, 0.0  ;;  %vm587_vm12 = vcmp.ge.f32.partialorder %v551_v10, 0.0  ;;  %v605_v17 = vmul.f32 0.1, %v533_v7  ;;  %v808_v19 = vadd.f32 %v4452_v0, %v776_v11 }
  0x16   :  { %3947 = vmatprep.subr.bf16.mxu1 %v4216_v26  ;;  %v606_v21 = vmul.f32 0.1, %v534_v8  ;;  %v608_v22 = vmul.f32 0.1, %v536_v9  ;;  %v623_v23 = vmul.f32 0.1, %v551_v10  ;;  %v161_v25 = vunpack.c.l.bf16 %v59_v63 }
  0x17   :  { %v4498_v26 = vsel %vm568_vm6, %v532_v6, %v604_v16  ;;  %v641_v27 = vsel %vm569_vm7, %v533_v7, %v605_v17  ;;  %vm838_vm0 = vcmp.ge.f32.partialorder %v806_v12, 0.0  ;;  %vm840_vm1 = vcmp.ge.f32.partialorder %v808_v19, 0.0 }
  0x18   :  { %3884 = vmatpush3.bf16.msra.mxu0 %v4217_v28  ;;  %v162_v28 = vunpack.c.l.bf16 %v24_v13  ;;  %v4506_v33 = vsel %vm587_vm12, %v551_v10, %v623_v23  ;;  %v4512_v35 = vsel %vm572_vm9, %v536_v9, %v608_v22  ;;  %v870_v39 = vmul.f32 0.1, %v806_v12  ;;  %vm4571_vm9 = vmor %vm1302_vm15, %vm1303_vm10 }
  0x19   :  { %3948 = vmatpush3.bf16.msra.mxu1 %v4218_v30  ;;  %3885 = vmatprep.subr.bf16.mxu0 %v4219_v32  ;;  %v163_v30 = vunpack.c.l.bf16 %v4476_v15  ;;  %v4503_v32 = vsel %vm570_vm8, %v534_v8, %v606_v21  ;;  %v748_v63 = vunpack.c.h.bf16 %v4545_v51  ;;  %vm5915_vm6 = vcmp.ge.s32.totalorder %v4385_v31, 1  ;;  %vm4608_vm10 = vmpackc.low %vm4484_vm13, %vm4484_vm13 }
  0x1a   :  { %3949 = vmatprep.subr.bf16.mxu1 %v4220_v34  ;;  %v690_v34 = vsel %vm4484_vm13, %v4498_v26, 0.0  ;;  %v204_v44 = vmul.f32 %v4437_v55, %v162_v28  ;;  %v902_v48 = vsel %vm838_vm0, %v806_v12, %v870_v39  ;;  %vm4563_vm7 = vmand %vm5915_vm6, %vm399_vm11  ;;  %v3679_v21 = vpack.c.bf16 %v4512_v35, %v4503_v32  ;;  %v26_v28 = vld [vmem:[%s5873_s0 + $0x14] sm:$0x1] }
  0x1b   :  { %v934_v52 = vsel %vm4523_vm2, %v902_v48, 0.0 }
  0x1c   :  { %3886 = vmatpush3.bf16.msra.mxu0 %v4221_v36  ;;  %v691_v36 = vsel %vm4493_vm14, %v641_v27, 0.0  ;;  %v246_v56 = vadd.f32 %v4452_v0, %v204_v44  ;;  %v3598_v57 = vpack.c.bf16 %v934_v52, %v934_v52  ;;  %v4228_v27 = vld [vmem:[%s5872_s3 + $0x100] sm:$0xff]   ;;  %v780_v44 = vmul.f32 %v4437_v55, %v748_v63 }
  0x1d   :  { %3950 = vmatpush3.bf16.msra.mxu1 %v4222_v38  ;;  %3887 = vmatprep.subr.bf16.mxu0 %v4223_v40  ;;  %v725_v38 = vpack.c.bf16 %v691_v36, %v690_v34  ;;  %v872_v40 = vmul.f32 0.1, %v808_v19  ;;  %v165_v52 = vunpack.c.l.bf16 %v4545_v51 }
  0x1e   :  { %3951 = vmatprep.subr.bf16.mxu1 %v4224_v41  ;;  %v203_v41 = vmul.f32 %v4437_v55, %v161_v25  ;;  %vm282_vm5 = vcmp.ge.f32.partialorder %v246_v56, 0.0  ;;  %v318_v62 = vmul.f32 0.1, %v246_v56  ;;  %v1610_v2 = vshrl.u32 %v3598_v57, 16 }
  0x1f   :  { %v3418_v47 = vcombine.low %v4272_v20, %v725_v38  ;;  %v904_v49 = vsel %vm840_vm1, %v808_v19, %v872_v40  ;;  %v1613_v3 = vshll.u32 %v3598_v57, 16  ;;  %v778_v19 = vmul.f32 %v4437_v55, %v746_v46 }
  0x20   :  { %3888 = vmatpush3.bf16.msra.mxu0 %v4225_v43  ;;  %v709_v43 = vsel %vm4493_vm14, %v4506_v33, 0.0  ;;  %v245_v50 = vadd.f32 %v4452_v0, %v203_v41  ;;  %v936_v53 = vsel %vm4523_vm2, %v904_v49, 0.0  ;;  %v3715_v54 = vpack.c.bf16 %v904_v49, %v902_v48 }
  0x21   :  { %3952 = vmatpush3.bf16.msra.mxu1 %v4226_v45  ;;  %4001 = vmatprep.subr.bf16.mxu0 %v4227_v5  ;;  %v205_v45 = vmul.f32 %v4437_v55, %v163_v30  ;;  %v3600_v58 = vpack.c.bf16 %v936_v53, %v936_v53  ;;  %v354_v9 = vsel %vm282_vm5, %v246_v56, %v318_v62  ;;  %v1612_v31 = vrot.slane %v1610_v2, 4  ;;  %v28_v30 = vld [vmem:[%s5873_s0 + $0x1c] sm:$0x1]  ;;  %v4231_v62 = vld [vmem:[%s5872_s3 + $0x150] sm:$0xff]  }
  0x22   :  { %2725 = vmatprep.mubr.bf16.mxu0 %v3418_v47  ;;  %vm281_vm4 = vcmp.ge.f32.partialorder %v245_v50, 0.0  ;;  %3716 = vmatprep.mubr.msk.bf16.mxu1 %vm4537_vm3, %v3715_v54  ;;  %v317_v61 = vmul.f32 0.1, %v245_v50  ;;  %v1615_v11 = vrot.slane %v1613_v3, 5  ;;  %v407_v17 = vsel %vm4563_vm7, %v354_v9, 0.0 }
  0x23   :  { %v247_v59 = vadd.f32 %v4452_v0, %v205_v45  ;;  %v1624_v5 = vshrl.u32 %v3600_v58, 16  ;;  %v1627_v6 = vshll.u32 %v3600_v58, 16  ;;  %4065 = vmatprep.subr.bf16.mxu1 %v4232_v60  ;;  %v4592_v25 = vsel %vm4571_vm9, %v4471_v14, %v4456_v4  ;;  %v4229_v45 = vld [vmem:[%s5872_s3 + $0x148] sm:$0xff]  }
  0x24   :  { %v4567_v8 = vsel %vm281_vm4, %v245_v50, %v317_v61  ;;  %v1616_v34 = vor.u32 %v1615_v11, %v1612_v31  ;;  %v3571_v38 = vpack.c.bf16 %v407_v17, %v407_v17  ;;  %v810_v49 = vadd.f32 %v4452_v0, %v778_v19 }
  0x25   :  { %vm283_vm8 = vcmp.ge.f32.partialorder %v247_v59, 0.0  ;;  %v319_v7 = vmul.f32 0.1, %v247_v59  ;;  %v1626_v12 = vrot.slane %v1624_v5, 4  ;;  %v1629_v13 = vrot.slane %v1627_v6, 5  ;;  %v4233_v6 = vld [vmem:[%s5872_s3 + $0x110] sm:$0xff]  }
  0x26   :  { %v406_v16 = vsel %vm4523_vm2, %v4567_v8, 0.0  ;;  %v1329_v48 = vshll.u32 %v3571_v38, 16  ;;  %v812_v50 = vadd.f32 %v4452_v0, %v780_v44  ;;  %v164_v53 = vunpack.c.l.bf16 %v26_v28  ;;  %v65_v38 = vld [vmem:[%s5873_s0 + $0xb0] ss:$8 sps:$4 sm:$0xff]  }
  0x27   :  { %v4575_v15 = vsel %vm283_vm8, %v247_v59, %v319_v7  ;;  %v441_v23 = vpack.c.bf16 %v407_v17, %v406_v16  ;;  %v3570_v36 = vpack.c.bf16 %v406_v16, %v406_v16  ;;  %v1630_v14 = vor.u32 %v1629_v13, %v1626_v12  ;;  %v4230_v59 = vld [vmem:[%s5872_s3 + $0x108] sm:$0xff]   ;;  %v4235_v12 = vld [vmem:[%s5872_s3 + $0x158] sm:$0xff]  }
  0x28   :  { %v408_v22 = vsel %vm4523_vm2, %v4575_v15, 0.0  ;;  %v166_v54 = vunpack.c.l.bf16 %v28_v30  ;;  %v4622_v56 = vrot.slane %v1616_v34, 4  ;;  %vm842_vm11 = vcmp.ge.f32.partialorder %v810_v49, 0.0 }
  0x29   :  { %v4612_v40 = vpack.c.bf16 %v408_v22, %v408_v22  ;;  %v3410_v41 = vcombine.low %v4272_v20, %v441_v23  ;;  %v1320_v46 = vshrl.u32 %v3570_v36, 16  ;;  %v1323_v47 = vshll.u32 %v3570_v36, 16 }
  0x2a   :  { %vm844_vm12 = vcmp.ge.f32.partialorder %v812_v50, 0.0  ;;  %v874_v60 = vmul.f32 0.1, %v810_v49  ;;  %v876_v61 = vmul.f32 0.1, %v812_v50  ;;  %v207_v51 = vmul.f32 %v4437_v55, %v165_v52 }
  0x2b   :  { %2726 = vmatmul.mubr.bf16.vlgmr.msra.gmra.mrb[0].mxu0 %v3410_v41  ;;  %v1322_v57 = vrot.slane %v1320_v46, 4  ;;  %v1325_v58 = vrot.slane %v1323_v47, 5  ;;  %v1331_v63 = vrot.slane %v1329_v48, 5  ;;  %v206_v3 = vmul.f32 %v4437_v55, %v164_v53  ;;  %v4236_v46 = vld [vmem:[%s5872_s3 + $0x1c8] sm:$0xff]  }
  0x2c   :  { %4002 = vmatpush3.bf16.msra.mxu0 %v4228_v27  ;;  %3680 = vmatprep.mubr.msk.bf16.mxu0 %vm4608_vm10, %v3679_v21  ;;  %v208_v5 = vmul.f32 %v4437_v55, %v166_v54  ;;  %v906_v7 = vsel %vm842_vm11, %v810_v49, %v874_v60  ;;  %v908_v9 = vsel %vm844_vm12, %v812_v50, %v876_v61  ;;  %v1334_v11 = vshrl.u32 %v4612_v40, 16  ;;  %v47_v27 = vld [vmem:[%s5873_s0 + $0x68] ss:$8 sps:$4 sm:$0xff]   ;;  %v4237_v49 = vld [vmem:[%s5872_s3 + $0x118] sm:$0xff]  }
  0x2d   :  { %4003 = vmatprep.subr.bf16.mxu0 %v4229_v45  ;;  %v1326_v2 = vor.u32 %v1325_v58, %v1322_v57  ;;  %v249_v31 = vadd.f32 %v4452_v0, %v207_v51  ;;  %v4643_v13 = vrot.slane %v1630_v14, 4  ;;  %v938_v17 = vsel %vm4523_vm2, %v906_v7, 0.0  ;;  %v4234_v14 = vld [vmem:[%s5872_s3 + $0x180] sm:$0xff]   ;;  %v4238_v51 = vld [vmem:[%s5872_s3 + $0x188] sm:$0xff]  }
  0x2e   :  { %v940_v19 = vsel %vm4523_vm2, %v908_v9, 0.0  ;;  %v4649_v21 = vpack.c.bf16 %v938_v17, %v938_v17  ;;  %v1337_v23 = vshll.u32 %v4612_v40, 16  ;;  %v3718_v30 = vpack.c.bf16 %v908_v9, %v906_v7  ;;  %v4239_v57 = vld [vmem:[%s5872_s3 + $0x160] sm:$0xff]  }
  0x2f   :  { %v1327_v16 = vrot.slane %v1326_v2, 4  ;;  %vm285_vm15 = vcmp.ge.f32.partialorder %v249_v31, 0.0  ;;  %v321_v22 = vmul.f32 0.1, %v249_v31  ;;  %v248_v34 = vadd.f32 %v4452_v0, %v206_v3  ;;  %v4241_v7 = vld [vmem:[%s5872_s3 + $0x120] sm:$0xff]  }
  0x30   :  { %4004 = vmatpush3.bf16.msra.mxu0 %v4230_v59  ;;  %v250_v36 = vadd.f32 %v4452_v0, %v208_v5  ;;  %v4669_v41 = vpack.c.bf16 %v940_v19, %v940_v19  ;;  %v1336_v45 = vrot.slane %v1334_v11, 4  ;;  %v1339_v59 = vrot.slane %v1337_v23, 5  ;;  %v4702_v5 = vld [vmem:[%s5873_s0 + $0x20] ss:$8 sps:$4 sm:$0xff]  }
  0x31   :  { %4005 = vmatprep.subr.bf16.mxu0 %v4231_v62  ;;  %v4657_v28 = vsel %vm4571_vm9, %v1327_v16, %v1331_v63  ;;  %v4677_v48 = vsel %vm285_vm15, %v249_v31, %v321_v22  ;;  %vm284_vm0 = vcmp.ge.f32.partialorder %v248_v34, 0.0  ;;  %v320_v53 = vmul.f32 0.1, %v248_v34  ;;  %v4242_v16 = vld [vmem:[%s5872_s3 + $0x190] sm:$0xff]  }
  0x32   :  { %5922 = vst [vmem:[#allocation2_spill] sm:$0xff] %v4657_v28  ;;  %v3426_v40 = vcombine.low %v4592_v25, %v4657_v28  ;;  %vm286_vm1 = vcmp.ge.f32.partialorder %v250_v36, 0.0  ;;  %v410_v50 = vsel %vm4523_vm2, %v4677_v48, 0.0  ;;  %v3682_v52 = vpack.c.bf16 %v4677_v48, %v4575_v15 }
  0x33   :  { %v322_v54 = vmul.f32 0.1, %v250_v36  ;;  %v3574_v58 = vpack.c.bf16 %v410_v50, %v410_v50  ;;  %v466_v60 = vunpack.c.l.bf16 %v47_v27  ;;  %v468_v61 = vunpack.c.h.bf16 %v47_v27  ;;  %v4243_v27 = vld [vmem:[%s5872_s3 + $0x168] sm:$0xff]  }
  0x34   :  { %4006 = vmatpush3.bf16.msra.mxu0 %v4233_v6  ;;  %2823 = vmatmul.mubr.bf16.vlgmr.msra.gmra.mrb[0].mxu1 %v3426_v40  ;;  %v356_v62 = vsel %vm284_vm0, %v248_v34, %v320_v53  ;;  %v750_v2 = vunpack.c.l.bf16 %v65_v38  ;;  %v752_v3 = vunpack.c.h.bf16 %v65_v38  ;;  %v4240_v6 = vld [vmem:[%s5872_s3 + $0x1d0] sm:$0xff]   ;;  %v1340_v11 = vor.u32 %v1339_v59, %v1336_v45 }
  0x35   :  { %4007 = vmatprep.subr.bf16.mxu0 %v4235_v12  ;;  %3719 = vmatprep.mubr.msk.bf16.mxu1 %vm4537_vm3, %v3718_v30  ;;  %v358_v63 = vsel %vm286_vm1, %v250_v36, %v322_v54  ;;  %v409_v9 = vsel %vm4563_vm7, %v356_v62, 0.0  ;;  %v1348_v12 = vshrl.u32 %v3574_v58, 16  ;;  %v1351_v22 = vshll.u32 %v3574_v58, 16 }
  0x36   :  { %4066 = vmatpush3.bf16.msra.mxu1 %v4234_v14  ;;  %3683 = vmatmul.mubr.msk.bf16.gmra.mrb[4].mxu0 %vm4537_vm3, %v3682_v52  ;;  %v411_v31 = vsel %vm4563_vm7, %v358_v63, 0.0  ;;  %v3573_v17 = vpack.c.bf16 %v409_v9, %v409_v9  ;;  %v502_v23 = vmul.f32 %v4437_v55, %v466_v60  ;;  %v1341_v30 = vrot.slane %v1340_v11, 4  ;;  %v30_v9 = vld [vmem:[%s5873_s0 + $0x24] sm:$0x1] }
  0x37   :  { %4067 = vmatprep.subr.bf16.mxu1 %v4236_v46  ;;  %v3575_v19 = vpack.c.bf16 %v411_v31, %v411_v31  ;;  %v1350_v34 = vrot.slane %v1348_v12, 4  ;;  %v504_v36 = vmul.f32 %v4437_v55, %v468_v61  ;;  %v782_v38 = vmul.f32 %v4437_v55, %v750_v2  ;;  %v4247_v61 = vld [vmem:[%s5872_s3 + $0x170] sm:$0xff]   ;;  %v4246_v2 = vld [vmem:[%s5872_s3 + $0x198] sm:$0xff]   ;;  %v32_v31 = vld [vmem:[%s5873_s0 + $0x2c] sm:$0x1] }
  0x38   :  { %4008 = vmatpush3.bf16.msra.mxu0 %v4237_v49  ;;  %v1343_v14 = vshll.u32 %v3573_v17, 16  ;;  %v1353_v40 = vrot.slane %v1351_v22, 5  ;;  %v538_v46 = vadd.f32 %v4452_v0, %v502_v23  ;;  %v4244_v49 = vld [vmem:[%s5872_s3 + $0x1d8] sm:$0xff]   ;;  %v784_v52 = vmul.f32 %v4437_v55, %v752_v3  ;;  %v4248_v11 = vld [vmem:[%s5872_s3 + $0x1e0] sm:$0xff]   ;;  %v4249_v22 = vld [vmem:[%s5872_s3 + $0x130] sm:$0xff]  }
  0x39   :  { %4009 = vmatprep.subr.bf16.mxu0 %v4239_v57  ;;  %v1357_v45 = vshll.u32 %v3575_v19, 16  ;;  %v540_v50 = vadd.f32 %v4452_v0, %v504_v36  ;;  %v814_v53 = vadd.f32 %v4452_v0, %v782_v38  ;;  %v167_v54 = vunpack.c.l.bf16 %v4702_v5  ;;  %v4245_v57 = vld [vmem:[%s5872_s3 + $0x128] sm:$0xff]   ;;  %v51_v19 = vld [vmem:[%s5873_s0 + $0x78] ss:$8 sps:$4 sm:$0xff]  }
  0x3a   :  { %4068 = vmatpush3.bf16.msra.mxu1 %v4238_v51  ;;  %v1345_v58 = vrot.slane %v1343_v14, 5  ;;  %v1354_v59 = vor.u32 %v1353_v40, %v1350_v34  ;;  %vm574_vm4 = vcmp.ge.f32.partialorder %v538_v46, 0.0  ;;  %v610_v51 = vmul.f32 0.1, %v538_v46  ;;  %v4250_v23 = vld [vmem:[%s5872_s3 + $0x1a0] sm:$0xff]   ;;  %v4253_v38 = vld [vmem:[%s5872_s3 + $0x178] sm:$0xff]  }
  0x3b   :  { %4069 = vmatprep.subr.bf16.mxu1 %v4240_v6  ;;  %v1359_v60 = vrot.slane %v1357_v45, 5  ;;  %vm576_vm5 = vcmp.ge.f32.partialorder %v540_v50, 0.0  ;;  %v612_v62 = vmul.f32 0.1, %v540_v50  ;;  %v816_v63 = vadd.f32 %v4452_v0, %v784_v52 }
  0x3c   :  { %4010 = vmatpush3.bf16.msra.mxu0 %v4241_v7  ;;  %v4743_v3 = vsel %vm4571_vm9, %v1341_v30, %v1345_v58  ;;  %v1355_v6 = vrot.slane %v1354_v59, 4  ;;  %vm846_vm6 = vcmp.ge.f32.partialorder %v814_v53, 0.0  ;;  %v878_v7 = vmul.f32 0.1, %v814_v53 }
  0x3d   :  { %4011 = vmatprep.subr.bf16.mxu0 %v4243_v27  ;;  %5923 = vst [vmem:[#allocation3_spill] sm:$0xff] %v4743_v3  ;;  %v4755_v12 = vsel %vm574_vm4, %v538_v46, %v610_v51  ;;  %vm848_vm8 = vcmp.ge.f32.partialorder %v816_v63, 0.0  ;;  %v880_v17 = vmul.f32 0.1, %v816_v63  ;;  %v169_v36 = vunpack.c.h.bf16 %v4702_v5 }
  0x3e   :  { %4070 = vmatpush3.bf16.msra.mxu1 %v4242_v16  ;;  %v4757_v16 = vsel %vm576_vm5, %v540_v50, %v612_v62  ;;  %v4770_v27 = vsel %vm4571_vm9, %v1355_v6, %v1359_v60  ;;  %v910_v34 = vsel %vm846_vm6, %v814_v53, %v878_v7  ;;  %v209_v46 = vmul.f32 %v4437_v55, %v167_v54  ;;  %v4797_v54 = vld [vmem:[%s5873_s0 + $0xc0] ss:$8 sps:$4 sm:$0xff]  }
  0x3f   :  { %4071 = vmatprep.subr.bf16.mxu1 %v4244_v49  ;;  %5924 = vst [vmem:[#allocation4_spill] sm:$0xff] %v4770_v27  ;;  %v3685_v30 = vpack.c.bf16 %v4757_v16, %v4755_v12  ;;  %v3427_v14 = vcombine.low %v4743_v3, %v4770_v27  ;;  %v912_v40 = vsel %vm848_vm8, %v816_v63, %v880_v17  ;;  %v942_v45 = vsel %vm4523_vm2, %v910_v34, 0.0  ;;  %v4251_v49 = vld [vmem:[%s5872_s3 + $0x1e8] sm:$0xff]  }
  0x40   :  { %4012 = vmatpush3.bf16.msra.mxu0 %v4245_v57  ;;  %v944_v5 = vsel %vm4523_vm2, %v912_v40, 0.0  ;;  %v4791_v50 = vpack.c.bf16 %v942_v45, %v942_v45  ;;  %v3721_v52 = vpack.c.bf16 %v912_v40, %v910_v34  ;;  %v211_v53 = vmul.f32 %v4437_v55, %v169_v36  ;;  %v4255_v57 = vld [vmem:[%s5872_s3 + $0x138] sm:$0xff]  }
  0x41   :  { %4013 = vmatprep.subr.bf16.mxu0 %v4247_v61  ;;  %3686 = vmatprep.mubr.msk.bf16.mxu0 %vm4608_vm10, %v3685_v30  ;;  %v251_v58 = vadd.f32 %v4452_v0, %v209_v46  ;;  %v168_v59 = vunpack.c.l.bf16 %v30_v9  ;;  %v170_v60 = vunpack.c.l.bf16 %v32_v31  ;;  %v470_v63 = vunpack.c.l.bf16 %v51_v19  ;;  %v4252_v9 = vld [vmem:[%s5872_s3 + $0x1a8] sm:$0xff]   ;;  %v4256_v46 = vld [vmem:[%s5872_s3 + $0x1b0] sm:$0xff]  }
  0x42   :  { %4072 = vmatpush3.bf16.msra.mxu1 %v4246_v2  ;;  %v253_v62 = vadd.f32 %v4452_v0, %v211_v53  ;;  %v4808_v2 = vpack.c.bf16 %v944_v5, %v944_v5  ;;  %v472_v34 = vunpack.c.h.bf16 %v51_v19  ;;  %v754_v36 = vunpack.c.l.bf16 %v4797_v54  ;;  %v4259_v19 = vld [vmem:[%s5872_s3 + $0x200] sm:$0xff]  }
  0x43   :  { %4073 = vmatprep.subr.bf16.mxu1 %v4248_v11  ;;  %2831 = vmatmul.mubr.bf16.gmra.mrb[4].mxu1 %v3427_v14  ;;  %vm287_vm11 = vcmp.ge.f32.partialorder %v251_v58, 0.0  ;;  %v323_v7 = vmul.f32 0.1, %v251_v58  ;;  %v210_v11 = vmul.f32 %v4437_v55, %v168_v59  ;;  %v212_v17 = vmul.f32 %v4437_v55, %v170_v60 }
  0x44   :  { %4014 = vmatpush3.bf16.msra.mxu0 %v4249_v22  ;;  %3722 = vmatprep.mubr.msk.bf16.mxu1 %vm4537_vm3, %v3721_v52  ;;  %vm289_vm12 = vcmp.ge.f32.partialorder %v253_v62, 0.0  ;;  %v325_v31 = vmul.f32 0.1, %v253_v62  ;;  %v4254_v22 = vld [vmem:[%s5872_s3 + $0x1f0] sm:$0xff]   ;;  %v508_v53 = vmul.f32 %v4437_v55, %v472_v34 }
  0x45   :  { %4015 = vmatprep.subr.bf16.mxu0 %v4253_v38  ;;  %v4819_v30 = vsel %vm287_vm11, %v251_v58, %v323_v7  ;;  %v252_v40 = vadd.f32 %v4452_v0, %v210_v11  ;;  %v254_v45 = vadd.f32 %v4452_v0, %v212_v17 }
  0x46   :  { %4074 = vmatpush3.bf16.msra.mxu1 %v4250_v23  ;;  %v506_v23 = vmul.f32 %v4437_v55, %v470_v63  ;;  %v4823_v38 = vsel %vm289_vm12, %v253_v62, %v325_v31  ;;  %v412_v14 = vsel %vm4523_vm2, %v4819_v30, 0.0  ;;  %v544_v17 = vadd.f32 %v4452_v0, %v508_v53 }
  0x47   :  { %4075 = vmatprep.subr.bf16.mxu1 %v4251_v49  ;;  %v414_v49 = vsel %vm4523_vm2, %v4823_v38, 0.0  ;;  %v3576_v5 = vpack.c.bf16 %v412_v14, %v412_v14  ;;  %v3688_v52 = vpack.c.bf16 %v4823_v38, %v4819_v30  ;;  %vm288_vm15 = vcmp.ge.f32.partialorder %v252_v40, 0.0 }
  0x48   :  { %4016 = vmatpush3.bf16.msra.mxu0 %v4255_v57  ;;  %v4257_v57 = vld [vmem:[%s5872_s3 + $0x1f8] sm:$0xff]   ;;  %v3578_v58 = vpack.c.bf16 %v414_v49, %v414_v49  ;;  %vm290_vm0 = vcmp.ge.f32.partialorder %v254_v45, 0.0  ;;  %v324_v59 = vmul.f32 0.1, %v252_v40  ;;  %v326_v60 = vmul.f32 0.1, %v254_v45 }
  0x49   :  { %4145 = vmatprep.subr.bf16.mxu0 %v4259_v19  ;;  %3689 = vmatmul.mubr.msk.bf16.gmra.mrb[8].mxu0 %vm4537_vm3, %v3688_v52  ;;  %v1362_v62 = vshrl.u32 %v3576_v5, 16  ;;  %v1365_v63 = vshll.u32 %v3576_v5, 16  ;;  %v542_v7 = vadd.f32 %v4452_v0, %v506_v23  ;;  %v4258_v52 = vld [vmem:[%s5872_s3 + $0x1b8] sm:$0xff]   ;;  %vm580_vm4 = vcmp.ge.f32.partialorder %v544_v17, 0.0 }
  0x4a   :  { %4076 = vmatpush3.bf16.msra.mxu1 %v4252_v9  ;;  %v360_v31 = vsel %vm288_vm15, %v252_v40, %v324_v59  ;;  %v1376_v9 = vshrl.u32 %v3578_v58, 16  ;;  %v1379_v11 = vshll.u32 %v3578_v58, 16  ;;  %v362_v34 = vsel %vm290_vm0, %v254_v45, %v326_v60  ;;  %v33_v45 = vld [vmem:[%s5873_s0 + $0x30] ss:$8 sps:$4 sm:$0xff]  }
  0x4b   :  { %4077 = vmatprep.subr.bf16.mxu1 %v4254_v22  ;;  %v413_v14 = vsel %vm4563_vm7, %v360_v31, 0.0  ;;  %v1364_v49 = vrot.slane %v1362_v62, 4  ;;  %v1367_v22 = vrot.slane %v1365_v63, 5  ;;  %v415_v5 = vsel %vm4563_vm7, %v362_v34, 0.0 }
  0x4c   :  { %v3577_v23 = vpack.c.bf16 %v413_v14, %v413_v14  ;;  %v1378_v40 = vrot.slane %v1376_v9, 4  ;;  %v1381_v59 = vrot.slane %v1379_v11, 5  ;;  %v3579_v58 = vpack.c.bf16 %v415_v5, %v415_v5 }
  0x4d   :  { %v1368_v53 = vor.u32 %v1367_v22, %v1364_v49  ;;  %vm578_vm1 = vcmp.ge.f32.partialorder %v542_v7, 0.0  ;;  %v614_v63 = vmul.f32 0.1, %v542_v7  ;;  %v616_v31 = vmul.f32 0.1, %v544_v17 }
  0x4e   :  { %4078 = vmatpush3.bf16.msra.mxu1 %v4256_v46  ;;  %v34_v46 = vld [vmem:[%s5873_s0 + $0x34] sm:$0x1]  ;;  %v1371_v60 = vshll.u32 %v3577_v23, 16  ;;  %v1382_v62 = vor.u32 %v1381_v59, %v1378_v40  ;;  %v1385_v9 = vshll.u32 %v3579_v58, 16  ;;  %v786_v11 = vmul.f32 %v4437_v55, %v754_v36 }
  0x4f   :  { %4079 = vmatprep.subr.bf16.mxu1 %v4257_v57  ;;  %v1369_v34 = vrot.slane %v1368_v53, 4  ;;  %v756_v57 = vunpack.c.h.bf16 %v4797_v54  ;;  %v4864_v22 = vsel %vm578_vm1, %v542_v7, %v614_v63  ;;  %v4866_v5 = vsel %vm580_vm4, %v544_v17, %v616_v31  ;;  %v36_v7 = vld [vmem:[%s5873_s0 + $0x3c] sm:$0x1] }
  0x50   :  { %v1373_v14 = vrot.slane %v1371_v60, 5  ;;  %v1383_v49 = vrot.slane %v1382_v62, 4  ;;  %v1387_v6 = vrot.slane %v1385_v9, 5  ;;  %v3691_v23 = vpack.c.bf16 %v4866_v5, %v4864_v22 }
  0x51   :  { %v788_v40 = vmul.f32 %v4437_v55, %v756_v57  ;;  %v818_v59 = vadd.f32 %v4452_v0, %v786_v11  ;;  %v171_v36 = vunpack.c.l.bf16 %v33_v45  ;;  %v172_v17 = vunpack.c.l.bf16 %v34_v46 }
  0x52   :  { %4080 = vmatpush3.bf16.msra.mxu1 %v4258_v52  ;;  %v4874_v54 = vsel %vm4571_vm9, %v1369_v34, %v1373_v14  ;;  %v173_v52 = vunpack.c.h.bf16 %v33_v45  ;;  %3692 = vmatprep.mubr.msk.bf16.mxu0 %vm4608_vm10, %v3691_v23  ;;  %v174_v63 = vunpack.c.l.bf16 %v36_v7 }
  0x53   :  { %4177 = vmatprep.subr.bf16.mxu1 %v4259_v19  ;;  %5925 = vst [vmem:[#allocation5_spill] sm:$0xff] %v4874_v54  ;;  %v4881_v19 = vsel %vm4571_vm9, %v1383_v49, %v1387_v6  ;;  %v820_v53 = vadd.f32 %v4452_v0, %v788_v40  ;;  %vm850_vm5 = vcmp.ge.f32.partialorder %v818_v59, 0.0  ;;  %v882_v60 = vmul.f32 0.1, %v818_v59 }
  0x54   :  { %5926 = vst [vmem:[#allocation6_spill] sm:$0xff] %v4881_v19  ;;  %v3428_v45 = vcombine.low %v4874_v54, %v4881_v19  ;;  %v213_v62 = vmul.f32 %v4437_v55, %v171_v36  ;;  %v215_v46 = vmul.f32 %v4437_v55, %v173_v52  ;;  %v214_v31 = vmul.f32 %v4437_v55, %v172_v17  ;;  %v109_v36 = vld [vmem:[%s5873_s0 + $0x170] ss:$72 sps:$4 sm:$0xff]  }
  0x55   :  { %vm852_vm6 = vcmp.ge.f32.partialorder %v820_v53, 0.0  ;;  %v884_v6 = vmul.f32 0.1, %v820_v53  ;;  %v914_v9 = vsel %vm850_vm5, %v818_v59, %v882_v60  ;;  %v216_v23 = vmul.f32 %v4437_v55, %v174_v63  ;;  %v4917_v63 = vld [vmem:[%s5873_s0 + $0x128] ss:$136 sps:$4 sm:$0xff]  }
  0x56   :  { %2839 = vmatmul.mubr.bf16.gmra.mrb[8].mxu1 %v3428_v45  ;;  %v255_v57 = vadd.f32 %v4452_v0, %v213_v62  ;;  %v257_v11 = vadd.f32 %v4452_v0, %v215_v46  ;;  %v946_v49 = vsel %vm4523_vm2, %v914_v9, 0.0  ;;  %v256_v40 = vadd.f32 %v4452_v0, %v214_v31 }
  0x57   :  { %v916_v14 = vsel %vm852_vm6, %v820_v53, %v884_v6  ;;  %v4905_v59 = vpack.c.bf16 %v946_v49, %v946_v49  ;;  %v258_v46 = vadd.f32 %v4452_v0, %v216_v23  ;;  %v478_v6 = vunpack.c.l.bf16 %v109_v36 }
  0x58   :  { %v948_v52 = vsel %vm4523_vm2, %v916_v14, 0.0  ;;  %v3724_v7 = vpack.c.bf16 %v916_v14, %v914_v9  ;;  %vm291_vm8 = vcmp.ge.f32.partialorder %v255_v57, 0.0  ;;  %vm293_vm11 = vcmp.ge.f32.partialorder %v257_v11, 0.0 }
  0x59   :  { %v327_v53 = vmul.f32 0.1, %v255_v57  ;;  %v329_v45 = vmul.f32 0.1, %v257_v11  ;;  %v4909_v62 = vpack.c.bf16 %v948_v52, %v948_v52  ;;  %vm292_vm12 = vcmp.ge.f32.partialorder %v256_v40, 0.0 }
  0x5a   :  { %3725 = vmatprep.mubr.msk.bf16.mxu1 %vm4537_vm3, %v3724_v7  ;;  %vm294_vm15 = vcmp.ge.f32.partialorder %v258_v46, 0.0  ;;  %v328_v58 = vmul.f32 0.1, %v256_v40  ;;  %v179_v31 = vunpack.c.l.bf16 %v4917_v63 }
  0x5b   :  { %v4920_v9 = vsel %vm291_vm8, %v255_v57, %v327_v53  ;;  %v4922_v14 = vsel %vm293_vm11, %v257_v11, %v329_v45  ;;  %v330_v57 = vmul.f32 0.1, %v258_v46  ;;  %v514_v11 = vmul.f32 %v4437_v55, %v478_v6 }
  0x5c   :  { %v416_v49 = vsel %vm4523_vm2, %v4920_v9, 0.0  ;;  %v418_v0 = vsel %vm4523_vm2, %v4922_v14, 0.0  ;;  %v3694_v23 = vpack.c.bf16 %v4922_v14, %v4920_v9  ;;  %v758_v53 = vunpack.c.h.bf16 %v4917_v63 }
  0x5d   :  { %v3580_v52 = vpack.c.bf16 %v416_v49, %v416_v49  ;;  %v3582_v7 = vpack.c.bf16 %v418_v0, %v418_v0  ;;  %v760_v45 = vunpack.c.h.bf16 %v109_v36  ;;  %v364_v60 = vsel %vm292_vm12, %v256_v40, %v328_v58  ;;  %v4944_v58 = vld [vmem:[%s5875_s2] ss:$0 sm:$0xff] }
  0x5e   :  { %3695 = vmatmul.mubr.msk.bf16.gmra.mrb[12].mxu0 %vm4537_vm3, %v3694_v23  ;;  %v366_v17 = vsel %vm294_vm15, %v258_v46, %v330_v57  ;;  %v417_v49 = vsel %vm4563_vm7, %v364_v60, 0.0  ;;  %v550_v40 = vadd.f32 %v4944_v58, %v514_v11  ;;  %v4950_v60 = vld [vmem:[%s5874_s1] ss:$0 sm:$0xff] }
  0x5f   :  { %v1390_v34 = vshrl.u32 %v3580_v52, 16  ;;  %v1393_v39 = vshll.u32 %v3580_v52, 16  ;;  %v419_v0 = vsel %vm4563_vm7, %v366_v17, 0.0  ;;  %v1404_v51 = vshrl.u32 %v3582_v7, 16 }
  0x60   :  { %v1407_v61 = vshll.u32 %v3582_v7, 16  ;;  %v3581_v23 = vpack.c.bf16 %v417_v49, %v417_v49  ;;  %v3583_v37 = vpack.c.bf16 %v419_v0, %v419_v0  ;;  %v790_v17 = vmul.f32 %v4950_v60, %v758_v53  ;;  %v92_v0 = vld [vmem:[%s5873_s0 + $0x12c] sm:$0x1] }
  0x61   :  { %v1392_v55 = vrot.slane %v1390_v34, 4  ;;  %v1395_v6 = vrot.slane %v1393_v39, 5  ;;  %v1406_v47 = vrot.slane %v1404_v51, 4  ;;  %v792_v39 = vmul.f32 %v4950_v60, %v760_v45 }
  0x62   :  { %v1409_v36 = vrot.slane %v1407_v61, 5  ;;  %v1399_v63 = vshll.u32 %v3581_v23, 16  ;;  %v1413_v34 = vshll.u32 %v3583_v37, 16  ;;  %vm586_vm0 = vcmp.ge.f32.partialorder %v550_v40, 0.0 }
  0x63   :  { %v1396_v46 = vor.u32 %v1395_v6, %v1392_v55  ;;  %v622_v51 = vmul.f32 0.1, %v550_v40  ;;  %v822_v52 = vadd.f32 %v4944_v58, %v790_v17  ;;  %v824_v49 = vadd.f32 %v4944_v58, %v792_v39 }
  0x64   :  { %v1410_v61 = vor.u32 %v1409_v36, %v1406_v47  ;;  %v1401_v57 = vrot.slane %v1399_v63, 5  ;;  %v1415_v11 = vrot.slane %v1413_v34, 5  ;;  %v180_v17 = vunpack.c.l.bf16 %v92_v0 }
  0x65   :  { %v1397_v7 = vrot.slane %v1396_v46, 4  ;;  %v4959_v55 = vsel %vm586_vm0, %v550_v40, %v622_v51  ;;  %vm854_vm1 = vcmp.ge.f32.partialorder %v822_v52, 0.0  ;;  %v886_v37 = vmul.f32 0.1, %v822_v52  ;;  %v111_v46 = vld [vmem:[%s5873_s0 + $0x178] ss:$8 sps:$4 sm:$0xff]  }
  0x66   :  { %v1411_v53 = vrot.slane %v1410_v61, 4  ;;  %v708_v45 = vsel %vm4484_vm13, %v4959_v55, 0.0  ;;  %vm856_vm4 = vcmp.ge.f32.partialorder %v824_v49, 0.0  ;;  %v888_v23 = vmul.f32 0.1, %v824_v49 }
  0x67   :  { %v4963_v47 = vsel %vm4571_vm9, %v1397_v7, %v1401_v57  ;;  %v734_v36 = vpack.c.bf16 %v709_v43, %v708_v45  ;;  %v918_v40 = vsel %vm854_vm1, %v822_v52, %v886_v37  ;;  %v221_v39 = vmul.f32 %v4950_v60, %v179_v31  ;;  %v93_v37 = vld [vmem:[%s5873_s0 + $0x130] ss:$8 sps:$4 sm:$0xff]  }
  0x68   :  { %5927 = vst [vmem:[#allocation7_spill] sm:$0xff] %v4963_v47  ;;  %v4970_v6 = vsel %vm4571_vm9, %v1411_v53, %v1415_v11  ;;  %v920_v63 = vsel %vm856_vm4, %v824_v49, %v888_v23  ;;  %v950_v34 = vsel %vm4523_vm2, %v918_v40, 0.0  ;;  %v222_v7 = vmul.f32 %v4950_v60, %v180_v17 }
  0x69   :  { %5928 = vst [vmem:[#allocation8_spill] sm:$0xff] %v4970_v6  ;;  %v3429_v18 = vcombine.low %v4963_v47, %v4970_v6  ;;  %v3422_v33 = vcombine.low %v4272_v20, %v734_v36  ;;  %v952_v43 = vsel %vm4523_vm2, %v920_v63, 0.0  ;;  %v4990_v61 = vpack.c.bf16 %v950_v34, %v950_v34 }
  0x6a   :  { %v3727_v51 = vpack.c.bf16 %v920_v63, %v918_v40  ;;  %v263_v57 = vadd.f32 %v4944_v58, %v221_v39  ;;  %v480_v31 = vunpack.c.l.bf16 %v111_v46  ;;  %v482_v0 = vunpack.c.h.bf16 %v111_v46 }
  0x6b   :  { %2847 = vmatmul.mubr.bf16.gmra.mrb[12].mxu1 %v3429_v18  ;;  %2757 = vmatprep.mubr.bf16.mxu0 %v3422_v33  ;;  %v762_v53 = vunpack.c.l.bf16 %v129_v24  ;;  %v5002_v45 = vpack.c.bf16 %v952_v43, %v952_v43  ;;  %v264_v36 = vadd.f32 %v4944_v58, %v222_v7  ;;  %v764_v63 = vunpack.c.h.bf16 %v129_v24 }
  0x6c   :  { %3728 = vmatprep.mubr.msk.bf16.mxu1 %vm4537_vm3, %v3727_v51  ;;  %vm299_vm13 = vcmp.ge.f32.partialorder %v263_v57, 0.0  ;;  %v335_v40 = vmul.f32 0.1, %v263_v57  ;;  %v516_v17 = vmul.f32 %v4950_v60, %v480_v31  ;;  %v518_v18 = vmul.f32 %v4950_v60, %v482_v0 }
  0x6d   :  { %vm300_vm14 = vcmp.ge.f32.partialorder %v264_v36, 0.0  ;;  %v336_v46 = vmul.f32 0.1, %v264_v36  ;;  %v794_v34 = vmul.f32 %v4950_v60, %v762_v53  ;;  %v181_v39 = vunpack.c.l.bf16 %v93_v37 }
  0x6e   :  { %v5009_v33 = vsel %vm299_vm13, %v263_v57, %v335_v40  ;;  %v552_v43 = vadd.f32 %v4944_v58, %v516_v17  ;;  %v554_v51 = vadd.f32 %v4944_v58, %v518_v18  ;;  %v796_v7 = vmul.f32 %v4950_v60, %v764_v63 }
  0x6f   :  { %v372_v23 = vsel %vm300_vm14, %v264_v36, %v336_v46  ;;  %v424_v31 = vsel %vm4523_vm2, %v5009_v33, 0.0  ;;  %v826_v24 = vadd.f32 %v4944_v58, %v794_v34  ;;  %v183_v0 = vunpack.c.h.bf16 %v93_v37 }
  0x70   :  { %v425_v53 = vsel %vm4563_vm7, %v372_v23, 0.0  ;;  %v3584_v49 = vpack.c.bf16 %v424_v31, %v424_v31  ;;  %vm588_vm5 = vcmp.ge.f32.partialorder %v552_v43, 0.0  ;;  %vm590_vm6 = vcmp.ge.f32.partialorder %v554_v51, 0.0  ;;  %v94_v23 = vld [vmem:[%s5873_s0 + $0x134] sm:$0x1] }
  0x71   :  { %v450_v57 = vpack.c.bf16 %v425_v53, %v424_v31  ;;  %v3585_v40 = vpack.c.bf16 %v425_v53, %v425_v53  ;;  %v624_v17 = vmul.f32 0.1, %v552_v43  ;;  %v626_v18 = vmul.f32 0.1, %v554_v51  ;;  %v96_v31 = vld [vmem:[%s5873_s0 + $0x13c] sm:$0x1] }
  0x72   :  { %v1432_v11 = vshrl.u32 %v3584_v49, 16  ;;  %v1435_v63 = vshll.u32 %v3584_v49, 16  ;;  %v828_v36 = vadd.f32 %v4944_v58, %v796_v7  ;;  %vm858_vm8 = vcmp.ge.f32.partialorder %v826_v24, 0.0 }
  0x73   :  { %v1441_v46 = vshll.u32 %v3585_v40, 16  ;;  %v3414_v52 = vcombine.low %v4272_v20, %v450_v57  ;;  %v5022_v34 = vsel %vm588_vm5, %v552_v43, %v624_v17  ;;  %v5024_v37 = vsel %vm590_vm6, %v554_v51, %v626_v18  ;;  %v115_v20 = vld [vmem:[%s5873_s0 + $0x188] ss:$8 sps:$4 sm:$0xff]  }
  0x74   :  { %5929 = vst [vmem:[#allocation9_spill] sm:$0xff] %v5024_v37  ;;  %v1434_v53 = vrot.slane %v1432_v11, 4  ;;  %v1437_v49 = vrot.slane %v1435_v63, 5  ;;  %v3697_v7 = vpack.c.bf16 %v5024_v37, %v5022_v34  ;;  %vm860_vm11 = vcmp.ge.f32.partialorder %v828_v36, 0.0 }
  0x75   :  { %v1443_v43 = vrot.slane %v1441_v46, 5  ;;  %2758 = vmatmul.mubr.bf16.gmra.mrb[16].mxu0 %v3414_v52  ;;  %v890_v51 = vmul.f32 0.1, %v826_v24  ;;  %v892_v57 = vmul.f32 0.1, %v828_v36  ;;  %v223_v40 = vmul.f32 %v4950_v60, %v181_v39 }
  0x76   :  { %v1438_v17 = vor.u32 %v1437_v49, %v1434_v53  ;;  %3698 = vmatprep.mubr.msk.bf16.mxu0 %vm4608_vm10, %v3697_v7  ;;  %v225_v11 = vmul.f32 %v4950_v60, %v183_v0  ;;  %v182_v18 = vunpack.c.l.bf16 %v94_v23  ;;  %v184_v63 = vunpack.c.l.bf16 %v96_v31 }
  0x77   :  { %v922_v6 = vsel %vm858_vm8, %v826_v24, %v890_v51  ;;  %v924_v54 = vsel %vm860_vm11, %v828_v36, %v892_v57  ;;  %v265_v46 = vadd.f32 %v4944_v58, %v223_v40  ;;  %v484_v53 = vunpack.c.l.bf16 %v115_v20 }
  0x78   :  { %v1439_v52 = vrot.slane %v1438_v17, 4  ;;  %v954_v27 = vsel %vm4523_vm2, %v922_v6, 0.0  ;;  %v956_v39 = vsel %vm4523_vm2, %v924_v54, 0.0  ;;  %v3730_v0 = vpack.c.bf16 %v924_v54, %v922_v6  ;;  %v133_v6 = vld [vmem:[%s5873_s0 + $0x1d0] ss:$8 sps:$4 sm:$0xff]  }
  0x79   :  { %v5048_v49 = vpack.c.bf16 %v954_v27, %v954_v27  ;;  %v267_v23 = vadd.f32 %v4944_v58, %v225_v11  ;;  %vm301_vm12 = vcmp.ge.f32.partialorder %v265_v46, 0.0  ;;  %v337_v36 = vmul.f32 0.1, %v265_v46 }
  0x7a   :  { %v5053_v24 = vsel %vm4571_vm9, %v1439_v52, %v1443_v43  ;;  %v224_v31 = vmul.f32 %v4950_v60, %v182_v18  ;;  %v226_v7 = vmul.f32 %v4950_v60, %v184_v63  ;;  %v5061_v54 = vpack.c.bf16 %v956_v39, %v956_v39 }
  0x7b   :  { %5930 = vst [vmem:[#allocation10_spill] sm:$0xff] %v5053_v24  ;;  %v3430_v27 = vcombine.low %v4592_v25, %v5053_v24  ;;  %vm303_vm15 = vcmp.ge.f32.partialorder %v267_v23, 0.0  ;;  %v339_v40 = vmul.f32 0.1, %v267_v23  ;;  %v5067_v17 = vsel %vm301_vm12, %v265_v46, %v337_v36 }
  0x7c   :  { %5931 = vst [vmem:[#allocation11_spill] sm:$0xff] %v5061_v54  ;;  %v426_v11 = vsel %vm4523_vm2, %v5067_v17, 0.0  ;;  %v266_v18 = vadd.f32 %v4944_v58, %v224_v31  ;;  %v268_v25 = vadd.f32 %v4944_v58, %v226_v7  ;;  %v486_v63 = vunpack.c.h.bf16 %v115_v20 }
  0x7d   :  { %2855 = vmatmul.mubr.bf16.gmra.mrb[16].mxu1 %v3430_v27  ;;  %v5076_v52 = vsel %vm303_vm15, %v267_v23, %v339_v40  ;;  %v3586_v39 = vpack.c.bf16 %v426_v11, %v426_v11  ;;  %v520_v43 = vmul.f32 %v4950_v60, %v484_v53  ;;  %v766_v46 = vunpack.c.l.bf16 %v133_v6 }
  0x7e   :  { %3731 = vmatprep.mubr.msk.bf16.mxu1 %vm4537_vm3, %v3730_v0  ;;  %5932 = vst [vmem:[#allocation12_spill] sm:$0xff] %v5076_v52  ;;  %v428_v36 = vsel %vm4523_vm2, %v5076_v52, 0.0  ;;  %v3700_v27 = vpack.c.bf16 %v5076_v52, %v5067_v17  ;;  %vm302_vm0 = vcmp.ge.f32.partialorder %v266_v18, 0.0  ;;  %vm304_vm1 = vcmp.ge.f32.partialorder %v268_v25, 0.0 }
  0x7f   :  { %v3588_v31 = vpack.c.bf16 %v428_v36, %v428_v36  ;;  %v338_v20 = vmul.f32 0.1, %v266_v18  ;;  %v340_v7 = vmul.f32 0.1, %v268_v25  ;;  %v1446_v57 = vshrl.u32 %v3586_v39, 16 }
  0x80   :  { %3701 = vmatmul.mubr.msk.bf16.gmra.mrb[20].mxu0 %vm4537_vm3, %v3700_v27  ;;  %v1449_v0 = vshll.u32 %v3586_v39, 16  ;;  %v522_v53 = vmul.f32 %v4950_v60, %v486_v63  ;;  %v556_v23 = vadd.f32 %v4944_v58, %v520_v43  ;;  %v768_v40 = vunpack.c.h.bf16 %v133_v6 }
  0x81   :  { %v374_v11 = vsel %vm302_vm0, %v266_v18, %v338_v20  ;;  %v376_v51 = vsel %vm304_vm1, %v268_v25, %v340_v7  ;;  %v1448_v44 = vrot.slane %v1446_v57, 4  ;;  %v1460_v19 = vshrl.u32 %v3588_v31, 16  ;;  %v97_v57 = vld [vmem:[%s5873_s0 + $0x140] ss:$8 sps:$4 sm:$0xff]  }
  0x82   :  { %v427_v47 = vsel %vm4563_vm7, %v374_v11, 0.0  ;;  %v429_v36 = vsel %vm4563_vm7, %v376_v51, 0.0  ;;  %v1451_v24 = vrot.slane %v1449_v0, 5  ;;  %v1463_v28 = vshll.u32 %v3588_v31, 16 }
  0x83   :  { %v3587_v3 = vpack.c.bf16 %v427_v47, %v427_v47  ;;  %v3589_v27 = vpack.c.bf16 %v429_v36, %v429_v36  ;;  %v1462_v39 = vrot.slane %v1460_v19, 4  ;;  %v558_v63 = vadd.f32 %v4944_v58, %v522_v53 }
  0x84   :  { %v1452_v52 = vor.u32 %v1451_v24, %v1448_v44  ;;  %v1465_v43 = vrot.slane %v1463_v28, 5  ;;  %vm592_vm4 = vcmp.ge.f32.partialorder %v556_v23, 0.0  ;;  %v628_v6 = vmul.f32 0.1, %v556_v23  ;;  %v98_v28 = vld [vmem:[%s5873_s0 + $0x144] sm:$0x1] }
  0x85   :  { %v1455_v18 = vshll.u32 %v3587_v3, 16  ;;  %v1469_v25 = vshll.u32 %v3589_v27, 16  ;;  %vm594_vm13 = vcmp.ge.f32.partialorder %v558_v63, 0.0  ;;  %v630_v20 = vmul.f32 0.1, %v558_v63 }
  0x86   :  { %v1453_v51 = vrot.slane %v1452_v52, 4  ;;  %v1466_v7 = vor.u32 %v1465_v43, %v1462_v39  ;;  %v5096_v31 = vsel %vm592_vm4, %v556_v23, %v628_v6  ;;  %v798_v19 = vmul.f32 %v4950_v60, %v766_v46  ;;  %v100_v27 = vld [vmem:[%s5873_s0 + $0x14c] sm:$0x1] }
  0x87   :  { %5933 = vst [vmem:[#allocation13_spill] sm:$0xff] %v5096_v31  ;;  %v1457_v44 = vrot.slane %v1455_v18, 5  ;;  %v1471_v47 = vrot.slane %v1469_v25, 5  ;;  %v5102_v24 = vsel %vm594_vm13, %v558_v63, %v630_v20  ;;  %v800_v0 = vmul.f32 %v4950_v60, %v768_v40 }
  0x88   :  { %5934 = vst [vmem:[#allocation14_spill] sm:$0xff] %v5102_v24  ;;  %v1467_v3 = vrot.slane %v1466_v7, 4  ;;  %v3703_v53 = vpack.c.bf16 %v5102_v24, %v5096_v31  ;;  %v830_v52 = vadd.f32 %v4944_v58, %v798_v19  ;;  %v185_v23 = vunpack.c.l.bf16 %v97_v57 }
  0x89   :  { %v5110_v46 = vsel %vm4571_vm9, %v1453_v51, %v1457_v44  ;;  %v832_v11 = vadd.f32 %v4944_v58, %v800_v0  ;;  %v187_v36 = vunpack.c.h.bf16 %v97_v57  ;;  %v186_v39 = vunpack.c.l.bf16 %v98_v28  ;;  %v119_v0 = vld [vmem:[%s5873_s0 + $0x198] ss:$8 sps:$4 sm:$0xff]  }
  0x8a   :  { %5935 = vst [vmem:[#allocation15_spill] sm:$0xff] %v5110_v46  ;;  %v5118_v40 = vsel %vm4571_vm9, %v1467_v3, %v1471_v47  ;;  %3704 = vmatprep.mubr.msk.bf16.mxu0 %vm4608_vm10, %v3703_v53  ;;  %vm862_vm14 = vcmp.ge.f32.partialorder %v830_v52, 0.0  ;;  %v894_v63 = vmul.f32 0.1, %v830_v52  ;;  %v227_v43 = vmul.f32 %v4950_v60, %v185_v23 }
  0x8b   :  { %5936 = vst [vmem:[#allocation16_spill] sm:$0xff] %v5118_v40  ;;  %v3431_v6 = vcombine.low %v5110_v46, %v5118_v40  ;;  %vm864_vm5 = vcmp.ge.f32.partialorder %v832_v11, 0.0  ;;  %v896_v57 = vmul.f32 0.1, %v832_v11  ;;  %v229_v18 = vmul.f32 %v4950_v60, %v187_v36 }
  0x8c   :  { %v926_v25 = vsel %vm862_vm14, %v830_v52, %v894_v63  ;;  %v269_v20 = vadd.f32 %v4944_v58, %v227_v43  ;;  %v188_v51 = vunpack.c.l.bf16 %v100_v27  ;;  %v228_v7 = vmul.f32 %v4950_v60, %v186_v39 }
  0x8d   :  { %2863 = vmatmul.mubr.bf16.gmra.mrb[20].mxu1 %v3431_v6  ;;  %v928_v28 = vsel %vm864_vm5, %v832_v11, %v896_v57  ;;  %v958_v44 = vsel %vm4523_vm2, %v926_v25, 0.0  ;;  %v271_v47 = vadd.f32 %v4944_v58, %v229_v18  ;;  %v488_v43 = vunpack.c.l.bf16 %v119_v0 }
  0x8e   :  { %v960_v3 = vsel %vm4523_vm2, %v928_v28, 0.0  ;;  %v5137_v53 = vpack.c.bf16 %v958_v44, %v958_v44  ;;  %v3733_v52 = vpack.c.bf16 %v928_v28, %v926_v25  ;;  %vm305_vm6 = vcmp.ge.f32.partialorder %v269_v20, 0.0 }
  0x8f   :  { %vm307_vm8 = vcmp.ge.f32.partialorder %v271_v47, 0.0  ;;  %v341_v11 = vmul.f32 0.1, %v269_v20  ;;  %v343_v36 = vmul.f32 0.1, %v271_v47  ;;  %v230_v39 = vmul.f32 %v4950_v60, %v188_v51 }
  0x90   :  { %5937 = vst [vmem:[#allocation17_spill] sm:$0xff] %v5137_v53  ;;  %3734 = vmatprep.mubr.msk.bf16.mxu1 %vm4537_vm3, %v3733_v52  ;;  %v270_v63 = vadd.f32 %v4944_v58, %v228_v7  ;;  %v5145_v6 = vpack.c.bf16 %v960_v3, %v960_v3 }
  0x91   :  { %v5148_v18 = vsel %vm305_vm6, %v269_v20, %v341_v11  ;;  %v5150_v25 = vsel %vm307_vm8, %v271_v47, %v343_v36  ;;  %v272_v7 = vadd.f32 %v4944_v58, %v230_v39  ;;  %v490_v11 = vunpack.c.h.bf16 %v119_v0 }
  0x92   :  { %5938 = vst [vmem:[#allocation18_spill] sm:$0xff] %v5145_v6  ;;  %5939 = vst [vmem:[#allocation19_spill] sm:$0xff] %v5148_v18  ;;  %v430_v28 = vsel %vm4523_vm2, %v5148_v18, 0.0  ;;  %v432_v44 = vsel %vm4523_vm2, %v5150_v25, 0.0  ;;  %v3706_v51 = vpack.c.bf16 %v5150_v25, %v5148_v18  ;;  %vm306_vm11 = vcmp.ge.f32.partialorder %v270_v63, 0.0 }
  0x93   :  { %5940 = vst [vmem:[#allocation20_spill] sm:$0xff] %v5150_v25  ;;  %v3590_v3 = vpack.c.bf16 %v430_v28, %v430_v28  ;;  %v3592_v52 = vpack.c.bf16 %v432_v44, %v432_v44  ;;  %v342_v20 = vmul.f32 0.1, %v270_v63  ;;  %vm308_vm12 = vcmp.ge.f32.partialorder %v272_v7, 0.0 }
  0x94   :  { %3707 = vmatmul.mubr.msk.bf16.gmra.mrb[24].mxu0 %vm4537_vm3, %v3706_v51  ;;  %v344_v47 = vmul.f32 0.1, %v272_v7  ;;  %v524_v36 = vmul.f32 %v4950_v60, %v488_v43  ;;  %v526_v44 = vmul.f32 %v4950_v60, %v490_v11  ;;  %v137_v51 = vld [vmem:[%s5873_s0 + $0x1e0] ss:$8 sps:$4 sm:$0xff]  }
  0x95   :  { %v378_v57 = vsel %vm306_vm11, %v270_v63, %v342_v20  ;;  %v1474_v27 = vshrl.u32 %v3590_v3, 16  ;;  %v1477_v23 = vshll.u32 %v3590_v3, 16  ;;  %v1488_v19 = vshrl.u32 %v3592_v52, 16 }
  0x96   :  { %v380_v46 = vsel %vm308_vm12, %v272_v7, %v344_v47  ;;  %v431_v39 = vsel %vm4563_vm7, %v378_v57, 0.0  ;;  %v1491_v28 = vshll.u32 %v3592_v52, 16  ;;  %v560_v7 = vadd.f32 %v4944_v58, %v524_v36 }
  0x97   :  { %v433_v0 = vsel %vm4563_vm7, %v380_v46, 0.0  ;;  %v3591_v25 = vpack.c.bf16 %v431_v39, %v431_v39  ;;  %v1476_v43 = vrot.slane %v1474_v27, 4  ;;  %v1479_v63 = vrot.slane %v1477_v23, 5  ;;  %v101_v46 = vld [vmem:[%s5873_s0 + $0x150] ss:$8 sps:$4 sm:$0xff]  }
  0x98   :  { %v3593_v20 = vpack.c.bf16 %v433_v0, %v433_v0  ;;  %v1490_v3 = vrot.slane %v1488_v19, 4  ;;  %v1493_v24 = vrot.slane %v1491_v28, 5  ;;  %v562_v52 = vadd.f32 %v4944_v58, %v526_v44 }
  0x99   :  { %v1480_v47 = vor.u32 %v1479_v63, %v1476_v43  ;;  %v1483_v57 = vshll.u32 %v3591_v25, 16  ;;  %v770_v11 = vunpack.c.l.bf16 %v137_v51  ;;  %vm596_vm15 = vcmp.ge.f32.partialorder %v560_v7, 0.0  ;;  %v102_v63 = vld [vmem:[%s5873_s0 + $0x154] sm:$0x1] }
  0x9a   :  { %v1494_v18 = vor.u32 %v1493_v24, %v1490_v3  ;;  %v1497_v31 = vshll.u32 %v3593_v20, 16  ;;  %v632_v37 = vmul.f32 0.1, %v560_v7  ;;  %vm598_vm0 = vcmp.ge.f32.partialorder %v562_v52, 0.0 }
  0x9b   :  { %v1481_v27 = vrot.slane %v1480_v47, 4  ;;  %v1485_v23 = vrot.slane %v1483_v57, 5  ;;  %v634_v19 = vmul.f32 0.1, %v562_v52  ;;  %v772_v25 = vunpack.c.h.bf16 %v137_v51 }
  0x9c   :  { %v1495_v39 = vrot.slane %v1494_v18, 4  ;;  %v1499_v28 = vrot.slane %v1497_v31, 5  ;;  %v5177_v36 = vsel %vm596_vm15, %v560_v7, %v632_v37  ;;  %v802_v0 = vmul.f32 %v4950_v60, %v770_v11  ;;  %v104_v31 = vld [vmem:[%s5873_s0 + $0x15c] sm:$0x1] }
  0x9d   :  { %5941 = vst [vmem:[#allocation21_spill] sm:$0xff] %v5177_v36  ;;  %v5181_v44 = vsel %vm4571_vm9, %v1481_v27, %v1485_v23  ;;  %v5183_v24 = vsel %vm598_vm0, %v562_v52, %v634_v19  ;;  %v189_v43 = vunpack.c.l.bf16 %v101_v46  ;;  %v804_v20 = vmul.f32 %v4950_v60, %v772_v25 }
  0x9e   :  { %5942 = vst [vmem:[#allocation22_spill] sm:$0xff] %v5181_v44  ;;  %5943 = vst [vmem:[#allocation23_spill] sm:$0xff] %v5183_v24  ;;  %v5194_v37 = vsel %vm4571_vm9, %v1495_v39, %v1499_v28  ;;  %v3709_v51 = vpack.c.bf16 %v5183_v24, %v5177_v36  ;;  %v834_v7 = vadd.f32 %v4944_v58, %v802_v0  ;;  %v191_v47 = vunpack.c.h.bf16 %v101_v46 }
  0x9f   :  { %5944 = vst [vmem:[#allocation24_spill] sm:$0xff] %v5194_v37  ;;  %v3432_v3 = vcombine.low %v5181_v44, %v5194_v37  ;;  %v231_v57 = vmul.f32 %v4950_v60, %v189_v43  ;;  %v836_v11 = vadd.f32 %v4944_v58, %v804_v20  ;;  %v190_v27 = vunpack.c.l.bf16 %v102_v63 }
  0xa0   :  { %3710 = vmatprep.mubr.msk.bf16.mxu0 %vm4608_vm10, %v3709_v51  ;;  %v192_v23 = vunpack.c.l.bf16 %v104_v31  ;;  %vm866_vm1 = vcmp.ge.f32.partialorder %v834_v7, 0.0  ;;  %v898_v19 = vmul.f32 0.1, %v834_v7  ;;  %v233_v39 = vmul.f32 %v4950_v60, %v191_v47 }
  0xa1   :  { %2871 = vmatmul.mubr.bf16.gmra.mrb[24].mxu1 %v3432_v3  ;;  %v273_v28 = vadd.f32 %v4944_v58, %v231_v57  ;;  %vm868_vm4 = vcmp.ge.f32.partialorder %v836_v11, 0.0  ;;  %v900_v46 = vmul.f32 0.1, %v836_v11  ;;  %v232_v25 = vmul.f32 %v4950_v60, %v190_v27  ;;  %v58_v57 = vld [vmem:[%s5873_s0 + $0x94] sm:$0x1] }
  0xa2   :  { %v234_v0 = vmul.f32 %v4950_v60, %v192_v23  ;;  %v930_v43 = vsel %vm866_vm1, %v834_v7, %v898_v19  ;;  %v275_v51 = vadd.f32 %v4944_v58, %v233_v39 }
  0xa3   :  { %vm309_vm13 = vcmp.ge.f32.partialorder %v273_v28, 0.0  ;;  %v345_v20 = vmul.f32 0.1, %v273_v28  ;;  %v932_v63 = vsel %vm868_vm4, %v836_v11, %v900_v46  ;;  %v962_v31 = vsel %vm4523_vm2, %v930_v43, 0.0 }
  0xa4   :  { %v274_v3 = vadd.f32 %v4944_v58, %v232_v25  ;;  %v276_v47 = vadd.f32 %v4944_v58, %v234_v0  ;;  %v964_v27 = vsel %vm4523_vm2, %v932_v63, 0.0  ;;  %v5223_v7 = vpack.c.bf16 %v962_v31, %v962_v31 }
  0xa5   :  { %v3736_v23 = vpack.c.bf16 %v932_v63, %v930_v43  ;;  %vm311_vm14 = vcmp.ge.f32.partialorder %v275_v51, 0.0  ;;  %v347_v39 = vmul.f32 0.1, %v275_v51  ;;  %v5227_v46 = vsel %vm309_vm13, %v273_v28, %v345_v20  ;;  %v60_v43 = vld [vmem:[%s5873_s0 + $0x9c] sm:$0x1] }
  0xa6   :  { %5945 = vst [vmem:[#allocation25_spill] sm:$0xff] %v5227_v46  ;;  %v5229_v25 = vpack.c.bf16 %v964_v27, %v964_v27  ;;  %v434_v0 = vsel %vm4523_vm2, %v5227_v46, 0.0  ;;  %vm310_vm5 = vcmp.ge.f32.partialorder %v274_v3, 0.0  ;;  %v743_v63 = vunpack.c.l.bf16 %v58_v57  ;;  %v73_v20 = vld [vmem:[%s5873_s0 + $0xd8] ss:$8 sps:$4 sm:$0xff]  }
  0xa7   :  { %3737 = vmatprep.mubr.msk.bf16.mxu1 %vm4537_vm3, %v3736_v23  ;;  %v5240_v18 = vsel %vm311_vm14, %v275_v51, %v347_v39  ;;  %v3594_v28 = vpack.c.bf16 %v434_v0, %v434_v0  ;;  %vm312_vm6 = vcmp.ge.f32.partialorder %v276_v47, 0.0  ;;  %v346_v19 = vmul.f32 0.1, %v274_v3 }
  0xa8   :  { %5946 = vst [vmem:[#allocation26_spill] sm:$0xff] %v5240_v18  ;;  %v436_v27 = vsel %vm4523_vm2, %v5240_v18, 0.0  ;;  %v3712_v23 = vpack.c.bf16 %v5240_v18, %v5227_v46  ;;  %v348_v11 = vmul.f32 0.1, %v276_v47  ;;  %v745_v51 = vunpack.c.l.bf16 %v60_v43 }
  0xa9   :  { %v3596_v57 = vpack.c.bf16 %v436_v27, %v436_v27  ;;  %v1502_v52 = vshrl.u32 %v3594_v28, 16  ;;  %v1505_v31 = vshll.u32 %v3594_v28, 16  ;;  %v382_v39 = vsel %vm310_vm5, %v274_v3, %v346_v19 }
  0xaa   :  { %3713 = vmatmul.mubr.msk.bf16.gmra.mrb[28].mxu0 %vm4537_vm3, %v3712_v23  ;;  %v384_v0 = vsel %vm312_vm6, %v276_v47, %v348_v11  ;;  %v775_v44 = vmul.f32 %v4950_v60, %v743_v63  ;;  %v982_v40 = vunpack.c.l.bf16 %v73_v20  ;;  %v435_v37 = vsel %vm4563_vm7, %v382_v39, 0.0 }
  0xab   :  { %v437_v18 = vsel %vm4563_vm7, %v384_v0, 0.0  ;;  %v1504_v24 = vrot.slane %v1502_v52, 4  ;;  %v1507_v27 = vrot.slane %v1505_v31, 5  ;;  %v3595_v46 = vpack.c.bf16 %v435_v37, %v435_v37 }
  0xac   :  { %v3597_v28 = vpack.c.bf16 %v437_v18, %v437_v18  ;;  %v1516_v43 = vshrl.u32 %v3596_v57, 16  ;;  %v1519_v36 = vshll.u32 %v3596_v57, 16  ;;  %v777_v23 = vmul.f32 %v4950_v60, %v745_v51 }
  0xad   :  { %v1508_v6 = vor.u32 %v1507_v27, %v1504_v24  ;;  %v807_v3 = vadd.f32 %v4944_v58, %v775_v44  ;;  %v984_v47 = vunpack.c.h.bf16 %v73_v20  ;;  %v1511_v11 = vshll.u32 %v3595_v46, 16  ;;  %v62_v24 = vld [vmem:[%s5873_s0 + $0xa4] sm:$0x1] }
  0xae   :  { %v1518_v19 = vrot.slane %v1516_v43, 4  ;;  %v1521_v63 = vrot.slane %v1519_v36, 5  ;;  %v1525_v53 = vshll.u32 %v3597_v28, 16  ;;  %v809_v54 = vadd.f32 %v4944_v58, %v777_v23  ;;  %v64_v28 = vld [vmem:[%s5873_s0 + $0xac] sm:$0x1] }
  0xaf   :  { %v1509_v39 = vrot.slane %v1508_v6, 4  ;;  %vm839_vm8 = vcmp.ge.f32.partialorder %v807_v3, 0.0  ;;  %v871_v52 = vmul.f32 0.1, %v807_v3  ;;  %v1513_v31 = vrot.slane %v1511_v11, 5 }
  0xb0   :  { %v1522_v37 = vor.u32 %v1521_v63, %v1518_v19  ;;  %v1527_v18 = vrot.slane %v1525_v53, 5  ;;  %v1014_v57 = vmul.f32 %v4950_v60, %v982_v40  ;;  %vm841_vm11 = vcmp.ge.f32.partialorder %v809_v54, 0.0 }
  0xb1   :  { %v873_v44 = vmul.f32 0.1, %v809_v54  ;;  %v903_v46 = vsel %vm839_vm8, %v807_v3, %v871_v52  ;;  %v1016_v36 = vmul.f32 %v4950_v60, %v984_v47  ;;  %v5268_v6 = vsel %vm4571_vm9, %v1509_v39, %v1513_v31 }
  0xb2   :  { %v1523_v20 = vrot.slane %v1522_v37, 4  ;;  %v935_v51 = vsel %vm4563_vm7, %v903_v46, 0.0  ;;  %v1046_v53 = vadd.f32 %v4944_v58, %v1014_v57  ;;  %v747_v43 = vunpack.c.l.bf16 %v62_v24 }
  0xb3   :  { %v905_v40 = vsel %vm841_vm11, %v809_v54, %v873_v44  ;;  %v3599_v0 = vpack.c.bf16 %v935_v51, %v935_v51  ;;  %v1048_v27 = vadd.f32 %v4944_v58, %v1016_v36  ;;  %v749_v52 = vunpack.c.l.bf16 %v64_v28  ;;  %v77_v28 = vld [vmem:[%s5873_s0 + $0xe8] ss:$8 sps:$4 sm:$0xff]  }
  0xb4   :  { %v5279_v23 = vsel %vm4571_vm9, %v1523_v20, %v1527_v18  ;;  %v937_v3 = vsel %vm4563_vm7, %v905_v40, 0.0  ;;  %vm1078_vm12 = vcmp.ge.f32.partialorder %v1046_v53, 0.0  ;;  %v1110_v47 = vmul.f32 0.1, %v1046_v53 }
  0xb5   :  { %v3433_v54 = vcombine.low %v5268_v6, %v5279_v23  ;;  %v3601_v11 = vpack.c.bf16 %v937_v3, %v937_v3  ;;  %v1619_v19 = vshll.u32 %v3599_v0, 16  ;;  %vm1080_vm15 = vcmp.ge.f32.partialorder %v1048_v27, 0.0 }
  0xb6   :  { %v1112_v63 = vmul.f32 0.1, %v1048_v27  ;;  %v1142_v39 = vsel %vm1078_vm12, %v1046_v53, %v1110_v47  ;;  %v779_v31 = vmul.f32 %v4950_v60, %v747_v43  ;;  %v5947_v57 = vshrl.u32 %v4649_v21, 16 }
  0xb7   :  { %2879 = vmatmul.mubr.bf16.gmra.mrb[28].mxu1 %v3433_v54  ;;  %v1621_v37 = vrot.slane %v1619_v19, 5  ;;  %v1633_v18 = vshll.u32 %v3601_v11, 16  ;;  %v5948_v44 = vshll.u32 %v4649_v21, 16  ;;  %v5949_v36 = vpack.c.bf16 %v4503_v32, %v4498_v26 }
  0xb8   :  { %v1640_v24 = vrot.slane %v5947_v57, 4  ;;  %v1144_v20 = vsel %vm1080_vm15, %v1048_v27, %v1112_v63  ;;  %v781_v51 = vmul.f32 %v4950_v60, %v749_v52  ;;  %v811_v53 = vadd.f32 %v4944_v58, %v779_v31 }
  0xb9   :  { %v1643_v46 = vrot.slane %v5948_v44, 5  ;;  %3764 = vmatprep.mubr.msk.bf16.mxu1 %vm4608_vm10, %v5949_v36  ;;  %v5950_v40 = vshrl.u32 %v4669_v41, 16  ;;  %v1622_v21 = vsel %vm4571_vm9, %v4622_v56, %v1621_v37  ;;  %v1635_v26 = vrot.slane %v1633_v18, 5  ;;  %v66_v56 = vld [vmem:[%s5873_s0 + $0xb4] sm:$0x1] }
  0xba   :  { %v3739_v32 = vpack.c.bf16 %v1144_v20, %v1142_v39  ;;  %v813_v27 = vadd.f32 %v4944_v58, %v781_v51  ;;  %vm843_vm0 = vcmp.ge.f32.partialorder %v811_v53, 0.0  ;;  %v875_v3 = vmul.f32 0.1, %v811_v53 }
  0xbb   :  { %v1654_v0 = vrot.slane %v5950_v40, 4  ;;  %v1644_v43 = vor.u32 %v1643_v46, %v1640_v24  ;;  %v5951_v47 = vshll.u32 %v4669_v41, 16  ;;  %v1636_v11 = vsel %vm4571_vm9, %v4643_v13, %v1635_v26 }
  0xbc   :  { %v3769_v63 = vpack.c.bf16 %v4755_v12, %v4512_v35  ;;  %v986_v52 = vunpack.c.l.bf16 %v77_v28  ;;  %v3450_v39 = vcombine.low %v1622_v21, %v1636_v11  ;;  %vm845_vm1 = vcmp.ge.f32.partialorder %v813_v27, 0.0  ;;  %v4260_v35 = vld [vmem:[%s5872_s3 + $0x208] sm:$0xff]   ;;  %v68_v12 = vld [vmem:[%s5873_s0 + $0xbc] sm:$0x1] }
  0xbd   :  { %v1657_v54 = vrot.slane %v5951_v47, 5  ;;  %v1645_v19 = vrot.slane %v1644_v43, 4  ;;  %v877_v31 = vmul.f32 0.1, %v813_v27  ;;  %v907_v37 = vsel %vm843_vm0, %v811_v53, %v875_v3 }
  0xbe   :  { %v939_v41 = vsel %vm4563_vm7, %v907_v37, 0.0  ;;  %v988_v57 = vunpack.c.h.bf16 %v77_v28  ;;  %v1018_v13 = vmul.f32 %v4950_v60, %v986_v52  ;;  %2919 = vmatprep.mubr.bf16.mxu0 %v3450_v39  ;;  %v3772_v46 = vpack.c.bf16 %v4819_v30, %v4677_v48  ;;  %v4269_v48 = vld [vmem:[%s5872_s3 + $0x200] sm:$0xff]  }
  0xbf   :  { %v1658_v18 = vor.u32 %v1657_v54, %v1654_v0  ;;  %v909_v24 = vsel %vm845_vm1, %v813_v27, %v877_v31  ;;  %v3603_v44 = vpack.c.bf16 %v939_v41, %v939_v41  ;;  %v751_v36 = vunpack.c.l.bf16 %v66_v56  ;;  %3740 = vmatmul.mubr.msk.bf16.vlgmr.msra.gmra.mrb[32].mxu0 %vm4608_vm10, %v3739_v32  ;;  %v4261_v27 = vld [vmem:[%s5872_s3 + $0x210] sm:$0xff]  }
  0xc0   :  { %v5952_v20 = vpack.c.bf16 %v4575_v15, %v4567_v8  ;;  %v941_v51 = vsel %vm4563_vm7, %v909_v24, 0.0  ;;  %v1020_v40 = vmul.f32 %v4950_v60, %v988_v57  ;;  %v1050_v0 = vadd.f32 %v4944_v58, %v1018_v13  ;;  %4146 = vmatpush3.bf16.msra.mxu0 %v4269_v48 }
  0xc1   :  { %v1659_v53 = vrot.slane %v1658_v18, 4  ;;  %v3605_v30 = vpack.c.bf16 %v941_v51, %v941_v51  ;;  %v1647_v28 = vshll.u32 %v3603_v44, 16  ;;  %v753_v8 = vunpack.c.l.bf16 %v68_v12  ;;  %4147 = vmatprep.subr.bf16.mxu0 %v4260_v35  ;;  %v81_v44 = vld [vmem:[%s5873_s0 + $0xf8] ss:$8 sps:$4 sm:$0xff]  }
  0xc2   :  { %3767 = vmatmul.mubr.msk.bf16.vlgmr.msra.gmra.mrb[32].mxu1 %vm4537_vm3, %v5952_v20  ;;  %v783_v15 = vmul.f32 %v4950_v60, %v751_v36  ;;  %v1052_v21 = vadd.f32 %v4944_v58, %v1020_v40  ;;  %vm1082_vm4 = vcmp.ge.f32.partialorder %v1050_v0, 0.0  ;;  %v1114_v26 = vmul.f32 0.1, %v1050_v0 }
  0xc3   :  { %3770 = vmatprep.mubr.msk.bf16.mxu1 %vm4608_vm10, %v3769_v63  ;;  %v5953_v32 = vshrl.u32 %v4791_v50, 16  ;;  %4185 = vmatpush3.bf16.msra.mxu1 %v4269_v48  ;;  %v1649_v3 = vrot.slane %v1647_v28, 5  ;;  %v1661_v47 = vshll.u32 %v3605_v30, 16  ;;  %v785_v54 = vmul.f32 %v4950_v60, %v753_v8 }
  0xc4   :  { %v815_v11 = vadd.f32 %v4944_v58, %v783_v15  ;;  %4178 = vmatprep.subr.bf16.mxu1 %v4260_v35  ;;  %vm1084_vm13 = vcmp.ge.f32.partialorder %v1052_v21, 0.0  ;;  %v1116_v63 = vmul.f32 0.1, %v1052_v21  ;;  %v1146_v52 = vsel %vm1082_vm4, %v1050_v0, %v1114_v26  ;;  %4148 = vmatpush3.bf16.msra.mxu0 %v4260_v35 }
  0xc5   :  { %v1668_v43 = vrot.slane %v5953_v32, 4  ;;  %v5954_v56 = vshll.u32 %v4791_v50, 16  ;;  %v1650_v31 = vsel %vm4571_vm9, %v1645_v19, %v1649_v3  ;;  %v1663_v37 = vrot.slane %v1661_v47, 5  ;;  %4149 = vmatprep.subr.bf16.mxu0 %v4261_v27  ;;  %v5365_v50 = vld [vmem:[%s5872_s3 + $0x218] sm:$0xff]  }
  0xc6   :  { %v817_v41 = vadd.f32 %v4944_v58, %v785_v54  ;;  %vm847_vm14 = vcmp.ge.f32.partialorder %v815_v11, 0.0  ;;  %v1148_v18 = vsel %vm1084_vm13, %v1052_v21, %v1116_v63  ;;  %v879_v57 = vmul.f32 0.1, %v815_v11 }
  0xc7   :  { %v1671_v39 = vrot.slane %v5954_v56, 5  ;;  %v5955_v12 = vshrl.u32 %v4808_v2, 16  ;;  %4186 = vmatpush3.bf16.msra.mxu1 %v4260_v35  ;;  %v1664_v19 = vsel %vm4571_vm9, %v1659_v53, %v1663_v37  ;;  %v3742_v36 = vpack.c.bf16 %v1148_v18, %v1146_v52  ;;  %v70_v35 = vld [vmem:[%s5873_s0 + $0xc4] sm:$0x1] }
  0xc8   :  { %vm849_vm5 = vcmp.ge.f32.partialorder %v817_v41, 0.0  ;;  %v881_v20 = vmul.f32 0.1, %v817_v41  ;;  %4179 = vmatprep.subr.bf16.mxu1 %v4261_v27  ;;  %v3451_v51 = vcombine.low %v1650_v31, %v1664_v19  ;;  %v911_v40 = vsel %vm847_vm14, %v815_v11, %v879_v57  ;;  %4150 = vmatpush3.bf16.msra.mxu0 %v4261_v27 }
  0xc9   :  { %v1672_v13 = vor.u32 %v1671_v39, %v1668_v43  ;;  %v1682_v24 = vrot.slane %v5955_v12, 4  ;;  %v5956_v48 = vshll.u32 %v4808_v2, 16  ;;  %v943_v53 = vsel %vm4563_vm7, %v911_v40, 0.0  ;;  %4151 = vmatprep.subr.bf16.mxu0 %v5365_v50  ;;  %v5390_v43 = vld [vmem:[%s5872_s3 + $0x220] sm:$0xff]  }
  0xca   :  { %3773 = vmatmul.mubr.msk.bf16.gmra.mrb[36].mxu1 %vm4537_vm3, %v3772_v46  ;;  %v913_v28 = vsel %vm849_vm5, %v817_v41, %v881_v20  ;;  %v3775_v8 = vpack.c.bf16 %v4864_v22, %v4757_v16  ;;  %v990_v15 = vunpack.c.l.bf16 %v81_v44  ;;  %v72_v46 = vld [vmem:[%s5873_s0 + $0xcc] sm:$0x1]  ;;  %2927 = vmatprep.mubr.bf16.mxu0 %v3451_v51  ;;  %v3607_v21 = vpack.c.bf16 %v943_v53, %v943_v53 }
  0xcb   :  { %v1673_v0 = vrot.slane %v1672_v13, 4  ;;  %v1685_v30 = vrot.slane %v5956_v48, 5  ;;  %v945_v2 = vsel %vm4563_vm7, %v913_v28, 0.0  ;;  %v992_v32 = vunpack.c.h.bf16 %v81_v44  ;;  %3743 = vmatmul.mubr.msk.bf16.gmra.mrb[36].mxu0 %vm4608_vm10, %v3742_v36  ;;  %4187 = vmatpush3.bf16.msra.mxu1 %v4261_v27  ;;  %v4264_v13 = vld [vmem:[%s5872_s3 + $0x228] sm:$0xff]  }
  0xcc   :  { %v3609_v16 = vpack.c.bf16 %v945_v2, %v945_v2  ;;  %3776 = vmatprep.mubr.msk.bf16.mxu1 %vm4608_vm10, %v3775_v8  ;;  %v1022_v22 = vmul.f32 %v4950_v60, %v990_v15  ;;  %v3778_v3 = vpack.c.bf16 %v4920_v9, %v4823_v38  ;;  %v755_v47 = vunpack.c.l.bf16 %v70_v35  ;;  %4152 = vmatpush3.bf16.msra.mxu0 %v5365_v50  ;;  %v5409_v9 = vld [vmem:[%s5875_s2] ss:$0 sm:$0xff]  ;;  %v55_v48 = vld [vmem:[%s5873_s0 + $0x88] ss:$136 sps:$4 sm:$0xff]  }
  0xcd   :  { %v1686_v26 = vor.u32 %v1685_v30, %v1682_v24  ;;  %v1675_v54 = vshll.u32 %v3607_v21, 16  ;;  %v1024_v63 = vmul.f32 %v4950_v60, %v992_v32  ;;  %v757_v52 = vunpack.c.l.bf16 %v72_v46  ;;  %4180 = vmatprep.subr.bf16.mxu1 %v5365_v50  ;;  %4153 = vmatprep.subr.bf16.mxu0 %v5390_v43  ;;  %v85_v28 = vld [vmem:[%s5873_s0 + $0x40] ss:$200 sps:$4 sm:$0xff]  }
  0xce   :  { %v1689_v56 = vshll.u32 %v3609_v16, 16  ;;  %v1054_v39 = vadd.f32 %v4944_v58, %v1022_v22  ;;  %v787_v31 = vmul.f32 %v4950_v60, %v755_v47  ;;  %v5957_v37 = vshrl.u32 %v4905_v59, 16  ;;  %v5415_v58 = vld [vmem:[%s5874_s1] ss:$0 sm:$0xff] }
  0xcf   :  { %v1687_v11 = vrot.slane %v1686_v26, 4  ;;  %v1677_v38 = vrot.slane %v1675_v54, 5  ;;  %v1056_v27 = vadd.f32 %v5409_v9, %v1024_v63  ;;  %v789_v60 = vmul.f32 %v5415_v58, %v757_v52  ;;  %4188 = vmatpush3.bf16.msra.mxu1 %v5365_v50  ;;  %v4265_v50 = vld [vmem:[%s5872_s3 + $0x230] sm:$0xff]  }
  0xd0   :  { %v1696_v41 = vrot.slane %v5957_v37, 4  ;;  %v5958_v18 = vshll.u32 %v4905_v59, 16  ;;  %v1691_v12 = vrot.slane %v1689_v56, 5  ;;  %vm1086_vm6 = vcmp.ge.f32.partialorder %v1054_v39, 0.0  ;;  %4154 = vmatpush3.bf16.msra.mxu0 %v5390_v43  ;;  %4181 = vmatprep.subr.bf16.mxu1 %v5390_v43 }
  0xd1   :  { %v1118_v24 = vmul.f32 0.1, %v1054_v39  ;;  %v819_v44 = vadd.f32 %v5409_v9, %v787_v31  ;;  %v1678_v19 = vsel %vm4571_vm9, %v1673_v0, %v1677_v38  ;;  %vm1088_vm8 = vcmp.ge.f32.partialorder %v1056_v27, 0.0  ;;  %4155 = vmatprep.subr.bf16.mxu0 %v4264_v13  ;;  %v128_v31 = vld [vmem:[%s5873_s0 + $0x1bc] sm:$0x1] }
  0xd2   :  { %v1699_v57 = vrot.slane %v5958_v18, 5  ;;  %v1120_v36 = vmul.f32 0.1, %v1056_v27  ;;  %3779 = vmatmul.mubr.msk.bf16.gmra.mrb[40].mxu1 %vm4537_vm3, %v3778_v3  ;;  %v821_v59 = vadd.f32 %v5409_v9, %v789_v60  ;;  %v1692_v20 = vsel %vm4571_vm9, %v1687_v11, %v1691_v12  ;;  %v126_v3 = vld [vmem:[%s5873_s0 + $0x1b4] sm:$0x1] }
  0xd3   :  { %v1150_v51 = vsel %vm1086_vm6, %v1054_v39, %v1118_v24  ;;  %vm851_vm11 = vcmp.ge.f32.partialorder %v819_v44, 0.0  ;;  %v883_v40 = vmul.f32 0.1, %v819_v44  ;;  %v3452_v0 = vcombine.low %v1678_v19, %v1692_v20  ;;  %4189 = vmatpush3.bf16.msra.mxu1 %v5390_v43  ;;  %v4266_v43 = vld [vmem:[%s5872_s3 + $0x238] sm:$0xff]  }
  0xd4   :  { %v1152_v30 = vsel %vm1088_vm8, %v1056_v27, %v1120_v36  ;;  %vm853_vm12 = vcmp.ge.f32.partialorder %v821_v59, 0.0  ;;  %v885_v35 = vmul.f32 0.1, %v821_v59  ;;  %v1700_v15 = vor.u32 %v1699_v57, %v1696_v41  ;;  %4156 = vmatpush3.bf16.msra.mxu0 %v4264_v13  ;;  %4182 = vmatprep.subr.bf16.mxu1 %v4264_v13 }
  0xd5   :  { %v3745_v53 = vpack.c.bf16 %v1152_v30, %v1150_v51  ;;  %v915_v8 = vsel %vm851_vm11, %v819_v44, %v883_v40  ;;  %v5959_v46 = vshrl.u32 %v4909_v62, 16  ;;  %2935 = vmatprep.mubr.bf16.mxu0 %v3452_v0  ;;  %v5960_v32 = vshll.u32 %v4909_v62, 16  ;;  %4157 = vmatprep.subr.bf16.mxu0 %v4265_v50 }
  0xd6   :  { %v917_v21 = vsel %vm853_vm12, %v821_v59, %v885_v35  ;;  %v947_v26 = vsel %vm4563_vm7, %v915_v8, 0.0  ;;  %v474_v22 = vunpack.c.l.bf16 %v55_v48  ;;  %v1701_v11 = vrot.slane %v1700_v15, 4 }
  0xd7   :  { %v1710_v2 = vrot.slane %v5959_v46, 4  ;;  %v1713_v16 = vrot.slane %v5960_v32, 5  ;;  %3746 = vmatmul.mubr.msk.bf16.gmra.mrb[40].mxu0 %vm4608_vm10, %v3745_v53  ;;  %v949_v47 = vsel %vm4563_vm7, %v917_v21, 0.0  ;;  %v3611_v54 = vpack.c.bf16 %v947_v26, %v947_v26  ;;  %4190 = vmatpush3.bf16.msra.mxu1 %v4264_v13 }
  0xd8   :  { %v994_v63 = vunpack.c.h.bf16 %v85_v28  ;;  %v3613_v52 = vpack.c.bf16 %v949_v47, %v949_v47  ;;  %v510_v62 = vmul.f32 %v5415_v58, %v474_v22  ;;  %v996_v39 = vunpack.c.h.bf16 %v55_v48  ;;  %4158 = vmatpush3.bf16.msra.mxu0 %v4265_v50  ;;  %4183 = vmatprep.subr.bf16.mxu1 %v4265_v50 }
  0xd9   :  { %v1714_v56 = vor.u32 %v1713_v16, %v1710_v2  ;;  %v1703_v37 = vshll.u32 %v3611_v54, 16  ;;  %v175_v38 = vunpack.c.l.bf16 %v85_v28  ;;  %v759_v27 = vunpack.c.l.bf16 %v126_v3  ;;  %4159 = vmatprep.subr.bf16.mxu0 %v4266_v43 }
  0xda   :  { %v1026_v41 = vmul.f32 %v5415_v58, %v994_v63  ;;  %v1717_v18 = vshll.u32 %v3613_v52, 16  ;;  %v546_v57 = vadd.f32 %v5409_v9, %v510_v62  ;;  %v1028_v12 = vmul.f32 %v5415_v58, %v996_v39 }
  0xdb   :  { %v1715_v60 = vrot.slane %v1714_v56, 4  ;;  %v1705_v24 = vrot.slane %v1703_v37, 5  ;;  %v217_v19 = vmul.f32 %v5415_v58, %v175_v38  ;;  %v761_v36 = vunpack.c.l.bf16 %v128_v31  ;;  %4191 = vmatpush3.bf16.msra.mxu1 %v4265_v50  ;;  %v141_v56 = vld [vmem:[%s5873_s0 + $0x1f8] ss:$8 sps:$4 sm:$0xff]  }
  0xdc   :  { %v1058_v44 = vadd.f32 %v5409_v9, %v1026_v41  ;;  %v1719_v59 = vrot.slane %v1717_v18, 5  ;;  %vm582_vm15 = vcmp.ge.f32.partialorder %v546_v57, 0.0  ;;  %v618_v20 = vmul.f32 0.1, %v546_v57  ;;  %4160 = vmatpush3.bf16.msra.mxu0 %v4266_v43  ;;  %4184 = vmatprep.subr.bf16.mxu1 %v4266_v43 }
  0xdd   :  { %v1060_v51 = vadd.f32 %v5409_v9, %v1028_v12  ;;  %v1706_v40 = vsel %vm4571_vm9, %v1701_v11, %v1705_v24  ;;  %v259_v0 = vadd.f32 %v5409_v9, %v217_v19  ;;  %v791_v2 = vmul.f32 %v5415_v58, %v759_v27 }
  0xde   :  { %vm1090_vm0 = vcmp.ge.f32.partialorder %v1058_v44, 0.0  ;;  %v1122_v48 = vmul.f32 0.1, %v1058_v44  ;;  %v1720_v30 = vsel %vm4571_vm9, %v1715_v60, %v1719_v59  ;;  %v654_v35 = vsel %vm582_vm15, %v546_v57, %v618_v20  ;;  %v132_v57 = vld [vmem:[%s5873_s0 + $0x1cc] sm:$0x1] }
  0xdf   :  { %vm1092_vm1 = vcmp.ge.f32.partialorder %v1060_v51, 0.0  ;;  %v1124_v13 = vmul.f32 0.1, %v1060_v51  ;;  %v3453_v28 = vcombine.low %v1706_v40, %v1720_v30  ;;  %v3781_v53 = vpack.c.bf16 %v654_v35, %v4866_v5  ;;  %4192 = vmatpush3.bf16.msra.mxu1 %v4266_v43  ;;  %v130_v43 = vld [vmem:[%s5873_s0 + $0x1c4] sm:$0x1] }
  0xe0   :  { %v1154_v8 = vsel %vm1090_vm0, %v1058_v44, %v1122_v48  ;;  %vm295_vm4 = vcmp.ge.f32.partialorder %v259_v0, 0.0  ;;  %v331_v46 = vmul.f32 0.1, %v259_v0  ;;  %v793_v21 = vmul.f32 %v5415_v58, %v761_v36 }
  0xe1   :  { %v1156_v15 = vsel %vm1092_vm1, %v1060_v51, %v1124_v13  ;;  %2943 = vmatprep.mubr.bf16.mxu0 %v3453_v28  ;;  %3782 = vmatprep.mubr.msk.bf16.mxu1 %vm4608_vm10, %v3781_v53  ;;  %v5961_v32 = vshrl.u32 %v4990_v61, 16  ;;  %v5962_v5 = vshll.u32 %v4990_v61, 16  ;;  %v5963_v50 = vshrl.u32 %v5002_v45, 16 }
  0xe2   :  { %v3748_v26 = vpack.c.bf16 %v1156_v15, %v1154_v8  ;;  %v367_v47 = vsel %vm295_vm4, %v259_v0, %v331_v46  ;;  %v823_v54 = vadd.f32 %v5409_v9, %v791_v2  ;;  %v825_v11 = vadd.f32 %v5409_v9, %v793_v21 }
  0xe3   :  { %v1724_v16 = vrot.slane %v5961_v32, 4  ;;  %v1727_v22 = vrot.slane %v5962_v5, 5  ;;  %v1738_v3 = vrot.slane %v5963_v50, 4  ;;  %v5964_v63 = vshll.u32 %v5002_v45, 16 }
  0xe4   :  { %v1809_v62 = vshll.u32 %v5223_v7, 16  ;;  %3749 = vmatmul.mubr.msk.bf16.gmra.mrb[44].mxu0 %vm4608_vm10, %v3748_v26  ;;  %v3784_v61 = vpack.c.bf16 %v367_v47, %v4922_v14  ;;  %v3787_v31 = vpack.c.bf16 %v5022_v34, %v4959_v55  ;;  %v1820_v37 = vshrl.u32 %v5229_v25, 16 }
  0xe5   :  { %v1741_v52 = vrot.slane %v5964_v63, 5  ;;  %v1728_v39 = vor.u32 %v1727_v22, %v1724_v16  ;;  %vm855_vm13 = vcmp.ge.f32.partialorder %v823_v54, 0.0  ;;  %vm857_vm14 = vcmp.ge.f32.partialorder %v825_v11, 0.0  ;;  %v145_v63 = vld [vmem:[%s5873_s0 + $0x208] ss:$8 sps:$4 sm:$0xff]  }
  0xe6   :  { %v887_v45 = vmul.f32 0.1, %v823_v54  ;;  %v1823_v41 = vshll.u32 %v5229_v25, 16  ;;  %3785 = vmatmul.mubr.msk.bf16.gmra.mrb[44].mxu1 %vm4537_vm3, %v3784_v61  ;;  %v889_v38 = vmul.f32 0.1, %v825_v11  ;;  %v998_v60 = vunpack.c.l.bf16 %v141_v56 }
  0xe7   :  { %v1742_v27 = vor.u32 %v1741_v52, %v1738_v3  ;;  %v5506_v14 = vsel %vm4523_vm2, %v367_v47, 0.0  ;;  %v1729_v55 = vrot.slane %v1728_v39, 4  ;;  %3788 = vmatprep.mubr.msk.bf16.mxu1 %vm4608_vm10, %v3787_v31  ;;  %v1000_v34 = vunpack.c.h.bf16 %v141_v56  ;;  %v5967_v47 = vld [vmem:[#allocation11_spill] sm:$0xff] }
  0xe8   :  { %v919_v18 = vsel %vm855_vm13, %v823_v54, %v887_v45  ;;  %v921_v12 = vsel %vm857_vm14, %v825_v11, %v889_v38  ;;  %v1030_v19 = vmul.f32 %v5415_v58, %v998_v60  ;;  %v3790_v51 = vpack.c.bf16 %v5067_v17, %v5009_v33 }
  0xe9   :  { %v951_v24 = vsel %vm4563_vm7, %v919_v18, 0.0  ;;  %v1743_v44 = vrot.slane %v1742_v27, 4  ;;  %v953_v36 = vsel %vm4563_vm7, %v921_v12, 0.0  ;;  %v1032_v20 = vmul.f32 %v5415_v58, %v1000_v34  ;;  %v5970_v18 = vld [vmem:[#allocation9_spill] sm:$0xff] }
  0xea   :  { %v3615_v59 = vpack.c.bf16 %v951_v24, %v951_v24  ;;  %v3617_v40 = vpack.c.bf16 %v953_v36, %v953_v36  ;;  %v1062_v48 = vadd.f32 %v5409_v9, %v1030_v19  ;;  %v763_v0 = vunpack.c.l.bf16 %v130_v43  ;;  %v136_v12 = vld [vmem:[%s5873_s0 + $0x1dc] sm:$0x1]  ;;  %v5972_v36 = vld [vmem:[#allocation12_spill] sm:$0xff] }
  0xeb   :  { %v765_v30 = vunpack.c.l.bf16 %v132_v57  ;;  %v1064_v13 = vadd.f32 %v5409_v9, %v1032_v20  ;;  %v5965_v28 = vshrl.u32 %v5048_v49, 16  ;;  %v5966_v8 = vshll.u32 %v5048_v49, 16  ;;  %v134_v57 = vld [vmem:[%s5873_s0 + $0x1d4] sm:$0x1] }
  0xec   :  { %v1731_v35 = vshll.u32 %v3615_v59, 16  ;;  %v1745_v46 = vshll.u32 %v3617_v40, 16  ;;  %vm1094_vm5 = vcmp.ge.f32.partialorder %v1062_v48, 0.0  ;;  %v1126_v2 = vmul.f32 0.1, %v1062_v48  ;;  %v5973_v59 = vld [vmem:[#allocation19_spill] sm:$0xff] }
  0xed   :  { %v1752_v53 = vrot.slane %v5965_v28, 4  ;;  %v1755_v15 = vrot.slane %v5966_v8, 5  ;;  %v795_v21 = vmul.f32 %v5415_v58, %v763_v0  ;;  %vm1096_vm6 = vcmp.ge.f32.partialorder %v1064_v13, 0.0 }
  0xee   :  { %v1733_v33 = vrot.slane %v1731_v35, 5  ;;  %v1128_v17 = vmul.f32 0.1, %v1064_v13  ;;  %v797_v26 = vmul.f32 %v5415_v58, %v765_v30  ;;  %v1747_v32 = vrot.slane %v1745_v46, 5  ;;  %3791 = vmatmul.mubr.msk.bf16.gmra.mrb[48].mxu1 %vm4537_vm3, %v3790_v51  ;;  %v5974_v46 = vld [vmem:[#allocation17_spill] sm:$0xff] }
  0xef   :  { %v1158_v16 = vsel %vm1094_vm5, %v1062_v48, %v1126_v2  ;;  %v827_v5 = vadd.f32 %v5409_v9, %v795_v21  ;;  %v1756_v22 = vor.u32 %v1755_v15, %v1752_v53  ;;  %v5968_v54 = vshrl.u32 %v5967_v47, 16 }
  0xf0   :  { %v1734_v49 = vsel %vm4571_vm9, %v1729_v55, %v1733_v33  ;;  %v1160_v50 = vsel %vm1096_vm6, %v1064_v13, %v1128_v17  ;;  %v829_v3 = vadd.f32 %v5409_v9, %v797_v26  ;;  %v1748_v52 = vsel %vm4571_vm9, %v1743_v44, %v1747_v32  ;;  %v5971_v55 = vld [vmem:[#allocation13_spill] sm:$0xff] }
  0xf1   :  { %v1766_v11 = vrot.slane %v5968_v54, 4  ;;  %v3751_v56 = vpack.c.bf16 %v1160_v50, %v1158_v16  ;;  %vm859_vm8 = vcmp.ge.f32.partialorder %v827_v5, 0.0  ;;  %v891_v61 = vmul.f32 0.1, %v827_v5 }
  0xf2   :  { %v3454_v39 = vcombine.low %v1734_v49, %v1748_v52  ;;  %vm861_vm11 = vcmp.ge.f32.partialorder %v829_v3, 0.0  ;;  %v893_v31 = vmul.f32 0.1, %v829_v3  ;;  %v1757_v45 = vrot.slane %v1756_v22, 4 }
  0xf3   :  { %v923_v38 = vsel %vm859_vm8, %v827_v5, %v891_v61  ;;  %v5969_v27 = vshll.u32 %v5967_v47, 16  ;;  %v3793_v34 = vpack.c.bf16 %v5971_v55, %v5970_v18  ;;  %v1002_v43 = vunpack.c.l.bf16 %v145_v63 }
  0xf4   :  { %2951 = vmatprep.mubr.bf16.mxu0 %v3454_v39  ;;  %v925_v24 = vsel %vm861_vm11, %v829_v3, %v893_v31  ;;  %v955_v44 = vsel %vm4563_vm7, %v923_v38, 0.0  ;;  %v1004_v19 = vunpack.c.h.bf16 %v145_v63  ;;  %v3796_v20 = vpack.c.bf16 %v5973_v59, %v5972_v36  ;;  %v149_v31 = vld [vmem:[%s5873_s0 + $0x218] ss:$8 sps:$4 sm:$0xff]  }
  0xf5   :  { %v1769_v60 = vrot.slane %v5969_v27, 5  ;;  %3752 = vmatmul.mubr.msk.bf16.gmra.mrb[48].mxu0 %vm4608_vm10, %v3751_v56  ;;  %v957_v51 = vsel %vm4563_vm7, %v925_v24, 0.0  ;;  %v3619_v40 = vpack.c.bf16 %v955_v44, %v955_v44  ;;  %3794 = vmatprep.mubr.msk.bf16.mxu1 %vm4608_vm10, %v3793_v34  ;;  %v1034_v0 = vmul.f32 %v5415_v58, %v1002_v43  ;;  %v5977_v43 = vld [vmem:[#allocation18_spill] sm:$0xff] }
  0xf6   :  { %v3621_v30 = vpack.c.bf16 %v957_v51, %v957_v51  ;;  %v1036_v35 = vmul.f32 %v5415_v58, %v1004_v19  ;;  %v767_v13 = vunpack.c.l.bf16 %v134_v57  ;;  %v769_v28 = vunpack.c.l.bf16 %v136_v12  ;;  %3797 = vmatmul.mubr.msk.bf16.gmra.mrb[52].mxu1 %vm4537_vm3, %v3796_v20  ;;  %v138_v19 = vld [vmem:[%s5873_s0 + $0x1e4] sm:$0x1] }
  0xf7   :  { %v1770_v48 = vor.u32 %v1769_v60, %v1766_v11  ;;  %v1759_v53 = vshll.u32 %v3619_v40, 16  ;;  %v1066_v15 = vadd.f32 %v5409_v9, %v1034_v0  ;;  %v5975_v2 = vshrl.u32 %v5974_v46, 16  ;;  %v5980_v51 = vld [vmem:[#allocation14_spill] sm:$0xff]  ;;  %v5981_v40 = vld [vmem:[#allocation21_spill] sm:$0xff] }
  0xf8   :  { %v1773_v33 = vshll.u32 %v3621_v30, 16  ;;  %v1068_v17 = vadd.f32 %v5409_v9, %v1036_v35  ;;  %v799_v26 = vmul.f32 %v5415_v58, %v767_v13  ;;  %v801_v32 = vmul.f32 %v5415_v58, %v769_v28  ;;  %v140_v30 = vld [vmem:[%s5873_s0 + $0x1ec] sm:$0x1] }
  0xf9   :  { %v1771_v8 = vrot.slane %v1770_v48, 4  ;;  %v1780_v21 = vrot.slane %v5975_v2, 4  ;;  %v1761_v16 = vrot.slane %v1759_v53, 5  ;;  %vm1098_vm12 = vcmp.ge.f32.partialorder %v1066_v15, 0.0  ;;  %v5982_v2 = vld [vmem:[#allocation20_spill] sm:$0xff] }
  0xfa   :  { %v1130_v5 = vmul.f32 0.1, %v1066_v15  ;;  %v5976_v22 = vshll.u32 %v5974_v46, 16  ;;  %v1775_v50 = vrot.slane %v1773_v33, 5  ;;  %vm1100_vm15 = vcmp.ge.f32.partialorder %v1068_v17, 0.0 }
  0xfb   :  { %v1132_v3 = vmul.f32 0.1, %v1068_v17  ;;  %v831_v47 = vadd.f32 %v5409_v9, %v799_v26  ;;  %v1762_v54 = vsel %vm4571_vm9, %v1757_v45, %v1761_v16  ;;  %v833_v63 = vadd.f32 %v5409_v9, %v801_v32 }
  0xfc   :  { %v1783_v49 = vrot.slane %v5976_v22, 5  ;;  %v1162_v11 = vsel %vm1098_vm12, %v1066_v15, %v1130_v5  ;;  %v1776_v56 = vsel %vm4571_vm9, %v1771_v8, %v1775_v50  ;;  %v5978_v57 = vshrl.u32 %v5977_v43, 16 }
  0xfd   :  { %v1164_v61 = vsel %vm1100_vm15, %v1068_v17, %v1132_v3  ;;  %vm863_vm0 = vcmp.ge.f32.partialorder %v831_v47, 0.0  ;;  %v895_v39 = vmul.f32 0.1, %v831_v47  ;;  %v3455_v27 = vcombine.low %v1762_v54, %v1776_v56 }
  0xfe   :  { %v1784_v52 = vor.u32 %v1783_v49, %v1780_v21  ;;  %v5586_v38 = vpop.f32.mrb[0].mxu0  ;;  %v3754_v60 = vpack.c.bf16 %v1164_v61, %v1162_v11  ;;  %vm865_vm1 = vcmp.ge.f32.partialorder %v833_v63, 0.0  ;;  %v897_v45 = vmul.f32 0.1, %v833_v63  ;;  %v5983_v21 = vld [vmem:[#allocation25_spill] sm:$0xff] }
  0xff   :  { %v5588_v18 = vpop.f32.mrb[1].mxu0  ;;  %v927_v55 = vsel %vm863_vm0, %v831_v47, %v895_v39  ;;  %v1794_v12 = vrot.slane %v5978_v57, 4  ;;  %v5979_v24 = vshll.u32 %v5977_v43, 16  ;;  %2959 = vmatprep.mubr.bf16.mxu0 %v3455_v27  ;;  %v3799_v48 = vpack.c.bf16 %v5981_v40, %v5980_v51 }
 0x100   :  { %v1785_v34 = vrot.slane %v1784_v52, 4  ;;  %v5597_v36 = vpop.f32.mrb[2].mxu0  ;;  %v929_v59 = vsel %vm865_vm1, %v833_v63, %v897_v45  ;;  %v959_v20 = vsel %vm4563_vm7, %v927_v55, 0.0  ;;  %v1006_v0 = vunpack.c.l.bf16 %v149_v31  ;;  %3755 = vmatmul.mubr.msk.bf16.gmra.mrb[52].mxu0 %vm4608_vm10, %v3754_v60  ;;  %v123_v45 = vld [vmem:[%s5873_s0 + $0x1a8] ss:$136 sps:$4 sm:$0xff]  }
 0x101   :  { %v1797_v44 = vrot.slane %v5979_v24, 5  ;;  %v5606_v35 = vpop.f32.mrb[3].mxu0  ;;  %v961_v13 = vsel %vm4563_vm7, %v929_v59, 0.0  ;;  %v3623_v28 = vpack.c.bf16 %v959_v20, %v959_v20  ;;  %v1008_v8 = vunpack.c.h.bf16 %v149_v31  ;;  %3800 = vmatprep.mubr.msk.bf16.mxu1 %vm4608_vm10, %v3799_v48 }
 0x102   :  { %v3625_v15 = vpack.c.bf16 %v961_v13, %v961_v13  ;;  %v1038_v46 = vmul.f32 %v5415_v58, %v1006_v0  ;;  %v3802_v33 = vpack.c.bf16 %v5983_v21, %v5982_v2  ;;  %v771_v17 = vunpack.c.l.bf16 %v138_v19 }
 0x103   :  { %v1798_v53 = vor.u32 %v1797_v44, %v1794_v12  ;;  %v1787_v26 = vshll.u32 %v3623_v28, 16  ;;  %v1040_v16 = vmul.f32 %v5415_v58, %v1008_v8  ;;  %v773_v5 = vunpack.c.l.bf16 %v140_v30 }
 0x104   :  { %v1801_v22 = vshll.u32 %v3625_v15, 16  ;;  %v1070_v49 = vadd.f32 %v5409_v9, %v1038_v46  ;;  %3803 = vmatmul.mubr.msk.bf16.gmra.mrb[56].mxu1 %vm4537_vm3, %v3802_v33  ;;  %v803_v50 = vmul.f32 %v5415_v58, %v771_v17  ;;  %v5984_v3 = vshrl.u32 %v5223_v7, 16 }
 0x105   :  { %v1799_v32 = vrot.slane %v1798_v53, 4  ;;  %v1789_v54 = vrot.slane %v1787_v26, 5  ;;  %v1072_v11 = vadd.f32 %v5409_v9, %v1040_v16  ;;  %v805_v63 = vmul.f32 %v5415_v58, %v773_v5 }
 0x106   :  { %v1808_v47 = vrot.slane %v5984_v3, 4  ;;  %v1811_v52 = vrot.slane %v1809_v62, 5  ;;  %v1803_v56 = vrot.slane %v1801_v22, 5  ;;  %vm1102_vm4 = vcmp.ge.f32.partialorder %v1070_v49, 0.0 }
 0x107   :  { %v1134_v61 = vmul.f32 0.1, %v1070_v49  ;;  %v835_v39 = vadd.f32 %v5409_v9, %v803_v50  ;;  %v1790_v31 = vsel %vm4571_vm9, %v1785_v34, %v1789_v54  ;;  %vm1104_vm13 = vcmp.ge.f32.partialorder %v1072_v11, 0.0  ;;  %v5635_v55 = vpop.f32.mrb[0].mxu1  ;;  %v153_v34 = vld [vmem:[%s5873_s0 + $0x160] ss:$200 sps:$4 sm:$0xff]  }
 0x108   :  { %v1136_v27 = vmul.f32 0.1, %v1072_v11  ;;  %v837_v60 = vadd.f32 %v5409_v9, %v805_v63  ;;  %v1804_v7 = vsel %vm4571_vm9, %v1799_v32, %v1803_v56  ;;  %v5642_v57 = vpop.f32.mrb[1].mxu1  ;;  %v1812_v40 = vor.u32 %v1811_v52, %v1808_v47 }
 0x109   :  { %v1166_v62 = vsel %vm1102_vm4, %v1070_v49, %v1134_v61  ;;  %vm867_vm14 = vcmp.ge.f32.partialorder %v835_v39, 0.0  ;;  %v899_v43 = vmul.f32 0.1, %v835_v39  ;;  %v3456_v12 = vcombine.low %v1790_v31, %v1804_v7  ;;  %v5644_v19 = vpop.f32.mrb[2].mxu1  ;;  %v5646_v59 = vpop.f32.mrb[4].mxu0 }
 0x10a   :  { %v1168_v24 = vsel %vm1104_vm13, %v1072_v11, %v1136_v27  ;;  %vm869_vm5 = vcmp.ge.f32.partialorder %v837_v60, 0.0  ;;  %v901_v44 = vmul.f32 0.1, %v837_v60  ;;  %v1822_v48 = vrot.slane %v1820_v37, 4  ;;  %v5650_v0 = vpop.f32.mrb[3].mxu1  ;;  %v5652_v30 = vpop.f32.mrb[5].mxu0 }
 0x10b   :  { %v3757_v20 = vpack.c.bf16 %v1168_v24, %v1166_v62  ;;  %v931_v51 = vsel %vm867_vm14, %v835_v39, %v899_v43  ;;  %2967 = vmatprep.mubr.bf16.mxu0 %v3456_v12  ;;  %v1825_v53 = vrot.slane %v1823_v41, 5  ;;  %v492_v8 = vunpack.c.l.bf16 %v123_v45  ;;  %v5658_v15 = vpop.f32.mrb[6].mxu0  ;;  %v38_v62 = vld [vmem:[%s5873_s0 + $0x44] sm:$0x1] }
 0x10c   :  { %v933_v13 = vsel %vm869_vm5, %v837_v60, %v901_v44  ;;  %v963_v28 = vsel %vm4563_vm7, %v931_v51, 0.0  ;;  %v5662_v46 = vpack.c.bf16 %v5506_v14, %v5506_v14  ;;  %v1010_v21 = vunpack.c.h.bf16 %v153_v34  ;;  %v5668_v33 = vpop.f32.mrb[7].mxu0  ;;  %v106_v44 = vld [vmem:[%s5873_s0 + $0x164] sm:$0x1] }
 0x10d   :  { %3758 = vmatmul.mubr.msk.bf16.gmra.mrb[56].mxu0 %vm4608_vm10, %v3757_v20  ;;  %v965_v37 = vsel %vm4563_vm7, %v933_v13, 0.0  ;;  %v3627_v2 = vpack.c.bf16 %v963_v28, %v963_v28  ;;  %v1826_v25 = vor.u32 %v1825_v53, %v1822_v48  ;;  %v528_v41 = vmul.f32 %v5415_v58, %v492_v8  ;;  %v5986_v48 = vld [vmem:[#allocation3_spill] sm:$0xff]  ;;  %v5987_v13 = vld [vmem:[#allocation2_spill] sm:$0xff] }
 0x10e   :  { %v3629_v17 = vpack.c.bf16 %v965_v37, %v965_v37  ;;  %v1012_v26 = vunpack.c.h.bf16 %v123_v45  ;;  %v1813_v32 = vrot.slane %v1812_v40, 4  ;;  %v1042_v14 = vmul.f32 %v5415_v58, %v1010_v21  ;;  %v5988_v8 = vld [vmem:[#allocation15_spill] sm:$0xff]  ;;  %v5989_v37 = vld [vmem:[#allocation10_spill] sm:$0xff] }
 0x10f   :  { %v1815_v16 = vshll.u32 %v3627_v2, 16  ;;  %v193_v5 = vunpack.c.l.bf16 %v153_v34  ;;  %v1827_v22 = vrot.slane %v1826_v25, 4  ;;  %v564_v50 = vadd.f32 %v5409_v9, %v528_v41  ;;  %v5985_v34 = vld [vmem:[#allocation23_spill] sm:$0xff] }
 0x110   :  { %v1829_v49 = vshll.u32 %v3629_v17, 16  ;;  %v1044_v3 = vmul.f32 %v5415_v58, %v1012_v26  ;;  %v1844_v47 = vshrl.u32 %v5662_v46, 16  ;;  %v1074_v11 = vadd.f32 %v5409_v9, %v1042_v14  ;;  %v5990_v21 = vld [vmem:[#allocation7_spill] sm:$0xff]  ;;  %v5991_v17 = vld [vmem:[#allocation6_spill] sm:$0xff] }
 0x111   :  { %v1817_v54 = vrot.slane %v1815_v16, 5  ;;  %v235_v63 = vmul.f32 %v5415_v58, %v193_v5  ;;  %vm600_vm6 = vcmp.ge.f32.partialorder %v564_v50, 0.0  ;;  %v636_v56 = vmul.f32 0.1, %v564_v50 }
 0x112   :  { %v1831_v52 = vrot.slane %v1829_v49, 5  ;;  %v1076_v61 = vadd.f32 %v5409_v9, %v1044_v3  ;;  %vm1106_vm8 = vcmp.ge.f32.partialorder %v1074_v11, 0.0  ;;  %v1138_v31 = vmul.f32 0.1, %v1074_v11  ;;  %v5992_v49 = vld [vmem:[#allocation26_spill] sm:$0xff] }
 0x113   :  { %v1818_v39 = vsel %vm4571_vm9, %v1813_v32, %v1817_v54  ;;  %v277_v27 = vadd.f32 %v5409_v9, %v235_v63  ;;  %v672_v45 = vsel %vm600_vm6, %v564_v50, %v636_v56  ;;  %v1847_v20 = vshll.u32 %v5662_v46, 16 }
 0x114   :  { %v1832_v60 = vsel %vm4571_vm9, %v1827_v22, %v1831_v52  ;;  %vm1108_vm11 = vcmp.ge.f32.partialorder %v1076_v61, 0.0  ;;  %v1140_v7 = vmul.f32 0.1, %v1076_v61  ;;  %v3805_v12 = vpack.c.bf16 %v672_v45, %v5985_v34 }
 0x115   :  { %v3457_v43 = vcombine.low %v1818_v39, %v1832_v60  ;;  %v1170_v24 = vsel %vm1106_vm8, %v1074_v11, %v1138_v31  ;;  %vm313_vm12 = vcmp.ge.f32.partialorder %v277_v27, 0.0  ;;  %v349_v40 = vmul.f32 0.1, %v277_v27 }
 0x116   :  { %v1172_v51 = vsel %vm1108_vm11, %v1076_v61, %v1140_v7  ;;  %v3474_v28 = vcombine.low %v5987_v13, %v5986_v48  ;;  %3806 = vmatprep.mubr.msk.bf16.mxu1 %vm4608_vm10, %v3805_v12  ;;  %v3478_v2 = vcombine.low %v5989_v37, %v5988_v8  ;;  %v3476_v25 = vcombine.low %v5991_v17, %v5990_v21  ;;  %v3959_v26 = vpop.f32.mrb[4].mxu1 }
 0x117   :  { %2975 = vmatprep.mubr.bf16.mxu0 %v3457_v43  ;;  %v3760_v53 = vpack.c.bf16 %v1172_v51, %v1170_v24  ;;  %v176_v41 = vunpack.c.l.bf16 %v38_v62  ;;  %v385_v32 = vsel %vm313_vm12, %v277_v27, %v349_v40  ;;  %v194_v46 = vunpack.c.l.bf16 %v106_v44  ;;  %v3960_v5 = vpop.f32.mrb[5].mxu1 }
 0x118   :  { %v3891_v16 = vadd.f32 %v5588_v18, %v5586_v38  ;;  %v3955_v14 = vadd.f32 %v5642_v57, %v5635_v55  ;;  %v438_v22 = vsel %vm4523_vm2, %v385_v32, 0.0  ;;  %v3808_v50 = vpack.c.bf16 %v385_v32, %v5992_v49  ;;  %v3962_v11 = vpop.f32.mrb[6].mxu1 }
 0x119   :  { %3761 = vmatmul.mubr.msk.bf16.gmra.mrb[60].mxu0 %vm4608_vm10, %v3760_v53  ;;  %v218_v3 = vmul.f32 %v5415_v58, %v176_v41  ;;  %v1846_v54 = vrot.slane %v1844_v47, 4  ;;  %v3632_v63 = vpack.c.bf16 %v438_v22, %v438_v22  ;;  %v236_v38 = vmul.f32 %v5415_v58, %v194_v46  ;;  %v3963_v4 = vpop.f32.mrb[7].mxu1  ;;  %v5998_v53 = vld [vmem:[#allocation22_spill] sm:$0xff]  ;;  %v6000_v46 = vld [vmem:[#allocation8_spill] sm:$0xff] }
 0x11a   :  { %4161 = vmatprep.mubr.bf16.mxu0 %v3474_v28  ;;  %v5710_v18 = vadd.f32 %v3955_v14, %v3891_v16  ;;  %v3894_v55 = vadd.f32 %v5606_v35, %v5597_v36  ;;  %3809 = vmatmul.mubr.msk.bf16.gmra.mrb[60].mxu1 %vm4537_vm3, %v3808_v50  ;;  %v1849_v57 = vrot.slane %v1847_v20, 5  ;;  %v3958_v47 = vadd.f32 %v5650_v0, %v5644_v19  ;;  %v5997_v28 = vld [vmem:[#allocation16_spill] sm:$0xff] }
 0x11b   :  { %v260_v42 = vadd.f32 %v5409_v9, %v218_v3  ;;  %v3897_v52 = vadd.f32 %v5652_v30, %v5646_v59  ;;  %v1858_v56 = vshrl.u32 %v3632_v63, 16  ;;  %v1861_v58 = vshll.u32 %v3632_v63, 16  ;;  %4169 = vmatprep.mubr.bf16.mxu1 %v3478_v2 }
 0x11c   :  { %v278_v61 = vadd.f32 %v5409_v9, %v236_v38  ;;  %v3961_v39 = vadd.f32 %v3960_v5, %v3959_v26  ;;  %v5722_v35 = vadd.f32 %v3958_v47, %v3894_v55  ;;  %v3900_v29 = vadd.f32 %v5668_v33, %v5658_v15  ;;  %v3901_v45 = vpop.f32.mrb[8].mxu0  ;;  %v5993_v9 = vld [vmem:[#allocation24_spill] sm:$0xff]  ;;  %v5995_v33 = vld [vmem:[#allocation5_spill] sm:$0xff] }
 0x11d   :  { %vm296_vm2 = vcmp.ge.f32.partialorder %v260_v42, 0.0  ;;  %v332_v36 = vmul.f32 0.1, %v260_v42  ;;  %v1860_v27 = vrot.slane %v1858_v56, 4  ;;  %v1863_v19 = vrot.slane %v1861_v58, 5  ;;  %v3902_v12 = vpop.f32.mrb[9].mxu0 }
 0x11e   :  { %vm314_vm3 = vcmp.ge.f32.partialorder %v278_v61, 0.0  ;;  %v350_v31 = vmul.f32 0.1, %v278_v61  ;;  %v1850_v60 = vor.u32 %v1849_v57, %v1846_v54  ;;  %v5726_v59 = vadd.f32 %v3961_v39, %v3897_v52  ;;  %v5994_v15 = vld [vmem:[#allocation4_spill] sm:$0xff]  ;;  %v3904_v48 = vpop.f32.mrb[10].mxu0 }
 0x11f   :  { %v368_v0 = vsel %vm296_vm2, %v260_v42, %v332_v36  ;;  %v3964_v30 = vadd.f32 %v3963_v4, %v3962_v11  ;;  %v3480_v7 = vcombine.low %v5993_v9, %v5268_v6  ;;  %v1864_v34 = vor.u32 %v1863_v19, %v1860_v27  ;;  %v3905_v13 = vpop.f32.mrb[11].mxu0 }
 0x120   :  { %v421_v62 = vsel %vm4563_vm7, %v368_v0, 0.0  ;;  %v386_v43 = vsel %vm314_vm3, %v278_v61, %v350_v31  ;;  %v5996_v24 = vcombine.low %v5994_v15, %v5995_v33  ;;  %v3903_v40 = vadd.f32 %v3902_v12, %v3901_v45 }
 0x121   :  { %v3631_v44 = vpack.c.bf16 %v421_v62, %v421_v62  ;;  %v439_v20 = vsel %vm4563_vm7, %v386_v43, 0.0  ;;  %v5737_v51 = vadd.f32 %v3964_v30, %v3900_v29  ;;  %v5999_v8 = vcombine.low %v5997_v28, %v5998_v53 }
 0x122   :  { %4162 = vmatmul.mubr.bf16.vlgmr.msra.gmra.mrb[64].mxu0 %v5996_v24  ;;  %v3633_v6 = vpack.c.bf16 %v439_v20, %v439_v20  ;;  %v1851_v37 = vrot.slane %v1850_v60, 4  ;;  %v3906_v21 = vadd.f32 %v3905_v13, %v3904_v48  ;;  %v1865_v17 = vrot.slane %v1864_v34, 4 }
 0x123   :  { %4165 = vmatprep.mubr.bf16.mxu0 %v3476_v25  ;;  %4170 = vmatmul.mubr.bf16.vlgmr.msra.gmra.mrb[64].mxu1 %v5999_v8  ;;  %v1853_v2 = vshll.u32 %v3631_v44, 16 }
 0x124   :  { %4173 = vmatprep.mubr.bf16.mxu1 %v3480_v7  ;;  %v1867_v41 = vshll.u32 %v3633_v6, 16 }
 0x125   :  { %v1855_v26 = vrot.slane %v1853_v2, 5 }
 0x126   :  { %v1869_v1 = vrot.slane %v1867_v41, 5 }
 0x127   :  { %v1856_v32 = vsel %vm4571_vm9, %v1851_v37, %v1855_v26 }
 0x128   :  { %v3477_v16 = vcombine.low %v6000_v46, %v1856_v32  ;;  %v1870_v25 = vsel %vm4571_vm9, %v1865_v17, %v1869_v1 }
 0x129   :  { %v3481_v14 = vcombine.low %v5279_v23, %v1870_v25  ;;  %v3965_v5 = vpop.f32.mrb[8].mxu1 }
 0x12a   :  { %4166 = vmatmul.mubr.bf16.gmra.mrb[68].mxu0 %v3477_v16  ;;  %v3966_v22 = vpop.f32.mrb[9].mxu1 }
 0x12b   :  { %4174 = vmatmul.mubr.bf16.gmra.mrb[68].mxu1 %v3481_v14  ;;  %v3967_v49 = vadd.f32 %v3966_v22, %v3965_v5  ;;  %v3968_v50 = vpop.f32.mrb[10].mxu1 }
 0x12c   :  { %v3969_v3 = vpop.f32.mrb[11].mxu1 }
 0x12d   :  { %v5748_v54 = vadd.f32 %v3967_v49, %v3903_v40  ;;  %v3970_v11 = vadd.f32 %v3969_v3, %v3968_v50 }
 0x12f   :  { %v5750_v63 = vadd.f32 %v3970_v11, %v3906_v21 }
 0x131   :  { %v3907_v38 = vpop.f32.mrb[12].mxu0 }
 0x132   :  { %v3908_v55 = vpop.f32.mrb[13].mxu0 }
 0x133   :  { %v3909_v4 = vadd.f32 %v3908_v55, %v3907_v38  ;;  %v3910_v42 = vpop.f32.mrb[14].mxu0 }
 0x134   :  { %v3911_v10 = vpop.f32.mrb[15].mxu0 }
 0x135   :  { %v3912_v57 = vadd.f32 %v3911_v10, %v3910_v42  ;;  %v4273_v10 = vmov 0.0  }
 0x136   :  { %3262 = vst [vmem:[%s5876_s5] sm:$0x1] %v4273_v10  ;;  %3263 = vst [vmem:[%s5877_s6] sm:$0x1] %v4273_v10 }
 0x13e   :  { %v3971_v47 = vpop.f32.mrb[12].mxu1 }
 0x13f   :  { %v3972_v23 = vpop.f32.mrb[13].mxu1 }
 0x140   :  { %v3973_v52 = vadd.f32 %v3972_v23, %v3971_v47  ;;  %v3974_v56 = vpop.f32.mrb[14].mxu1 }
 0x141   :  { %v3975_v58 = vpop.f32.mrb[15].mxu1 }
 0x142   :  { %v5752_v61 = vadd.f32 %v3973_v52, %v3909_v4  ;;  %v3976_v39 = vadd.f32 %v3975_v58, %v3974_v56 }
 0x144   :  { %v5754_v36 = vadd.f32 %v3976_v39, %v3912_v57 }
 0x148   :  { %v3913_v29 = vpop.f32.mrb[16].mxu0 }
 0x149   :  { %v3914_v31 = vpop.f32.mrb[17].mxu0 }
 0x14a   :  { %v3915_v27 = vadd.f32 %v3914_v31, %v3913_v29  ;;  %v3916_v19 = vpop.f32.mrb[18].mxu0 }
 0x14b   :  { %v3917_v0 = vpop.f32.mrb[19].mxu0 }
 0x14c   :  { %v3918_v60 = vadd.f32 %v3917_v0, %v3916_v19 }
 0x150   :  { %v3977_v30 = vpop.f32.mrb[16].mxu1 }
 0x151   :  { %v3978_v45 = vpop.f32.mrb[17].mxu1 }
 0x152   :  { %v3979_v9 = vadd.f32 %v3978_v45, %v3977_v30  ;;  %v3980_v7 = vpop.f32.mrb[18].mxu1 }
 0x153   :  { %v3981_v62 = vpop.f32.mrb[19].mxu1  ;;  %v3919_v12 = vpop.f32.mrb[20].mxu0 }
 0x154   :  { %v5756_v43 = vadd.f32 %v3979_v9, %v3915_v27  ;;  %v3982_v34 = vadd.f32 %v3981_v62, %v3980_v7  ;;  %v3920_v15 = vpop.f32.mrb[21].mxu0 }
 0x155   :  { %v3921_v24 = vadd.f32 %v3920_v15, %v3919_v12  ;;  %v3922_v44 = vpop.f32.mrb[22].mxu0 }
 0x156   :  { %v5758_v33 = vadd.f32 %v3982_v34, %v3918_v60  ;;  %v3923_v20 = vpop.f32.mrb[23].mxu0 }
 0x157   :  { %v3924_v40 = vadd.f32 %v3923_v20, %v3922_v44 }
 0x160   :  { %v3983_v48 = vpop.f32.mrb[20].mxu1 }
 0x161   :  { %v3984_v6 = vpop.f32.mrb[21].mxu1 }
 0x162   :  { %v3985_v13 = vadd.f32 %v3984_v6, %v3983_v48  ;;  %v3986_v28 = vpop.f32.mrb[22].mxu1 }
 0x163   :  { %v3987_v53 = vpop.f32.mrb[23].mxu1 }
 0x164   :  { %v5760_v8 = vadd.f32 %v3985_v13, %v3921_v24  ;;  %v3988_v37 = vadd.f32 %v3987_v53, %v3986_v28 }
 0x166   :  { %v5762_v2 = vadd.f32 %v3988_v37, %v3924_v40 }
 0x167   :  { %v3925_v21 = vpop.f32.mrb[24].mxu0 }
 0x168   :  { %v3926_v17 = vpop.f32.mrb[25].mxu0 }
 0x169   :  { %v3927_v41 = vadd.f32 %v3926_v17, %v3925_v21  ;;  %v3928_v26 = vpop.f32.mrb[26].mxu0 }
 0x16a   :  { %v3929_v1 = vpop.f32.mrb[27].mxu0 }
 0x16b   :  { %v3930_v32 = vadd.f32 %v3929_v1, %v3928_v26 }
 0x174   :  { %v3989_v46 = vpop.f32.mrb[24].mxu1 }
 0x175   :  { %v3990_v16 = vpop.f32.mrb[25].mxu1 }
 0x176   :  { %v3991_v25 = vadd.f32 %v3990_v16, %v3989_v46  ;;  %v3992_v14 = vpop.f32.mrb[26].mxu1 }
 0x177   :  { %v3993_v5 = vpop.f32.mrb[27].mxu1 }
 0x178   :  { %v5764_v22 = vadd.f32 %v3991_v25, %v3927_v41  ;;  %v3994_v49 = vadd.f32 %v3993_v5, %v3992_v14 }
 0x17a   :  { %v5766_v50 = vadd.f32 %v3994_v49, %v3930_v32 }
 0x17d   :  { %v3931_v3 = vpop.f32.mrb[28].mxu0 }
 0x17e   :  { %v3932_v11 = vpop.f32.mrb[29].mxu0 }
 0x17f   :  { %v3933_v38 = vadd.f32 %v3932_v11, %v3931_v3  ;;  %v3934_v55 = vpop.f32.mrb[30].mxu0 }
 0x180   :  { %v3935_v4 = vpop.f32.mrb[31].mxu0 }
 0x181   :  { %v3936_v42 = vadd.f32 %v3935_v4, %v3934_v55 }
 0x18a   :  { %v3995_v57 = vpop.f32.mrb[28].mxu1 }
 0x18b   :  { %v3996_v47 = vpop.f32.mrb[29].mxu1 }
 0x18c   :  { %v3997_v23 = vadd.f32 %v3996_v47, %v3995_v57  ;;  %v3998_v52 = vpop.f32.mrb[30].mxu1 }
 0x18d   :  { %v3999_v56 = vpop.f32.mrb[31].mxu1 }
 0x18e   :  { %v5774_v58 = vadd.f32 %v3997_v23, %v3933_v38  ;;  %v4000_v39 = vadd.f32 %v3999_v56, %v3998_v52 }
 0x190   :  { %v5776_v29 = vadd.f32 %v4000_v39, %v3936_v42 }
 0x192   :  { %v4017_v31 = vpop.f32.mrb[32].mxu0 }
 0x193   :  { %v4018_v19 = vpop.f32.mrb[33].mxu0 }
 0x194   :  { %v4019_v60 = vadd.f32 %v4018_v19, %v4017_v31  ;;  %v4020_v30 = vpop.f32.mrb[34].mxu0 }
 0x195   :  { %v4081_v27 = vpop.f32.mrb[32].mxu1  ;;  %v4021_v7 = vpop.f32.mrb[35].mxu0 }
 0x196   :  { %v4082_v0 = vpop.f32.mrb[33].mxu1  ;;  %v2922_v34 = vadd.f32 %v4019_v60, %v5710_v18  ;;  %v4022_v12 = vadd.f32 %v4021_v7, %v4020_v30 }
 0x197   :  { %v4083_v45 = vadd.f32 %v4082_v0, %v4081_v27  ;;  %v4084_v9 = vpop.f32.mrb[34].mxu1 }
 0x198   :  { %v4085_v62 = vpop.f32.mrb[35].mxu1  ;;  %v2925_v24 = vadd.f32 %v4022_v12, %v5722_v35 }
 0x199   :  { %v4086_v15 = vadd.f32 %v4085_v62, %v4084_v9  ;;  %v5780_v44 = vadd.f32 %v4083_v45, %v2922_v34 }
 0x19b   :  { %v5782_v40 = vadd.f32 %v4086_v15, %v2925_v24 }
 0x19d   :  { %v4087_v20 = vpop.f32.mrb[36].mxu1 }
 0x19e   :  { %v4088_v48 = vpop.f32.mrb[37].mxu1  ;;  %v4023_v28 = vpop.f32.mrb[36].mxu0 }
 0x19f   :  { %v4089_v6 = vadd.f32 %v4088_v48, %v4087_v20  ;;  %v4090_v13 = vpop.f32.mrb[38].mxu1  ;;  %v4024_v37 = vpop.f32.mrb[37].mxu0 }
 0x1a0   :  { %v4091_v53 = vpop.f32.mrb[39].mxu1  ;;  %v4025_v17 = vadd.f32 %v4024_v37, %v4023_v28  ;;  %v4026_v41 = vpop.f32.mrb[38].mxu0 }
 0x1a1   :  { %v4092_v21 = vadd.f32 %v4091_v53, %v4090_v13  ;;  %v4027_v26 = vpop.f32.mrb[39].mxu0 }
 0x1a2   :  { %v2930_v18 = vadd.f32 %v4025_v17, %v5726_v59  ;;  %v4028_v1 = vadd.f32 %v4027_v26, %v4026_v41 }
 0x1a4   :  { %v2933_v35 = vadd.f32 %v4028_v1, %v5737_v51  ;;  %v5786_v16 = vadd.f32 %v4089_v6, %v2930_v18 }
 0x1a5   :  { %v4093_v32 = vpop.f32.mrb[40].mxu1 }
 0x1a6   :  { %v4094_v46 = vpop.f32.mrb[41].mxu1  ;;  %v5788_v49 = vadd.f32 %v4092_v21, %v2933_v35 }
 0x1a7   :  { %v4095_v25 = vadd.f32 %v4094_v46, %v4093_v32  ;;  %v4096_v14 = vpop.f32.mrb[42].mxu1 }
 0x1a8   :  { %v4097_v5 = vpop.f32.mrb[43].mxu1 }
 0x1a9   :  { %v4098_v3 = vadd.f32 %v4097_v5, %v4096_v14 }
 0x1aa   :  { %v4029_v11 = vpop.f32.mrb[40].mxu0 }
 0x1ab   :  { %v4030_v38 = vpop.f32.mrb[41].mxu0 }
 0x1ac   :  { %v4031_v55 = vadd.f32 %v4030_v38, %v4029_v11  ;;  %v4032_v4 = vpop.f32.mrb[42].mxu0 }
 0x1ad   :  { %v4033_v42 = vpop.f32.mrb[43].mxu0 }
 0x1ae   :  { %v2938_v59 = vadd.f32 %v4031_v55, %v5748_v54  ;;  %v4034_v10 = vadd.f32 %v4033_v42, %v4032_v4 }
 0x1b0   :  { %v2941_v57 = vadd.f32 %v4034_v10, %v5750_v63  ;;  %v5792_v51 = vadd.f32 %v4095_v25, %v2938_v59 }
 0x1b2   :  { %v5794_v47 = vadd.f32 %v4098_v3, %v2941_v57 }
 0x1b7   :  { %v4035_v23 = vpop.f32.mrb[44].mxu0 }
 0x1b8   :  { %v4036_v52 = vpop.f32.mrb[45].mxu0 }
 0x1b9   :  { %v4037_v56 = vadd.f32 %v4036_v52, %v4035_v23  ;;  %v4038_v39 = vpop.f32.mrb[46].mxu0  ;;  %v4099_v31 = vpop.f32.mrb[44].mxu1 }
 0x1ba   :  { %v4039_v27 = vpop.f32.mrb[47].mxu0  ;;  %v4100_v19 = vpop.f32.mrb[45].mxu1 }
 0x1bb   :  { %v2946_v0 = vadd.f32 %v4037_v56, %v5752_v61  ;;  %v4040_v60 = vadd.f32 %v4039_v27, %v4038_v39  ;;  %v4101_v30 = vadd.f32 %v4100_v19, %v4099_v31  ;;  %v4102_v45 = vpop.f32.mrb[46].mxu1 }
 0x1bc   :  { %v4103_v54 = vpop.f32.mrb[47].mxu1 }
 0x1bd   :  { %v2949_v9 = vadd.f32 %v4040_v60, %v5754_v36  ;;  %v4104_v63 = vadd.f32 %v4103_v54, %v4102_v45  ;;  %v5798_v7 = vadd.f32 %v4101_v30, %v2946_v0 }
 0x1bf   :  { %v5800_v62 = vadd.f32 %v4104_v63, %v2949_v9 }
 0x1c1   :  { %v4105_v34 = vpop.f32.mrb[48].mxu1 }
 0x1c2   :  { %v4106_v12 = vpop.f32.mrb[49].mxu1 }
 0x1c3   :  { %v4107_v15 = vadd.f32 %v4106_v12, %v4105_v34  ;;  %v4108_v24 = vpop.f32.mrb[50].mxu1 }
 0x1c4   :  { %v4109_v20 = vpop.f32.mrb[51].mxu1 }
 0x1c5   :  { %v4110_v48 = vadd.f32 %v4109_v20, %v4108_v24 }
 0x1c8   :  { %v4041_v6 = vpop.f32.mrb[48].mxu0 }
 0x1c9   :  { %v4042_v13 = vpop.f32.mrb[49].mxu0  ;;  %v4111_v53 = vpop.f32.mrb[52].mxu1 }
 0x1ca   :  { %v4043_v61 = vadd.f32 %v4042_v13, %v4041_v6  ;;  %v4044_v28 = vpop.f32.mrb[50].mxu0  ;;  %v4112_v21 = vpop.f32.mrb[53].mxu1 }
 0x1cb   :  { %v4045_v37 = vpop.f32.mrb[51].mxu0  ;;  %v4113_v41 = vadd.f32 %v4112_v21, %v4111_v53  ;;  %v4114_v26 = vpop.f32.mrb[54].mxu1 }
 0x1cc   :  { %v2954_v36 = vadd.f32 %v4043_v61, %v5756_v43  ;;  %v4046_v17 = vadd.f32 %v4045_v37, %v4044_v28  ;;  %v4115_v18 = vpop.f32.mrb[55].mxu1 }
 0x1cd   :  { %v4116_v32 = vadd.f32 %v4115_v18, %v4114_v26 }
 0x1ce   :  { %v2957_v1 = vadd.f32 %v4046_v17, %v5758_v33  ;;  %v3051_v35 = vadd.f32 %v4107_v15, %v2954_v36 }
 0x1d0   :  { %v5804_v46 = vadd.f32 %v4110_v48, %v2957_v1 }
 0x1d3   :  { %v4047_v25 = vpop.f32.mrb[52].mxu0 }
 0x1d4   :  { %v4048_v14 = vpop.f32.mrb[53].mxu0 }
 0x1d5   :  { %v4049_v5 = vadd.f32 %v4048_v14, %v4047_v25  ;;  %v4050_v3 = vpop.f32.mrb[54].mxu0 }
 0x1d6   :  { %v4051_v11 = vpop.f32.mrb[55].mxu0 }
 0x1d7   :  { %v4117_v38 = vpop.f32.mrb[56].mxu1  ;;  %v2962_v55 = vadd.f32 %v4049_v5, %v5760_v8  ;;  %v4052_v4 = vadd.f32 %v4051_v11, %v4050_v3 }
 0x1d8   :  { %v4118_v43 = vpop.f32.mrb[57].mxu1 }
 0x1d9   :  { %v4119_v42 = vadd.f32 %v4118_v43, %v4117_v38  ;;  %v4120_v59 = vpop.f32.mrb[58].mxu1  ;;  %v2965_v10 = vadd.f32 %v4052_v4, %v5762_v2  ;;  %v3059_v33 = vadd.f32 %v4113_v41, %v2962_v55 }
 0x1da   :  { %v4121_v57 = vpop.f32.mrb[59].mxu1 }
 0x1db   :  { %v4122_v23 = vadd.f32 %v4121_v57, %v4120_v59  ;;  %v3062_v52 = vadd.f32 %v4116_v32, %v2965_v10 }
 0x1e0   :  { %v4053_v56 = vpop.f32.mrb[56].mxu0 }
 0x1e1   :  { %v4054_v39 = vpop.f32.mrb[57].mxu0 }
 0x1e2   :  { %v4055_v31 = vadd.f32 %v4054_v39, %v4053_v56  ;;  %v4056_v27 = vpop.f32.mrb[58].mxu0 }
 0x1e3   :  { %v4057_v19 = vpop.f32.mrb[59].mxu0 }
 0x1e4   :  { %v2970_v0 = vadd.f32 %v4055_v31, %v5764_v22  ;;  %v4058_v60 = vadd.f32 %v4057_v19, %v4056_v27 }
 0x1e6   :  { %v2973_v8 = vadd.f32 %v4058_v60, %v5766_v50  ;;  %v3067_v30 = vadd.f32 %v4119_v42, %v2970_v0 }
 0x1e8   :  { %v5810_v45 = vadd.f32 %v4122_v23, %v2973_v8 }
 0x1ec   :  { %v4059_v54 = vpop.f32.mrb[60].mxu0 }
 0x1ed   :  { %v4060_v9 = vpop.f32.mrb[61].mxu0  ;;  %v4123_v34 = vpop.f32.mrb[60].mxu1 }
 0x1ee   :  { %v4061_v2 = vadd.f32 %v4060_v9, %v4059_v54  ;;  %v4062_v63 = vpop.f32.mrb[62].mxu0  ;;  %v4124_v15 = vpop.f32.mrb[61].mxu1 }
 0x1ef   :  { %v4063_v12 = vpop.f32.mrb[63].mxu0  ;;  %v4125_v48 = vadd.f32 %v4124_v15, %v4123_v34  ;;  %v4126_v6 = vpop.f32.mrb[62].mxu1 }
 0x1f0   :  { %v2978_v24 = vadd.f32 %v4061_v2, %v5774_v58  ;;  %v4064_v20 = vadd.f32 %v4063_v12, %v4062_v63  ;;  %v4127_v13 = vpop.f32.mrb[63].mxu1 }
 0x1f1   :  { %v4128_v61 = vadd.f32 %v4127_v13, %v4126_v6 }
 0x1f2   :  { %v2981_v22 = vadd.f32 %v4064_v20, %v5776_v29  ;;  %v3075_v50 = vadd.f32 %v4125_v48, %v2978_v24 }
 0x1f4   :  { %v3078_v53 = vadd.f32 %v4128_v61, %v2981_v22 }
 0x1f5   :  { %v4163_v28 = vpop.f32.mrb[64].mxu0 }
 0x1f6   :  { %v3124_v37 = vadd.f32 %v4163_v28, %v5786_v16  ;;  %v3115_v21 = vpop.f32.mrb[65].mxu0  ;;  %v4171_v36 = vpop.f32.mrb[64].mxu1 }
 0x1f7   :  { %v3116_v17 = vadd.f32 %v3115_v21, %v5780_v44  ;;  %v4164_v41 = vpop.f32.mrb[66].mxu0  ;;  %v5816_v26 = vadd.f32 %v4171_v36, %v3059_v33  ;;  %v3147_v58 = vpop.f32.mrb[65].mxu1 }
 0x1f8   :  { %v3127_v18 = vadd.f32 %v4164_v41, %v5788_v49  ;;  %v3118_v1 = vpop.f32.mrb[67].mxu0  ;;  %v3148_v32 = vadd.f32 %v3147_v58, %v3051_v35  ;;  %v4172_v25 = vpop.f32.mrb[66].mxu1  ;;  %v3291_v35 = vmul.f32 %v3124_v37, %v3124_v37 }
 0x1f9   :  { %v3119_v29 = vadd.f32 %v3118_v1, %v5782_v40  ;;  %v5820_v5 = vadd.f32 %v4172_v25, %v3062_v52  ;;  %v3150_v3 = vpop.f32.mrb[67].mxu1  ;;  %v3289_v16 = vmul.f32 %v3116_v17, %v3116_v17  ;;  %v3299_v36 = vmul.f32 %v5816_v26, %v5816_v26 }
 0x1fa   :  { %v3834_v14 = vpack.c.bf16 %v3127_v18, %v3124_v37  ;;  %v3151_v49 = vadd.f32 %v3150_v3, %v5804_v46  ;;  %v3292_v59 = vmul.f32 %v3127_v18, %v3127_v18  ;;  %v3297_v61 = vmul.f32 %v3148_v32, %v3148_v32 }
 0x1fb   :  { %v3829_v11 = vpack.c.bf16 %v3119_v29, %v3116_v17  ;;  %v3265_v38 = vadd.f32 %v3119_v29, %v3116_v17  ;;  %v3290_v55 = vmul.f32 %v3119_v29, %v3119_v29  ;;  %v3854_v44 = vpack.c.bf16 %v5820_v5, %v5816_v26 }
 0x1fc   :  { %3866 = vst [vmem:[%s5878_s4 + $0x8] sm:$0xff] %v3834_v14   ;;  %v3849_v43 = vpack.c.bf16 %v3151_v49, %v3148_v32  ;;  %v3300_v58 = vmul.f32 %v5820_v5, %v5820_v5 }
 0x1fd   :  { %3830 = vst [vmem:[%s5878_s4] sm:$0xff] %v3829_v11   ;;  %v3266_v40 = vadd.f32 %v3265_v38, %v3124_v37  ;;  %v3305_v4 = vadd.f32 %v3290_v55, %v3289_v16  ;;  %3870 = vst [vmem:[%s5878_s4 + $0x28] sm:$0xff] %v3854_v44   ;;  %v4167_v42 = vpop.f32.mrb[68].mxu0 }
 0x1fe   :  { %v3140_v57 = vadd.f32 %v4167_v42, %v5798_v7  ;;  %v4175_v33 = vpop.f32.mrb[68].mxu1  ;;  %v3131_v23 = vpop.f32.mrb[69].mxu0  ;;  %3869 = vst [vmem:[%s5878_s4 + $0x20] sm:$0xff] %v3849_v43  }
 0x1ff   :  { %v3306_v10 = vadd.f32 %v3305_v4, %v3291_v35  ;;  %v3267_v46 = vadd.f32 %v3266_v40, %v3127_v18  ;;  %v3172_v52 = vadd.f32 %v4175_v33, %v3075_v50  ;;  %v3132_v56 = vadd.f32 %v3131_v23, %v5792_v51  ;;  %v3163_v39 = vpop.f32.mrb[69].mxu1  ;;  %v4168_v31 = vpop.f32.mrb[70].mxu0  ;;  %v3264_v23 = vld [vmem:[%s5876_s5] sm:$0x1] }
 0x200   :  { %v3164_v19 = vadd.f32 %v3163_v39, %v3067_v30  ;;  %v3143_v0 = vadd.f32 %v4168_v31, %v5800_v62  ;;  %v4176_v60 = vpop.f32.mrb[70].mxu1  ;;  %v3134_v8 = vpop.f32.mrb[71].mxu0  ;;  %v3295_v48 = vmul.f32 %v3140_v57, %v3140_v57 }
 0x201   :  { %v3307_v27 = vadd.f32 %v3306_v10, %v3292_v59  ;;  %v3268_v54 = vadd.f32 %v3267_v46, %v3132_v56  ;;  %v3293_v7 = vmul.f32 %v3132_v56, %v3132_v56  ;;  %v3175_v9 = vadd.f32 %v4176_v60, %v3078_v53  ;;  %v3166_v2 = vpop.f32.mrb[71].mxu1 }
 0x202   :  { %v3844_v63 = vpack.c.bf16 %v3143_v0, %v3140_v57  ;;  %v3135_v34 = vadd.f32 %v3134_v8, %v5794_v47  ;;  %v3167_v24 = vadd.f32 %v3166_v2, %v5810_v45  ;;  %v3296_v45 = vmul.f32 %v3143_v0, %v3143_v0 }
 0x203   :  { %v3308_v12 = vadd.f32 %v3307_v27, %v3293_v7  ;;  %v3864_v15 = vpack.c.bf16 %v3175_v9, %v3172_v52  ;;  %v3298_v53 = vmul.f32 %v3151_v49, %v3151_v49  ;;  %v3301_v25 = vmul.f32 %v3164_v19, %v3164_v19 }
 0x204   :  { %3868 = vst [vmem:[%s5878_s4 + $0x18] sm:$0xff] %v3844_v63   ;;  %v3839_v51 = vpack.c.bf16 %v3135_v34, %v3132_v56  ;;  %v3269_v30 = vadd.f32 %v3268_v54, %v3135_v34  ;;  %v3294_v62 = vmul.f32 %v3135_v34, %v3135_v34  ;;  %v3859_v20 = vpack.c.bf16 %v3167_v24, %v3164_v19  ;;  %v3288_v56 = vld [vmem:[%s5877_s6] sm:$0x1] }
 0x205   :  { %3872 = vst [vmem:[%s5878_s4 + $0x38] sm:$0xff] %v3864_v15   ;;  %v3302_v3 = vmul.f32 %v3167_v24, %v3167_v24  ;;  %v3303_v11 = vmul.f32 %v3172_v52, %v3172_v52  ;;  %v3304_v44 = vmul.f32 %v3175_v9, %v3175_v9 }
 0x206   :  { %3867 = vst [vmem:[%s5878_s4 + $0x10] sm:$0xff] %v3839_v51   ;;  %v3270_v47 = vadd.f32 %v3269_v30, %v3140_v57  ;;  %v3309_v6 = vadd.f32 %v3308_v12, %v3294_v62  ;;  %3871 = vst [vmem:[%s5878_s4 + $0x30] sm:$0xff] %v3859_v20  }
 0x208   :  { %v3271_v13 = vadd.f32 %v3270_v47, %v3143_v0  ;;  %v3310_v22 = vadd.f32 %v3309_v6, %v3295_v48 }
 0x20a   :  { %v3272_v50 = vadd.f32 %v3271_v13, %v3148_v32  ;;  %v3311_v28 = vadd.f32 %v3310_v22, %v3296_v45 }
 0x20c   :  { %v3312_v37 = vadd.f32 %v3311_v28, %v3297_v61  ;;  %v3273_v21 = vadd.f32 %v3272_v50, %v3151_v49 }
 0x20e   :  { %v3274_v17 = vadd.f32 %v3273_v21, %v5816_v26  ;;  %v3313_v41 = vadd.f32 %v3312_v37, %v3298_v53 }
 0x210   :  { %v3275_v18 = vadd.f32 %v3274_v17, %v5820_v5  ;;  %v3314_v1 = vadd.f32 %v3313_v41, %v3299_v36 }
 0x212   :  { %v3276_v29 = vadd.f32 %v3275_v18, %v3164_v19  ;;  %v3315_v14 = vadd.f32 %v3314_v1, %v3300_v58 }
 0x214   :  { %v3277_v32 = vadd.f32 %v3276_v29, %v3167_v24  ;;  %v3316_v16 = vadd.f32 %v3315_v14, %v3301_v25 }
 0x216   :  { %v3278_v38 = vadd.f32 %v3277_v32, %v3172_v52  ;;  %v3317_v55 = vadd.f32 %v3316_v16, %v3302_v3 }
 0x218   :  { %v3279_v49 = vadd.f32 %v3278_v38, %v3175_v9  ;;  %v3318_v35 = vadd.f32 %v3317_v55, %v3303_v11 }
 0x21a   :  { %v3280_v26 = vrot.slane %v3279_v49, 4  ;;  %v3319_v40 = vadd.f32 %v3318_v35, %v3304_v44 }
 0x21c   :  { %v3281_v4 = vadd.f32 %v3280_v26, %v3279_v49  ;;  %v3320_v43 = vrot.slane %v3319_v40, 4 }
 0x21e   :  { %v3282_v42 = vrot.slane %v3281_v4, 2  ;;  %v3321_v59 = vadd.f32 %v3320_v43, %v3319_v40 }
 0x220   :  { %v3283_v5 = vadd.f32 %v3282_v42, %v3281_v4  ;;  %v3322_v10 = vrot.slane %v3321_v59, 2 }
 0x222   :  { %v3284_v57 = vrot.slane %v3283_v5, 1  ;;  %v3323_v33 = vadd.f32 %v3322_v10, %v3321_v59 }
 0x224   :  { %v3285_v46 = vadd.f32 %v3284_v57, %v3283_v5  ;;  %v3324_v52 = vrot.slane %v3323_v33, 1 }
 0x226   :  { %v3286_v39 = vadd.f32 %v3285_v46, %v3264_v23  ;;  %v3325_v31 = vadd.f32 %v3324_v52, %v3323_v33 }
 0x228   :  { %3287 = vst [vmem:[%s5876_s5] sm:$0x1] %v3286_v39  ;;  %v3326_v27 = vadd.f32 %v3325_v31, %v3288_v56 }
 0x22a   :  { %3327 = vst [vmem:[%s5877_s6] sm:$0x1] %v3326_v27 }

</bundles_post_ra>
